<compile_context>
chip_gen: v7x
topology: tpu7x:2x2x1
jax: 0.10.0
libtpu: 0.0.40
codegen_flags: <defaults>
</compile_context>

<pallas_src>
import functools

import jax
import jax.numpy as jnp
from jax.experimental import pallas as pl
from jax.experimental.pallas import tpu as pltpu


def _round_up(x, m):
    return ((x + m - 1) // m) * m


def _pick_tile(dim, preferred):
    for t in preferred:
        if t <= dim and dim % t == 0:
            return t
    return dim


# ---------------------------------------------------------------------------
# Kernel 1: fused conv3x3(pad=1) + BatchNorm(folded) + ReLU + MaxPool2d(2)
# ---------------------------------------------------------------------------
#
# Inputs are the zero-padded image with the 3 ky taps stacked along channels
# and split into even / odd padded columns, flattened to rows per batch elem:
#   xe[h*We + j, ky*Cin + c] = padded_img[h + ky, 2*j,     c]
#   xo[h*We + j, ky*Cin + c] = padded_img[h + ky, 2*j + 1, c]
# Conv output column w = 2j   reads padded cols (2j,   2j+1, 2j+2) = Xe[j], Xo[j], Xe[j+1]
# Conv output column w = 2j+1 reads padded cols (2j+1, 2j+2, 2j+3) = Xo[j], Xe[j+1], Xo[j+1]
# so every kx tap is a contiguous row-slice of xe/xo followed by one plain 2-D
# matmul over K = 3*Cin, and max(even, odd) is exactly the W half of
# MaxPool2d(2); the H half is a row-group max in the epilogue.

def _conv_bn_relu_pool_kernel(xe_ref, xo_ref, w_ref, b_ref, o_ref,
                              *, H, We, Wo, Cout, B_blk):
    Ho = H // 2
    HW = H * We
    w0 = w_ref[0]            # (K, Cout), kx = 0
    w1 = w_ref[1]            # kx = 1
    w2 = w_ref[2]            # kx = 2
    bias = b_ref[...]        # (1, Cout) f32

    for bi in range(B_blk):
        xe0 = xe_ref[bi, pl.ds(0, HW), :]    # Xe[j]
        xe1 = xe_ref[bi, pl.ds(1, HW), :]    # Xe[j+1]
        xo0 = xo_ref[bi, pl.ds(0, HW), :]    # Xo[j]
        xo1 = xo_ref[bi, pl.ds(1, HW), :]    # Xo[j+1]

        # 6 MXU matmuls, K = 3*Cin, f32 accumulation (no zero-init pass).
        acc_e = (jnp.dot(xe0, w0, preferred_element_type=jnp.float32)
                 + jnp.dot(xo0, w1, preferred_element_type=jnp.float32)
                 + jnp.dot(xe1, w2, preferred_element_type=jnp.float32))
        acc_o = (jnp.dot(xo0, w0, preferred_element_type=jnp.float32)
                 + jnp.dot(xe1, w1, preferred_element_type=jnp.float32)
                 + jnp.dot(xo1, w2, preferred_element_type=jnp.float32))

        # W-direction 2:1 max, then bias + ReLU (bias is a per-channel
        # constant and ReLU is monotone, so max-before-bias/ReLU is exactly
        # pool(ReLU(conv + bias))).
        y = jnp.maximum(jnp.maximum(acc_e, acc_o) + bias, 0.0)   # (H*We, Cout)
        # H-direction 2:1 max: row r = h*We + j -> (h//2, (h%2)*We + j).
        # We % 8 == 0 keeps the split sublane-aligned (no relayout).
        y = y.reshape(Ho, 2 * We, Cout)
        p = jnp.maximum(y[:, :We, :], y[:, We:, :])              # (Ho, We, Cout)
        # TODO(synk): lane-dense (Ho, Wo*Cout) flattened store (perf-review
        # item) deferred: the sublane->lane merge reshape is a relayout risk.
        o_ref[bi] = p[:, :Wo, :].astype(o_ref.dtype)


def conv_bn_relu_pool(x_nhwc, w, b):
    """x (N,H,W,C) NHWC -> (N,H//2,W//2,Cout); fused conv3x3+BN+ReLU+maxpool2."""
    N, H, W, C = x_nhwc.shape
    K = w.shape[1]                 # 3*Cin, zero-padded to a multiple of 8
    Cout = w.shape[2]
    Ho, Wo = H // 2, W // 2
    We = _round_up(Wo + 1, 8)      # deinterleaved width: halo col + 8-alignment

    # Pad: 1 halo row top, 2 bottom (halo + spare row for the "+1" shifted
    # slab), 1 halo col left, right out to width 2*We.  Stack the 3 ky taps
    # along channels, then deinterleave even/odd columns.  Cheap XLA
    # pad/concat/slice; no 9x im2col copy ever touches HBM.
    xp = jnp.pad(x_nhwc.astype(jnp.bfloat16),
                 ((0, 0), (1, 2), (1, 2 * We - 1 - W), (0, 0)))
    xs = jnp.concatenate([xp[:, 0:H + 1], xp[:, 1:H + 2], xp[:, 2:H + 3]],
                         axis=-1)                          # (N, H+1, 2We, 3C)
    if K > 3 * C:
        xs = jnp.pad(xs, ((0, 0), (0, 0), (0, 0), (0, K - 3 * C)))
    rows = (H + 1) * We
    xe = xs[:, :, 0::2, :].reshape(N, rows, K)
    xo = xs[:, :, 1::2, :].reshape(N, rows, K)

    # Batch block: several images per grid step (amortises per-step overhead
    # at small batch; each image is 6 back-to-back MXU matmuls).
    # TODO(synk): add a row-group "parallel" grid axis (1-row halo) so v7x's
    # two TensorCores both work at batch<=2 and 224x224 conv1 row-tiles VMEM.
    # TODO(synk): emit the next layer's (xe, xo) layout directly from the
    # epilogue to drop the inter-stage XLA glue / HBM round trip.
    B_blk = min(N, 4)
    Np = _round_up(N, B_blk)
    if Np != N:
        xe = jnp.pad(xe, ((0, Np - N), (0, 0), (0, 0)))
        xo = jnp.pad(xo, ((0, Np - N), (0, 0), (0, 0)))

    kernel = functools.partial(_conv_bn_relu_pool_kernel,
                               H=H, We=We, Wo=Wo, Cout=Cout, B_blk=B_blk)
    out = pl.pallas_call(
        kernel,
        out_shape=jax.ShapeDtypeStruct((Np, Ho, Wo, Cout), jnp.bfloat16),
        grid=(Np // B_blk,),
        in_specs=[
            pl.BlockSpec((B_blk, rows, K), lambda n: (n, 0, 0)),
            pl.BlockSpec((B_blk, rows, K), lambda n: (n, 0, 0)),
            pl.BlockSpec((3, K, Cout), lambda n: (0, 0, 0)),
            pl.BlockSpec((1, Cout), lambda n: (0, 0)),
        ],
        out_specs=pl.BlockSpec((B_blk, Ho, Wo, Cout), lambda n: (n, 0, 0, 0)),
        compiler_params=pltpu.CompilerParams(
            dimension_semantics=("parallel",),
            vmem_limit_bytes=32 * 1024 * 1024),
    )(xe, xo, w, b)
    return out[:N] if Np != N else out


# ---------------------------------------------------------------------------
# Kernel 2: fused fc1 + ReLU + fc2 + sigmoid (single K-tiled pallas_call)
# ---------------------------------------------------------------------------

def _fc_fused_kernel(x_ref, w1_ref, b1_ref, w2_ref, b2_ref, o_ref, acc_ref):
    k = pl.program_id(1)

    @pl.when(k == 0)
    def _init():
        acc_ref[...] = jnp.zeros_like(acc_ref)

    acc_ref[...] += jnp.dot(x_ref[...], w1_ref[...],
                            preferred_element_type=jnp.float32)

    @pl.when(k == pl.num_programs(1) - 1)
    def _finalize():
        h = jnp.maximum(acc_ref[...] + b1_ref[...], 0.0).astype(jnp.bfloat16)
        z = jnp.dot(h, w2_ref[...], preferred_element_type=jnp.float32) + b2_ref[...]
        o_ref[...] = jax.nn.sigmoid(z).astype(o_ref.dtype)


def fc_fused(x, w1, b1, w2, b2):
    """sigmoid(relu(x @ w1 + b1) @ w2 + b2), one fused K-tiled accumulator kernel."""
    M, K = x.shape
    N1 = w1.shape[1]                       # 256
    N2 = w2.shape[1]                       # 128 (lane-padded; col 0 is real)
    assert w1.shape[0] == K and w2.shape[0] == N1

    Mp = _round_up(M, 16)                  # bf16 sublane packing for the x rows
    if Mp != M:
        x = jnp.pad(x, ((0, Mp - M), (0, 0)))
    x = x.astype(jnp.bfloat16)

    tm = _pick_tile(Mp, (256, 128, 64, 32, 16))
    # Big K tile: at the real 128*28*28 fc1 this gives ~25-50 grid steps while
    # the double-buffered weight block (2*tk*N1*2B) stays well inside VMEM.
    tk = _pick_tile(K, (4096, 2048, 1024, 512, 256, 128, 64, 32, 16, 8))
    grid = (Mp // tm, K // tk)

    out = pl.pallas_call(
        _fc_fused_kernel,
        out_shape=jax.ShapeDtypeStruct((Mp, N2), jnp.float32),
        grid=grid,
        in_specs=[
            pl.BlockSpec((tm, tk), lambda i, k: (i, k)),
            pl.BlockSpec((tk, N1), lambda i, k: (k, 0)),
            pl.BlockSpec((1, N1), lambda i, k: (0, 0)),
            pl.BlockSpec((N1, N2), lambda i, k: (0, 0)),
            pl.BlockSpec((1, N2), lambda i, k: (0, 0)),
        ],
        out_specs=pl.BlockSpec((tm, N2), lambda i, k: (i, 0)),
        scratch_shapes=[pltpu.VMEM((tm, N1), jnp.float32)],
        compiler_params=pltpu.CompilerParams(
            dimension_semantics=("parallel", "arbitrary"),
            vmem_limit_bytes=32 * 1024 * 1024),
    )(x, w1, b1, w2, b2)
    return out[:M, :1]


# ---------------------------------------------------------------------------
# Parameter preparation (done once, outside the per-step forward)
# ---------------------------------------------------------------------------

def fold_bn_into_conv(w, b, bn, eps=1e-5):
    """(Cout,Cin,3,3),(Cout,) + BN -> (3_kx, round8(3*Cin), Cout) bf16, (1,Cout) f32."""
    gamma, beta, mean, var = bn
    scale = gamma / jnp.sqrt(var + eps)
    wf = w * scale[:, None, None, None]                    # (Cout, Cin, ky, kx)
    bf = (b - mean) * scale + beta
    cout, cin = wf.shape[0], wf.shape[1]
    # (kx, ky, Cin, Cout) -> (kx, ky*Cin + cin, Cout): matches the wrapper's
    # ky-stack-along-channels input layout exactly.
    wt = jnp.transpose(wf, (3, 2, 1, 0)).reshape(3, 3 * cin, cout)
    k_pad = _round_up(3 * cin, 8)
    if k_pad > 3 * cin:
        wt = jnp.pad(wt, ((0, 0), (0, k_pad - 3 * cin), (0, 0)))
    # TODO(synk): v7x-only fp8 weight/activation quantization for conv2/conv3.
    return wt.astype(jnp.bfloat16), bf.reshape(1, -1).astype(jnp.float32)


def prepare_params(params, img_size):
    prep = {}
    prep["c1_w"], prep["c1_b"] = fold_bn_into_conv(
        params["c1_w"], params["c1_b"], params["bn1"])
    prep["c2_w"], prep["c2_b"] = fold_bn_into_conv(
        params["c2_w"], params["c2_b"], params["bn2"])
    prep["c3_w"], prep["c3_b"] = fold_bn_into_conv(
        params["c3_w"], params["c3_b"], params["bn3"])

    Hf = Wf = img_size // 8
    C3 = 128
    # fc1 weight: torch layout is (256, C3*Hf*Wf) over an NCHW flatten; permute
    # the contraction rows to NHWC order so the conv output feeds it directly.
    w1 = params["fc1_w"].reshape(256, C3, Hf, Wf)
    w1 = jnp.transpose(w1, (2, 3, 1, 0)).reshape(Hf * Wf * C3, 256)
    prep["fc1_w"] = w1.astype(jnp.bfloat16)
    prep["fc1_b"] = params["fc1_b"].reshape(1, -1).astype(jnp.float32)

    # fc2: (1,256) -> (256,1), zero-padded to 128 output lanes (lane-dense
    # MXU/store); the forward slices column 0 back out.
    w2 = jnp.pad(params["fc2_w"].T, ((0, 0), (0, 127)))
    b2 = jnp.pad(params["fc2_b"], (0, 127))
    prep["fc2_w"] = w2.astype(jnp.bfloat16)
    prep["fc2_b"] = b2.reshape(1, -1).astype(jnp.float32)
    return prep


# ---------------------------------------------------------------------------
# Forward pass
# ---------------------------------------------------------------------------

def pneumonia_cnn_forward(prep, x_nchw):
    """x_nchw (N,1,H,W) f32 -> (N,1) f32 sigmoid probabilities."""
    x = jnp.transpose(x_nchw, (0, 2, 3, 1))                # NCHW -> NHWC
    x = conv_bn_relu_pool(x, prep["c1_w"], prep["c1_b"])
    x = conv_bn_relu_pool(x, prep["c2_w"], prep["c2_b"])
    x = conv_bn_relu_pool(x, prep["c3_w"], prep["c3_b"])
    x = x.reshape(x.shape[0], -1)                          # NHWC flatten (fc1 rows permuted)
    # TODO(synk): Dropout(0.5)/Dropout(0.3) are identity in the eval-mode forward.
    return fc_fused(x, prep["fc1_w"], prep["fc1_b"], prep["fc2_w"], prep["fc2_b"])


# ---------------------------------------------------------------------------
# Deterministic synthetic parameters + pure-JAX reference (for a sanity check)
# ---------------------------------------------------------------------------

def init_params(key, img_size=32):
    ks = jax.random.split(key, 16)
    p = {}

    def conv_params(kw, kb, cin, cout):
        w = 0.05 * jax.random.normal(kw, (cout, cin, 3, 3), jnp.float32)
        b = 0.01 * jax.random.normal(kb, (cout,), jnp.float32)
        return w, b

    def bn_params(k, c):
        k1, k2, k3, k4 = jax.random.split(k, 4)
        gamma = 1.0 + 0.1 * jax.random.normal(k1, (c,), jnp.float32)
        beta = 0.05 * jax.random.normal(k2, (c,), jnp.float32)
        mean = 0.02 * jax.random.normal(k3, (c,), jnp.float32)
        var = 1.0 + 0.1 * jax.nn.softplus(jax.random.normal(k4, (c,), jnp.float32))
        return gamma, beta, mean, var

    p["c1_w"], p["c1_b"] = conv_params(ks[0], ks[1], 1, 32)
    p["bn1"] = bn_params(ks[2], 32)
    p["c2_w"], p["c2_b"] = conv_params(ks[3], ks[4], 32, 64)
    p["bn2"] = bn_params(ks[5], 64)
    p["c3_w"], p["c3_b"] = conv_params(ks[6], ks[7], 64, 128)
    p["bn3"] = bn_params(ks[8], 128)

    feat = 128 * (img_size // 8) * (img_size // 8)
    p["fc1_w"] = 0.02 * jax.random.normal(ks[9], (256, feat), jnp.float32)
    p["fc1_b"] = 0.01 * jax.random.normal(ks[10], (256,), jnp.float32)
    p["fc2_w"] = 0.02 * jax.random.normal(ks[11], (1, 256), jnp.float32)
    p["fc2_b"] = 0.01 * jax.random.normal(ks[12], (1,), jnp.float32)
    return p


def reference_forward(params, x_nchw, eps=1e-5):
    x = jnp.transpose(x_nchw, (0, 2, 3, 1))                # NHWC, f32

    def block(x, w, b, bn):
        gamma, beta, mean, var = bn
        y = jax.lax.conv_general_dilated(
            x, jnp.transpose(w, (2, 3, 1, 0)),
            window_strides=(1, 1), padding=((1, 1), (1, 1)),
            dimension_numbers=("NHWC", "HWIO", "NHWC"))
        y = y + b
        y = (y - mean) / jnp.sqrt(var + eps) * gamma + beta
        y = jax.nn.relu(y)
        return jax.lax.reduce_window(y, -jnp.inf, jax.lax.max,
                                     (1, 2, 2, 1), (1, 2, 2, 1), "VALID")

    x = block(x, params["c1_w"], params["c1_b"], params["bn1"])
    x = block(x, params["c2_w"], params["c2_b"], params["bn2"])
    x = block(x, params["c3_w"], params["c3_b"], params["bn3"])
    x = jnp.transpose(x, (0, 3, 1, 2)).reshape(x.shape[0], -1)   # NCHW flatten
    x = jax.nn.relu(x @ params["fc1_w"].T + params["fc1_b"])
    x = x @ params["fc2_w"].T + params["fc2_b"]
    return jax.nn.sigmoid(x)


if __name__ == "__main__":
    key = jax.random.PRNGKey(0)
    k_param, k_data = jax.random.split(key)
    IMG = 32   # small stand-in for 224 (original FC expects 128*28*28)
    params = init_params(k_param, img_size=IMG)
    prep = prepare_params(params, img_size=IMG)
    x = jax.random.normal(k_data, (2, 1, IMG, IMG), jnp.float32)

    fwd = jax.jit(pneumonia_cnn_forward)
    out = jax.block_until_ready(fwd(prep, x))
    assert out.shape == (2, 1)
    assert bool(jnp.all(jnp.isfinite(out)))

    ref = jax.block_until_ready(jax.jit(reference_forward)(params, x))
    assert float(jnp.max(jnp.abs(out - ref))) < 5e-2  # bf16-vs-f32 tolerance

    print("KERNEL_OK")
</pallas_src>

<mosaic_0001>
module attributes {stable_mosaic.version = 11 : i64} {
  func.func @_conv_bn_relu_pool_kernel(%arg0: i32, %arg1: memref<2x792x8xbf16, #tpu.memory_space<vmem>>, %arg2: memref<2x792x8xbf16, #tpu.memory_space<vmem>>, %arg3: memref<3x8x32xbf16, #tpu.memory_space<vmem>>, %arg4: memref<1x32xf32, #tpu.memory_space<vmem>>, %arg5: memref<2x16x16x32xbf16, #tpu.memory_space<vmem>>) attributes {dimension_semantics = [#tpu.dimension_semantics<parallel>], iteration_bounds = array<i64: 1>, scalar_prefetch = 0 : i64, scratch_operands = 0 : i64, tpu.core_type = #tpu.core_type<tc>, window_params = [{transform_indices = @transform_0, window_bounds = array<i64: 2, 792, 8>}, {transform_indices = @transform_1, window_bounds = array<i64: 2, 792, 8>}, {pipeline_mode = #tpu.pipeline_mode<synchronous>, transform_indices = @transform_2, window_bounds = array<i64: 3, 8, 32>}, {pipeline_mode = #tpu.pipeline_mode<synchronous>, transform_indices = @transform_3, window_bounds = array<i64: 1, 32>}, {transform_indices = @transform_4, window_bounds = array<i64: 2, 16, 16, 32>}]} {
    %c0 = arith.constant 0 : index
    %c0_0 = arith.constant 0 : index
    %c0_1 = arith.constant 0 : index
    %0 = vector.load %arg3[%c0, %c0_0, %c0_1] : memref<3x8x32xbf16, #tpu.memory_space<vmem>>, vector<1x8x32xbf16>
    %1 = vector.shape_cast %0 : vector<1x8x32xbf16> to vector<8x32xbf16>
    %c1 = arith.constant 1 : index
    %c0_2 = arith.constant 0 : index
    %c0_3 = arith.constant 0 : index
    %2 = vector.load %arg3[%c1, %c0_2, %c0_3] : memref<3x8x32xbf16, #tpu.memory_space<vmem>>, vector<1x8x32xbf16>
    %3 = vector.shape_cast %2 : vector<1x8x32xbf16> to vector<8x32xbf16>
    %c2 = arith.constant 2 : index
    %c0_4 = arith.constant 0 : index
    %c0_5 = arith.constant 0 : index
    %4 = vector.load %arg3[%c2, %c0_4, %c0_5] : memref<3x8x32xbf16, #tpu.memory_space<vmem>>, vector<1x8x32xbf16>
    %5 = vector.shape_cast %4 : vector<1x8x32xbf16> to vector<8x32xbf16>
    %c0_6 = arith.constant 0 : index
    %c0_7 = arith.constant 0 : index
    %6 = vector.load %arg4[%c0_6, %c0_7] : memref<1x32xf32, #tpu.memory_space<vmem>>, vector<1x32xf32>
    %c0_8 = arith.constant 0 : index
    %c0_9 = arith.constant 0 : index
    %c0_10 = arith.constant 0 : index
    %7 = vector.load %arg1[%c0_8, %c0_9, %c0_10] : memref<2x792x8xbf16, #tpu.memory_space<vmem>>, vector<1x768x8xbf16>
    %8 = vector.shape_cast %7 : vector<1x768x8xbf16> to vector<768x8xbf16>
    %c0_11 = arith.constant 0 : index
    %c1_12 = arith.constant 1 : index
    %c0_13 = arith.constant 0 : index
    %9 = vector.load %arg1[%c0_11, %c1_12, %c0_13] : memref<2x792x8xbf16, #tpu.memory_space<vmem>>, vector<1x768x8xbf16>
    %10 = vector.shape_cast %9 : vector<1x768x8xbf16> to vector<768x8xbf16>
    %c0_14 = arith.constant 0 : index
    %c0_15 = arith.constant 0 : index
    %c0_16 = arith.constant 0 : index
    %11 = vector.load %arg2[%c0_14, %c0_15, %c0_16] : memref<2x792x8xbf16, #tpu.memory_space<vmem>>, vector<1x768x8xbf16>
    %12 = vector.shape_cast %11 : vector<1x768x8xbf16> to vector<768x8xbf16>
    %c0_17 = arith.constant 0 : index
    %c1_18 = arith.constant 1 : index
    %c0_19 = arith.constant 0 : index
    %13 = vector.load %arg2[%c0_17, %c1_18, %c0_19] : memref<2x792x8xbf16, #tpu.memory_space<vmem>>, vector<1x768x8xbf16>
    %14 = vector.shape_cast %13 : vector<1x768x8xbf16> to vector<768x8xbf16>
    %cst = arith.constant dense<0.000000e+00> : vector<768x32xf32>
    %15 = tpu.matmul %8, %1, %cst {dimension_numbers = #tpu.dot_dimension_numbers<[1], [0], [0], [1], [0, 0, 1, 1], [], []>} : vector<768x8xbf16>, vector<8x32xbf16>, vector<768x32xf32> -> vector<768x32xf32>
    %cst_20 = arith.constant dense<0.000000e+00> : vector<768x32xf32>
    %16 = tpu.matmul %12, %3, %cst_20 {dimension_numbers = #tpu.dot_dimension_numbers<[1], [0], [0], [1], [0, 0, 1, 1], [], []>} : vector<768x8xbf16>, vector<8x32xbf16>, vector<768x32xf32> -> vector<768x32xf32>
    %17 = arith.addf %15, %16 : vector<768x32xf32>
    %cst_21 = arith.constant dense<0.000000e+00> : vector<768x32xf32>
    %18 = tpu.matmul %10, %5, %cst_21 {dimension_numbers = #tpu.dot_dimension_numbers<[1], [0], [0], [1], [0, 0, 1, 1], [], []>} : vector<768x8xbf16>, vector<8x32xbf16>, vector<768x32xf32> -> vector<768x32xf32>
    %19 = arith.addf %17, %18 : vector<768x32xf32>
    %cst_22 = arith.constant dense<0.000000e+00> : vector<768x32xf32>
    %20 = tpu.matmul %12, %1, %cst_22 {dimension_numbers = #tpu.dot_dimension_numbers<[1], [0], [0], [1], [0, 0, 1, 1], [], []>} : vector<768x8xbf16>, vector<8x32xbf16>, vector<768x32xf32> -> vector<768x32xf32>
    %cst_23 = arith.constant dense<0.000000e+00> : vector<768x32xf32>
    %21 = tpu.matmul %10, %3, %cst_23 {dimension_numbers = #tpu.dot_dimension_numbers<[1], [0], [0], [1], [0, 0, 1, 1], [], []>} : vector<768x8xbf16>, vector<8x32xbf16>, vector<768x32xf32> -> vector<768x32xf32>
    %22 = arith.addf %20, %21 : vector<768x32xf32>
    %cst_24 = arith.constant dense<0.000000e+00> : vector<768x32xf32>
    %23 = tpu.matmul %14, %5, %cst_24 {dimension_numbers = #tpu.dot_dimension_numbers<[1], [0], [0], [1], [0, 0, 1, 1], [], []>} : vector<768x8xbf16>, vector<8x32xbf16>, vector<768x32xf32> -> vector<768x32xf32>
    %24 = arith.addf %22, %23 : vector<768x32xf32>
    %25 = arith.maximumf %19, %24 : vector<768x32xf32>
    %26 = vector.broadcast %6 : vector<1x32xf32> to vector<768x32xf32>
    %27 = arith.addf %25, %26 : vector<768x32xf32>
    %cst_25 = arith.constant 0.000000e+00 : f32
    %28 = vector.broadcast %cst_25 : f32 to vector<768x32xf32>
    %29 = arith.maximumf %27, %28 : vector<768x32xf32>
    %30 = vector.shape_cast %29 : vector<768x32xf32> to vector<16x48x32xf32>
    %31 = vector.extract_strided_slice %30 {offsets = [0, 0, 0], sizes = [16, 24, 32], strides = [1, 1, 1]} : vector<16x48x32xf32> to vector<16x24x32xf32>
    %32 = vector.extract_strided_slice %30 {offsets = [0, 24, 0], sizes = [16, 24, 32], strides = [1, 1, 1]} : vector<16x48x32xf32> to vector<16x24x32xf32>
    %33 = arith.maximumf %31, %32 : vector<16x24x32xf32>
    %34 = vector.extract_strided_slice %33 {offsets = [0, 0, 0], sizes = [16, 16, 32], strides = [1, 1, 1]} : vector<16x24x32xf32> to vector<16x16x32xf32>
    %35 = arith.truncf %34 : vector<16x16x32xf32> to vector<16x16x32xbf16>
    %c0_26 = arith.constant 0 : index
    %c0_27 = arith.constant 0 : index
    %c0_28 = arith.constant 0 : index
    %c0_29 = arith.constant 0 : index
    %36 = vector.load %arg5[%c0_26, %c0_27, %c0_28, %c0_29] : memref<2x16x16x32xbf16, #tpu.memory_space<vmem>>, vector<1x16x16x32xbf16>
    %37 = vector.shape_cast %36 : vector<1x16x16x32xbf16> to vector<16x16x32xbf16>
    %38 = vector.shape_cast %35 : vector<16x16x32xbf16> to vector<1x16x16x32xbf16>
    tpu.vector_store %arg5[%c0_26, %c0_27, %c0_28, %c0_29], %38 {strides = array<i32>} : memref<2x16x16x32xbf16, #tpu.memory_space<vmem>>, vector<1x16x16x32xbf16>,
    %c1_30 = arith.constant 1 : index
    %c0_31 = arith.constant 0 : index
    %c0_32 = arith.constant 0 : index
    %39 = vector.load %arg1[%c1_30, %c0_31, %c0_32] : memref<2x792x8xbf16, #tpu.memory_space<vmem>>, vector<1x768x8xbf16>
    %40 = vector.shape_cast %39 : vector<1x768x8xbf16> to vector<768x8xbf16>
    %c1_33 = arith.constant 1 : index
    %c1_34 = arith.constant 1 : index
    %c0_35 = arith.constant 0 : index
    %41 = vector.load %arg1[%c1_33, %c1_34, %c0_35] : memref<2x792x8xbf16, #tpu.memory_space<vmem>>, vector<1x768x8xbf16>
    %42 = vector.shape_cast %41 : vector<1x768x8xbf16> to vector<768x8xbf16>
    %c1_36 = arith.constant 1 : index
    %c0_37 = arith.constant 0 : index
    %c0_38 = arith.constant 0 : index
    %43 = vector.load %arg2[%c1_36, %c0_37, %c0_38] : memref<2x792x8xbf16, #tpu.memory_space<vmem>>, vector<1x768x8xbf16>
    %44 = vector.shape_cast %43 : vector<1x768x8xbf16> to vector<768x8xbf16>
    %c1_39 = arith.constant 1 : index
    %c1_40 = arith.constant 1 : index
    %c0_41 = arith.constant 0 : index
    %45 = vector.load %arg2[%c1_39, %c1_40, %c0_41] : memref<2x792x8xbf16, #tpu.memory_space<vmem>>, vector<1x768x8xbf16>
    %46 = vector.shape_cast %45 : vector<1x768x8xbf16> to vector<768x8xbf16>
    %cst_42 = arith.constant dense<0.000000e+00> : vector<768x32xf32>
    %47 = tpu.matmul %40, %1, %cst_42 {dimension_numbers = #tpu.dot_dimension_numbers<[1], [0], [0], [1], [0, 0, 1, 1], [], []>} : vector<768x8xbf16>, vector<8x32xbf16>, vector<768x32xf32> -> vector<768x32xf32>
    %cst_43 = arith.constant dense<0.000000e+00> : vector<768x32xf32>
    %48 = tpu.matmul %44, %3, %cst_43 {dimension_numbers = #tpu.dot_dimension_numbers<[1], [0], [0], [1], [0, 0, 1, 1], [], []>} : vector<768x8xbf16>, vector<8x32xbf16>, vector<768x32xf32> -> vector<768x32xf32>
    %49 = arith.addf %47, %48 : vector<768x32xf32>
    %cst_44 = arith.constant dense<0.000000e+00> : vector<768x32xf32>
    %50 = tpu.matmul %42, %5, %cst_44 {dimension_numbers = #tpu.dot_dimension_numbers<[1], [0], [0], [1], [0, 0, 1, 1], [], []>} : vector<768x8xbf16>, vector<8x32xbf16>, vector<768x32xf32> -> vector<768x32xf32>
    %51 = arith.addf %49, %50 : vector<768x32xf32>
    %cst_45 = arith.constant dense<0.000000e+00> : vector<768x32xf32>
    %52 = tpu.matmul %44, %1, %cst_45 {dimension_numbers = #tpu.dot_dimension_numbers<[1], [0], [0], [1], [0, 0, 1, 1], [], []>} : vector<768x8xbf16>, vector<8x32xbf16>, vector<768x32xf32> -> vector<768x32xf32>
    %cst_46 = arith.constant dense<0.000000e+00> : vector<768x32xf32>
    %53 = tpu.matmul %42, %3, %cst_46 {dimension_numbers = #tpu.dot_dimension_numbers<[1], [0], [0], [1], [0, 0, 1, 1], [], []>} : vector<768x8xbf16>, vector<8x32xbf16>, vector<768x32xf32> -> vector<768x32xf32>
    %54 = arith.addf %52, %53 : vector<768x32xf32>
    %cst_47 = arith.constant dense<0.000000e+00> : vector<768x32xf32>
    %55 = tpu.matmul %46, %5, %cst_47 {dimension_numbers = #tpu.dot_dimension_numbers<[1], [0], [0], [1], [0, 0, 1, 1], [], []>} : vector<768x8xbf16>, vector<8x32xbf16>, vector<768x32xf32> -> vector<768x32xf32>
    %56 = arith.addf %54, %55 : vector<768x32xf32>
    %57 = arith.maximumf %51, %56 : vector<768x32xf32>
    %58 = vector.broadcast %6 : vector<1x32xf32> to vector<768x32xf32>
    %59 = arith.addf %57, %58 : vector<768x32xf32>
    %cst_48 = arith.constant 0.000000e+00 : f32
    %60 = vector.broadcast %cst_48 : f32 to vector<768x32xf32>
    %61 = arith.maximumf %59, %60 : vector<768x32xf32>
    %62 = vector.shape_cast %61 : vector<768x32xf32> to vector<16x48x32xf32>
    %63 = vector.extract_strided_slice %62 {offsets = [0, 0, 0], sizes = [16, 24, 32], strides = [1, 1, 1]} : vector<16x48x32xf32> to vector<16x24x32xf32>
    %64 = vector.extract_strided_slice %62 {offsets = [0, 24, 0], sizes = [16, 24, 32], strides = [1, 1, 1]} : vector<16x48x32xf32> to vector<16x24x32xf32>
    %65 = arith.maximumf %63, %64 : vector<16x24x32xf32>
    %66 = vector.extract_strided_slice %65 {offsets = [0, 0, 0], sizes = [16, 16, 32], strides = [1, 1, 1]} : vector<16x24x32xf32> to vector<16x16x32xf32>
    %67 = arith.truncf %66 : vector<16x16x32xf32> to vector<16x16x32xbf16>
    %c1_49 = arith.constant 1 : index
    %c0_50 = arith.constant 0 : index
    %c0_51 = arith.constant 0 : index
    %c0_52 = arith.constant 0 : index
    %68 = vector.load %arg5[%c1_49, %c0_50, %c0_51, %c0_52] : memref<2x16x16x32xbf16, #tpu.memory_space<vmem>>, vector<1x16x16x32xbf16>
    %69 = vector.shape_cast %68 : vector<1x16x16x32xbf16> to vector<16x16x32xbf16>
    %70 = vector.shape_cast %67 : vector<16x16x32xbf16> to vector<1x16x16x32xbf16>
    tpu.vector_store %arg5[%c1_49, %c0_50, %c0_51, %c0_52], %70 {strides = array<i32>} : memref<2x16x16x32xbf16, #tpu.memory_space<vmem>>, vector<1x16x16x32xbf16>,
    return
  }
  func.func @transform_0(%arg0: i32) -> (i32, i32, i32) {
    %c0_i32 = arith.constant 0 : i32
    %c0_i32_0 = arith.constant 0 : i32
    %c0_i32_1 = arith.constant 0 : i32
    return %arg0, %c0_i32, %c0_i32_0 : i32, i32, i32
  }
  func.func @transform_1(%arg0: i32) -> (i32, i32, i32) {
    %c0_i32 = arith.constant 0 : i32
    %c0_i32_0 = arith.constant 0 : i32
    %c0_i32_1 = arith.constant 0 : i32
    return %arg0, %c0_i32, %c0_i32_0 : i32, i32, i32
  }
  func.func @transform_2(%arg0: i32) -> (i32, i32, i32) {
    %c0_i32 = arith.constant 0 : i32
    %c0_i32_0 = arith.constant 0 : i32
    %c0_i32_1 = arith.constant 0 : i32
    %c0_i32_2 = arith.constant 0 : i32
    return %c0_i32, %c0_i32_0, %c0_i32_1 : i32, i32, i32
  }
  func.func @transform_3(%arg0: i32) -> (i32, i32) {
    %c0_i32 = arith.constant 0 : i32
    %c0_i32_0 = arith.constant 0 : i32
    %c0_i32_1 = arith.constant 0 : i32
    return %c0_i32, %c0_i32_0 : i32, i32
  }
  func.func @transform_4(%arg0: i32) -> (i32, i32, i32, i32) {
    %c0_i32 = arith.constant 0 : i32
    %c0_i32_0 = arith.constant 0 : i32
    %c0_i32_1 = arith.constant 0 : i32
    %c0_i32_2 = arith.constant 0 : i32
    return %arg0, %c0_i32, %c0_i32_0, %c0_i32_1 : i32, i32, i32, i32
  }
}

module attributes {stable_mosaic.version = 11 : i64} {
  func.func @_conv_bn_relu_pool_kernel(%arg0: i32, %arg1: memref<2x272x96xbf16, #tpu.memory_space<vmem>>, %arg2: memref<2x272x96xbf16, #tpu.memory_space<vmem>>, %arg3: memref<3x96x64xbf16, #tpu.memory_space<vmem>>, %arg4: memref<1x64xf32, #tpu.memory_space<vmem>>, %arg5: memref<2x8x8x64xbf16, #tpu.memory_space<vmem>>) attributes {dimension_semantics = [#tpu.dimension_semantics<parallel>], iteration_bounds = array<i64: 1>, scalar_prefetch = 0 : i64, scratch_operands = 0 : i64, tpu.core_type = #tpu.core_type<tc>, window_params = [{transform_indices = @transform_0, window_bounds = array<i64: 2, 272, 96>}, {transform_indices = @transform_1, window_bounds = array<i64: 2, 272, 96>}, {pipeline_mode = #tpu.pipeline_mode<synchronous>, transform_indices = @transform_2, window_bounds = array<i64: 3, 96, 64>}, {pipeline_mode = #tpu.pipeline_mode<synchronous>, transform_indices = @transform_3, window_bounds = array<i64: 1, 64>}, {transform_indices = @transform_4, window_bounds = array<i64: 2, 8, 8, 64>}]} {
    %c0 = arith.constant 0 : index
    %c0_0 = arith.constant 0 : index
    %c0_1 = arith.constant 0 : index
    %0 = vector.load %arg3[%c0, %c0_0, %c0_1] : memref<3x96x64xbf16, #tpu.memory_space<vmem>>, vector<1x96x64xbf16>
    %1 = vector.shape_cast %0 : vector<1x96x64xbf16> to vector<96x64xbf16>
    %c1 = arith.constant 1 : index
    %c0_2 = arith.constant 0 : index
    %c0_3 = arith.constant 0 : index
    %2 = vector.load %arg3[%c1, %c0_2, %c0_3] : memref<3x96x64xbf16, #tpu.memory_space<vmem>>, vector<1x96x64xbf16>
    %3 = vector.shape_cast %2 : vector<1x96x64xbf16> to vector<96x64xbf16>
    %c2 = arith.constant 2 : index
    %c0_4 = arith.constant 0 : index
    %c0_5 = arith.constant 0 : index
    %4 = vector.load %arg3[%c2, %c0_4, %c0_5] : memref<3x96x64xbf16, #tpu.memory_space<vmem>>, vector<1x96x64xbf16>
    %5 = vector.shape_cast %4 : vector<1x96x64xbf16> to vector<96x64xbf16>
    %c0_6 = arith.constant 0 : index
    %c0_7 = arith.constant 0 : index
    %6 = vector.load %arg4[%c0_6, %c0_7] : memref<1x64xf32, #tpu.memory_space<vmem>>, vector<1x64xf32>
    %c0_8 = arith.constant 0 : index
    %c0_9 = arith.constant 0 : index
    %c0_10 = arith.constant 0 : index
    %7 = vector.load %arg1[%c0_8, %c0_9, %c0_10] : memref<2x272x96xbf16, #tpu.memory_space<vmem>>, vector<1x256x96xbf16>
    %8 = vector.shape_cast %7 : vector<1x256x96xbf16> to vector<256x96xbf16>
    %c0_11 = arith.constant 0 : index
    %c1_12 = arith.constant 1 : index
    %c0_13 = arith.constant 0 : index
    %9 = vector.load %arg1[%c0_11, %c1_12, %c0_13] : memref<2x272x96xbf16, #tpu.memory_space<vmem>>, vector<1x256x96xbf16>
    %10 = vector.shape_cast %9 : vector<1x256x96xbf16> to vector<256x96xbf16>
    %c0_14 = arith.constant 0 : index
    %c0_15 = arith.constant 0 : index
    %c0_16 = arith.constant 0 : index
    %11 = vector.load %arg2[%c0_14, %c0_15, %c0_16] : memref<2x272x96xbf16, #tpu.memory_space<vmem>>, vector<1x256x96xbf16>
    %12 = vector.shape_cast %11 : vector<1x256x96xbf16> to vector<256x96xbf16>
    %c0_17 = arith.constant 0 : index
    %c1_18 = arith.constant 1 : index
    %c0_19 = arith.constant 0 : index
    %13 = vector.load %arg2[%c0_17, %c1_18, %c0_19] : memref<2x272x96xbf16, #tpu.memory_space<vmem>>, vector<1x256x96xbf16>
    %14 = vector.shape_cast %13 : vector<1x256x96xbf16> to vector<256x96xbf16>
    %cst = arith.constant dense<0.000000e+00> : vector<256x64xf32>
    %15 = tpu.matmul %8, %1, %cst {dimension_numbers = #tpu.dot_dimension_numbers<[1], [0], [0], [1], [0, 0, 1, 1], [], []>} : vector<256x96xbf16>, vector<96x64xbf16>, vector<256x64xf32> -> vector<256x64xf32>
    %cst_20 = arith.constant dense<0.000000e+00> : vector<256x64xf32>
    %16 = tpu.matmul %12, %3, %cst_20 {dimension_numbers = #tpu.dot_dimension_numbers<[1], [0], [0], [1], [0, 0, 1, 1], [], []>} : vector<256x96xbf16>, vector<96x64xbf16>, vector<256x64xf32> -> vector<256x64xf32>
    %17 = arith.addf %15, %16 : vector<256x64xf32>
    %cst_21 = arith.constant dense<0.000000e+00> : vector<256x64xf32>
    %18 = tpu.matmul %10, %5, %cst_21 {dimension_numbers = #tpu.dot_dimension_numbers<[1], [0], [0], [1], [0, 0, 1, 1], [], []>} : vector<256x96xbf16>, vector<96x64xbf16>, vector<256x64xf32> -> vector<256x64xf32>
    %19 = arith.addf %17, %18 : vector<256x64xf32>
    %cst_22 = arith.constant dense<0.000000e+00> : vector<256x64xf32>
    %20 = tpu.matmul %12, %1, %cst_22 {dimension_numbers = #tpu.dot_dimension_numbers<[1], [0], [0], [1], [0, 0, 1, 1], [], []>} : vector<256x96xbf16>, vector<96x64xbf16>, vector<256x64xf32> -> vector<256x64xf32>
    %cst_23 = arith.constant dense<0.000000e+00> : vector<256x64xf32>
    %21 = tpu.matmul %10, %3, %cst_23 {dimension_numbers = #tpu.dot_dimension_numbers<[1], [0], [0], [1], [0, 0, 1, 1], [], []>} : vector<256x96xbf16>, vector<96x64xbf16>, vector<256x64xf32> -> vector<256x64xf32>
    %22 = arith.addf %20, %21 : vector<256x64xf32>
    %cst_24 = arith.constant dense<0.000000e+00> : vector<256x64xf32>
    %23 = tpu.matmul %14, %5, %cst_24 {dimension_numbers = #tpu.dot_dimension_numbers<[1], [0], [0], [1], [0, 0, 1, 1], [], []>} : vector<256x96xbf16>, vector<96x64xbf16>, vector<256x64xf32> -> vector<256x64xf32>
    %24 = arith.addf %22, %23 : vector<256x64xf32>
    %25 = arith.maximumf %19, %24 : vector<256x64xf32>
    %26 = vector.broadcast %6 : vector<1x64xf32> to vector<256x64xf32>
    %27 = arith.addf %25, %26 : vector<256x64xf32>
    %cst_25 = arith.constant 0.000000e+00 : f32
    %28 = vector.broadcast %cst_25 : f32 to vector<256x64xf32>
    %29 = arith.maximumf %27, %28 : vector<256x64xf32>
    %30 = vector.shape_cast %29 : vector<256x64xf32> to vector<8x32x64xf32>
    %31 = vector.extract_strided_slice %30 {offsets = [0, 0, 0], sizes = [8, 16, 64], strides = [1, 1, 1]} : vector<8x32x64xf32> to vector<8x16x64xf32>
    %32 = vector.extract_strided_slice %30 {offsets = [0, 16, 0], sizes = [8, 16, 64], strides = [1, 1, 1]} : vector<8x32x64xf32> to vector<8x16x64xf32>
    %33 = arith.maximumf %31, %32 : vector<8x16x64xf32>
    %34 = vector.extract_strided_slice %33 {offsets = [0, 0, 0], sizes = [8, 8, 64], strides = [1, 1, 1]} : vector<8x16x64xf32> to vector<8x8x64xf32>
    %35 = arith.truncf %34 : vector<8x8x64xf32> to vector<8x8x64xbf16>
    %c0_26 = arith.constant 0 : index
    %c0_27 = arith.constant 0 : index
    %c0_28 = arith.constant 0 : index
    %c0_29 = arith.constant 0 : index
    %36 = vector.load %arg5[%c0_26, %c0_27, %c0_28, %c0_29] : memref<2x8x8x64xbf16, #tpu.memory_space<vmem>>, vector<1x8x8x64xbf16>
    %37 = vector.shape_cast %36 : vector<1x8x8x64xbf16> to vector<8x8x64xbf16>
    %38 = vector.shape_cast %35 : vector<8x8x64xbf16> to vector<1x8x8x64xbf16>
    tpu.vector_store %arg5[%c0_26, %c0_27, %c0_28, %c0_29], %38 {strides = array<i32>} : memref<2x8x8x64xbf16, #tpu.memory_space<vmem>>, vector<1x8x8x64xbf16>,
    %c1_30 = arith.constant 1 : index
    %c0_31 = arith.constant 0 : index
    %c0_32 = arith.constant 0 : index
    %39 = vector.load %arg1[%c1_30, %c0_31, %c0_32] : memref<2x272x96xbf16, #tpu.memory_space<vmem>>, vector<1x256x96xbf16>
    %40 = vector.shape_cast %39 : vector<1x256x96xbf16> to vector<256x96xbf16>
    %c1_33 = arith.constant 1 : index
    %c1_34 = arith.constant 1 : index
    %c0_35 = arith.constant 0 : index
    %41 = vector.load %arg1[%c1_33, %c1_34, %c0_35] : memref<2x272x96xbf16, #tpu.memory_space<vmem>>, vector<1x256x96xbf16>
    %42 = vector.shape_cast %41 : vector<1x256x96xbf16> to vector<256x96xbf16>
    %c1_36 = arith.constant 1 : index
    %c0_37 = arith.constant 0 : index
    %c0_38 = arith.constant 0 : index
    %43 = vector.load %arg2[%c1_36, %c0_37, %c0_38] : memref<2x272x96xbf16, #tpu.memory_space<vmem>>, vector<1x256x96xbf16>
    %44 = vector.shape_cast %43 : vector<1x256x96xbf16> to vector<256x96xbf16>
    %c1_39 = arith.constant 1 : index
    %c1_40 = arith.constant 1 : index
    %c0_41 = arith.constant 0 : index
    %45 = vector.load %arg2[%c1_39, %c1_40, %c0_41] : memref<2x272x96xbf16, #tpu.memory_space<vmem>>, vector<1x256x96xbf16>
    %46 = vector.shape_cast %45 : vector<1x256x96xbf16> to vector<256x96xbf16>
    %cst_42 = arith.constant dense<0.000000e+00> : vector<256x64xf32>
    %47 = tpu.matmul %40, %1, %cst_42 {dimension_numbers = #tpu.dot_dimension_numbers<[1], [0], [0], [1], [0, 0, 1, 1], [], []>} : vector<256x96xbf16>, vector<96x64xbf16>, vector<256x64xf32> -> vector<256x64xf32>
    %cst_43 = arith.constant dense<0.000000e+00> : vector<256x64xf32>
    %48 = tpu.matmul %44, %3, %cst_43 {dimension_numbers = #tpu.dot_dimension_numbers<[1], [0], [0], [1], [0, 0, 1, 1], [], []>} : vector<256x96xbf16>, vector<96x64xbf16>, vector<256x64xf32> -> vector<256x64xf32>
    %49 = arith.addf %47, %48 : vector<256x64xf32>
    %cst_44 = arith.constant dense<0.000000e+00> : vector<256x64xf32>
    %50 = tpu.matmul %42, %5, %cst_44 {dimension_numbers = #tpu.dot_dimension_numbers<[1], [0], [0], [1], [0, 0, 1, 1], [], []>} : vector<256x96xbf16>, vector<96x64xbf16>, vector<256x64xf32> -> vector<256x64xf32>
    %51 = arith.addf %49, %50 : vector<256x64xf32>
    %cst_45 = arith.constant dense<0.000000e+00> : vector<256x64xf32>
    %52 = tpu.matmul %44, %1, %cst_45 {dimension_numbers = #tpu.dot_dimension_numbers<[1], [0], [0], [1], [0, 0, 1, 1], [], []>} : vector<256x96xbf16>, vector<96x64xbf16>, vector<256x64xf32> -> vector<256x64xf32>
    %cst_46 = arith.constant dense<0.000000e+00> : vector<256x64xf32>
    %53 = tpu.matmul %42, %3, %cst_46 {dimension_numbers = #tpu.dot_dimension_numbers<[1], [0], [0], [1], [0, 0, 1, 1], [], []>} : vector<256x96xbf16>, vector<96x64xbf16>, vector<256x64xf32> -> vector<256x64xf32>
    %54 = arith.addf %52, %53 : vector<256x64xf32>
    %cst_47 = arith.constant dense<0.000000e+00> : vector<256x64xf32>
    %55 = tpu.matmul %46, %5, %cst_47 {dimension_numbers = #tpu.dot_dimension_numbers<[1], [0], [0], [1], [0, 0, 1, 1], [], []>} : vector<256x96xbf16>, vector<96x64xbf16>, vector<256x64xf32> -> vector<256x64xf32>
    %56 = arith.addf %54, %55 : vector<256x64xf32>
    %57 = arith.maximumf %51, %56 : vector<256x64xf32>
    %58 = vector.broadcast %6 : vector<1x64xf32> to vector<256x64xf32>
    %59 = arith.addf %57, %58 : vector<256x64xf32>
    %cst_48 = arith.constant 0.000000e+00 : f32
    %60 = vector.broadcast %cst_48 : f32 to vector<256x64xf32>
    %61 = arith.maximumf %59, %60 : vector<256x64xf32>
    %62 = vector.shape_cast %61 : vector<256x64xf32> to vector<8x32x64xf32>
    %63 = vector.extract_strided_slice %62 {offsets = [0, 0, 0], sizes = [8, 16, 64], strides = [1, 1, 1]} : vector<8x32x64xf32> to vector<8x16x64xf32>
    %64 = vector.extract_strided_slice %62 {offsets = [0, 16, 0], sizes = [8, 16, 64], strides = [1, 1, 1]} : vector<8x32x64xf32> to vector<8x16x64xf32>
    %65 = arith.maximumf %63, %64 : vector<8x16x64xf32>
    %66 = vector.extract_strided_slice %65 {offsets = [0, 0, 0], sizes = [8, 8, 64], strides = [1, 1, 1]} : vector<8x16x64xf32> to vector<8x8x64xf32>
    %67 = arith.truncf %66 : vector<8x8x64xf32> to vector<8x8x64xbf16>
    %c1_49 = arith.constant 1 : index
    %c0_50 = arith.constant 0 : index
    %c0_51 = arith.constant 0 : index
    %c0_52 = arith.constant 0 : index
    %68 = vector.load %arg5[%c1_49, %c0_50, %c0_51, %c0_52] : memref<2x8x8x64xbf16, #tpu.memory_space<vmem>>, vector<1x8x8x64xbf16>
    %69 = vector.shape_cast %68 : vector<1x8x8x64xbf16> to vector<8x8x64xbf16>
    %70 = vector.shape_cast %67 : vector<8x8x64xbf16> to vector<1x8x8x64xbf16>
    tpu.vector_store %arg5[%c1_49, %c0_50, %c0_51, %c0_52], %70 {strides = array<i32>} : memref<2x8x8x64xbf16, #tpu.memory_space<vmem>>, vector<1x8x8x64xbf16>,
    return
  }
  func.func @transform_0(%arg0: i32) -> (i32, i32, i32) {
    %c0_i32 = arith.constant 0 : i32
    %c0_i32_0 = arith.constant 0 : i32
    %c0_i32_1 = arith.constant 0 : i32
    return %arg0, %c0_i32, %c0_i32_0 : i32, i32, i32
  }
  func.func @transform_1(%arg0: i32) -> (i32, i32, i32) {
    %c0_i32 = arith.constant 0 : i32
    %c0_i32_0 = arith.constant 0 : i32
    %c0_i32_1 = arith.constant 0 : i32
    return %arg0, %c0_i32, %c0_i32_0 : i32, i32, i32
  }
  func.func @transform_2(%arg0: i32) -> (i32, i32, i32) {
    %c0_i32 = arith.constant 0 : i32
    %c0_i32_0 = arith.constant 0 : i32
    %c0_i32_1 = arith.constant 0 : i32
    %c0_i32_2 = arith.constant 0 : i32
    return %c0_i32, %c0_i32_0, %c0_i32_1 : i32, i32, i32
  }
  func.func @transform_3(%arg0: i32) -> (i32, i32) {
    %c0_i32 = arith.constant 0 : i32
    %c0_i32_0 = arith.constant 0 : i32
    %c0_i32_1 = arith.constant 0 : i32
    return %c0_i32, %c0_i32_0 : i32, i32
  }
  func.func @transform_4(%arg0: i32) -> (i32, i32, i32, i32) {
    %c0_i32 = arith.constant 0 : i32
    %c0_i32_0 = arith.constant 0 : i32
    %c0_i32_1 = arith.constant 0 : i32
    %c0_i32_2 = arith.constant 0 : i32
    return %arg0, %c0_i32, %c0_i32_0, %c0_i32_1 : i32, i32, i32, i32
  }
}

module attributes {stable_mosaic.version = 11 : i64} {
  func.func @_conv_bn_relu_pool_kernel(%arg0: i32, %arg1: memref<2x72x192xbf16, #tpu.memory_space<vmem>>, %arg2: memref<2x72x192xbf16, #tpu.memory_space<vmem>>, %arg3: memref<3x192x128xbf16, #tpu.memory_space<vmem>>, %arg4: memref<1x128xf32, #tpu.memory_space<vmem>>, %arg5: memref<2x4x4x128xbf16, #tpu.memory_space<vmem>>) attributes {dimension_semantics = [#tpu.dimension_semantics<parallel>], iteration_bounds = array<i64: 1>, scalar_prefetch = 0 : i64, scratch_operands = 0 : i64, tpu.core_type = #tpu.core_type<tc>, window_params = [{transform_indices = @transform_0, window_bounds = array<i64: 2, 72, 192>}, {transform_indices = @transform_1, window_bounds = array<i64: 2, 72, 192>}, {pipeline_mode = #tpu.pipeline_mode<synchronous>, transform_indices = @transform_2, window_bounds = array<i64: 3, 192, 128>}, {pipeline_mode = #tpu.pipeline_mode<synchronous>, transform_indices = @transform_3, window_bounds = array<i64: 1, 128>}, {transform_indices = @transform_4, window_bounds = array<i64: 2, 4, 4, 128>}]} {
    %c0 = arith.constant 0 : index
    %c0_0 = arith.constant 0 : index
    %c0_1 = arith.constant 0 : index
    %0 = vector.load %arg3[%c0, %c0_0, %c0_1] : memref<3x192x128xbf16, #tpu.memory_space<vmem>>, vector<1x192x128xbf16>
    %1 = vector.shape_cast %0 : vector<1x192x128xbf16> to vector<192x128xbf16>
    %c1 = arith.constant 1 : index
    %c0_2 = arith.constant 0 : index
    %c0_3 = arith.constant 0 : index
    %2 = vector.load %arg3[%c1, %c0_2, %c0_3] : memref<3x192x128xbf16, #tpu.memory_space<vmem>>, vector<1x192x128xbf16>
    %3 = vector.shape_cast %2 : vector<1x192x128xbf16> to vector<192x128xbf16>
    %c2 = arith.constant 2 : index
    %c0_4 = arith.constant 0 : index
    %c0_5 = arith.constant 0 : index
    %4 = vector.load %arg3[%c2, %c0_4, %c0_5] : memref<3x192x128xbf16, #tpu.memory_space<vmem>>, vector<1x192x128xbf16>
    %5 = vector.shape_cast %4 : vector<1x192x128xbf16> to vector<192x128xbf16>
    %c0_6 = arith.constant 0 : index
    %c0_7 = arith.constant 0 : index
    %6 = vector.load %arg4[%c0_6, %c0_7] : memref<1x128xf32, #tpu.memory_space<vmem>>, vector<1x128xf32>
    %c0_8 = arith.constant 0 : index
    %c0_9 = arith.constant 0 : index
    %c0_10 = arith.constant 0 : index
    %7 = vector.load %arg1[%c0_8, %c0_9, %c0_10] : memref<2x72x192xbf16, #tpu.memory_space<vmem>>, vector<1x64x192xbf16>
    %8 = vector.shape_cast %7 : vector<1x64x192xbf16> to vector<64x192xbf16>
    %c0_11 = arith.constant 0 : index
    %c1_12 = arith.constant 1 : index
    %c0_13 = arith.constant 0 : index
    %9 = vector.load %arg1[%c0_11, %c1_12, %c0_13] : memref<2x72x192xbf16, #tpu.memory_space<vmem>>, vector<1x64x192xbf16>
    %10 = vector.shape_cast %9 : vector<1x64x192xbf16> to vector<64x192xbf16>
    %c0_14 = arith.constant 0 : index
    %c0_15 = arith.constant 0 : index
    %c0_16 = arith.constant 0 : index
    %11 = vector.load %arg2[%c0_14, %c0_15, %c0_16] : memref<2x72x192xbf16, #tpu.memory_space<vmem>>, vector<1x64x192xbf16>
    %12 = vector.shape_cast %11 : vector<1x64x192xbf16> to vector<64x192xbf16>
    %c0_17 = arith.constant 0 : index
    %c1_18 = arith.constant 1 : index
    %c0_19 = arith.constant 0 : index
    %13 = vector.load %arg2[%c0_17, %c1_18, %c0_19] : memref<2x72x192xbf16, #tpu.memory_space<vmem>>, vector<1x64x192xbf16>
    %14 = vector.shape_cast %13 : vector<1x64x192xbf16> to vector<64x192xbf16>
    %cst = arith.constant dense<0.000000e+00> : vector<64x128xf32>
    %15 = tpu.matmul %8, %1, %cst {dimension_numbers = #tpu.dot_dimension_numbers<[1], [0], [0], [1], [0, 0, 1, 1], [], []>} : vector<64x192xbf16>, vector<192x128xbf16>, vector<64x128xf32> -> vector<64x128xf32>
    %cst_20 = arith.constant dense<0.000000e+00> : vector<64x128xf32>
    %16 = tpu.matmul %12, %3, %cst_20 {dimension_numbers = #tpu.dot_dimension_numbers<[1], [0], [0], [1], [0, 0, 1, 1], [], []>} : vector<64x192xbf16>, vector<192x128xbf16>, vector<64x128xf32> -> vector<64x128xf32>
    %17 = arith.addf %15, %16 : vector<64x128xf32>
    %cst_21 = arith.constant dense<0.000000e+00> : vector<64x128xf32>
    %18 = tpu.matmul %10, %5, %cst_21 {dimension_numbers = #tpu.dot_dimension_numbers<[1], [0], [0], [1], [0, 0, 1, 1], [], []>} : vector<64x192xbf16>, vector<192x128xbf16>, vector<64x128xf32> -> vector<64x128xf32>
    %19 = arith.addf %17, %18 : vector<64x128xf32>
    %cst_22 = arith.constant dense<0.000000e+00> : vector<64x128xf32>
    %20 = tpu.matmul %12, %1, %cst_22 {dimension_numbers = #tpu.dot_dimension_numbers<[1], [0], [0], [1], [0, 0, 1, 1], [], []>} : vector<64x192xbf16>, vector<192x128xbf16>, vector<64x128xf32> -> vector<64x128xf32>
    %cst_23 = arith.constant dense<0.000000e+00> : vector<64x128xf32>
    %21 = tpu.matmul %10, %3, %cst_23 {dimension_numbers = #tpu.dot_dimension_numbers<[1], [0], [0], [1], [0, 0, 1, 1], [], []>} : vector<64x192xbf16>, vector<192x128xbf16>, vector<64x128xf32> -> vector<64x128xf32>
    %22 = arith.addf %20, %21 : vector<64x128xf32>
    %cst_24 = arith.constant dense<0.000000e+00> : vector<64x128xf32>
    %23 = tpu.matmul %14, %5, %cst_24 {dimension_numbers = #tpu.dot_dimension_numbers<[1], [0], [0], [1], [0, 0, 1, 1], [], []>} : vector<64x192xbf16>, vector<192x128xbf16>, vector<64x128xf32> -> vector<64x128xf32>
    %24 = arith.addf %22, %23 : vector<64x128xf32>
    %25 = arith.maximumf %19, %24 : vector<64x128xf32>
    %26 = vector.broadcast %6 : vector<1x128xf32> to vector<64x128xf32>
    %27 = arith.addf %25, %26 : vector<64x128xf32>
    %cst_25 = arith.constant 0.000000e+00 : f32
    %28 = vector.broadcast %cst_25 : f32 to vector<64x128xf32>
    %29 = arith.maximumf %27, %28 : vector<64x128xf32>
    %30 = vector.shape_cast %29 : vector<64x128xf32> to vector<4x16x128xf32>
    %31 = vector.extract_strided_slice %30 {offsets = [0, 0, 0], sizes = [4, 8, 128], strides = [1, 1, 1]} : vector<4x16x128xf32> to vector<4x8x128xf32>
    %32 = vector.extract_strided_slice %30 {offsets = [0, 8, 0], sizes = [4, 8, 128], strides = [1, 1, 1]} : vector<4x16x128xf32> to vector<4x8x128xf32>
    %33 = arith.maximumf %31, %32 : vector<4x8x128xf32>
    %34 = vector.extract_strided_slice %33 {offsets = [0, 0, 0], sizes = [4, 4, 128], strides = [1, 1, 1]} : vector<4x8x128xf32> to vector<4x4x128xf32>
    %35 = arith.truncf %34 : vector<4x4x128xf32> to vector<4x4x128xbf16>
    %c0_26 = arith.constant 0 : index
    %c0_27 = arith.constant 0 : index
    %c0_28 = arith.constant 0 : index
    %c0_29 = arith.constant 0 : index
    %36 = vector.load %arg5[%c0_26, %c0_27, %c0_28, %c0_29] : memref<2x4x4x128xbf16, #tpu.memory_space<vmem>>, vector<1x4x4x128xbf16>
    %37 = vector.shape_cast %36 : vector<1x4x4x128xbf16> to vector<4x4x128xbf16>
    %38 = vector.shape_cast %35 : vector<4x4x128xbf16> to vector<1x4x4x128xbf16>
    tpu.vector_store %arg5[%c0_26, %c0_27, %c0_28, %c0_29], %38 {strides = array<i32>} : memref<2x4x4x128xbf16, #tpu.memory_space<vmem>>, vector<1x4x4x128xbf16>,
    %c1_30 = arith.constant 1 : index
    %c0_31 = arith.constant 0 : index
    %c0_32 = arith.constant 0 : index
    %39 = vector.load %arg1[%c1_30, %c0_31, %c0_32] : memref<2x72x192xbf16, #tpu.memory_space<vmem>>, vector<1x64x192xbf16>
    %40 = vector.shape_cast %39 : vector<1x64x192xbf16> to vector<64x192xbf16>
    %c1_33 = arith.constant 1 : index
    %c1_34 = arith.constant 1 : index
    %c0_35 = arith.constant 0 : index
    %41 = vector.load %arg1[%c1_33, %c1_34, %c0_35] : memref<2x72x192xbf16, #tpu.memory_space<vmem>>, vector<1x64x192xbf16>
    %42 = vector.shape_cast %41 : vector<1x64x192xbf16> to vector<64x192xbf16>
    %c1_36 = arith.constant 1 : index
    %c0_37 = arith.constant 0 : index
    %c0_38 = arith.constant 0 : index
    %43 = vector.load %arg2[%c1_36, %c0_37, %c0_38] : memref<2x72x192xbf16, #tpu.memory_space<vmem>>, vector<1x64x192xbf16>
    %44 = vector.shape_cast %43 : vector<1x64x192xbf16> to vector<64x192xbf16>
    %c1_39 = arith.constant 1 : index
    %c1_40 = arith.constant 1 : index
    %c0_41 = arith.constant 0 : index
    %45 = vector.load %arg2[%c1_39, %c1_40, %c0_41] : memref<2x72x192xbf16, #tpu.memory_space<vmem>>, vector<1x64x192xbf16>
    %46 = vector.shape_cast %45 : vector<1x64x192xbf16> to vector<64x192xbf16>
    %cst_42 = arith.constant dense<0.000000e+00> : vector<64x128xf32>
    %47 = tpu.matmul %40, %1, %cst_42 {dimension_numbers = #tpu.dot_dimension_numbers<[1], [0], [0], [1], [0, 0, 1, 1], [], []>} : vector<64x192xbf16>, vector<192x128xbf16>, vector<64x128xf32> -> vector<64x128xf32>
    %cst_43 = arith.constant dense<0.000000e+00> : vector<64x128xf32>
    %48 = tpu.matmul %44, %3, %cst_43 {dimension_numbers = #tpu.dot_dimension_numbers<[1], [0], [0], [1], [0, 0, 1, 1], [], []>} : vector<64x192xbf16>, vector<192x128xbf16>, vector<64x128xf32> -> vector<64x128xf32>
    %49 = arith.addf %47, %48 : vector<64x128xf32>
    %cst_44 = arith.constant dense<0.000000e+00> : vector<64x128xf32>
    %50 = tpu.matmul %42, %5, %cst_44 {dimension_numbers = #tpu.dot_dimension_numbers<[1], [0], [0], [1], [0, 0, 1, 1], [], []>} : vector<64x192xbf16>, vector<192x128xbf16>, vector<64x128xf32> -> vector<64x128xf32>
    %51 = arith.addf %49, %50 : vector<64x128xf32>
    %cst_45 = arith.constant dense<0.000000e+00> : vector<64x128xf32>
    %52 = tpu.matmul %44, %1, %cst_45 {dimension_numbers = #tpu.dot_dimension_numbers<[1], [0], [0], [1], [0, 0, 1, 1], [], []>} : vector<64x192xbf16>, vector<192x128xbf16>, vector<64x128xf32> -> vector<64x128xf32>
    %cst_46 = arith.constant dense<0.000000e+00> : vector<64x128xf32>
    %53 = tpu.matmul %42, %3, %cst_46 {dimension_numbers = #tpu.dot_dimension_numbers<[1], [0], [0], [1], [0, 0, 1, 1], [], []>} : vector<64x192xbf16>, vector<192x128xbf16>, vector<64x128xf32> -> vector<64x128xf32>
    %54 = arith.addf %52, %53 : vector<64x128xf32>
    %cst_47 = arith.constant dense<0.000000e+00> : vector<64x128xf32>
    %55 = tpu.matmul %46, %5, %cst_47 {dimension_numbers = #tpu.dot_dimension_numbers<[1], [0], [0], [1], [0, 0, 1, 1], [], []>} : vector<64x192xbf16>, vector<192x128xbf16>, vector<64x128xf32> -> vector<64x128xf32>
    %56 = arith.addf %54, %55 : vector<64x128xf32>
    %57 = arith.maximumf %51, %56 : vector<64x128xf32>
    %58 = vector.broadcast %6 : vector<1x128xf32> to vector<64x128xf32>
    %59 = arith.addf %57, %58 : vector<64x128xf32>
    %cst_48 = arith.constant 0.000000e+00 : f32
    %60 = vector.broadcast %cst_48 : f32 to vector<64x128xf32>
    %61 = arith.maximumf %59, %60 : vector<64x128xf32>
    %62 = vector.shape_cast %61 : vector<64x128xf32> to vector<4x16x128xf32>
    %63 = vector.extract_strided_slice %62 {offsets = [0, 0, 0], sizes = [4, 8, 128], strides = [1, 1, 1]} : vector<4x16x128xf32> to vector<4x8x128xf32>
    %64 = vector.extract_strided_slice %62 {offsets = [0, 8, 0], sizes = [4, 8, 128], strides = [1, 1, 1]} : vector<4x16x128xf32> to vector<4x8x128xf32>
    %65 = arith.maximumf %63, %64 : vector<4x8x128xf32>
    %66 = vector.extract_strided_slice %65 {offsets = [0, 0, 0], sizes = [4, 4, 128], strides = [1, 1, 1]} : vector<4x8x128xf32> to vector<4x4x128xf32>
    %67 = arith.truncf %66 : vector<4x4x128xf32> to vector<4x4x128xbf16>
    %c1_49 = arith.constant 1 : index
    %c0_50 = arith.constant 0 : index
    %c0_51 = arith.constant 0 : index
    %c0_52 = arith.constant 0 : index
    %68 = vector.load %arg5[%c1_49, %c0_50, %c0_51, %c0_52] : memref<2x4x4x128xbf16, #tpu.memory_space<vmem>>, vector<1x4x4x128xbf16>
    %69 = vector.shape_cast %68 : vector<1x4x4x128xbf16> to vector<4x4x128xbf16>
    %70 = vector.shape_cast %67 : vector<4x4x128xbf16> to vector<1x4x4x128xbf16>
    tpu.vector_store %arg5[%c1_49, %c0_50, %c0_51, %c0_52], %70 {strides = array<i32>} : memref<2x4x4x128xbf16, #tpu.memory_space<vmem>>, vector<1x4x4x128xbf16>,
    return
  }
  func.func @transform_0(%arg0: i32) -> (i32, i32, i32) {
    %c0_i32 = arith.constant 0 : i32
    %c0_i32_0 = arith.constant 0 : i32
    %c0_i32_1 = arith.constant 0 : i32
    return %arg0, %c0_i32, %c0_i32_0 : i32, i32, i32
  }
  func.func @transform_1(%arg0: i32) -> (i32, i32, i32) {
    %c0_i32 = arith.constant 0 : i32
    %c0_i32_0 = arith.constant 0 : i32
    %c0_i32_1 = arith.constant 0 : i32
    return %arg0, %c0_i32, %c0_i32_0 : i32, i32, i32
  }
  func.func @transform_2(%arg0: i32) -> (i32, i32, i32) {
    %c0_i32 = arith.constant 0 : i32
    %c0_i32_0 = arith.constant 0 : i32
    %c0_i32_1 = arith.constant 0 : i32
    %c0_i32_2 = arith.constant 0 : i32
    return %c0_i32, %c0_i32_0, %c0_i32_1 : i32, i32, i32
  }
  func.func @transform_3(%arg0: i32) -> (i32, i32) {
    %c0_i32 = arith.constant 0 : i32
    %c0_i32_0 = arith.constant 0 : i32
    %c0_i32_1 = arith.constant 0 : i32
    return %c0_i32, %c0_i32_0 : i32, i32
  }
  func.func @transform_4(%arg0: i32) -> (i32, i32, i32, i32) {
    %c0_i32 = arith.constant 0 : i32
    %c0_i32_0 = arith.constant 0 : i32
    %c0_i32_1 = arith.constant 0 : i32
    %c0_i32_2 = arith.constant 0 : i32
    return %arg0, %c0_i32, %c0_i32_0, %c0_i32_1 : i32, i32, i32, i32
  }
}

module attributes {stable_mosaic.version = 11 : i64} {
  func.func @_fc_fused_kernel(%arg0: i32, %arg1: i32, %arg2: memref<16x2048xbf16, #tpu.memory_space<vmem>>, %arg3: memref<2048x256xbf16, #tpu.memory_space<vmem>>, %arg4: memref<1x256xf32, #tpu.memory_space<vmem>>, %arg5: memref<256x128xbf16, #tpu.memory_space<vmem>>, %arg6: memref<1x128xf32, #tpu.memory_space<vmem>>, %arg7: memref<16x128xf32, #tpu.memory_space<vmem>>, %arg8: memref<16x256xf32, #tpu.memory_space<vmem>>) attributes {dimension_semantics = [#tpu.dimension_semantics<parallel>, #tpu.dimension_semantics<arbitrary>], iteration_bounds = array<i64: 1, 1>, scalar_prefetch = 0 : i64, scratch_operands = 1 : i64, tpu.core_type = #tpu.core_type<tc>, window_params = [{transform_indices = @transform_0, window_bounds = array<i64: 16, 2048>}, {transform_indices = @transform_1, window_bounds = array<i64: 2048, 256>}, {pipeline_mode = #tpu.pipeline_mode<synchronous>, transform_indices = @transform_2, window_bounds = array<i64: 1, 256>}, {pipeline_mode = #tpu.pipeline_mode<synchronous>, transform_indices = @transform_3, window_bounds = array<i64: 256, 128>}, {pipeline_mode = #tpu.pipeline_mode<synchronous>, transform_indices = @transform_4, window_bounds = array<i64: 1, 128>}, {transform_indices = @transform_5, window_bounds = array<i64: 16, 128>}]} {
    %c0_i32 = arith.constant 0 : i32
    %0 = arith.cmpi eq, %arg1, %c0_i32 : i32
    %1 = arith.extui %0 : i1 to i32
    %c0_i32_0 = arith.constant 0 : i32
    %2 = arith.cmpi ne, %1, %c0_i32_0 : i32
    scf.if %2 {
      %cst_10 = arith.constant 0.000000e+00 : f32
      %12 = vector.broadcast %cst_10 : f32 to vector<16x256xf32>
      %c0_11 = arith.constant 0 : index
      %c0_12 = arith.constant 0 : index
      %13 = vector.load %arg8[%c0_11, %c0_12] : memref<16x256xf32, #tpu.memory_space<vmem>>, vector<16x256xf32>
      tpu.vector_store %arg8[%c0_11, %c0_12], %12 {strides = array<i32>} : memref<16x256xf32, #tpu.memory_space<vmem>>, vector<16x256xf32>,
    } else {
    }
    %c0 = arith.constant 0 : index
    %c0_1 = arith.constant 0 : index
    %3 = vector.load %arg8[%c0, %c0_1] : memref<16x256xf32, #tpu.memory_space<vmem>>, vector<16x256xf32>
    %c0_2 = arith.constant 0 : index
    %c0_3 = arith.constant 0 : index
    %4 = vector.load %arg2[%c0_2, %c0_3] : memref<16x2048xbf16, #tpu.memory_space<vmem>>, vector<16x2048xbf16>
    %c0_4 = arith.constant 0 : index
    %c0_5 = arith.constant 0 : index
    %5 = vector.load %arg3[%c0_4, %c0_5] : memref<2048x256xbf16, #tpu.memory_space<vmem>>, vector<2048x256xbf16>
    %cst = arith.constant dense<0.000000e+00> : vector<16x256xf32>
    %6 = tpu.matmul %4, %5, %cst {dimension_numbers = #tpu.dot_dimension_numbers<[1], [0], [0], [1], [0, 0, 1, 1], [], []>} : vector<16x2048xbf16>, vector<2048x256xbf16>, vector<16x256xf32> -> vector<16x256xf32>
    %7 = arith.addf %3, %6 : vector<16x256xf32>
    %c0_6 = arith.constant 0 : index
    %c0_7 = arith.constant 0 : index
    %8 = vector.load %arg8[%c0_6, %c0_7] : memref<16x256xf32, #tpu.memory_space<vmem>>, vector<16x256xf32>
    tpu.vector_store %arg8[%c0_6, %c0_7], %7 {strides = array<i32>} : memref<16x256xf32, #tpu.memory_space<vmem>>, vector<16x256xf32>,
    %c0_i32_8 = arith.constant 0 : i32
    %9 = arith.cmpi eq, %arg1, %c0_i32_8 : i32
    %10 = arith.extui %9 : i1 to i32
    %c0_i32_9 = arith.constant 0 : i32
    %11 = arith.cmpi ne, %10, %c0_i32_9 : i32
    scf.if %11 {
      %c0_10 = arith.constant 0 : index
      %c0_11 = arith.constant 0 : index
      %12 = vector.load %arg8[%c0_10, %c0_11] : memref<16x256xf32, #tpu.memory_space<vmem>>, vector<16x256xf32>
      %c0_12 = arith.constant 0 : index
      %c0_13 = arith.constant 0 : index
      %13 = vector.load %arg4[%c0_12, %c0_13] : memref<1x256xf32, #tpu.memory_space<vmem>>, vector<1x256xf32>
      %14 = vector.broadcast %13 : vector<1x256xf32> to vector<16x256xf32>
      %15 = arith.addf %12, %14 : vector<16x256xf32>
      %cst_14 = arith.constant 0.000000e+00 : f32
      %16 = vector.broadcast %cst_14 : f32 to vector<16x256xf32>
      %17 = arith.maximumf %15, %16 : vector<16x256xf32>
      %18 = arith.truncf %17 : vector<16x256xf32> to vector<16x256xbf16>
      %c0_15 = arith.constant 0 : index
      %c0_16 = arith.constant 0 : index
      %19 = vector.load %arg5[%c0_15, %c0_16] : memref<256x128xbf16, #tpu.memory_space<vmem>>, vector<256x128xbf16>
      %cst_17 = arith.constant dense<0.000000e+00> : vector<16x128xf32>
      %20 = tpu.matmul %18, %19, %cst_17 {dimension_numbers = #tpu.dot_dimension_numbers<[1], [0], [0], [1], [0, 0, 1, 1], [], []>} : vector<16x256xbf16>, vector<256x128xbf16>, vector<16x128xf32> -> vector<16x128xf32>
      %c0_18 = arith.constant 0 : index
      %c0_19 = arith.constant 0 : index
      %21 = vector.load %arg6[%c0_18, %c0_19] : memref<1x128xf32, #tpu.memory_space<vmem>>, vector<1x128xf32>
      %22 = vector.broadcast %21 : vector<1x128xf32> to vector<16x128xf32>
      %23 = arith.addf %20, %22 : vector<16x128xf32>
      %24 = arith.negf %23 : vector<16x128xf32>
      %25 = math.exp %24 : vector<16x128xf32>
      %cst_20 = arith.constant 1.000000e+00 : f32
      %26 = vector.broadcast %cst_20 : f32 to vector<16x128xf32>
      %27 = arith.addf %26, %25 : vector<16x128xf32>
      %28 = arith.divf %26, %27 : vector<16x128xf32>
      %c0_21 = arith.constant 0 : index
      %c0_22 = arith.constant 0 : index
      %29 = vector.load %arg7[%c0_21, %c0_22] : memref<16x128xf32, #tpu.memory_space<vmem>>, vector<16x128xf32>
      tpu.vector_store %arg7[%c0_21, %c0_22], %28 {strides = array<i32>} : memref<16x128xf32, #tpu.memory_space<vmem>>, vector<16x128xf32>,
    } else {
    }
    return
  }
  func.func @transform_0(%arg0: i32, %arg1: i32) -> (i32, i32) {
    %c0_i32 = arith.constant 0 : i32
    return %arg0, %arg1 : i32, i32
  }
  func.func @transform_1(%arg0: i32, %arg1: i32) -> (i32, i32) {
    %c0_i32 = arith.constant 0 : i32
    %c0_i32_0 = arith.constant 0 : i32
    return %arg1, %c0_i32 : i32, i32
  }
  func.func @transform_2(%arg0: i32, %arg1: i32) -> (i32, i32) {
    %c0_i32 = arith.constant 0 : i32
    %c0_i32_0 = arith.constant 0 : i32
    %c0_i32_1 = arith.constant 0 : i32
    return %c0_i32, %c0_i32_0 : i32, i32
  }
  func.func @transform_3(%arg0: i32, %arg1: i32) -> (i32, i32) {
    %c0_i32 = arith.constant 0 : i32
    %c0_i32_0 = arith.constant 0 : i32
    %c0_i32_1 = arith.constant 0 : i32
    return %c0_i32, %c0_i32_0 : i32, i32
  }
  func.func @transform_4(%arg0: i32, %arg1: i32) -> (i32, i32) {
    %c0_i32 = arith.constant 0 : i32
    %c0_i32_0 = arith.constant 0 : i32
    %c0_i32_1 = arith.constant 0 : i32
    return %c0_i32, %c0_i32_0 : i32, i32
  }
  func.func @transform_5(%arg0: i32, %arg1: i32) -> (i32, i32) {
    %c0_i32 = arith.constant 0 : i32
    %c0_i32_0 = arith.constant 0 : i32
    return %arg0, %c0_i32 : i32, i32
  }
}

</mosaic_0001>

<bundles_post_ra>
// kernel: pneumonia_cnn_forward.5
= control target key start
LH: loop header
LB: loop body
LE: loop exit
PB: predicated region body
PF: predicated region fallthrough
CT: control target
= control target key end

     0   :  { %vm239_vm0 = vcmask 785408   ;;  %vm745_vm1 = vsmask.f32 7424  ;;  %vm1795_vm2 = vcmask 519168   ;;  %s6291_s2 = inlined_call_operand.vmem [shape: bf16[3,96,64], index: 2, kind: input, shape index: {}]   ;;  %s6292_s1 = inlined_call_operand.vmem [shape: bf16[2,272,96], index: 1, kind: input, shape index: {}]   ;;  %s6293_s0 = inlined_call_operand.vmem [shape: bf16[2,272,96], index: 0, kind: input, shape index: {}]   ;;  %s6294_s3 = inlined_call_operand.vmem [shape: f32[1,64], index: 3, kind: input, shape index: {}]   ;;  %s6295_s4 = inlined_call_operand.vmem [shape: bf16[2,8,8,64], index: 4, kind: output, shape index: {}]  }
   0x1   :  { %v4983_v0 = vld [vmem:[%s6291_s2 + $0x30] sm:$0xff]   ;;  %v4988_v1 = vld [vmem:[%s6291_s2 + $0x38] sm:$0xff]   ;;  %v4999_v2 = vld [vmem:[%s6291_s2 + $0x40] sm:$0xff]  }
   0x2   :  { %4082 = vmatprep.subr.bf16.mxu0 %v4983_v0  ;;  %4214 = vmatprep.subr.bf16.mxu1 %v4983_v0  ;;  %v5004_v3 = vld [vmem:[%s6291_s2 + $0x48] sm:$0xff]   ;;  %v5009_v4 = vld [vmem:[%s6292_s1] sm:$0xff]   ;;  %v5037_v10 = vld [vmem:[%s6291_s2 + $0x50] sm:$0xff]  }
   0x3   :  { %4083 = vmatpush3.bf16.msra.mxu0 %v4983_v0  ;;  %4215 = vmatpush3.bf16.msra.mxu1 %v4983_v0  ;;  %6318 = vst [vmem:[#allocation2_spill] sm:$0xff] %v5004_v3  ;;  %v5018_v5 = vld [vmem:[%s6293_s0] sm:$0xff]   ;;  %v5023_v6 = vld [vmem:[%s6293_s0 + $0x8] sm:$0xff]   ;;  %6319 = vst [vmem:[#allocation3_spill] sm:$0xff] %v5037_v10 }
   0x4   :  { %4084 = vmatprep.subr.bf16.mxu0 %v4988_v1  ;;  %4216 = vmatprep.subr.bf16.mxu1 %v4988_v1  ;;  %v746_v7 = vshrl.u32 %v5018_v5, 16  ;;  %v748_v8 = vshll.u32 %v5018_v5, 16  ;;  %v752_v9 = vshll.u32 %v5023_v6, 16  ;;  %v5042_v13 = vld [vmem:[%s6293_s0 + $0x10] sm:$0xff]   ;;  %v756_v15 = vshrl.u32 %v5023_v6, 16  ;;  %v5049_v17 = vld [vmem:[%s6293_s0 + $0x18] sm:$0xff]  }
   0x5   :  { %4094 = vmatprep.mubr.msk.bf16.mxu0 %vm239_vm0, %v5009_v4  ;;  %v759_v16 = vshll.u32 %v5042_v13, 16  ;;  %v5058_v18 = vld [vmem:[%s6291_s2 + $0x58] sm:$0xff]   ;;  %v763_v20 = vshrl.u32 %v5042_v13, 16  ;;  %v766_v21 = vshll.u32 %v5049_v17, 16  ;;  %v5070_v22 = vld [vmem:[%s6293_s0 + $0x20] sm:$0xff]   ;;  %v5084_v26 = vld [vmem:[%s6293_s0 + $0x28] sm:$0xff]  }
   0x6   :  { %v750_v11 = vrot.slane %v748_v8, 1  ;;  %v754_v12 = vrot.slane %v752_v9, 1  ;;  %6320 = vst [vmem:[#allocation4_spill] sm:$0xff] %v5058_v18  ;;  %v5077_v24 = vld [vmem:[%s6291_s2] sm:$0xff]   ;;  %v5089_v29 = vld [vmem:[%s6292_s1 + $0x8] sm:$0xff]   ;;  %v770_v30 = vshrl.u32 %v5049_v17, 16 }
   0x7   :  { %4085 = vmatpush3.bf16.msra.mxu0 %v4988_v1  ;;  %4217 = vmatpush3.bf16.msra.mxu1 %v4988_v1  ;;  %6321 = vst [vmem:[#allocation5_spill] sm:$0xff] %v5077_v24  ;;  %v761_v25 = vrot.slane %v759_v16, 1  ;;  %v768_v28 = vrot.slane %v766_v21, 1  ;;  %v773_v31 = vshll.u32 %v5070_v22, 16  ;;  %v5103_v33 = vld [vmem:[%s6292_s1 + $0x10] sm:$0xff]   ;;  %v4882_v34 = vld [vmem:[%s6291_s2 + $0x8] sm:$0xff]  }
   0x8   :  { %4086 = vmatprep.subr.bf16.mxu0 %v4999_v2  ;;  %4218 = vmatprep.subr.bf16.mxu1 %v4999_v2  ;;  %v751_v14 = vor.u32 %v750_v11, %v746_v7  ;;  %v758_v23 = vor.u32 %v756_v15, %v754_v12  ;;  %v777_v35 = vshrl.u32 %v5070_v22, 16  ;;  %v780_v36 = vshll.u32 %v5084_v26, 16  ;;  %v5116_v38 = vld [vmem:[%s6293_s0 + $0x30] sm:$0xff]   ;;  %v5136_v44 = vld [vmem:[%s6293_s0 + $0x38] sm:$0xff]   ;;  %v5150_v48 = vld [vmem:[%s6292_s1 + $0x20] sm:$0xff]  }
   0x9   :  { %v765_v27 = vor.u32 %v763_v20, %v761_v25  ;;  %v775_v39 = vrot.slane %v773_v31, 1  ;;  %v772_v40 = vor.u32 %v770_v30, %v768_v28  ;;  %v5127_v41 = vld [vmem:[%s6291_s2 + $0x10] sm:$0xff]   ;;  %v5141_v45 = vld [vmem:[%s6292_s1 + $0x18] sm:$0xff]   ;;  %v787_v46 = vshll.u32 %v5116_v38, 16  ;;  %v5163_v53 = vld [vmem:[%s6293_s0 + $0x40] sm:$0xff]  }
   0xa   :  { %v5061_v19 = vsel %vm745_vm1, %v751_v14, %v754_v12  ;;  %v5096_v32 = vsel %vm745_vm1, %v758_v23, %v761_v25  ;;  %6322 = vst [vmem:[#allocation6_spill] sm:$0xff] %v5127_v41  ;;  %v782_v43 = vrot.slane %v780_v36, 1  ;;  %v784_v49 = vshrl.u32 %v5084_v26, 16  ;;  %v5168_v54 = vld [vmem:[%s6291_s2 + $0x18] sm:$0xff]   ;;  %v5177_v56 = vld [vmem:[%s6293_s0 + $0x48] sm:$0xff]   ;;  %v5193_v61 = vld [vmem:[%s6293_s0 + $0x50] sm:$0xff]  }
   0xb   :  { %4087 = vmatpush3.bf16.msra.mxu0 %v4999_v2  ;;  %4219 = vmatpush3.bf16.msra.mxu1 %v4999_v2  ;;  %v5111_v37 = vsel %vm745_vm1, %v765_v27, %v768_v28  ;;  %v779_v42 = vor.u32 %v777_v35, %v775_v39  ;;  %v5145_v47 = vsel %vm745_vm1, %v772_v40, %v775_v39  ;;  %v791_v50 = vshrl.u32 %v5116_v38, 16  ;;  %v5186_v58 = vld [vmem:[%s6292_s1 + $0x28] sm:$0xff]   ;;  %v5198_v62 = vld [vmem:[%s6293_s0 + $0x58] sm:$0xff]   ;;  %v5206_v7 = vld [vmem:[%s6291_s2 + $0x20] sm:$0xff]  }
   0xc   :  { %4088 = vmatprep.subr.bf16.mxu0 %v5004_v3  ;;  %4220 = vmatprep.subr.bf16.mxu1 %v5004_v3  ;;  %v794_v52 = vshll.u32 %v5136_v44, 16  ;;  %6323 = vst [vmem:[#allocation7_spill] sm:$0xff] %v5168_v54  ;;  %v789_v55 = vrot.slane %v787_v46, 1  ;;  %v786_v57 = vor.u32 %v784_v49, %v782_v43  ;;  %v801_v63 = vshll.u32 %v5163_v53, 16  ;;  %6324 = vst [vmem:[#allocation8_spill] sm:$0xff] %v5206_v7  ;;  %v5212_v9 = vld [vmem:[%s6293_s0 + $0x60] sm:$0xff]  }
   0xd   :  { %4226 = vmatprep.mubr.msk.bf16.mxu1 %vm239_vm0, %v5061_v19  ;;  %v5155_v51 = vsel %vm745_vm1, %v779_v42, %v782_v43  ;;  %v808_v8 = vshll.u32 %v5177_v56, 16  ;;  %v5220_v12 = vld [vmem:[%s6292_s1 + $0x30] sm:$0xff]   ;;  %v798_v14 = vshrl.u32 %v5136_v44, 16  ;;  %v805_v16 = vshrl.u32 %v5163_v53, 16  ;;  %v5242_v30 = vld [vmem:[%s6291_s2 + $0x28] sm:$0xff]   ;;  %v5262_v42 = vld [vmem:[%s6292_s1 + $0x38] sm:$0xff]  }
   0xe   :  { %v793_v59 = vor.u32 %v791_v50, %v789_v55  ;;  %v796_v60 = vrot.slane %v794_v52, 1  ;;  %v5215_v11 = vsel %vm745_vm1, %v786_v57, %v789_v55  ;;  %v822_v20 = vshll.u32 %v5198_v62, 16  ;;  %6327 = vst [vmem:[#allocation11_spill] sm:$0xff] %v5242_v30  ;;  %v5255_v40 = vld [vmem:[%s6293_s0 + $0x68] sm:$0xff]   ;;  %v5270_v49 = vld [vmem:[%s6292_s1 + $0x40] sm:$0xff]  }
   0xf   :  { %4089 = vmatpush3.bf16.msra.mxu0 %v5004_v3  ;;  %4221 = vmatpush3.bf16.msra.mxu1 %v5004_v3  ;;  %6325 = vst [vmem:[#allocation9_spill] sm:$0xff] %v5215_v11  ;;  %v803_v21 = vrot.slane %v801_v63, 1  ;;  %v812_v23 = vshrl.u32 %v5177_v56, 16  ;;  %v810_v25 = vrot.slane %v808_v8, 1  ;;  %v815_v27 = vshll.u32 %v5193_v61, 16  ;;  %v5281_v63 = vld [vmem:[%s6291_s2 + $0x60] sm:$0xff]  }
  0x10   :  { %4090 = vmatprep.subr.bf16.mxu0 %v5037_v10  ;;  %4222 = vmatprep.subr.bf16.mxu1 %v5037_v10  ;;  %v5224_v15 = vsel %vm745_vm1, %v793_v59, %v796_v60  ;;  %v829_v28 = vshll.u32 %v5212_v9, 16  ;;  %v800_v31 = vor.u32 %v798_v14, %v796_v60  ;;  %v819_v35 = vshrl.u32 %v5193_v61, 16  ;;  %v5286_v8 = vld [vmem:[%s6293_s0 + $0x70] sm:$0xff]  }
  0x11   :  { %6326 = vst [vmem:[#allocation10_spill] sm:$0xff] %v5224_v15  ;;  %v824_v36 = vrot.slane %v822_v20, 1  ;;  %v826_v39 = vshrl.u32 %v5198_v62, 16  ;;  %v817_v43 = vrot.slane %v815_v27, 1  ;;  %v814_v50 = vor.u32 %v812_v23, %v810_v25 }
  0x12   :  { %v5265_v46 = vsel %vm745_vm1, %v800_v31, %v803_v21  ;;  %v831_v52 = vrot.slane %v829_v28, 1  ;;  %v836_v60 = vshll.u32 %v5255_v40, 16  ;;  %v1406_v28 = vshll.u32 %v5089_v29, 16  ;;  %v5320_v31 = vld [vmem:[%s6292_s1 + $0x50] sm:$0xff]  }
  0x13   :  { %4091 = vmatpush3.bf16.msra.mxu0 %v5037_v10  ;;  %4223 = vmatpush3.bf16.msra.mxu1 %v5037_v10  ;;  %6328 = vst [vmem:[#allocation12_spill] sm:$0xff] %v5265_v46  ;;  %v821_v57 = vor.u32 %v819_v35, %v817_v43  ;;  %v828_v59 = vor.u32 %v826_v39, %v824_v36  ;;  %v1410_v35 = vshrl.u32 %v5089_v29, 16  ;;  %v1417_v39 = vshrl.u32 %v5103_v33, 16 }
  0x14   :  { %4092 = vmatprep.subr.bf16.mxu0 %v5058_v18  ;;  %4224 = vmatprep.subr.bf16.mxu1 %v5058_v18  ;;  %v5297_v14 = vsel %vm745_vm1, %v814_v50, %v817_v43  ;;  %v5312_v27 = vrot.slane %v836_v60, 1  ;;  %v5326_v43 = vrot.slane %v1406_v28, 1  ;;  %v1420_v50 = vshll.u32 %v5141_v45, 16 }
  0x15   :  { %6330 = vst [vmem:[#allocation14_spill] sm:$0xff] %v5297_v14  ;;  %v5307_v23 = vsel %vm745_vm1, %v821_v57, %v824_v36  ;;  %v1413_v36 = vshll.u32 %v5103_v33, 16  ;;  %v1424_v57 = vshrl.u32 %v5141_v45, 16  ;;  %v1431_v20 = vshrl.u32 %v5150_v48, 16 }
  0x16   :  { %6331 = vst [vmem:[#allocation15_spill] sm:$0xff] %v5307_v23 }
  0x17   :  { %4093 = vmatpush3.bf16.msra.mxu0 %v5058_v18  ;;  %4225 = vmatpush3.bf16.msra.mxu1 %v5058_v18  ;;  %v1415_v60 = vrot.slane %v1413_v36, 1  ;;  %v1441_v18 = vshll.u32 %v5220_v12, 16  ;;  %v1448_v36 = vshll.u32 %v5262_v42, 16 }
  0x18   :  { %4126 = vmatprep.subr.bf16.mxu0 %v5077_v24  ;;  %4258 = vmatprep.subr.bf16.mxu1 %v5077_v24 }
  0x19   :  { %v1419_v28 = vor.u32 %v1417_v39, %v1415_v60 }
  0x1a   :  { %4095 = vmatmul.mubr.msk.bf16.vlgmr.msra.gmra.mrb[0].mxu0 %vm239_vm0, %v5089_v29  ;;  %4227 = vmatmul.mubr.msk.bf16.vlgmr.msra.gmra.mrb[0].mxu1 %vm239_vm0, %v5096_v32 }
  0x1b   :  { %4127 = vmatpush3.bf16.msra.mxu0 %v5077_v24  ;;  %4259 = vmatpush3.bf16.msra.mxu1 %v5077_v24 }
  0x1c   :  { %4098 = vmatprep.mubr.msk.bf16.mxu0 %vm239_vm0, %v5103_v33  ;;  %4230 = vmatprep.mubr.msk.bf16.mxu1 %vm239_vm0, %v5111_v37 }
  0x1d   :  { %4128 = vmatprep.subr.bf16.mxu0 %v4882_v34  ;;  %4260 = vmatprep.subr.bf16.mxu1 %v4882_v34 }
  0x1f   :  { %4129 = vmatpush3.bf16.msra.mxu0 %v4882_v34  ;;  %4261 = vmatpush3.bf16.msra.mxu1 %v4882_v34  ;;  %v807_v34 = vor.u32 %v805_v16, %v803_v21  ;;  %v833_v16 = vshrl.u32 %v5212_v9, 16  ;;  %v5304_v21 = vld [vmem:[%s6292_s1 + $0x48] sm:$0xff]  }
  0x20   :  { %4130 = vmatprep.subr.bf16.mxu0 %v5127_v41  ;;  %4262 = vmatprep.subr.bf16.mxu1 %v5127_v41 }
  0x21   :  { %v5273_v55 = vsel %vm745_vm1, %v807_v34, %v810_v25  ;;  %v5310_v25 = vsel %vm745_vm1, %v828_v59, %v831_v52  ;;  %v843_v34 = vshll.u32 %v5286_v8, 16  ;;  %v1427_v59 = vshll.u32 %v5150_v48, 16 }
  0x22   :  { %4099 = vmatmul.mubr.msk.bf16.gmra.mrb[4].mxu0 %vm239_vm0, %v5141_v45  ;;  %4231 = vmatmul.mubr.msk.bf16.gmra.mrb[4].mxu1 %vm239_vm0, %v5145_v47  ;;  %6329 = vst [vmem:[#allocation13_spill] sm:$0xff] %v5273_v55 }
  0x23   :  { %4102 = vmatprep.mubr.msk.bf16.mxu0 %vm239_vm0, %v5150_v48  ;;  %4234 = vmatprep.mubr.msk.bf16.mxu1 %vm239_vm0, %v5155_v51  ;;  %v845_v3 = vrot.slane %v843_v34, 1  ;;  %v6334_v34 = vshrl.u32 %v5255_v40, 16 }
  0x24   :  { %4131 = vmatpush3.bf16.msra.mxu0 %v5127_v41  ;;  %4263 = vmatpush3.bf16.msra.mxu1 %v5127_v41  ;;  %v1412_v41 = vor.u32 %v1410_v35, %v5326_v43 }
  0x25   :  { %4132 = vmatprep.subr.bf16.mxu0 %v5168_v54  ;;  %4264 = vmatprep.subr.bf16.mxu1 %v5168_v54 }
  0x28   :  { %4133 = vmatpush3.bf16.msra.mxu0 %v5168_v54  ;;  %4265 = vmatpush3.bf16.msra.mxu1 %v5168_v54  ;;  %v835_v54 = vor.u32 %v833_v16, %v831_v52  ;;  %v5344_v52 = vld [vmem:[%s6293_s0 + $0x78] sm:$0xff]   ;;  %v5347_v16 = vsel %vm745_vm1, %v1412_v41, %v1415_v60  ;;  %v1455_v60 = vshll.u32 %v5270_v49, 16 }
  0x29   :  { %4134 = vmatprep.subr.bf16.mxu0 %v5206_v7  ;;  %4266 = vmatprep.subr.bf16.mxu1 %v5206_v7 }
  0x2a   :  { %4103 = vmatmul.mubr.msk.bf16.gmra.mrb[8].mxu0 %vm239_vm0, %v5186_v58  ;;  %4235 = vmatmul.mubr.msk.bf16.gmra.mrb[8].mxu1 %vm239_vm0, %v5215_v11 }
  0x2b   :  { %4106 = vmatprep.mubr.msk.bf16.mxu0 %vm239_vm0, %v5220_v12  ;;  %4238 = vmatprep.mubr.msk.bf16.mxu1 %vm239_vm0, %v5224_v15  ;;  %v1445_v15 = vshrl.u32 %v5220_v12, 16 }
  0x2c   :  { %4135 = vmatpush3.bf16.msra.mxu0 %v5206_v7  ;;  %4267 = vmatpush3.bf16.msra.mxu1 %v5206_v7  ;;  %v1438_v7 = vshrl.u32 %v5186_v58, 16 }
  0x2d   :  { %4136 = vmatprep.subr.bf16.mxu0 %v5242_v30  ;;  %4268 = vmatprep.subr.bf16.mxu1 %v5242_v30 }
  0x30   :  { %4137 = vmatpush3.bf16.msra.mxu0 %v5242_v30  ;;  %4269 = vmatpush3.bf16.msra.mxu1 %v5242_v30  ;;  %v1434_v30 = vshll.u32 %v5186_v58, 16 }
  0x31   :  { %4170 = vmatprep.subr.bf16.mxu0 %v5281_v63  ;;  %4302 = vmatprep.subr.bf16.mxu1 %v5281_v63 }
  0x32   :  { %4107 = vmatmul.mubr.msk.bf16.gmra.mrb[12].mxu0 %vm239_vm0, %v5262_v42  ;;  %4239 = vmatmul.mubr.msk.bf16.gmra.mrb[12].mxu1 %vm239_vm0, %v5265_v46  ;;  %v1429_v46 = vrot.slane %v1427_v59, 1  ;;  %v1436_v24 = vrot.slane %v1434_v30, 1  ;;  %v1443_v59 = vrot.slane %v1441_v18, 1  ;;  %v5373_v18 = vld [vmem:[%s6292_s1 + $0x58] sm:$0xff]  }
  0x33   :  { %4110 = vmatprep.mubr.msk.bf16.mxu0 %vm239_vm0, %v5270_v49  ;;  %4242 = vmatprep.mubr.msk.bf16.mxu1 %vm239_vm0, %v5273_v55  ;;  %v1422_v55 = vrot.slane %v1420_v50, 1 }
  0x34   :  { %v1433_v30 = vor.u32 %v1431_v20, %v1429_v46  ;;  %v1440_v50 = vor.u32 %v1438_v7, %v1436_v24  ;;  %v1462_v7 = vshll.u32 %v5304_v21, 16 }
  0x35   :  { %v1426_v35 = vor.u32 %v1424_v57, %v1422_v55  ;;  %v5355_v39 = vsel %vm745_vm1, %v1419_v28, %v1422_v55  ;;  %v1450_v57 = vrot.slane %v1448_v36, 1  ;;  %v1459_v55 = vshrl.u32 %v5270_v49, 16 }
  0x36   :  { %v5362_v20 = vsel %vm745_vm1, %v1433_v30, %v1436_v24  ;;  %v5366_v11 = vsel %vm745_vm1, %v1440_v50, %v1443_v59  ;;  %v1457_v28 = vrot.slane %v1455_v60, 1  ;;  %v1466_v24 = vshrl.u32 %v5304_v21, 16  ;;  %v5380_v30 = vld [vmem:[%s6292_s1 + $0x60] sm:$0xff]  }
  0x37   :  { %v5359_v41 = vsel %vm745_vm1, %v1426_v35, %v1429_v46  ;;  %6332 = vst [vmem:[#allocation16_spill] sm:$0xff] %v5362_v20  ;;  %6333 = vst [vmem:[#allocation17_spill] sm:$0xff] %v5366_v11  ;;  %v1469_v35 = vshll.u32 %v5320_v31, 16  ;;  %v847_v36 = vshrl.u32 %v5286_v8, 16 }
  0x38   :  { %v1461_v11 = vor.u32 %v1459_v55, %v1457_v28 }
  0x39   :  { %v5394_v10 = vrot.slane %v1469_v35, 1 }
  0x3a   :  { %4111 = vmatmul.mubr.msk.bf16.gmra.mrb[16].mxu0 %vm239_vm0, %v5304_v21  ;;  %4243 = vmatmul.mubr.msk.bf16.gmra.mrb[16].mxu1 %vm239_vm0, %v5297_v14  ;;  %v1452_v14 = vshrl.u32 %v5262_v42, 16 }
  0x3b   :  { %4114 = vmatprep.mubr.msk.bf16.mxu0 %vm239_vm0, %v5320_v31  ;;  %4246 = vmatprep.mubr.msk.bf16.mxu1 %vm239_vm0, %v5307_v23  ;;  %v1447_v23 = vor.u32 %v1445_v15, %v1443_v59  ;;  %v5384_v15 = vsel %vm745_vm1, %v835_v54, %v5312_v27  ;;  %v850_v59 = vshll.u32 %v5344_v52, 16  ;;  %v4910_v54 = vld [vmem:[%s6293_s0 + $0x80] ss:$0 sps:$4 sm:$0x11]  }
  0x3c   :  { %v1454_v46 = vor.u32 %v1452_v14, %v1450_v57  ;;  %v1464_v14 = vrot.slane %v1462_v7, 1  ;;  %v849_v7 = vor.u32 %v847_v36, %v845_v3  ;;  %v858_v35 = vshll.u32 %v4910_v54, 16  ;;  %v5461_v54 = vld [vmem:[%s6291_s2 + $0x68] sm:$0xff]  }
  0x3d   :  { %v5388_v50 = vsel %vm745_vm1, %v1447_v23, %v1450_v57  ;;  %v842_v57 = vor.u32 %v6334_v34, %v5312_v27  ;;  %v854_v27 = vshrl.u32 %v5344_v52, 16 }
  0x3e   :  { %v5392_v60 = vsel %vm745_vm1, %v1454_v46, %v1457_v28  ;;  %v1468_v20 = vor.u32 %v1466_v24, %v1464_v14  ;;  %v5404_v23 = vsel %vm745_vm1, %v1461_v11, %v1464_v14  ;;  %v852_v46 = vrot.slane %v850_v59, 1  ;;  %v5420_v11 = vld [vmem:[%s6292_s1 + $0x68] sm:$0xff]   ;;  %v5425_v28 = vld [vmem:[%s6292_s1 + $0x70] sm:$0xff]   ;;  %v5445_v14 = vld [vmem:[%s6292_s1 + $0x78] sm:$0xff]  }
  0x3f   :  { %v5428_v24 = vsel %vm745_vm1, %v842_v57, %v845_v3  ;;  %v860_v36 = vrot.slane %v858_v35, 1  ;;  %v5668_v57 = vld [vmem:[%s6293_s0 + $0x90] sm:$0xff]  }
  0x40   :  { %v5415_v55 = vsel %vm745_vm1, %v1468_v20, %v5394_v10  ;;  %v5432_v20 = vsel %vm745_vm1, %v849_v7, %v852_v46  ;;  %v856_v3 = vor.u32 %v854_v27, %v852_v46  ;;  %v2427_v27 = vshll.u32 %v5668_v57, 16 }
  0x42   :  { %4115 = vmatmul.mubr.msk.bf16.gmra.mrb[20].mxu0 %vm239_vm0, %v5373_v18  ;;  %4247 = vmatmul.mubr.msk.bf16.gmra.mrb[20].mxu1 %vm239_vm0, %v5310_v25  ;;  %v5448_v59 = vsel %vm745_vm1, %v856_v3, %v860_v36  ;;  %v5685_v36 = vld [vmem:[%s6293_s0 + $0x98] sm:$0xff]  }
  0x43   :  { %4118 = vmatprep.mubr.msk.bf16.mxu0 %vm239_vm0, %v5380_v30  ;;  %4250 = vmatprep.mubr.msk.bf16.mxu1 %vm239_vm0, %v5384_v15 }
  0x4a   :  { %4119 = vmatmul.mubr.msk.bf16.gmra.mrb[24].mxu0 %vm239_vm0, %v5420_v11  ;;  %4251 = vmatmul.mubr.msk.bf16.gmra.mrb[24].mxu1 %vm239_vm0, %v5428_v24 }
  0x4b   :  { %4122 = vmatprep.mubr.msk.bf16.mxu0 %vm239_vm0, %v5425_v28  ;;  %4254 = vmatprep.mubr.msk.bf16.mxu1 %vm239_vm0, %v5432_v20 }
  0x52   :  { %4123 = vmatmul.mubr.msk.bf16.gmra.mrb[28].mxu0 %vm239_vm0, %v5445_v14  ;;  %4255 = vmatmul.mubr.msk.bf16.gmra.mrb[28].mxu1 %vm239_vm0, %v5448_v59 }
  0x53   :  { %4138 = vmatprep.mubr.msk.bf16.mxu0 %vm239_vm0, %v5018_v5  ;;  %4270 = vmatprep.mubr.msk.bf16.mxu1 %vm239_vm0, %v5009_v4  ;;  %v5476_v5 = vld [vmem:[%s6291_s2 + $0x70] sm:$0xff]  }
  0x5a   :  { %4139 = vmatmul.mubr.msk.bf16.vlgmr.msra.gmra.mrb[0].mxu0 %vm239_vm0, %v5023_v6  ;;  %4271 = vmatmul.mubr.msk.bf16.vlgmr.msra.gmra.mrb[0].mxu1 %vm239_vm0, %v5089_v29  ;;  %v5487_v6 = vld [vmem:[%s6291_s2 + $0x78] sm:$0xff]  }
  0x5b   :  { %4171 = vmatpush3.bf16.msra.mxu0 %v5281_v63  ;;  %4303 = vmatpush3.bf16.msra.mxu1 %v5281_v63 }
  0x5c   :  { %4142 = vmatprep.mubr.msk.bf16.mxu0 %vm239_vm0, %v5042_v13  ;;  %4274 = vmatprep.mubr.msk.bf16.mxu1 %vm239_vm0, %v5103_v33  ;;  %v5504_v13 = vld [vmem:[%s6291_s2 + $0x80] sm:$0xff]  }
  0x5d   :  { %4172 = vmatprep.subr.bf16.mxu0 %v5461_v54  ;;  %4304 = vmatprep.subr.bf16.mxu1 %v5461_v54 }
  0x5f   :  { %4173 = vmatpush3.bf16.msra.mxu0 %v5461_v54  ;;  %4305 = vmatpush3.bf16.msra.mxu1 %v5461_v54 }
  0x60   :  { %4174 = vmatprep.subr.bf16.mxu0 %v5476_v5  ;;  %4306 = vmatprep.subr.bf16.mxu1 %v5476_v5 }
  0x62   :  { %4143 = vmatmul.mubr.msk.bf16.gmra.mrb[4].mxu0 %vm239_vm0, %v5049_v17  ;;  %4275 = vmatmul.mubr.msk.bf16.gmra.mrb[4].mxu1 %vm239_vm0, %v5141_v45  ;;  %v5513_v17 = vld [vmem:[%s6291_s2 + $0x88] sm:$0xff]   ;;  %v1476_v45 = vshll.u32 %v5373_v18, 16 }
  0x63   :  { %4146 = vmatprep.mubr.msk.bf16.mxu0 %vm239_vm0, %v5070_v22  ;;  %4278 = vmatprep.mubr.msk.bf16.mxu1 %vm239_vm0, %v5150_v48  ;;  %v1402_v22 = vshll.u32 %v5009_v4, 16  ;;  %v6343_v48 = vld [vmem:[#allocation12_spill] sm:$0xff] }
  0x64   :  { %4175 = vmatpush3.bf16.msra.mxu0 %v5476_v5  ;;  %4307 = vmatpush3.bf16.msra.mxu1 %v5476_v5 }
  0x65   :  { %4176 = vmatprep.subr.bf16.mxu0 %v5487_v6  ;;  %4308 = vmatprep.subr.bf16.mxu1 %v5487_v6  ;;  %v1404_v29 = vrot.slane %v1402_v22, 1  ;;  %v2429_v22 = vrot.slane %v2427_v27, 1  ;;  %v5823_v27 = vld [vmem:[%s6292_s1 + $0xb8] sm:$0xff]  }
  0x68   :  { %4177 = vmatpush3.bf16.msra.mxu0 %v5487_v6  ;;  %4309 = vmatpush3.bf16.msra.mxu1 %v5487_v6 }
  0x69   :  { %4178 = vmatprep.subr.bf16.mxu0 %v5504_v13  ;;  %4310 = vmatprep.subr.bf16.mxu1 %v5504_v13 }
  0x6a   :  { %4147 = vmatmul.mubr.msk.bf16.gmra.mrb[8].mxu0 %vm239_vm0, %v5084_v26  ;;  %4279 = vmatmul.mubr.msk.bf16.gmra.mrb[8].mxu1 %vm239_vm0, %v5186_v58  ;;  %v1400_v26 = vshrl.u32 %v5009_v4, 16  ;;  %v6337_v4 = vld [vmem:[#allocation3_spill] sm:$0xff]  ;;  %v1483_v58 = vshll.u32 %v5380_v30, 16 }
  0x6b   :  { %4150 = vmatprep.mubr.msk.bf16.mxu0 %vm239_vm0, %v5116_v38  ;;  %4282 = vmatprep.mubr.msk.bf16.mxu1 %vm239_vm0, %v5220_v12  ;;  %v1490_v12 = vshll.u32 %v5420_v11, 16 }
  0x6c   :  { %4179 = vmatpush3.bf16.msra.mxu0 %v5504_v13  ;;  %4311 = vmatpush3.bf16.msra.mxu1 %v5504_v13  ;;  %v1405_v33 = vor.u32 %v1404_v29, %v1400_v26  ;;  %v2431_v29 = vshrl.u32 %v5668_v57, 16 }
  0x6d   :  { %4180 = vmatprep.subr.bf16.mxu0 %v5513_v17  ;;  %4312 = vmatprep.subr.bf16.mxu1 %v5513_v17 }
  0x6e   :  { %v1409_v38 = vsel %vm745_vm1, %v1405_v33, %v5326_v43  ;;  %v2434_v33 = vshll.u32 %v5685_v36, 16 }
  0x70   :  { %4181 = vmatpush3.bf16.msra.mxu0 %v5513_v17  ;;  %4313 = vmatpush3.bf16.msra.mxu1 %v5513_v17 }
  0x71   :  { %4346 = vmatprep.subr.bf16.mxu0 %v4983_v0  ;;  %4478 = vmatprep.subr.bf16.mxu1 %v4983_v0 }
  0x72   :  { %4151 = vmatmul.mubr.msk.bf16.gmra.mrb[12].mxu0 %vm239_vm0, %v5136_v44  ;;  %4283 = vmatmul.mubr.msk.bf16.gmra.mrb[12].mxu1 %vm239_vm0, %v5262_v42  ;;  %v1473_v44 = vshrl.u32 %v5320_v31, 16  ;;  %v1485_v42 = vrot.slane %v1483_v58, 1 }
  0x73   :  { %4154 = vmatprep.mubr.msk.bf16.mxu0 %vm239_vm0, %v5163_v53  ;;  %4286 = vmatprep.mubr.msk.bf16.mxu1 %vm239_vm0, %v5270_v49  ;;  %v6346_v49 = vld [vmem:[#allocation15_spill] sm:$0xff] }
  0x74   :  { %v1475_v53 = vor.u32 %v1473_v44, %v5394_v10  ;;  %v5725_v44 = vld [vmem:[%s6292_s1 + $0x90] sm:$0xff]  }
  0x7a   :  { %4155 = vmatmul.mubr.msk.bf16.gmra.mrb[16].mxu0 %vm239_vm0, %v5177_v56  ;;  %4287 = vmatmul.mubr.msk.bf16.gmra.mrb[16].mxu1 %vm239_vm0, %v5304_v21  ;;  %v1478_v56 = vrot.slane %v1476_v45, 1  ;;  %v1492_v21 = vrot.slane %v1490_v12, 1 }
  0x7b   :  { %4158 = vmatprep.mubr.msk.bf16.mxu0 %vm239_vm0, %v5193_v61  ;;  %4290 = vmatprep.mubr.msk.bf16.mxu1 %vm239_vm0, %v5320_v31  ;;  %v1480_v61 = vshrl.u32 %v5373_v18, 16  ;;  %v1497_v31 = vshll.u32 %v5425_v28, 16 }
  0x7d   :  { %v1482_v10 = vor.u32 %v1480_v61, %v1478_v56 }
  0x7f   :  { %v1486_v43 = vsel %vm745_vm1, %v1482_v10, %v1485_v42  ;;  %v4953_v10 = vld [vmem:[%s6291_s2 + $0x8] sm:$0xff]  }
  0x82   :  { %4159 = vmatmul.mubr.msk.bf16.gmra.mrb[20].mxu0 %vm239_vm0, %v5198_v62  ;;  %4291 = vmatmul.mubr.msk.bf16.gmra.mrb[20].mxu1 %vm239_vm0, %v5373_v18  ;;  %v1479_v62 = vsel %vm745_vm1, %v1475_v53, %v1478_v56  ;;  %v5654_v18 = vld [vmem:[%s6293_s0 + $0x88] sm:$0xff]  }
  0x83   :  { %4162 = vmatprep.mubr.msk.bf16.mxu0 %vm239_vm0, %v5212_v9  ;;  %4294 = vmatprep.mubr.msk.bf16.mxu1 %vm239_vm0, %v5380_v30  ;;  %v1487_v9 = vshrl.u32 %v5380_v30, 16  ;;  %v1499_v30 = vrot.slane %v1497_v31, 1 }
  0x8a   :  { %4163 = vmatmul.mubr.msk.bf16.gmra.mrb[24].mxu0 %vm239_vm0, %v5255_v40  ;;  %4295 = vmatmul.mubr.msk.bf16.gmra.mrb[24].mxu1 %vm239_vm0, %v5420_v11  ;;  %v6345_v40 = vld [vmem:[#allocation14_spill] sm:$0xff] }
  0x8b   :  { %4166 = vmatprep.mubr.msk.bf16.mxu0 %vm239_vm0, %v5286_v8  ;;  %4298 = vmatprep.mubr.msk.bf16.mxu1 %vm239_vm0, %v5425_v28  ;;  %v1489_v8 = vor.u32 %v1487_v9, %v1485_v42  ;;  %v4952_v9 = vld [vmem:[%s6291_s2] sm:$0xff]  }
  0x92   :  { %4167 = vmatmul.mubr.msk.bf16.gmra.mrb[28].mxu0 %vm239_vm0, %v5344_v52  ;;  %4299 = vmatmul.mubr.msk.bf16.gmra.mrb[28].mxu1 %vm239_vm0, %v5445_v14  ;;  %v1494_v52 = vshrl.u32 %v5420_v11, 16  ;;  %v2421_v11 = vshrl.u32 %v5654_v18, 16 }
  0x93   :  { %4182 = vmatprep.mubr.msk.bf16.mxu0 %vm239_vm0, %v5061_v19  ;;  %4314 = vmatprep.mubr.msk.bf16.mxu1 %vm239_vm0, %v1409_v38  ;;  %v6338_v19 = vld [vmem:[#allocation9_spill] sm:$0xff] }
  0x9a   :  { %4183 = vmatmul.mubr.msk.bf16.vlgmr.msra.gmra.mrb[0].mxu0 %vm239_vm0, %v5096_v32  ;;  %4315 = vmatmul.mubr.msk.bf16.vlgmr.msra.gmra.mrb[0].mxu1 %vm239_vm0, %v5347_v16  ;;  %v6339_v32 = vld [vmem:[#allocation17_spill] sm:$0xff]  ;;  %v1493_v16 = vsel %vm745_vm1, %v1489_v8, %v1492_v21  ;;  %v5769_v8 = vld [vmem:[%s6292_s1 + $0xa0] sm:$0xff]  }
  0x9b   :  { %4347 = vmatpush3.bf16.msra.mxu0 %v4983_v0  ;;  %4479 = vmatpush3.bf16.msra.mxu1 %v4983_v0  ;;  %v6335_v0 = vld [vmem:[#allocation16_spill] sm:$0xff] }
  0x9c   :  { %4186 = vmatprep.mubr.msk.bf16.mxu0 %vm239_vm0, %v5111_v37  ;;  %4318 = vmatprep.mubr.msk.bf16.mxu1 %vm239_vm0, %v5355_v39  ;;  %v6340_v37 = vld [vmem:[#allocation10_spill] sm:$0xff]  ;;  %v1501_v39 = vshrl.u32 %v5425_v28, 16 }
  0x9d   :  { %4348 = vmatprep.subr.bf16.mxu0 %v4988_v1  ;;  %4480 = vmatprep.subr.bf16.mxu1 %v4988_v1 }
  0x9f   :  { %4349 = vmatpush3.bf16.msra.mxu0 %v4988_v1  ;;  %4481 = vmatpush3.bf16.msra.mxu1 %v4988_v1  ;;  %v6336_v1 = vld [vmem:[#allocation2_spill] sm:$0xff] }
  0xa0   :  { %4350 = vmatprep.subr.bf16.mxu0 %v4999_v2  ;;  %4482 = vmatprep.subr.bf16.mxu1 %v4999_v2 }
  0xa2   :  { %4187 = vmatmul.mubr.msk.bf16.gmra.mrb[4].mxu0 %vm239_vm0, %v5145_v47  ;;  %4319 = vmatmul.mubr.msk.bf16.gmra.mrb[4].mxu1 %vm239_vm0, %v5359_v41  ;;  %v6342_v47 = vld [vmem:[#allocation5_spill] sm:$0xff]  ;;  %v1504_v41 = vshll.u32 %v5445_v14, 16 }
  0xa3   :  { %4190 = vmatprep.mubr.msk.bf16.mxu0 %vm239_vm0, %v5155_v51  ;;  %4322 = vmatprep.mubr.msk.bf16.mxu1 %vm239_vm0, %v6335_v0  ;;  %v6344_v51 = vld [vmem:[#allocation13_spill] sm:$0xff]  ;;  %v2438_v0 = vshrl.u32 %v5685_v36, 16 }
  0xa4   :  { %4351 = vmatpush3.bf16.msra.mxu0 %v4999_v2  ;;  %4483 = vmatpush3.bf16.msra.mxu1 %v4999_v2  ;;  %v6341_v2 = vld [vmem:[#allocation4_spill] sm:$0xff]  ;;  %v1506_v34 = vrot.slane %v1504_v41, 1 }
  0xa5   :  { %4352 = vmatprep.subr.bf16.mxu0 %v6336_v1  ;;  %4484 = vmatprep.subr.bf16.mxu1 %v6336_v1 }
  0xa8   :  { %4353 = vmatpush3.bf16.msra.mxu0 %v6336_v1  ;;  %4485 = vmatpush3.bf16.msra.mxu1 %v6336_v1 }
  0xa9   :  { %4354 = vmatprep.subr.bf16.mxu0 %v6337_v4  ;;  %4486 = vmatprep.subr.bf16.mxu1 %v6337_v4 }
  0xaa   :  { %4191 = vmatmul.mubr.msk.bf16.gmra.mrb[8].mxu0 %vm239_vm0, %v6338_v19  ;;  %4323 = vmatmul.mubr.msk.bf16.gmra.mrb[8].mxu1 %vm239_vm0, %v6339_v32  ;;  %v2433_v19 = vor.u32 %v2431_v29, %v2429_v22  ;;  %v2436_v32 = vrot.slane %v2434_v33, 1  ;;  %v5842_v33 = vld [vmem:[%s6293_s0 + $0xd8] sm:$0xff]  }
  0xab   :  { %4194 = vmatprep.mubr.msk.bf16.mxu0 %vm239_vm0, %v6340_v37  ;;  %4326 = vmatprep.mubr.msk.bf16.mxu1 %vm239_vm0, %v5388_v50  ;;  %v1496_v50 = vor.u32 %v1494_v52, %v1492_v21  ;;  %v5720_v37 = vld [vmem:[%s6293_s0 + $0xb0] sm:$0xff]  }
  0xac   :  { %4355 = vmatpush3.bf16.msra.mxu0 %v6337_v4  ;;  %4487 = vmatpush3.bf16.msra.mxu1 %v6337_v4  ;;  %v5711_v4 = vld [vmem:[%s6293_s0 + $0xa8] sm:$0xff]   ;;  %v2455_v56 = vshll.u32 %v5720_v37, 16  ;;  %v2459_v52 = vshrl.u32 %v5720_v37, 16 }
  0xad   :  { %4356 = vmatprep.subr.bf16.mxu0 %v6341_v2  ;;  %4488 = vmatprep.subr.bf16.mxu1 %v6341_v2  ;;  %v2448_v45 = vshll.u32 %v5711_v4, 16  ;;  %v2452_v53 = vshrl.u32 %v5711_v4, 16 }
  0xae   :  { %v2457_v42 = vrot.slane %v2455_v56, 1 }
  0xaf   :  { %v2450_v61 = vrot.slane %v2448_v45, 1  ;;  %v2490_v45 = vshll.u32 %v5842_v33, 16 }
  0xb0   :  { %4357 = vmatpush3.bf16.msra.mxu0 %v6341_v2  ;;  %4489 = vmatpush3.bf16.msra.mxu1 %v6341_v2 }
  0xb1   :  { %4390 = vmatprep.subr.bf16.mxu0 %v6342_v47  ;;  %4522 = vmatprep.subr.bf16.mxu1 %v6342_v47  ;;  %v5729_v47 = vsel %vm745_vm1, %v2433_v19, %v2436_v32 }
  0xb2   :  { %4195 = vmatmul.mubr.msk.bf16.gmra.mrb[12].mxu0 %vm239_vm0, %v6343_v48  ;;  %4327 = vmatmul.mubr.msk.bf16.gmra.mrb[12].mxu1 %vm239_vm0, %v5392_v60  ;;  %v4917_v60 = vld [vmem:[%s6292_s1 + $0x80] ss:$0 sps:$4 sm:$0x11]  }
  0xb3   :  { %4198 = vmatprep.mubr.msk.bf16.mxu0 %vm239_vm0, %v6344_v51  ;;  %4330 = vmatprep.mubr.msk.bf16.mxu1 %vm239_vm0, %v5404_v23  ;;  %v1503_v23 = vor.u32 %v1501_v39, %v1499_v30  ;;  %v1512_v7 = vshll.u32 %v4917_v60, 16  ;;  %v5735_v51 = vld [vmem:[%s6292_s1 + $0x98] sm:$0xff]   ;;  %v6347_v39 = vld [vmem:[#allocation6_spill] sm:$0xff]  ;;  %v5795_v60 = vld [vmem:[%s6293_s0 + $0xc8] sm:$0xff]  }
  0xb5   :  { %v1507_v46 = vsel %vm745_vm1, %v1503_v23, %v1506_v34  ;;  %v1514_v3 = vrot.slane %v1512_v7, 1  ;;  %v2461_v23 = vor.u32 %v2459_v52, %v2457_v42  ;;  %v6348_v7 = vld [vmem:[#allocation7_spill] sm:$0xff] }
  0xba   :  { %4199 = vmatmul.mubr.msk.bf16.gmra.mrb[16].mxu0 %vm239_vm0, %v6345_v40  ;;  %4331 = vmatmul.mubr.msk.bf16.gmra.mrb[16].mxu1 %vm239_vm0, %v5415_v55  ;;  %v1500_v55 = vsel %vm745_vm1, %v1496_v50, %v1499_v30  ;;  %v2454_v40 = vor.u32 %v2452_v53, %v2450_v61  ;;  %v5869_v53 = vld [vmem:[%s6292_s1 + $0xc8] sm:$0xff]  }
  0xbb   :  { %4202 = vmatprep.mubr.msk.bf16.mxu0 %vm239_vm0, %v6346_v49  ;;  %4334 = vmatprep.mubr.msk.bf16.mxu1 %vm239_vm0, %v1479_v62  ;;  %v5749_v62 = vld [vmem:[%s6293_s0 + $0xb8] sm:$0xff]   ;;  %v5761_v49 = vld [vmem:[%s6293_s0 + $0xc0] sm:$0xff]  }
  0xbc   :  { %v2462_v21 = vshll.u32 %v5749_v62, 16  ;;  %v2466_v41 = vshrl.u32 %v5749_v62, 16  ;;  %v2469_v30 = vshll.u32 %v5761_v49, 16 }
  0xbe   :  { %v2464_v50 = vrot.slane %v2462_v21, 1 }
  0xc2   :  { %4203 = vmatmul.mubr.msk.bf16.gmra.mrb[20].mxu0 %vm239_vm0, %v5310_v25  ;;  %4335 = vmatmul.mubr.msk.bf16.gmra.mrb[20].mxu1 %vm239_vm0, %v1486_v43  ;;  %v2423_v25 = vshll.u32 %v5654_v18, 16  ;;  %v5778_v43 = vld [vmem:[%s6292_s1 + $0xa8] sm:$0xff]  }
  0xc3   :  { %4206 = vmatprep.mubr.msk.bf16.mxu0 %vm239_vm0, %v5384_v15  ;;  %4338 = vmatprep.mubr.msk.bf16.mxu1 %vm239_vm0, %v1493_v16  ;;  %v1508_v15 = vshrl.u32 %v5445_v14, 16  ;;  %v5782_v16 = vsel %vm745_vm1, %v2454_v40, %v2457_v42  ;;  %v2492_v40 = vrot.slane %v2490_v45, 1  ;;  %v5888_v42 = vld [vmem:[%s6293_s0 + $0xe8] sm:$0xff]  }
  0xc4   :  { %v2425_v28 = vrot.slane %v2423_v25, 1  ;;  %v2468_v25 = vor.u32 %v2466_v41, %v2464_v50  ;;  %v5902_v41 = vld [vmem:[%s6292_s1 + $0xd0] sm:$0xff]  }
  0xc5   :  { %v1510_v35 = vor.u32 %v1508_v15, %v1506_v34  ;;  %v4954_v34 = vld [vmem:[%s6291_s2 + $0x10] sm:$0xff]  }
  0xc6   :  { %v2426_v14 = vor.u32 %v2425_v28, %v2421_v11  ;;  %v5807_v15 = vld [vmem:[%s6293_s0 + $0xd0] sm:$0xff]   ;;  %v2476_v11 = vshll.u32 %v5795_v60, 16  ;;  %v5818_v28 = vsel %vm745_vm1, %v2461_v23, %v2464_v50  ;;  %v5911_v23 = vld [vmem:[%s6292_s1 + $0xd8] sm:$0xff]  }
  0xc7   :  { %v1515_v26 = vsel %vm745_vm1, %v1510_v35, %v1514_v3  ;;  %v2473_v35 = vshrl.u32 %v5761_v49, 16  ;;  %v2487_v56 = vshrl.u32 %v5807_v15, 16 }
  0xc8   :  { %v5701_v38 = vsel %vm745_vm1, %v2426_v14, %v2429_v22  ;;  %v2480_v14 = vshrl.u32 %v5795_v60, 16  ;;  %v2483_v22 = vshll.u32 %v5807_v15, 16  ;;  %v2478_v29 = vrot.slane %v2476_v11, 1 }
  0xca   :  { %4207 = vmatmul.mubr.msk.bf16.gmra.mrb[24].mxu0 %vm239_vm0, %v5428_v24  ;;  %4339 = vmatmul.mubr.msk.bf16.gmra.mrb[24].mxu1 %vm239_vm0, %v1500_v55  ;;  %v5690_v24 = vld [vmem:[%s6293_s0 + $0xa0] sm:$0xff]   ;;  %v2471_v55 = vrot.slane %v2469_v30, 1  ;;  %v2485_v19 = vrot.slane %v2483_v22, 1  ;;  %v2504_v30 = vshll.u32 %v5888_v42, 16 }
  0xcb   :  { %4210 = vmatprep.mubr.msk.bf16.mxu0 %vm239_vm0, %v5432_v20  ;;  %4342 = vmatprep.mubr.msk.bf16.mxu1 %vm239_vm0, %v1507_v46  ;;  %v5696_v20 = vld [vmem:[%s6292_s1 + $0x88] sm:$0xff]   ;;  %v2441_v1 = vshll.u32 %v5690_v24, 16  ;;  %v2445_v48 = vshrl.u32 %v5690_v24, 16  ;;  %v5814_v46 = vld [vmem:[%s6292_s1 + $0xb0] sm:$0xff]  }
  0xcc   :  { %v5827_v3 = vsel %vm745_vm1, %v2468_v25, %v2471_v55  ;;  %v2506_v11 = vrot.slane %v2504_v30, 1 }
  0xcd   :  { %v2443_v2 = vrot.slane %v2441_v1, 1  ;;  %v2482_v1 = vor.u32 %v2480_v14, %v2478_v29 }
  0xcf   :  { %v2447_v12 = vor.u32 %v2445_v48, %v2443_v2 }
  0xd1   :  { %v5773_v31 = vsel %vm745_vm1, %v2447_v12, %v2450_v61  ;;  %v5873_v61 = vsel %vm745_vm1, %v2482_v1, %v2485_v19 }
  0xd2   :  { %4211 = vmatmul.mubr.msk.bf16.gmra.mrb[28].mxu0 %vm239_vm0, %v5448_v59  ;;  %4343 = vmatmul.mubr.msk.bf16.gmra.mrb[28].mxu1 %vm239_vm0, %v1515_v26  ;;  %v2440_v59 = vor.u32 %v2438_v0, %v2436_v32  ;;  %v6349_v26 = vld [vmem:[#allocation8_spill] sm:$0xff]  ;;  %v2475_v0 = vor.u32 %v2473_v35, %v2471_v55  ;;  %v5851_v32 = vld [vmem:[%s6293_s0 + $0xe0] sm:$0xff]   ;;  %v2508_v55 = vshrl.u32 %v5888_v42, 16  ;;  %v5926_v35 = vld [vmem:[%s6293_s0 + $0xf8] sm:$0xff]  }
  0xd3   :  { %4358 = vmatprep.mubr.msk.bf16.mxu0 %vm239_vm0, %v5696_v20  ;;  %4490 = vmatprep.mubr.msk.bf16.mxu1 %vm239_vm0, %v5701_v38  ;;  %v2497_v12 = vshll.u32 %v5851_v32, 16  ;;  %v2518_v1 = vshll.u32 %v5926_v35, 16 }
  0xd4   :  { %v5740_v58 = vsel %vm745_vm1, %v2440_v59, %v2443_v2  ;;  %v6350_v59 = vld [vmem:[#allocation11_spill] sm:$0xff]  ;;  %v5860_v2 = vld [vmem:[%s6292_s1 + $0xc0] sm:$0xff]   ;;  %v5864_v48 = vsel %vm745_vm1, %v2475_v0, %v2478_v29  ;;  %v2510_v22 = vor.u32 %v2508_v55, %v2506_v11 }
  0xd5   :  { %v2499_v52 = vrot.slane %v2497_v12, 1  ;;  %v5935_v29 = vld [vmem:[%s6293_s0 + $0x100] sm:$0xff]  }
  0xd6   :  { %v5940_v0 = vld [vmem:[%s6292_s1 + $0xe0] sm:$0xff]   ;;  %v2525_v12 = vshll.u32 %v5935_v29, 16 }
  0xd8   :  { %v2527_v30 = vrot.slane %v2525_v12, 1 }
  0xda   :  { %4359 = vmatmul.mubr.msk.bf16.vlgmr.msra.gmra.mrb[32].mxu0 %vm239_vm0, %v5725_v44  ;;  %4491 = vmatmul.mubr.msk.bf16.vlgmr.msra.gmra.mrb[32].mxu1 %vm239_vm0, %v5729_v47 }
  0xdb   :  { %4391 = vmatpush3.bf16.msra.mxu0 %v4952_v9  ;;  %4523 = vmatpush3.bf16.msra.mxu1 %v4952_v9  ;;  %v2494_v9 = vshrl.u32 %v5842_v33, 16 }
  0xdc   :  { %4362 = vmatprep.mubr.msk.bf16.mxu0 %vm239_vm0, %v5735_v51  ;;  %4494 = vmatprep.mubr.msk.bf16.mxu1 %vm239_vm0, %v5740_v58 }
  0xdd   :  { %4392 = vmatprep.subr.bf16.mxu0 %v4953_v10  ;;  %4524 = vmatprep.subr.bf16.mxu1 %v4953_v10  ;;  %v2496_v21 = vor.u32 %v2494_v9, %v2492_v40  ;;  %v2522_v9 = vshrl.u32 %v5926_v35, 16 }
  0xdf   :  { %4393 = vmatpush3.bf16.msra.mxu0 %v4953_v10  ;;  %4525 = vmatpush3.bf16.msra.mxu1 %v4953_v10  ;;  %v2489_v10 = vor.u32 %v2487_v56, %v2485_v19  ;;  %v5915_v25 = vsel %vm745_vm1, %v2496_v21, %v2499_v52  ;;  %v4950_v21 = vld [vmem:[%s6293_s0 + $0x108] ss:$0 sps:$4 sm:$0x11]  }
  0xe0   :  { %4394 = vmatprep.subr.bf16.mxu0 %v6347_v39  ;;  %4526 = vmatprep.subr.bf16.mxu1 %v6347_v39  ;;  %v5897_v39 = vld [vmem:[%s6293_s0 + $0xf0] sm:$0xff]  }
  0xe1   :  { %v5906_v50 = vsel %vm745_vm1, %v2489_v10, %v2492_v40  ;;  %v2515_v45 = vshrl.u32 %v5897_v39, 16  ;;  %v2520_v40 = vrot.slane %v2518_v1, 1 }
  0xe2   :  { %4363 = vmatmul.mubr.msk.bf16.gmra.mrb[36].mxu0 %vm239_vm0, %v5769_v8  ;;  %4495 = vmatmul.mubr.msk.bf16.gmra.mrb[36].mxu1 %vm239_vm0, %v5773_v31 }
  0xe3   :  { %4366 = vmatprep.mubr.msk.bf16.mxu0 %vm239_vm0, %v5778_v43  ;;  %4498 = vmatprep.mubr.msk.bf16.mxu1 %vm239_vm0, %v5782_v16 }
  0xe4   :  { %4395 = vmatpush3.bf16.msra.mxu0 %v4954_v34  ;;  %4527 = vmatpush3.bf16.msra.mxu1 %v4954_v34  ;;  %v2501_v34 = vshrl.u32 %v5851_v32, 16 }
  0xe5   :  { %4396 = vmatprep.subr.bf16.mxu0 %v6348_v7  ;;  %4528 = vmatprep.subr.bf16.mxu1 %v6348_v7 }
  0xe6   :  { %v2503_v14 = vor.u32 %v2501_v34, %v2499_v52  ;;  %v2524_v52 = vor.u32 %v2522_v9, %v2520_v40  ;;  %v5971_v34 = vld [vmem:[%s6292_s1 + $0xf0] sm:$0xff]  }
  0xe8   :  { %4397 = vmatpush3.bf16.msra.mxu0 %v6348_v7  ;;  %4529 = vmatpush3.bf16.msra.mxu1 %v6348_v7  ;;  %v2511_v7 = vshll.u32 %v5897_v39, 16  ;;  %v5944_v19 = vsel %vm745_vm1, %v2503_v14, %v2506_v11  ;;  %v2529_v11 = vshrl.u32 %v5935_v29, 16  ;;  %v2533_v14 = vshll.u32 %v4950_v21, 16 }
  0xe9   :  { %4398 = vmatprep.subr.bf16.mxu0 %v6349_v26  ;;  %4530 = vmatprep.subr.bf16.mxu1 %v6349_v26 }
  0xea   :  { %4367 = vmatmul.mubr.msk.bf16.gmra.mrb[40].mxu0 %vm239_vm0, %v5814_v46  ;;  %4499 = vmatmul.mubr.msk.bf16.gmra.mrb[40].mxu1 %vm239_vm0, %v5818_v28  ;;  %v2535_v1 = vrot.slane %v2533_v14, 1  ;;  %v3101_v14 = vshll.u32 %v5902_v41, 16 }
  0xeb   :  { %4370 = vmatprep.mubr.msk.bf16.mxu0 %vm239_vm0, %v5823_v27  ;;  %4502 = vmatprep.mubr.msk.bf16.mxu1 %vm239_vm0, %v5827_v3 }
  0xec   :  { %4399 = vmatpush3.bf16.msra.mxu0 %v6349_v26  ;;  %4531 = vmatpush3.bf16.msra.mxu1 %v6349_v26  ;;  %v2513_v26 = vrot.slane %v2511_v7, 1  ;;  %v5979_v7 = vld [vmem:[%s6292_s1 + $0xf8] sm:$0xff]  }
  0xed   :  { %4400 = vmatprep.subr.bf16.mxu0 %v6350_v59  ;;  %4532 = vmatprep.subr.bf16.mxu1 %v6350_v59 }
  0xee   :  { %v5953_v56 = vsel %vm745_vm1, %v2510_v22, %v2513_v26  ;;  %v2517_v10 = vor.u32 %v2515_v45, %v2513_v26  ;;  %v5983_v22 = vsel %vm745_vm1, %v2524_v52, %v2527_v30  ;;  %v2531_v26 = vor.u32 %v2529_v11, %v2527_v30  ;;  %v5996_v45 = vld [vmem:[%s6292_s1 + $0x100] sm:$0xff]  }
  0xef   :  { %v3094_v52 = vshll.u32 %v5869_v53, 16  ;;  %v3091_v30 = vshrl.u32 %v5860_v2, 16 }
  0xf0   :  { %4401 = vmatpush3.bf16.msra.mxu0 %v6350_v59  ;;  %4533 = vmatpush3.bf16.msra.mxu1 %v6350_v59  ;;  %v5949_v59 = vld [vmem:[%s6292_s1 + $0xe8] sm:$0xff]   ;;  %v5974_v55 = vsel %vm745_vm1, %v2517_v10, %v2520_v40  ;;  %v5999_v9 = vsel %vm745_vm1, %v2531_v26, %v2535_v1  ;;  %v3087_v40 = vshll.u32 %v5860_v2, 16 }
  0xf1   :  { %4434 = vmatprep.subr.bf16.mxu0 %v5281_v63  ;;  %4566 = vmatprep.subr.bf16.mxu1 %v5281_v63 }
  0xf2   :  { %4371 = vmatmul.mubr.msk.bf16.gmra.mrb[44].mxu0 %vm239_vm0, %v5860_v2  ;;  %4503 = vmatmul.mubr.msk.bf16.gmra.mrb[44].mxu1 %vm239_vm0, %v5864_v48 }
  0xf3   :  { %4374 = vmatprep.mubr.msk.bf16.mxu0 %vm239_vm0, %v5869_v53  ;;  %4506 = vmatprep.mubr.msk.bf16.mxu1 %vm239_vm0, %v5873_v61 }
  0xfa   :  { %4375 = vmatmul.mubr.msk.bf16.gmra.mrb[48].mxu0 %vm239_vm0, %v5902_v41  ;;  %4507 = vmatmul.mubr.msk.bf16.gmra.mrb[48].mxu1 %vm239_vm0, %v5906_v50 }
  0xfb   :  { %4378 = vmatprep.mubr.msk.bf16.mxu0 %vm239_vm0, %v5911_v23  ;;  %4510 = vmatprep.mubr.msk.bf16.mxu1 %vm239_vm0, %v5915_v25 }
 0x102   :  { %4379 = vmatmul.mubr.msk.bf16.gmra.mrb[52].mxu0 %vm239_vm0, %v5940_v0  ;;  %4511 = vmatmul.mubr.msk.bf16.gmra.mrb[52].mxu1 %vm239_vm0, %v5944_v19 }
 0x103   :  { %4382 = vmatprep.mubr.msk.bf16.mxu0 %vm239_vm0, %v5949_v59  ;;  %4514 = vmatprep.mubr.msk.bf16.mxu1 %vm239_vm0, %v5953_v56 }
 0x10a   :  { %4383 = vmatmul.mubr.msk.bf16.gmra.mrb[56].mxu0 %vm239_vm0, %v5971_v34  ;;  %4515 = vmatmul.mubr.msk.bf16.gmra.mrb[56].mxu1 %vm239_vm0, %v5974_v55 }
 0x10b   :  { %4386 = vmatprep.mubr.msk.bf16.mxu0 %vm239_vm0, %v5979_v7  ;;  %4518 = vmatprep.mubr.msk.bf16.mxu1 %vm239_vm0, %v5983_v22 }
 0x112   :  { %4387 = vmatmul.mubr.msk.bf16.gmra.mrb[60].mxu0 %vm239_vm0, %v5996_v45  ;;  %4519 = vmatmul.mubr.msk.bf16.gmra.mrb[60].mxu1 %vm239_vm0, %v5999_v9 }
 0x113   :  { %4402 = vmatprep.mubr.msk.bf16.mxu0 %vm239_vm0, %v5654_v18  ;;  %4534 = vmatprep.mubr.msk.bf16.mxu1 %vm239_vm0, %v5696_v20  ;;  %v3052_v18 = vshll.u32 %v5735_v51, 16 }
 0x11a   :  { %4403 = vmatmul.mubr.msk.bf16.vlgmr.msra.gmra.mrb[32].mxu0 %vm239_vm0, %v5668_v57  ;;  %4535 = vmatmul.mubr.msk.bf16.vlgmr.msra.gmra.mrb[32].mxu1 %vm239_vm0, %v5725_v44  ;;  %v3049_v57 = vshrl.u32 %v5725_v44, 16 }
 0x11b   :  { %4435 = vmatpush3.bf16.msra.mxu0 %v5281_v63  ;;  %4567 = vmatpush3.bf16.msra.mxu1 %v5281_v63  ;;  %v3041_v63 = vshll.u32 %v5696_v20, 16 }
 0x11c   :  { %4406 = vmatprep.mubr.msk.bf16.mxu0 %vm239_vm0, %v5685_v36  ;;  %4538 = vmatprep.mubr.msk.bf16.mxu1 %vm239_vm0, %v5735_v51 }
 0x11d   :  { %4436 = vmatprep.subr.bf16.mxu0 %v5461_v54  ;;  %4568 = vmatprep.subr.bf16.mxu1 %v5461_v54 }
 0x11f   :  { %4437 = vmatpush3.bf16.msra.mxu0 %v5461_v54  ;;  %4569 = vmatpush3.bf16.msra.mxu1 %v5461_v54  ;;  %v3039_v54 = vshrl.u32 %v5696_v20, 16  ;;  %v3059_v20 = vshll.u32 %v5769_v8, 16 }
 0x120   :  { %4438 = vmatprep.subr.bf16.mxu0 %v5476_v5  ;;  %4570 = vmatprep.subr.bf16.mxu1 %v5476_v5 }
 0x122   :  { %4407 = vmatmul.mubr.msk.bf16.gmra.mrb[36].mxu0 %vm239_vm0, %v5690_v24  ;;  %4539 = vmatmul.mubr.msk.bf16.gmra.mrb[36].mxu1 %vm239_vm0, %v5769_v8  ;;  %v3056_v24 = vshrl.u32 %v5735_v51, 16 }
 0x123   :  { %4410 = vmatprep.mubr.msk.bf16.mxu0 %vm239_vm0, %v5711_v4  ;;  %4542 = vmatprep.mubr.msk.bf16.mxu1 %vm239_vm0, %v5778_v43  ;;  %v3054_v4 = vrot.slane %v3052_v18, 1 }
 0x124   :  { %4439 = vmatpush3.bf16.msra.mxu0 %v5476_v5  ;;  %4571 = vmatpush3.bf16.msra.mxu1 %v5476_v5  ;;  %v3043_v5 = vrot.slane %v3041_v63, 1 }
 0x125   :  { %4440 = vmatprep.subr.bf16.mxu0 %v5487_v6  ;;  %4572 = vmatprep.subr.bf16.mxu1 %v5487_v6 }
 0x128   :  { %4441 = vmatpush3.bf16.msra.mxu0 %v5487_v6  ;;  %4573 = vmatpush3.bf16.msra.mxu1 %v5487_v6  ;;  %v3045_v6 = vshll.u32 %v5725_v44, 16  ;;  %v3058_v44 = vor.u32 %v3056_v24, %v3054_v4 }
 0x129   :  { %4442 = vmatprep.subr.bf16.mxu0 %v5504_v13  ;;  %4574 = vmatprep.subr.bf16.mxu1 %v5504_v13 }
 0x12a   :  { %4411 = vmatmul.mubr.msk.bf16.gmra.mrb[40].mxu0 %vm239_vm0, %v5720_v37  ;;  %4543 = vmatmul.mubr.msk.bf16.gmra.mrb[40].mxu1 %vm239_vm0, %v5814_v46 }
 0x12b   :  { %4414 = vmatprep.mubr.msk.bf16.mxu0 %vm239_vm0, %v5749_v62  ;;  %4546 = vmatprep.mubr.msk.bf16.mxu1 %vm239_vm0, %v5823_v27  ;;  %v3061_v62 = vrot.slane %v3059_v20, 1 }
 0x12c   :  { %4443 = vmatpush3.bf16.msra.mxu0 %v5504_v13  ;;  %4575 = vmatpush3.bf16.msra.mxu1 %v5504_v13  ;;  %v3044_v13 = vor.u32 %v3043_v5, %v3039_v54 }
 0x12d   :  { %4444 = vmatprep.subr.bf16.mxu0 %v5513_v17  ;;  %4576 = vmatprep.subr.bf16.mxu1 %v5513_v17 }
 0x130   :  { %4445 = vmatpush3.bf16.msra.mxu0 %v5513_v17  ;;  %4577 = vmatpush3.bf16.msra.mxu1 %v5513_v17  ;;  %v3047_v17 = vrot.slane %v3045_v6, 1 }
 0x132   :  { %4415 = vmatmul.mubr.msk.bf16.gmra.mrb[44].mxu0 %vm239_vm0, %v5761_v49  ;;  %4547 = vmatmul.mubr.msk.bf16.gmra.mrb[44].mxu1 %vm239_vm0, %v5860_v2  ;;  %v3048_v36 = vsel %vm745_vm1, %v3044_v13, %v3047_v17  ;;  %v3051_v37 = vor.u32 %v3049_v57, %v3047_v17  ;;  %v3066_v49 = vshll.u32 %v5778_v43, 16  ;;  %v3103_v2 = vrot.slane %v3101_v14, 1 }
 0x133   :  { %4418 = vmatprep.mubr.msk.bf16.mxu0 %vm239_vm0, %v5795_v60  ;;  %4550 = vmatprep.mubr.msk.bf16.mxu1 %vm239_vm0, %v5869_v53  ;;  %v3063_v60 = vshrl.u32 %v5769_v8, 16  ;;  %v3108_v13 = vshll.u32 %v5911_v23, 16 }
 0x134   :  { %v3055_v51 = vsel %vm745_vm1, %v3051_v37, %v3054_v4 }
 0x13a   :  { %4419 = vmatmul.mubr.msk.bf16.gmra.mrb[48].mxu0 %vm239_vm0, %v5807_v15  ;;  %4551 = vmatmul.mubr.msk.bf16.gmra.mrb[48].mxu1 %vm239_vm0, %v5902_v41  ;;  %v3062_v15 = vsel %vm745_vm1, %v3058_v44, %v3061_v62  ;;  %v3112_v44 = vshrl.u32 %v5911_v23, 16 }
 0x13b   :  { %4422 = vmatprep.mubr.msk.bf16.mxu0 %vm239_vm0, %v5842_v33  ;;  %4554 = vmatprep.mubr.msk.bf16.mxu1 %vm239_vm0, %v5911_v23  ;;  %v3070_v33 = vshrl.u32 %v5778_v43, 16 }
 0x142   :  { %4423 = vmatmul.mubr.msk.bf16.gmra.mrb[52].mxu0 %vm239_vm0, %v5851_v32  ;;  %4555 = vmatmul.mubr.msk.bf16.gmra.mrb[52].mxu1 %vm239_vm0, %v5940_v0  ;;  %v3073_v32 = vshll.u32 %v5814_v46, 16 }
 0x143   :  { %4426 = vmatprep.mubr.msk.bf16.mxu0 %vm239_vm0, %v5888_v42  ;;  %4558 = vmatprep.mubr.msk.bf16.mxu1 %vm239_vm0, %v5949_v59  ;;  %v3065_v42 = vor.u32 %v3063_v60, %v3061_v62  ;;  %v3115_v62 = vshll.u32 %v5940_v0, 16  ;;  %v3110_v60 = vrot.slane %v3108_v13, 1 }
 0x144   :  { %v3075_v8 = vrot.slane %v3073_v32, 1 }
 0x145   :  { %v3117_v23 = vrot.slane %v3115_v62, 1 }
 0x14a   :  { %4427 = vmatmul.mubr.msk.bf16.gmra.mrb[56].mxu0 %vm239_vm0, %v5897_v39  ;;  %4559 = vmatmul.mubr.msk.bf16.gmra.mrb[56].mxu1 %vm239_vm0, %v5971_v34 }
 0x14b   :  { %4430 = vmatprep.mubr.msk.bf16.mxu0 %vm239_vm0, %v5926_v35  ;;  %4562 = vmatprep.mubr.msk.bf16.mxu1 %vm239_vm0, %v5979_v7  ;;  %v3080_v35 = vshll.u32 %v5823_v27, 16 }
 0x152   :  { %4431 = vmatmul.mubr.msk.bf16.gmra.mrb[60].mxu0 %vm239_vm0, %v5935_v29  ;;  %4563 = vmatmul.mubr.msk.bf16.gmra.mrb[60].mxu1 %vm239_vm0, %v5996_v45  ;;  %v3077_v29 = vshrl.u32 %v5814_v46, 16  ;;  %v3089_v46 = vrot.slane %v3087_v40, 1  ;;  %v3119_v40 = vshrl.u32 %v5940_v0, 16 }
 0x153   :  { %4446 = vmatprep.mubr.msk.bf16.mxu0 %vm239_vm0, %v5701_v38  ;;  %4578 = vmatprep.mubr.msk.bf16.mxu1 %vm239_vm0, %v3048_v36  ;;  %v3068_v38 = vrot.slane %v3066_v49, 1  ;;  %v3105_v36 = vshrl.u32 %v5902_v41, 16 }
 0x154   :  { %v3079_v10 = vor.u32 %v3077_v29, %v3075_v8  ;;  %v3093_v26 = vor.u32 %v3091_v30, %v3089_v46 }
 0x155   :  { %v3072_v39 = vor.u32 %v3070_v33, %v3068_v38  ;;  %v3069_v43 = vsel %vm745_vm1, %v3065_v42, %v3068_v38  ;;  %v3114_v33 = vor.u32 %v3112_v44, %v3110_v60 }
 0x157   :  { %v3076_v12 = vsel %vm745_vm1, %v3072_v39, %v3075_v8 }
 0x15a   :  { %4447 = vmatmul.mubr.msk.bf16.vlgmr.msra.gmra.mrb[32].mxu0 %vm239_vm0, %v5729_v47  ;;  %4579 = vmatmul.mubr.msk.bf16.vlgmr.msra.gmra.mrb[32].mxu1 %vm239_vm0, %v3055_v51  ;;  %v3084_v47 = vshrl.u32 %v5823_v27, 16 }
 0x15b   :  { %4450 = vmatprep.mubr.msk.bf16.mxu0 %vm239_vm0, %v5740_v58  ;;  %4582 = vmatprep.mubr.msk.bf16.mxu1 %vm239_vm0, %v3062_v15  ;;  %v3082_v58 = vrot.slane %v3080_v35, 1  ;;  %v3107_v15 = vor.u32 %v3105_v36, %v3103_v2 }
 0x15d   :  { %v3086_v21 = vor.u32 %v3084_v47, %v3082_v58  ;;  %v3083_v27 = vsel %vm745_vm1, %v3079_v10, %v3082_v58 }
 0x15f   :  { %v3090_v11 = vsel %vm745_vm1, %v3086_v21, %v3089_v46  ;;  %v3118_v46 = vsel %vm745_vm1, %v3114_v33, %v3117_v23 }
 0x162   :  { %4451 = vmatmul.mubr.msk.bf16.gmra.mrb[36].mxu0 %vm239_vm0, %v5773_v31  ;;  %4583 = vmatmul.mubr.msk.bf16.gmra.mrb[36].mxu1 %vm239_vm0, %v3069_v43  ;;  %v3098_v31 = vshrl.u32 %v5869_v53, 16  ;;  %v6141_v53 = vld [vmem:[%s6294_s3] ss:$0 sm:$0xff] }
 0x163   :  { %4454 = vmatprep.mubr.msk.bf16.mxu0 %vm239_vm0, %v5782_v16  ;;  %4586 = vmatprep.mubr.msk.bf16.mxu1 %vm239_vm0, %v3076_v12  ;;  %v3096_v16 = vrot.slane %v3094_v52, 1  ;;  %v3126_v52 = vshrl.u32 %v5949_v59, 16 }
 0x165   :  { %v3100_v1 = vor.u32 %v3098_v31, %v3096_v16  ;;  %v3097_v57 = vsel %vm745_vm1, %v3093_v26, %v3096_v16 }
 0x167   :  { %v3104_v37 = vsel %vm745_vm1, %v3100_v1, %v3103_v2 }
 0x16a   :  { %4455 = vmatmul.mubr.msk.bf16.gmra.mrb[40].mxu0 %vm239_vm0, %v5818_v28  ;;  %4587 = vmatmul.mubr.msk.bf16.gmra.mrb[40].mxu1 %vm239_vm0, %v3083_v27  ;;  %v3129_v27 = vshll.u32 %v5971_v34, 16 }
 0x16b   :  { %4458 = vmatprep.mubr.msk.bf16.mxu0 %vm239_vm0, %v5827_v3  ;;  %4590 = vmatprep.mubr.msk.bf16.mxu1 %vm239_vm0, %v3090_v11 }
 0x16c   :  { %v3131_v16 = vrot.slane %v3129_v27, 1 }
 0x16d   :  { %v4184_v63 = vpop.f32.mrb[0].mxu0  ;;  %v4316_v54 = vpop.f32.mrb[0].mxu1 }
 0x16e   :  { %v1726_v5 = vmax.f32 %v4184_v63, %v4316_v54  ;;  %v980_v28 = vpop.f32.mrb[1].mxu0  ;;  %v1598_v6 = vpop.f32.mrb[1].mxu1 }
 0x16f   :  { %v1725_v17 = vmax.f32 %v980_v28, %v1598_v6  ;;  %v4185_v18 = vpop.f32.mrb[2].mxu0  ;;  %v4317_v3 = vpop.f32.mrb[2].mxu1  ;;  %v3136_v28 = vshll.u32 %v5979_v7, 16 }
 0x170   :  { %v1748_v24 = vadd.f32 %v6141_v53, %v1726_v5  ;;  %v983_v20 = vpop.f32.mrb[3].mxu0  ;;  %v1601_v4 = vpop.f32.mrb[3].mxu1 }
 0x171   :  { %v1747_v49 = vadd.f32 %v6141_v53, %v1725_v17  ;;  %v3140_v20 = vshrl.u32 %v5979_v7, 16  ;;  %v3143_v4 = vshll.u32 %v5996_v45, 16  ;;  %v3138_v62 = vrot.slane %v3136_v28, 1  ;;  %v4951_v7 = vld [vmem:[%s6292_s1 + $0x108] ss:$0 sps:$4 sm:$0x11]  }
 0x172   :  { %v1764_v51 = vmax.f32 %v1748_v24, 0.0  ;;  %4459 = vmatmul.mubr.msk.bf16.gmra.mrb[44].mxu0 %vm239_vm0, %v5864_v48  ;;  %4591 = vmatmul.mubr.msk.bf16.gmra.mrb[44].mxu1 %vm239_vm0, %v3097_v57  ;;  %v3122_v48 = vshll.u32 %v5949_v59, 16  ;;  %v3121_v59 = vor.u32 %v3119_v40, %v3117_v23 }
 0x173   :  { %v1763_v41 = vmax.f32 %v1747_v49, 0.0  ;;  %4462 = vmatprep.mubr.msk.bf16.mxu0 %vm239_vm0, %v5873_v61  ;;  %4594 = vmatprep.mubr.msk.bf16.mxu1 %vm239_vm0, %v3104_v37  ;;  %v3111_v61 = vsel %vm745_vm1, %v3107_v15, %v3110_v60  ;;  %v3145_v60 = vrot.slane %v3143_v4, 1 }
 0x174   :  { %v3124_v0 = vrot.slane %v3122_v48, 1  ;;  %v3151_v48 = vshll.u32 %v4951_v7, 16 }
 0x175   :  { %v1779_v32 = vmax.f32 %v1763_v41, %v1764_v51  ;;  %v4188_v38 = vpop.f32.mrb[4].mxu0  ;;  %v4320_v42 = vpop.f32.mrb[4].mxu1  ;;  %v3142_v51 = vor.u32 %v3140_v20, %v3138_v62 }
 0x176   :  { %v1728_v39 = vmax.f32 %v4188_v38, %v4320_v42  ;;  %v994_v8 = vpop.f32.mrb[5].mxu0  ;;  %v1612_v35 = vpop.f32.mrb[5].mxu1  ;;  %v3128_v14 = vor.u32 %v3126_v52, %v3124_v0 }
 0x177   :  { %v1787_v43 = vpack.c.bf16 %v1779_v32, %v1779_v32  ;;  %v1727_v29 = vmax.f32 %v994_v8, %v1612_v35  ;;  %v4189_v12 = vpop.f32.mrb[6].mxu0  ;;  %v4321_v47 = vpop.f32.mrb[6].mxu1  ;;  %v3147_v35 = vshrl.u32 %v5996_v45, 16 }
 0x178   :  { %v1750_v58 = vadd.f32 %v6141_v53, %v1728_v39  ;;  %v997_v10 = vpop.f32.mrb[7].mxu0  ;;  %v1615_v21 = vpop.f32.mrb[7].mxu1  ;;  %v3132_v24 = vsel %vm745_vm1, %v3128_v14, %v3131_v16  ;;  %v3146_v47 = vsel %vm745_vm1, %v3142_v51, %v3145_v60 }
 0x179   :  { %1796 = vst.msk [vmem:[%s6295_s4] sm:$0xf] %vm1795_vm2, %v1787_v43  ;;  %v1749_v30 = vadd.f32 %v6141_v53, %v1727_v29  ;;  %v3153_v10 = vrot.slane %v3151_v48, 1 }
 0x17a   :  { %v1766_v11 = vmax.f32 %v1750_v58, 0.0  ;;  %4463 = vmatmul.mubr.msk.bf16.gmra.mrb[48].mxu0 %vm239_vm0, %v5906_v50  ;;  %4595 = vmatmul.mubr.msk.bf16.gmra.mrb[48].mxu1 %vm239_vm0, %v3111_v61  ;;  %v3133_v50 = vshrl.u32 %v5971_v34, 16  ;;  %v3149_v58 = vor.u32 %v3147_v35, %v3145_v60 }
 0x17b   :  { %v1765_v31 = vmax.f32 %v1749_v30, 0.0  ;;  %4466 = vmatprep.mubr.msk.bf16.mxu0 %vm239_vm0, %v5915_v25  ;;  %4598 = vmatprep.mubr.msk.bf16.mxu1 %vm239_vm0, %v3118_v46  ;;  %v3125_v25 = vsel %vm745_vm1, %v3121_v59, %v3124_v0 }
 0x17c   :  { %v3135_v44 = vor.u32 %v3133_v50, %v3131_v16  ;;  %v3154_v14 = vsel %vm745_vm1, %v3149_v58, %v3153_v10 }
 0x17d   :  { %v1780_v26 = vmax.f32 %v1765_v31, %v1766_v11  ;;  %v4192_v1 = vpop.f32.mrb[8].mxu0  ;;  %v4324_v2 = vpop.f32.mrb[8].mxu1 }
 0x17e   :  { %v1730_v63 = vmax.f32 %v4192_v1, %v4324_v2  ;;  %v1008_v54 = vpop.f32.mrb[9].mxu0  ;;  %v1626_v5 = vpop.f32.mrb[9].mxu1  ;;  %v3139_v38 = vsel %vm745_vm1, %v3135_v44, %v3138_v62 }
 0x17f   :  { %v1788_v6 = vpack.c.bf16 %v1780_v26, %v1780_v26  ;;  %v1729_v13 = vmax.f32 %v1008_v54, %v1626_v5  ;;  %v4193_v17 = vpop.f32.mrb[10].mxu0  ;;  %v4325_v18 = vpop.f32.mrb[10].mxu1 }
 0x180   :  { %v1752_v3 = vadd.f32 %v6141_v53, %v1730_v63  ;;  %v1011_v57 = vpop.f32.mrb[11].mxu0  ;;  %v1629_v36 = vpop.f32.mrb[11].mxu1 }
 0x181   :  { %1797 = vst.msk [vmem:[%s6295_s4 + $0x4] sm:$0xf] %vm1795_vm2, %v1788_v6  ;;  %v1751_v34 = vadd.f32 %v6141_v53, %v1729_v13 }
 0x182   :  { %v1768_v37 = vmax.f32 %v1752_v3, 0.0  ;;  %4467 = vmatmul.mubr.msk.bf16.gmra.mrb[52].mxu0 %vm239_vm0, %v5944_v19  ;;  %4599 = vmatmul.mubr.msk.bf16.gmra.mrb[52].mxu1 %vm239_vm0, %v3125_v25 }
 0x183   :  { %v1767_v49 = vmax.f32 %v1751_v34, 0.0  ;;  %4470 = vmatprep.mubr.msk.bf16.mxu0 %vm239_vm0, %v5953_v56  ;;  %4602 = vmatprep.mubr.msk.bf16.mxu1 %vm239_vm0, %v3132_v24 }
 0x185   :  { %v1781_v41 = vmax.f32 %v1767_v49, %v1768_v37  ;;  %v4196_v15 = vpop.f32.mrb[12].mxu0  ;;  %v4328_v33 = vpop.f32.mrb[12].mxu1 }
 0x186   :  { %v1732_v19 = vmax.f32 %v4196_v15, %v4328_v33  ;;  %v1022_v23 = vpop.f32.mrb[13].mxu0  ;;  %v1640_v32 = vpop.f32.mrb[13].mxu1 }
 0x187   :  { %v1789_v42 = vpack.c.bf16 %v1781_v41, %v1781_v41  ;;  %v1731_v39 = vmax.f32 %v1022_v23, %v1640_v32  ;;  %v4197_v8 = vpop.f32.mrb[14].mxu0  ;;  %v4329_v56 = vpop.f32.mrb[14].mxu1 }
 0x188   :  { %v1754_v43 = vadd.f32 %v6141_v53, %v1732_v19  ;;  %v1025_v29 = vpop.f32.mrb[15].mxu0  ;;  %v1643_v12 = vpop.f32.mrb[15].mxu1 }
 0x189   :  { %1798 = vst.msk [vmem:[%s6295_s4 + $0x8] sm:$0xf] %vm1795_vm2, %v1789_v42  ;;  %v1753_v61 = vadd.f32 %v6141_v53, %v1731_v39 }
 0x18a   :  { %v1770_v40 = vmax.f32 %v1754_v43, 0.0  ;;  %4471 = vmatmul.mubr.msk.bf16.gmra.mrb[56].mxu0 %vm239_vm0, %v5974_v55  ;;  %4603 = vmatmul.mubr.msk.bf16.gmra.mrb[56].mxu1 %vm239_vm0, %v3139_v38 }
 0x18b   :  { %v1769_v45 = vmax.f32 %v1753_v61, 0.0  ;;  %4474 = vmatprep.mubr.msk.bf16.mxu0 %vm239_vm0, %v5983_v22  ;;  %4606 = vmatprep.mubr.msk.bf16.mxu1 %vm239_vm0, %v3146_v47 }
 0x18d   :  { %v1782_v21 = vmax.f32 %v1769_v45, %v1770_v40  ;;  %v4200_v46 = vpop.f32.mrb[16].mxu0  ;;  %v4332_v52 = vpop.f32.mrb[16].mxu1 }
 0x18e   :  { %v1734_v27 = vmax.f32 %v4200_v46, %v4332_v52  ;;  %v1036_v30 = vpop.f32.mrb[17].mxu0  ;;  %v1654_v11 = vpop.f32.mrb[17].mxu1 }
 0x18f   :  { %v1790_v0 = vpack.c.bf16 %v1782_v21, %v1782_v21  ;;  %v1733_v31 = vmax.f32 %v1036_v30, %v1654_v11  ;;  %v4201_v59 = vpop.f32.mrb[18].mxu0  ;;  %v4333_v55 = vpop.f32.mrb[18].mxu1 }
 0x190   :  { %v1756_v16 = vadd.f32 %v6141_v53, %v1734_v27  ;;  %v1039_v26 = vpop.f32.mrb[19].mxu0  ;;  %v1657_v22 = vpop.f32.mrb[19].mxu1 }
 0x191   :  { %1799 = vst.msk [vmem:[%s6295_s4 + $0xc] sm:$0xf] %vm1795_vm2, %v1790_v0  ;;  %v1755_v1 = vadd.f32 %v6141_v53, %v1733_v31 }
 0x192   :  { %v1772_v2 = vmax.f32 %v1756_v16, 0.0  ;;  %4475 = vmatmul.mubr.msk.bf16.gmra.mrb[60].mxu0 %vm239_vm0, %v5999_v9  ;;  %4607 = vmatmul.mubr.msk.bf16.gmra.mrb[60].mxu1 %vm239_vm0, %v3154_v14 }
 0x193   :  { %v1771_v63 = vmax.f32 %v1755_v1, 0.0 }
 0x195   :  { %v1783_v54 = vmax.f32 %v1771_v63, %v1772_v2  ;;  %v4204_v5 = vpop.f32.mrb[20].mxu0  ;;  %v4336_v50 = vpop.f32.mrb[20].mxu1 }
 0x196   :  { %v1736_v28 = vmax.f32 %v4204_v5, %v4336_v50  ;;  %v1050_v6 = vpop.f32.mrb[21].mxu0  ;;  %v1668_v13 = vpop.f32.mrb[21].mxu1 }
 0x197   :  { %v1791_v17 = vpack.c.bf16 %v1783_v54, %v1783_v54  ;;  %v1735_v18 = vmax.f32 %v1050_v6, %v1668_v13  ;;  %v4205_v25 = vpop.f32.mrb[22].mxu0  ;;  %v4337_v3 = vpop.f32.mrb[22].mxu1 }
 0x198   :  { %v1758_v57 = vadd.f32 %v6141_v53, %v1736_v28  ;;  %v1053_v36 = vpop.f32.mrb[23].mxu0  ;;  %v1671_v24 = vpop.f32.mrb[23].mxu1 }
 0x199   :  { %1800 = vst.msk [vmem:[%s6295_s4 + $0x10] sm:$0xf] %vm1795_vm2, %v1791_v17  ;;  %v1757_v9 = vadd.f32 %v6141_v53, %v1735_v18 }
 0x19a   :  { %v1774_v20 = vmax.f32 %v1758_v57, 0.0 }
 0x19b   :  { %v1773_v4 = vmax.f32 %v1757_v9, 0.0 }
 0x19d   :  { %v1784_v34 = vmax.f32 %v1773_v4, %v1774_v20  ;;  %v4208_v37 = vpop.f32.mrb[24].mxu0  ;;  %v4340_v44 = vpop.f32.mrb[24].mxu1 }
 0x19e   :  { %v1738_v62 = vmax.f32 %v4208_v37, %v4340_v44  ;;  %v1064_v49 = vpop.f32.mrb[25].mxu0  ;;  %v1682_v7 = vpop.f32.mrb[25].mxu1 }
 0x19f   :  { %v1792_v51 = vpack.c.bf16 %v1784_v34, %v1784_v34  ;;  %v1737_v60 = vmax.f32 %v1064_v49, %v1682_v7  ;;  %v4209_v41 = vpop.f32.mrb[26].mxu0  ;;  %v4341_v15 = vpop.f32.mrb[26].mxu1 }
 0x1a0   :  { %v1760_v33 = vadd.f32 %v6141_v53, %v1738_v62  ;;  %v1067_v19 = vpop.f32.mrb[27].mxu0  ;;  %v1685_v23 = vpop.f32.mrb[27].mxu1 }
 0x1a1   :  { %1801 = vst.msk [vmem:[%s6295_s4 + $0x14] sm:$0xf] %vm1795_vm2, %v1792_v51  ;;  %v1759_v32 = vadd.f32 %v6141_v53, %v1737_v60 }
 0x1a2   :  { %v1776_v38 = vmax.f32 %v1760_v33, 0.0 }
 0x1a3   :  { %v1775_v42 = vmax.f32 %v1759_v32, 0.0 }
 0x1a5   :  { %v1785_v39 = vmax.f32 %v1775_v42, %v1776_v38  ;;  %v4212_v8 = vpop.f32.mrb[28].mxu0  ;;  %v4344_v56 = vpop.f32.mrb[28].mxu1 }
 0x1a6   :  { %v1740_v35 = vmax.f32 %v4212_v8, %v4344_v56  ;;  %v1078_v48 = vpop.f32.mrb[29].mxu0  ;;  %v1696_v43 = vpop.f32.mrb[29].mxu1 }
 0x1a7   :  { %v1793_v29 = vpack.c.bf16 %v1785_v39, %v1785_v39  ;;  %v1739_v12 = vmax.f32 %v1078_v48, %v1696_v43  ;;  %v4213_v47 = vpop.f32.mrb[30].mxu0  ;;  %v4345_v61 = vpop.f32.mrb[30].mxu1 }
 0x1a8   :  { %v1762_v40 = vadd.f32 %v6141_v53, %v1740_v35  ;;  %v1081_v45 = vpop.f32.mrb[31].mxu0  ;;  %v1699_v58 = vpop.f32.mrb[31].mxu1 }
 0x1a9   :  { %1802 = vst.msk [vmem:[%s6295_s4 + $0x18] sm:$0xf] %vm1795_vm2, %v1793_v29  ;;  %v1761_v10 = vadd.f32 %v6141_v53, %v1739_v12 }
 0x1aa   :  { %v1778_v21 = vmax.f32 %v1762_v40, 0.0 }
 0x1ab   :  { %v1777_v46 = vmax.f32 %v1761_v10, 0.0 }
 0x1ad   :  { %v1786_v52 = vmax.f32 %v1777_v46, %v1778_v21 }
 0x1af   :  { %v1794_v27 = vpack.c.bf16 %v1786_v52, %v1786_v52 }
 0x1b1   :  { %1803 = vst.msk [vmem:[%s6295_s4 + $0x1c] sm:$0xf] %vm1795_vm2, %v1794_v27 }
 0x22d   :  { %v4448_v30 = vpop.f32.mrb[32].mxu0  ;;  %v4580_v11 = vpop.f32.mrb[32].mxu1 }
 0x22e   :  { %v3365_v0 = vmax.f32 %v4448_v30, %v4580_v11  ;;  %v2619_v31 = vpop.f32.mrb[33].mxu0  ;;  %v3237_v59 = vpop.f32.mrb[33].mxu1 }
 0x22f   :  { %v3364_v55 = vmax.f32 %v2619_v31, %v3237_v59  ;;  %v4449_v14 = vpop.f32.mrb[34].mxu0  ;;  %v4581_v16 = vpop.f32.mrb[34].mxu1 }
 0x230   :  { %v3381_v26 = vadd.f32 %v6141_v53, %v3365_v0  ;;  %v2622_v22 = vpop.f32.mrb[35].mxu0  ;;  %v3240_v1 = vpop.f32.mrb[35].mxu1 }
 0x231   :  { %v3380_v2 = vadd.f32 %v6141_v53, %v3364_v55 }
 0x232   :  { %v3397_v63 = vmax.f32 %v3381_v26, 0.0 }
 0x233   :  { %v3396_v54 = vmax.f32 %v3380_v2, 0.0 }
 0x235   :  { %v3412_v5 = vmax.f32 %v3396_v54, %v3397_v63  ;;  %v4452_v50 = vpop.f32.mrb[36].mxu0  ;;  %v4584_v28 = vpop.f32.mrb[36].mxu1 }
 0x236   :  { %v3367_v6 = vmax.f32 %v4452_v50, %v4584_v28  ;;  %v2633_v13 = vpop.f32.mrb[37].mxu0  ;;  %v3251_v17 = vpop.f32.mrb[37].mxu1 }
 0x237   :  { %v3420_v18 = vpack.c.bf16 %v3412_v5, %v3412_v5  ;;  %v3366_v25 = vmax.f32 %v2633_v13, %v3251_v17  ;;  %v4453_v3 = vpop.f32.mrb[38].mxu0  ;;  %v4585_v57 = vpop.f32.mrb[38].mxu1 }
 0x238   :  { %v3383_v36 = vadd.f32 %v6141_v53, %v3367_v6  ;;  %v2636_v24 = vpop.f32.mrb[39].mxu0  ;;  %v3254_v9 = vpop.f32.mrb[39].mxu1 }
 0x239   :  { %3810 = vst.msk [vmem:[%s6295_s4 + $0x20] sm:$0xf] %vm1795_vm2, %v3420_v18  ;;  %v3382_v20 = vadd.f32 %v6141_v53, %v3366_v25 }
 0x23a   :  { %v3399_v4 = vmax.f32 %v3383_v36, 0.0 }
 0x23b   :  { %v3398_v34 = vmax.f32 %v3382_v20, 0.0 }
 0x23d   :  { %v3413_v37 = vmax.f32 %v3398_v34, %v3399_v4  ;;  %v4456_v44 = vpop.f32.mrb[40].mxu0  ;;  %v4588_v62 = vpop.f32.mrb[40].mxu1 }
 0x23e   :  { %v3369_v49 = vmax.f32 %v4456_v44, %v4588_v62  ;;  %v2647_v7 = vpop.f32.mrb[41].mxu0  ;;  %v3265_v51 = vpop.f32.mrb[41].mxu1 }
 0x23f   :  { %v3421_v60 = vpack.c.bf16 %v3413_v37, %v3413_v37  ;;  %v3368_v41 = vmax.f32 %v2647_v7, %v3265_v51  ;;  %v4457_v15 = vpop.f32.mrb[42].mxu0  ;;  %v4589_v33 = vpop.f32.mrb[42].mxu1 }
 0x240   :  { %v3385_v19 = vadd.f32 %v6141_v53, %v3369_v49  ;;  %v2650_v23 = vpop.f32.mrb[43].mxu0  ;;  %v3268_v32 = vpop.f32.mrb[43].mxu1 }
 0x241   :  { %3811 = vst.msk [vmem:[%s6295_s4 + $0x24] sm:$0xf] %vm1795_vm2, %v3421_v60  ;;  %v3384_v38 = vadd.f32 %v6141_v53, %v3368_v41 }
 0x242   :  { %v3401_v42 = vmax.f32 %v3385_v19, 0.0 }
 0x243   :  { %v3400_v39 = vmax.f32 %v3384_v38, 0.0 }
 0x245   :  { %v3414_v8 = vmax.f32 %v3400_v39, %v3401_v42  ;;  %v4460_v56 = vpop.f32.mrb[44].mxu0  ;;  %v4592_v35 = vpop.f32.mrb[44].mxu1 }
 0x246   :  { %v3371_v48 = vmax.f32 %v4460_v56, %v4592_v35  ;;  %v2661_v43 = vpop.f32.mrb[45].mxu0  ;;  %v3279_v29 = vpop.f32.mrb[45].mxu1 }
 0x247   :  { %v3422_v12 = vpack.c.bf16 %v3414_v8, %v3414_v8  ;;  %v3370_v47 = vmax.f32 %v2661_v43, %v3279_v29  ;;  %v4461_v61 = vpop.f32.mrb[46].mxu0  ;;  %v4593_v40 = vpop.f32.mrb[46].mxu1 }
 0x248   :  { %v3387_v45 = vadd.f32 %v6141_v53, %v3371_v48  ;;  %v2664_v58 = vpop.f32.mrb[47].mxu0  ;;  %v3282_v10 = vpop.f32.mrb[47].mxu1 }
 0x249   :  { %3812 = vst.msk [vmem:[%s6295_s4 + $0x28] sm:$0xf] %vm1795_vm2, %v3422_v12  ;;  %v3386_v21 = vadd.f32 %v6141_v53, %v3370_v47 }
 0x24a   :  { %v3403_v46 = vmax.f32 %v3387_v45, 0.0 }
 0x24b   :  { %v3402_v52 = vmax.f32 %v3386_v21, 0.0 }
 0x24d   :  { %v3415_v27 = vmax.f32 %v3402_v52, %v3403_v46  ;;  %v4464_v30 = vpop.f32.mrb[48].mxu0  ;;  %v4596_v11 = vpop.f32.mrb[48].mxu1 }
 0x24e   :  { %v3373_v0 = vmax.f32 %v4464_v30, %v4596_v11  ;;  %v2675_v31 = vpop.f32.mrb[49].mxu0  ;;  %v3293_v59 = vpop.f32.mrb[49].mxu1 }
 0x24f   :  { %v3423_v55 = vpack.c.bf16 %v3415_v27, %v3415_v27  ;;  %v3372_v14 = vmax.f32 %v2675_v31, %v3293_v59  ;;  %v4465_v16 = vpop.f32.mrb[50].mxu0  ;;  %v4597_v26 = vpop.f32.mrb[50].mxu1 }
 0x250   :  { %v3389_v22 = vadd.f32 %v6141_v53, %v3373_v0  ;;  %v2678_v1 = vpop.f32.mrb[51].mxu0  ;;  %v3296_v2 = vpop.f32.mrb[51].mxu1 }
 0x251   :  { %3813 = vst.msk [vmem:[%s6295_s4 + $0x2c] sm:$0xf] %vm1795_vm2, %v3423_v55  ;;  %v3388_v63 = vadd.f32 %v6141_v53, %v3372_v14 }
 0x252   :  { %v3405_v54 = vmax.f32 %v3389_v22, 0.0 }
 0x253   :  { %v3404_v5 = vmax.f32 %v3388_v63, 0.0 }
 0x255   :  { %v3416_v50 = vmax.f32 %v3404_v5, %v3405_v54  ;;  %v4468_v28 = vpop.f32.mrb[52].mxu0  ;;  %v4600_v6 = vpop.f32.mrb[52].mxu1 }
 0x256   :  { %v3375_v13 = vmax.f32 %v4468_v28, %v4600_v6  ;;  %v2689_v17 = vpop.f32.mrb[53].mxu0  ;;  %v3307_v18 = vpop.f32.mrb[53].mxu1 }
 0x257   :  { %v3424_v25 = vpack.c.bf16 %v3416_v50, %v3416_v50  ;;  %v3374_v3 = vmax.f32 %v2689_v17, %v3307_v18  ;;  %v4469_v57 = vpop.f32.mrb[54].mxu0  ;;  %v4601_v36 = vpop.f32.mrb[54].mxu1 }
 0x258   :  { %v3391_v24 = vadd.f32 %v6141_v53, %v3375_v13  ;;  %v2692_v9 = vpop.f32.mrb[55].mxu0  ;;  %v3310_v20 = vpop.f32.mrb[55].mxu1 }
 0x259   :  { %3814 = vst.msk [vmem:[%s6295_s4 + $0x30] sm:$0xf] %vm1795_vm2, %v3424_v25  ;;  %v3390_v4 = vadd.f32 %v6141_v53, %v3374_v3 }
 0x25a   :  { %v3407_v34 = vmax.f32 %v3391_v24, 0.0 }
 0x25b   :  { %v3406_v37 = vmax.f32 %v3390_v4, 0.0 }
 0x25d   :  { %v3417_v44 = vmax.f32 %v3406_v37, %v3407_v34  ;;  %v4472_v62 = vpop.f32.mrb[56].mxu0  ;;  %v4604_v49 = vpop.f32.mrb[56].mxu1 }
 0x25e   :  { %v3377_v7 = vmax.f32 %v4472_v62, %v4604_v49  ;;  %v2703_v51 = vpop.f32.mrb[57].mxu0  ;;  %v3321_v60 = vpop.f32.mrb[57].mxu1 }
 0x25f   :  { %v3425_v41 = vpack.c.bf16 %v3417_v44, %v3417_v44  ;;  %v3376_v15 = vmax.f32 %v2703_v51, %v3321_v60  ;;  %v4473_v33 = vpop.f32.mrb[58].mxu0  ;;  %v4605_v19 = vpop.f32.mrb[58].mxu1 }
 0x260   :  { %v3393_v23 = vadd.f32 %v6141_v53, %v3377_v7  ;;  %v2706_v32 = vpop.f32.mrb[59].mxu0  ;;  %v3324_v38 = vpop.f32.mrb[59].mxu1 }
 0x261   :  { %3815 = vst.msk [vmem:[%s6295_s4 + $0x34] sm:$0xf] %vm1795_vm2, %v3425_v41  ;;  %v3392_v42 = vadd.f32 %v6141_v53, %v3376_v15 }
 0x262   :  { %v3409_v39 = vmax.f32 %v3393_v23, 0.0 }
 0x263   :  { %v3408_v8 = vmax.f32 %v3392_v42, 0.0 }
 0x265   :  { %v3418_v56 = vmax.f32 %v3408_v8, %v3409_v39  ;;  %v4476_v35 = vpop.f32.mrb[60].mxu0  ;;  %v4608_v48 = vpop.f32.mrb[60].mxu1 }
 0x266   :  { %v3379_v43 = vmax.f32 %v4476_v35, %v4608_v48  ;;  %v2717_v29 = vpop.f32.mrb[61].mxu0  ;;  %v3335_v12 = vpop.f32.mrb[61].mxu1 }
 0x267   :  { %v3426_v47 = vpack.c.bf16 %v3418_v56, %v3418_v56  ;;  %v3378_v61 = vmax.f32 %v2717_v29, %v3335_v12  ;;  %v4477_v40 = vpop.f32.mrb[62].mxu0  ;;  %v4609_v45 = vpop.f32.mrb[62].mxu1 }
 0x268   :  { %v3395_v58 = vadd.f32 %v6141_v53, %v3379_v43  ;;  %v2720_v10 = vpop.f32.mrb[63].mxu0  ;;  %v3338_v21 = vpop.f32.mrb[63].mxu1 }
 0x269   :  { %3816 = vst.msk [vmem:[%s6295_s4 + $0x38] sm:$0xf] %vm1795_vm2, %v3426_v47  ;;  %v3394_v46 = vadd.f32 %v6141_v53, %v3378_v61 }
 0x26a   :  { %v3411_v52 = vmax.f32 %v3395_v58, 0.0 }
 0x26b   :  { %v3410_v27 = vmax.f32 %v3394_v46, 0.0 }
 0x26d   :  { %v3419_v30 = vmax.f32 %v3410_v27, %v3411_v52 }
 0x26f   :  { %v3427_v11 = vpack.c.bf16 %v3419_v30, %v3419_v30 }
 0x271   :  { %3817 = vst.msk [vmem:[%s6295_s4 + $0x3c] sm:$0xf] %vm1795_vm2, %v3427_v11 }

// kernel: pneumonia_cnn_forward.6
= control target key start
LH: loop header
LB: loop body
LE: loop exit
PB: predicated region body
PF: predicated region fallthrough
CT: control target
= control target key end

     0   :  { %v2208_v0 = vmov 0   ;;  %vm219_vm0 = vcmask 523264   ;;  %vm487_vm1 = vsmask.f32 7424  ;;  %s3175_s2 = inlined_call_operand.vmem [shape: bf16[3,192,128], index: 2, kind: input, shape index: {}]   ;;  %s3176_s1 = inlined_call_operand.vmem [shape: bf16[2,72,192], index: 1, kind: input, shape index: {}]   ;;  %s3177_s0 = inlined_call_operand.vmem [shape: bf16[2,72,192], index: 0, kind: input, shape index: {}]   ;;  %s3178_s3 = inlined_call_operand.vmem [shape: f32[1,128], index: 3, kind: input, shape index: {}]   ;;  %s3179_s4 = inlined_call_operand.vmem [shape: bf16[2,4,4,128], index: 4, kind: output, shape index: {}]  }
   0x1   :  { %232 = vmatprep.subr.bf16.mxu0 %v2208_v0  ;;  %717 = vmatprep.subr.bf16.mxu1 %v2208_v0  ;;  %v2239_v1 = vld [vmem:[%s3175_s2 + $0x60] sm:$0xff]   ;;  %v2246_v2 = vld [vmem:[%s3175_s2 + $0x68] sm:$0xff]   ;;  %v2255_v3 = vld [vmem:[%s3175_s2 + $0x70] sm:$0xff]  }
   0x2   :  { %233 = vmatpush1.bf16.msra.mxu0 %v2239_v1  ;;  %718 = vmatpush1.bf16.msra.mxu1 %v2239_v1  ;;  %v2264_v4 = vld [vmem:[%s3175_s2 + $0x78] sm:$0xff]   ;;  %v2271_v5 = vld [vmem:[%s3175_s2 + $0x80] sm:$0xff]   ;;  %v2300_v12 = vld [vmem:[%s3175_s2 + $0x88] sm:$0xff]  }
   0x3   :  { %234 = vmatprep.subr.bf16.mxu0 %v2208_v0  ;;  %719 = vmatprep.subr.bf16.mxu1 %v2208_v0  ;;  %v2276_v6 = vld [vmem:[%s3176_s1 + $0x4] ss:$8 sps:$4 sm:$0xff]   ;;  %v2288_v8 = vld [vmem:[%s3177_s0 + $0x14] ss:$8 sps:$4 sm:$0xff]   ;;  %v2339_v20 = vld [vmem:[%s3177_s0] ss:$8 sps:$4 sm:$0xff]  }
   0x4   :  { %v2283_v7 = vld [vmem:[%s3177_s0 + $0x4] ss:$8 sps:$4 sm:$0xff]   ;;  %1860 = vmatprep.mubr.msk.bf16.mxu0 %vm219_vm0, %v2276_v6  ;;  %v506_v11 = vshll.u32 %v2288_v8, 16  ;;  %v2311_v16 = vld [vmem:[%s3175_s2 + $0x90] sm:$0xff]   ;;  %v2325_v18 = vld [vmem:[%s3175_s2 + $0x98] sm:$0xff]   ;;  %v491_v23 = vshll.u32 %v2339_v20, 16 }
   0x5   :  { %v500_v9 = vshrl.u32 %v2283_v7, 16  ;;  %v502_v10 = vshll.u32 %v2283_v7, 16  ;;  %v2334_v19 = vld [vmem:[%s3175_s2 + $0xa0] sm:$0xff]   ;;  %v2346_v21 = vld [vmem:[%s3177_s0 + $0x10] ss:$8 sps:$4 sm:$0xff]   ;;  %v2353_v22 = vld [vmem:[%s3175_s2 + $0xa8] sm:$0xff]  }
   0x6   :  { %235 = vmatpush1.bf16.msra.mxu0 %v2246_v2  ;;  %720 = vmatpush1.bf16.msra.mxu1 %v2246_v2  ;;  %v508_v14 = vrot.slane %v506_v11, 1  ;;  %v496_v24 = vshll.u32 %v2346_v21, 16  ;;  %v2362_v25 = vld [vmem:[%s3177_s0 + $0x24] ss:$8 sps:$4 sm:$0xff]   ;;  %v2367_v26 = vld [vmem:[%s3175_s2 + $0xb0] sm:$0xff]   ;;  %v489_v27 = vshrl.u32 %v2339_v20, 16 }
   0x7   :  { %236 = vmatprep.subr.bf16.mxu0 %v2208_v0  ;;  %721 = vmatprep.subr.bf16.mxu1 %v2208_v0  ;;  %v504_v13 = vrot.slane %v502_v10, 1  ;;  %v493_v28 = vrot.slane %v491_v23, 1  ;;  %v518_v29 = vshrl.u32 %v2288_v8, 16  ;;  %v2378_v30 = vld [vmem:[%s3175_s2 + $0xb8] sm:$0xff]   ;;  %v521_v32 = vshll.u32 %v2362_v25, 16  ;;  %v2398_v36 = vld [vmem:[%s3175_s2] sm:$0xff]  }
   0x8   :  { %v498_v31 = vrot.slane %v496_v24, 1  ;;  %v2386_v34 = vld [vmem:[%s3177_s0 + $0x20] ss:$8 sps:$4 sm:$0xff]   ;;  %v2403_v39 = vld [vmem:[%s3177_s0 + $0x34] ss:$8 sps:$4 sm:$0xff]   ;;  %v510_v41 = vshrl.u32 %v2346_v21, 16 }
   0x9   :  { %v505_v15 = vor.u32 %v504_v13, %v500_v9  ;;  %v494_v33 = vor.u32 %v493_v28, %v489_v27  ;;  %v2393_v35 = vld [vmem:[%s3176_s1] ss:$8 sps:$4 sm:$0xff]   ;;  %v523_v37 = vrot.slane %v521_v32, 1  ;;  %v520_v38 = vor.u32 %v518_v29, %v508_v14  ;;  %v2422_v44 = vld [vmem:[%s3176_s1 + $0x14] ss:$8 sps:$4 sm:$0xff]  }
   0xa   :  { %237 = vmatpush1.bf16.msra.mxu0 %v2255_v3  ;;  %722 = vmatpush1.bf16.msra.mxu1 %v2255_v3  ;;  %v514_v42 = vshll.u32 %v2386_v34, 16  ;;  %v2417_v43 = vld [vmem:[%s3175_s2 + $0x8] sm:$0xff]   ;;  %v2427_v45 = vld [vmem:[%s3177_s0 + $0x30] ss:$8 sps:$4 sm:$0xff]   ;;  %v533_v47 = vshrl.u32 %v2362_v25, 16  ;;  %v536_v48 = vshll.u32 %v2403_v39, 16  ;;  %v512_v50 = vor.u32 %v510_v41, %v498_v31 }
   0xb   :  { %238 = vmatprep.subr.bf16.mxu0 %v2208_v0  ;;  %723 = vmatprep.subr.bf16.mxu1 %v2208_v0  ;;  %v2314_v17 = vsel %vm487_vm1, %v505_v15, %v508_v14  ;;  %v2408_v40 = vsel %vm487_vm1, %v494_v33, %v498_v31  ;;  %v2432_v46 = vsel %vm487_vm1, %v520_v38, %v523_v37  ;;  %v101_v49 = vld [vmem:[%s3177_s0 + $0x40] sm:$0x11]  ;;  %v2446_v52 = vld [vmem:[%s3176_s1 + $0x10] ss:$8 sps:$4 sm:$0xff]   ;;  %v525_v58 = vshrl.u32 %v2386_v34, 16  ;;  %v2523_v33 = vld [vmem:[%s3175_s2 + $0x28] sm:$0xff]  }
   0xc   :  { %1906 = vmatprep.mubr.msk.bf16.mxu1 %vm219_vm0, %v2314_v17  ;;  %v516_v51 = vrot.slane %v514_v42, 1  ;;  %v535_v53 = vor.u32 %v533_v47, %v523_v37  ;;  %v538_v54 = vrot.slane %v536_v48, 1  ;;  %v1889_v55 = vcombine.high %v101_v49, %v101_v49  ;;  %v2457_v56 = vld [vmem:[%s3175_s2 + $0x10] sm:$0xff]   ;;  %v2469_v60 = vld [vmem:[%s3176_s1 + $0x24] ss:$8 sps:$4 sm:$0xff]   ;;  %v2482_v9 = vld [vmem:[%s3175_s2 + $0x18] sm:$0xff]  }
   0xd   :  { %v529_v59 = vshll.u32 %v2427_v45, 16  ;;  %v548_v62 = vshrl.u32 %v2403_v39, 16  ;;  %v1888_v13 = vcombine.low %v101_v49, %v101_v49  ;;  %v2493_v14 = vld [vmem:[%s3176_s1 + $0x20] ss:$8 sps:$4 sm:$0xff]   ;;  %v540_v28 = vshrl.u32 %v2427_v45, 16  ;;  %v2541_v42 = vld [vmem:[%s3175_s2 + $0x30] sm:$0xff]  }
   0xe   :  { %239 = vmatpush1.bf16.msra.mxu0 %v2264_v4  ;;  %724 = vmatpush1.bf16.msra.mxu1 %v2264_v4  ;;  %v2460_v57 = vsel %vm487_vm1, %v512_v50, %v516_v51  ;;  %v2474_v61 = vsel %vm487_vm1, %v535_v53, %v538_v54  ;;  %v552_v63 = vshll.u32 %v1889_v55, 16  ;;  %v527_v10 = vor.u32 %v525_v58, %v516_v51  ;;  %v2500_v24 = vld [vmem:[%s3175_s2 + $0x20] sm:$0xff]   ;;  %v2511_v31 = vld [vmem:[%s3176_s1 + $0x34] ss:$8 sps:$4 sm:$0xff]   ;;  %v2534_v41 = vld [vmem:[%s3176_s1 + $0x30] ss:$8 sps:$4 sm:$0xff]  }
   0xf   :  { %240 = vmatprep.subr.bf16.mxu0 %v2208_v0  ;;  %725 = vmatprep.subr.bf16.mxu1 %v2208_v0  ;;  %v531_v11 = vrot.slane %v529_v59, 1  ;;  %v550_v15 = vor.u32 %v548_v62, %v538_v54  ;;  %v544_v29 = vshll.u32 %v1888_v13, 16  ;;  %v2555_v48 = vld [vmem:[%s3175_s2 + $0x38] sm:$0xff]   ;;  %v2568_v49 = vld [vmem:[%s3175_s2 + $0x40] sm:$0xff]   ;;  %v2586_v50 = vld [vmem:[%s3175_s2 + $0x50] sm:$0xff]   ;;  %v870_v59 = vshll.u32 %v2422_v44, 16 }
  0x10   :  { %v554_v23 = vrot.slane %v552_v63, 1  ;;  %v2595_v51 = vld [vmem:[%s3175_s2 + $0x58] sm:$0xff]   ;;  %v2604_v53 = vld [vmem:[%s3175_s2 + $0xc0] sm:$0xff]   ;;  %v2615_v54 = vld [vmem:[%s3175_s2 + $0xc8] sm:$0xff]  }
  0x11   :  { %v2503_v27 = vsel %vm487_vm1, %v527_v10, %v531_v11  ;;  %v542_v37 = vor.u32 %v540_v28, %v531_v11  ;;  %v546_v38 = vrot.slane %v544_v29, 1  ;;  %v2653_v55 = vld [vmem:[%s3175_s2 + $0xe0] sm:$0xff]   ;;  %v2666_v62 = vld [vmem:[%s3175_s2 + $0xe8] sm:$0xff]   ;;  %v2679_v63 = vld [vmem:[%s3175_s2 + $0xf0] sm:$0xff]   ;;  %v855_v11 = vshll.u32 %v2393_v35, 16 }
  0x12   :  { %241 = vmatpush1.bf16.msra.mxu0 %v2271_v5  ;;  %726 = vmatpush1.bf16.msra.mxu1 %v2271_v5  ;;  %v2516_v32 = vsel %vm487_vm1, %v550_v15, %v554_v23  ;;  %v2691_v10 = vld [vmem:[%s3175_s2 + $0xf8] sm:$0xff]   ;;  %v2722_v13 = vld [vmem:[%s3175_s2 + $0x110] sm:$0xff]   ;;  %v853_v15 = vshrl.u32 %v2393_v35, 16  ;;  %v860_v28 = vshll.u32 %v2446_v52, 16  ;;  %v882_v29 = vshrl.u32 %v2422_v44, 16 }
  0x13   :  { %242 = vmatprep.subr.bf16.mxu0 %v2208_v0  ;;  %727 = vmatprep.subr.bf16.mxu1 %v2208_v0  ;;  %v2544_v47 = vsel %vm487_vm1, %v542_v37, %v546_v38  ;;  %v857_v23 = vrot.slane %v855_v11, 1  ;;  %v885_v37 = vshll.u32 %v2469_v60, 16  ;;  %v2735_v38 = vld [vmem:[%s3175_s2 + $0x118] sm:$0xff]   ;;  %v900_v11 = vshll.u32 %v2511_v31, 16 }
  0x16   :  { %243 = vmatpush1.bf16.msra.mxu0 %v2300_v12  ;;  %728 = vmatpush1.bf16.msra.mxu1 %v2300_v12 }
  0x17   :  { %244 = vmatprep.subr.bf16.mxu0 %v2208_v0  ;;  %729 = vmatprep.subr.bf16.mxu1 %v2208_v0 }
  0x1a   :  { %245 = vmatpush1.bf16.msra.mxu0 %v2311_v16  ;;  %730 = vmatpush1.bf16.msra.mxu1 %v2311_v16 }
  0x1b   :  { %246 = vmatprep.subr.bf16.mxu0 %v2208_v0  ;;  %731 = vmatprep.subr.bf16.mxu1 %v2208_v0 }
  0x1e   :  { %247 = vmatpush1.bf16.msra.mxu0 %v2325_v18  ;;  %732 = vmatpush1.bf16.msra.mxu1 %v2325_v18 }
  0x1f   :  { %248 = vmatprep.subr.bf16.mxu0 %v2208_v0  ;;  %733 = vmatprep.subr.bf16.mxu1 %v2208_v0 }
  0x22   :  { %249 = vmatpush1.bf16.msra.mxu0 %v2334_v19  ;;  %734 = vmatpush1.bf16.msra.mxu1 %v2334_v19 }
  0x23   :  { %250 = vmatprep.subr.bf16.mxu0 %v2208_v0  ;;  %735 = vmatprep.subr.bf16.mxu1 %v2208_v0 }
  0x26   :  { %251 = vmatpush1.bf16.msra.mxu0 %v2353_v22  ;;  %736 = vmatpush1.bf16.msra.mxu1 %v2353_v22 }
  0x27   :  { %252 = vmatprep.subr.bf16.mxu0 %v2208_v0  ;;  %737 = vmatprep.subr.bf16.mxu1 %v2208_v0 }
  0x2a   :  { %253 = vmatpush1.bf16.msra.mxu0 %v2367_v26  ;;  %738 = vmatpush1.bf16.msra.mxu1 %v2367_v26 }
  0x2b   :  { %254 = vmatprep.subr.bf16.mxu0 %v2208_v0  ;;  %739 = vmatprep.subr.bf16.mxu1 %v2208_v0 }
  0x2e   :  { %255 = vmatpush1.bf16.msra.mxu0 %v2378_v30  ;;  %740 = vmatpush1.bf16.msra.mxu1 %v2378_v30 }
  0x2f   :  { %417 = vmatprep.subr.bf16.mxu0 %v2208_v0  ;;  %782 = vmatprep.subr.bf16.mxu1 %v2208_v0 }
  0x31   :  { %265 = vmatmul.mubr.bf16.vlgmr.msra.gmra.mrb[0].mxu0 %v2393_v35  ;;  %750 = vmatmul.mubr.bf16.vlgmr.msra.gmra.mrb[0].mxu1 %v2408_v40 }
  0x32   :  { %418 = vmatpush1.bf16.msra.mxu0 %v2398_v36  ;;  %783 = vmatpush1.bf16.msra.mxu1 %v2398_v36 }
  0x33   :  { %419 = vmatprep.subr.bf16.mxu0 %v2208_v0  ;;  %784 = vmatprep.subr.bf16.mxu1 %v2208_v0 }
  0x34   :  { %1861 = vmatprep.mubr.msk.bf16.mxu0 %vm219_vm0, %v2422_v44  ;;  %1907 = vmatprep.mubr.msk.bf16.mxu1 %vm219_vm0, %v2432_v46 }
  0x36   :  { %420 = vmatpush1.bf16.msra.mxu0 %v2417_v43  ;;  %785 = vmatpush1.bf16.msra.mxu1 %v2417_v43 }
  0x37   :  { %421 = vmatprep.subr.bf16.mxu0 %v2208_v0  ;;  %786 = vmatprep.subr.bf16.mxu1 %v2208_v0 }
  0x39   :  { %273 = vmatmul.mubr.bf16.gmra.mrb[4].mxu0 %v2446_v52  ;;  %758 = vmatmul.mubr.bf16.gmra.mrb[4].mxu1 %v2460_v57 }
  0x3a   :  { %422 = vmatpush1.bf16.msra.mxu0 %v2457_v56  ;;  %787 = vmatpush1.bf16.msra.mxu1 %v2457_v56 }
  0x3b   :  { %423 = vmatprep.subr.bf16.mxu0 %v2208_v0  ;;  %788 = vmatprep.subr.bf16.mxu1 %v2208_v0 }
  0x3c   :  { %1862 = vmatprep.mubr.msk.bf16.mxu0 %vm219_vm0, %v2469_v60  ;;  %1908 = vmatprep.mubr.msk.bf16.mxu1 %vm219_vm0, %v2474_v61 }
  0x3e   :  { %424 = vmatpush1.bf16.msra.mxu0 %v2482_v9  ;;  %789 = vmatpush1.bf16.msra.mxu1 %v2482_v9 }
  0x3f   :  { %425 = vmatprep.subr.bf16.mxu0 %v2208_v0  ;;  %790 = vmatprep.subr.bf16.mxu1 %v2208_v0 }
  0x41   :  { %281 = vmatmul.mubr.bf16.gmra.mrb[8].mxu0 %v2493_v14  ;;  %766 = vmatmul.mubr.bf16.gmra.mrb[8].mxu1 %v2503_v27 }
  0x42   :  { %426 = vmatpush1.bf16.msra.mxu0 %v2500_v24  ;;  %791 = vmatpush1.bf16.msra.mxu1 %v2500_v24 }
  0x43   :  { %427 = vmatprep.subr.bf16.mxu0 %v2208_v0  ;;  %792 = vmatprep.subr.bf16.mxu1 %v2208_v0 }
  0x44   :  { %1863 = vmatprep.mubr.msk.bf16.mxu0 %vm219_vm0, %v2511_v31  ;;  %1909 = vmatprep.mubr.msk.bf16.mxu1 %vm219_vm0, %v2516_v32 }
  0x46   :  { %428 = vmatpush1.bf16.msra.mxu0 %v2523_v33  ;;  %793 = vmatpush1.bf16.msra.mxu1 %v2523_v33 }
  0x47   :  { %429 = vmatprep.subr.bf16.mxu0 %v2208_v0  ;;  %794 = vmatprep.subr.bf16.mxu1 %v2208_v0 }
  0x49   :  { %289 = vmatmul.mubr.bf16.gmra.mrb[12].mxu0 %v2534_v41  ;;  %774 = vmatmul.mubr.bf16.gmra.mrb[12].mxu1 %v2544_v47 }
  0x4a   :  { %430 = vmatpush1.bf16.msra.mxu0 %v2541_v42  ;;  %795 = vmatpush1.bf16.msra.mxu1 %v2541_v42 }
  0x4b   :  { %431 = vmatprep.subr.bf16.mxu0 %v2208_v0  ;;  %796 = vmatprep.subr.bf16.mxu1 %v2208_v0 }
  0x4c   :  { %1884 = vmatprep.mubr.msk.bf16.mxu0 %vm219_vm0, %v2283_v7  ;;  %1910 = vmatprep.mubr.msk.bf16.mxu1 %vm219_vm0, %v2276_v6  ;;  %v2577_v7 = vld [vmem:[%s3175_s2 + $0x48] sm:$0xff]  }
  0x4e   :  { %432 = vmatpush1.bf16.msra.mxu0 %v2555_v48  ;;  %797 = vmatpush1.bf16.msra.mxu1 %v2555_v48 }
  0x4f   :  { %433 = vmatprep.subr.bf16.mxu0 %v2208_v0  ;;  %798 = vmatprep.subr.bf16.mxu1 %v2208_v0 }
  0x52   :  { %434 = vmatpush1.bf16.msra.mxu0 %v2568_v49  ;;  %799 = vmatpush1.bf16.msra.mxu1 %v2568_v49 }
  0x53   :  { %435 = vmatprep.subr.bf16.mxu0 %v2208_v0  ;;  %800 = vmatprep.subr.bf16.mxu1 %v2208_v0 }
  0x56   :  { %436 = vmatpush1.bf16.msra.mxu0 %v2577_v7  ;;  %801 = vmatpush1.bf16.msra.mxu1 %v2577_v7 }
  0x57   :  { %437 = vmatprep.subr.bf16.mxu0 %v2208_v0  ;;  %802 = vmatprep.subr.bf16.mxu1 %v2208_v0 }
  0x5a   :  { %438 = vmatpush1.bf16.msra.mxu0 %v2586_v50  ;;  %803 = vmatpush1.bf16.msra.mxu1 %v2586_v50 }
  0x5b   :  { %439 = vmatprep.subr.bf16.mxu0 %v2208_v0  ;;  %804 = vmatprep.subr.bf16.mxu1 %v2208_v0 }
  0x5e   :  { %440 = vmatpush1.bf16.msra.mxu0 %v2595_v51  ;;  %805 = vmatpush1.bf16.msra.mxu1 %v2595_v51 }
  0x5f   :  { %644 = vmatprep.subr.bf16.mxu0 %v2208_v0  ;;  %936 = vmatprep.subr.bf16.mxu1 %v2208_v0 }
  0x61   :  { %450 = vmatmul.mubr.bf16.vlgmr.msra.gmra.mrb[0].mxu0 %v2339_v20  ;;  %815 = vmatmul.mubr.bf16.vlgmr.msra.gmra.mrb[0].mxu1 %v2393_v35  ;;  %v2628_v20 = vld [vmem:[%s3175_s2 + $0xd0] sm:$0xff]   ;;  %v858_v35 = vor.u32 %v857_v23, %v853_v15  ;;  %v110_v23 = vld [vmem:[%s3176_s1 + $0x40] sm:$0x11] }
  0x62   :  { %645 = vmatpush1.bf16.msra.mxu0 %v2604_v53  ;;  %937 = vmatpush1.bf16.msra.mxu1 %v2604_v53 }
  0x63   :  { %646 = vmatprep.subr.bf16.mxu0 %v2208_v0  ;;  %938 = vmatprep.subr.bf16.mxu1 %v2208_v0 }
  0x64   :  { %1885 = vmatprep.mubr.msk.bf16.mxu0 %vm219_vm0, %v2288_v8  ;;  %1911 = vmatprep.mubr.msk.bf16.mxu1 %vm219_vm0, %v2422_v44  ;;  %v2639_v8 = vld [vmem:[%s3175_s2 + $0xd8] sm:$0xff]  }
  0x66   :  { %647 = vmatpush1.bf16.msra.mxu0 %v2615_v54  ;;  %939 = vmatpush1.bf16.msra.mxu1 %v2615_v54 }
  0x67   :  { %648 = vmatprep.subr.bf16.mxu0 %v2208_v0  ;;  %940 = vmatprep.subr.bf16.mxu1 %v2208_v0 }
  0x69   :  { %458 = vmatmul.mubr.bf16.gmra.mrb[4].mxu0 %v2346_v21  ;;  %823 = vmatmul.mubr.bf16.gmra.mrb[4].mxu1 %v2446_v52  ;;  %v866_v21 = vshll.u32 %v2276_v6, 16 }
  0x6a   :  { %649 = vmatpush1.bf16.msra.mxu0 %v2628_v20  ;;  %941 = vmatpush1.bf16.msra.mxu1 %v2628_v20 }
  0x6b   :  { %650 = vmatprep.subr.bf16.mxu0 %v2208_v0  ;;  %942 = vmatprep.subr.bf16.mxu1 %v2208_v0  ;;  %v868_v58 = vrot.slane %v866_v21, 1  ;;  %v862_v21 = vrot.slane %v860_v28, 1  ;;  %v1915_v28 = vcombine.high %v110_v23, %v110_v23 }
  0x6c   :  { %1886 = vmatprep.mubr.msk.bf16.mxu0 %vm219_vm0, %v2362_v25  ;;  %1912 = vmatprep.mubr.msk.bf16.mxu1 %vm219_vm0, %v2469_v60  ;;  %v864_v25 = vshrl.u32 %v2276_v6, 16 }
  0x6d   :  { %v863_v44 = vsel %vm487_vm1, %v858_v35, %v862_v21  ;;  %v912_v35 = vshrl.u32 %v2511_v31, 16 }
  0x6e   :  { %651 = vmatpush1.bf16.msra.mxu0 %v2639_v8  ;;  %943 = vmatpush1.bf16.msra.mxu1 %v2639_v8  ;;  %v869_v6 = vor.u32 %v868_v58, %v864_v25  ;;  %v887_v58 = vrot.slane %v885_v37, 1  ;;  %v893_v37 = vshll.u32 %v2534_v41, 16 }
  0x6f   :  { %652 = vmatprep.subr.bf16.mxu0 %v2208_v0  ;;  %944 = vmatprep.subr.bf16.mxu1 %v2208_v0 }
  0x71   :  { %466 = vmatmul.mubr.bf16.gmra.mrb[8].mxu0 %v2386_v34  ;;  %831 = vmatmul.mubr.bf16.gmra.mrb[8].mxu1 %v2493_v14  ;;  %v872_v34 = vrot.slane %v870_v59, 1  ;;  %v874_v59 = vshrl.u32 %v2446_v52, 16 }
  0x72   :  { %653 = vmatpush1.bf16.msra.mxu0 %v2653_v55  ;;  %945 = vmatpush1.bf16.msra.mxu1 %v2653_v55 }
  0x73   :  { %654 = vmatprep.subr.bf16.mxu0 %v2208_v0  ;;  %946 = vmatprep.subr.bf16.mxu1 %v2208_v0  ;;  %v884_v25 = vor.u32 %v882_v29, %v872_v34  ;;  %v876_v52 = vor.u32 %v874_v59, %v862_v21  ;;  %v889_v29 = vshrl.u32 %v2493_v14, 16  ;;  %v916_v21 = vshll.u32 %v1915_v28, 16 }
  0x74   :  { %1887 = vmatprep.mubr.msk.bf16.mxu0 %vm219_vm0, %v2403_v39  ;;  %1913 = vmatprep.mubr.msk.bf16.mxu1 %vm219_vm0, %v2511_v31  ;;  %v873_v39 = vsel %vm487_vm1, %v869_v6, %v872_v34  ;;  %v878_v6 = vshll.u32 %v2493_v14, 16 }
  0x75   :  { %v888_v34 = vsel %vm487_vm1, %v884_v25, %v887_v58  ;;  %v895_v25 = vrot.slane %v893_v37, 1  ;;  %v918_v31 = vrot.slane %v916_v21, 1 }
  0x76   :  { %655 = vmatpush1.bf16.msra.mxu0 %v2666_v62  ;;  %947 = vmatpush1.bf16.msra.mxu1 %v2666_v62  ;;  %v880_v15 = vrot.slane %v878_v6, 1  ;;  %v904_v6 = vshrl.u32 %v2534_v41, 16 }
  0x77   :  { %656 = vmatprep.subr.bf16.mxu0 %v2208_v0  ;;  %948 = vmatprep.subr.bf16.mxu1 %v2208_v0 }
  0x78   :  { %v891_v14 = vor.u32 %v889_v29, %v880_v15 }
  0x79   :  { %474 = vmatmul.mubr.bf16.gmra.mrb[12].mxu0 %v2427_v45  ;;  %839 = vmatmul.mubr.bf16.gmra.mrb[12].mxu1 %v2534_v41  ;;  %v2703_v45 = vld [vmem:[%s3175_s2 + $0x100] sm:$0xff]  }
  0x7a   :  { %657 = vmatpush1.bf16.msra.mxu0 %v2679_v63  ;;  %949 = vmatpush1.bf16.msra.mxu1 %v2679_v63  ;;  %v896_v59 = vsel %vm487_vm1, %v891_v14, %v895_v25 }
  0x7b   :  { %658 = vmatprep.subr.bf16.mxu0 %v2208_v0  ;;  %950 = vmatprep.subr.bf16.mxu1 %v2208_v0 }
  0x7c   :  { %1902 = vmatprep.mubr.msk.bf16.mxu0 %vm219_vm0, %v2314_v17  ;;  %1916 = vmatprep.mubr.msk.bf16.mxu1 %vm219_vm0, %v873_v39  ;;  %v2712_v17 = vld [vmem:[%s3175_s2 + $0x108] sm:$0xff]   ;;  %v897_v39 = vshrl.u32 %v2469_v60, 16  ;;  %v902_v60 = vrot.slane %v900_v11, 1 }
  0x7e   :  { %659 = vmatpush1.bf16.msra.mxu0 %v2691_v10  ;;  %951 = vmatpush1.bf16.msra.mxu1 %v2691_v10 }
  0x7f   :  { %660 = vmatprep.subr.bf16.mxu0 %v2208_v0  ;;  %952 = vmatprep.subr.bf16.mxu1 %v2208_v0 }
  0x82   :  { %661 = vmatpush1.bf16.msra.mxu0 %v2703_v45  ;;  %953 = vmatpush1.bf16.msra.mxu1 %v2703_v45 }
  0x83   :  { %662 = vmatprep.subr.bf16.mxu0 %v2208_v0  ;;  %954 = vmatprep.subr.bf16.mxu1 %v2208_v0 }
  0x86   :  { %663 = vmatpush1.bf16.msra.mxu0 %v2712_v17  ;;  %955 = vmatpush1.bf16.msra.mxu1 %v2712_v17 }
  0x87   :  { %664 = vmatprep.subr.bf16.mxu0 %v2208_v0  ;;  %956 = vmatprep.subr.bf16.mxu1 %v2208_v0 }
  0x8a   :  { %665 = vmatpush1.bf16.msra.mxu0 %v2722_v13  ;;  %957 = vmatpush1.bf16.msra.mxu1 %v2722_v13 }
  0x8b   :  { %666 = vmatprep.subr.bf16.mxu0 %v2208_v0  ;;  %958 = vmatprep.subr.bf16.mxu1 %v2208_v0 }
  0x8e   :  { %667 = vmatpush1.bf16.msra.mxu0 %v2735_v38  ;;  %959 = vmatpush1.bf16.msra.mxu1 %v2735_v38 }
  0x8f   :  { %1119 = vmatprep.subr.bf16.mxu0 %v2208_v0  ;;  %1459 = vmatprep.subr.bf16.mxu1 %v2208_v0 }
  0x91   :  { %677 = vmatmul.mubr.bf16.vlgmr.msra.gmra.mrb[0].mxu0 %v2408_v40  ;;  %969 = vmatmul.mubr.bf16.vlgmr.msra.gmra.mrb[0].mxu1 %v863_v44  ;;  %v899_v40 = vor.u32 %v897_v39, %v887_v58  ;;  %v1914_v58 = vcombine.low %v110_v23, %v110_v23  ;;  %v2785_v44 = vld [vmem:[%s3177_s0 + $0x5c] ss:$8 sps:$4 sm:$0xff]  }
  0x92   :  { %1120 = vmatpush1.bf16.msra.mxu0 %v2239_v1  ;;  %1460 = vmatpush1.bf16.msra.mxu1 %v2239_v1  ;;  %v881_v1 = vsel %vm487_vm1, %v876_v52, %v880_v15  ;;  %v1320_v52 = vshll.u32 %v2785_v44, 16  ;;  %v1332_v28 = vshrl.u32 %v2785_v44, 16 }
  0x93   :  { %1121 = vmatprep.subr.bf16.mxu0 %v2208_v0  ;;  %1461 = vmatprep.subr.bf16.mxu1 %v2208_v0 }
  0x94   :  { %1903 = vmatprep.mubr.msk.bf16.mxu0 %vm219_vm0, %v2432_v46  ;;  %1917 = vmatprep.mubr.msk.bf16.mxu1 %vm219_vm0, %v888_v34  ;;  %v903_v46 = vsel %vm487_vm1, %v899_v40, %v902_v60  ;;  %v1322_v15 = vrot.slane %v1320_v52, 1 }
  0x96   :  { %1122 = vmatpush1.bf16.msra.mxu0 %v2246_v2  ;;  %1462 = vmatpush1.bf16.msra.mxu1 %v2246_v2  ;;  %v2773_v2 = vld [vmem:[%s3177_s0 + $0x4c] ss:$8 sps:$4 sm:$0xff]  }
  0x97   :  { %1123 = vmatprep.subr.bf16.mxu0 %v2208_v0  ;;  %1463 = vmatprep.subr.bf16.mxu1 %v2208_v0  ;;  %v1314_v39 = vshrl.u32 %v2773_v2, 16 }
  0x99   :  { %685 = vmatmul.mubr.bf16.gmra.mrb[4].mxu0 %v2460_v57  ;;  %977 = vmatmul.mubr.bf16.gmra.mrb[4].mxu1 %v881_v1  ;;  %v914_v57 = vor.u32 %v912_v35, %v902_v60  ;;  %v1334_v35 = vor.u32 %v1332_v28, %v1322_v15  ;;  %v2951_v28 = vld [vmem:[%s3176_s1 + $0x68] ss:$8 sps:$4 sm:$0xff]  }
  0x9a   :  { %1124 = vmatpush1.bf16.msra.mxu0 %v2255_v3  ;;  %1464 = vmatpush1.bf16.msra.mxu1 %v2255_v3  ;;  %v1316_v3 = vshll.u32 %v2773_v2, 16 }
  0x9b   :  { %1125 = vmatprep.subr.bf16.mxu0 %v2208_v0  ;;  %1465 = vmatprep.subr.bf16.mxu1 %v2208_v0  ;;  %v919_v34 = vsel %vm487_vm1, %v914_v57, %v918_v31  ;;  %v2890_v57 = vld [vmem:[%s3176_s1 + $0x5c] ss:$8 sps:$4 sm:$0xff]  }
  0x9c   :  { %1904 = vmatprep.mubr.msk.bf16.mxu0 %vm219_vm0, %v2474_v61  ;;  %1918 = vmatprep.mubr.msk.bf16.mxu1 %vm219_vm0, %v903_v46  ;;  %v908_v61 = vshll.u32 %v1914_v58, 16  ;;  %v1318_v11 = vrot.slane %v1316_v3, 1  ;;  %v2871_v46 = vld [vmem:[%s3176_s1 + $0x48] ss:$8 sps:$4 sm:$0xff]  }
  0x9e   :  { %1126 = vmatpush1.bf16.msra.mxu0 %v2264_v4  ;;  %1466 = vmatpush1.bf16.msra.mxu1 %v2264_v4  ;;  %v906_v4 = vor.u32 %v904_v6, %v895_v25  ;;  %v910_v41 = vrot.slane %v908_v61, 1  ;;  %v2904_v61 = vld [vmem:[%s3177_s0 + $0x78] ss:$8 sps:$4 sm:$0xff]  }
  0x9f   :  { %1127 = vmatprep.subr.bf16.mxu0 %v2208_v0  ;;  %1467 = vmatprep.subr.bf16.mxu1 %v2208_v0 }
  0xa0   :  { %v911_v23 = vsel %vm487_vm1, %v906_v4, %v910_v41 }
  0xa1   :  { %693 = vmatmul.mubr.bf16.gmra.mrb[8].mxu0 %v2503_v27  ;;  %985 = vmatmul.mubr.bf16.gmra.mrb[8].mxu1 %v896_v59  ;;  %v1319_v27 = vor.u32 %v1318_v11, %v1314_v39 }
  0xa2   :  { %1128 = vmatpush1.bf16.msra.mxu0 %v2271_v5  ;;  %1468 = vmatpush1.bf16.msra.mxu1 %v2271_v5  ;;  %v2813_v5 = vld [vmem:[%s3176_s1 + $0x4c] ss:$8 sps:$4 sm:$0xff]  }
  0xa3   :  { %1129 = vmatprep.subr.bf16.mxu0 %v2208_v0  ;;  %1469 = vmatprep.subr.bf16.mxu1 %v2208_v0 }
  0xa4   :  { %1905 = vmatprep.mubr.msk.bf16.mxu0 %vm219_vm0, %v2516_v32  ;;  %1919 = vmatprep.mubr.msk.bf16.mxu1 %vm219_vm0, %v919_v34  ;;  %v2817_v32 = vsel %vm487_vm1, %v1319_v27, %v1322_v15  ;;  %v1929_v34 = vld [vmem:[%s3177_s0 + $0x88] sm:$0x11]  ;;  %v1343_v27 = vshll.u32 %v2904_v61, 16 }
  0xa5   :  { %v1964_v52 = vcombine.high %v1929_v34, %v1929_v34  ;;  %v2932_v15 = vld [vmem:[%s3176_s1 + $0x6c] ss:$8 sps:$4 sm:$0xff]  }
  0xa6   :  { %1130 = vmatpush1.bf16.msra.mxu0 %v2300_v12  ;;  %1470 = vmatpush1.bf16.msra.mxu1 %v2300_v12  ;;  %v2832_v12 = vld [vmem:[%s3177_s0 + $0x48] ss:$8 sps:$4 sm:$0xff]  }
  0xa7   :  { %1131 = vmatprep.subr.bf16.mxu0 %v2208_v0  ;;  %1471 = vmatprep.subr.bf16.mxu1 %v2208_v0 }
  0xa9   :  { %701 = vmatmul.mubr.bf16.gmra.mrb[12].mxu0 %v2544_v47  ;;  %993 = vmatmul.mubr.bf16.gmra.mrb[12].mxu1 %v911_v23  ;;  %v2849_v47 = vld [vmem:[%s3177_s0 + $0x6c] ss:$8 sps:$4 sm:$0xff]  }
  0xaa   :  { %1132 = vmatpush1.bf16.msra.mxu0 %v2311_v16  ;;  %1472 = vmatpush1.bf16.msra.mxu1 %v2311_v16  ;;  %v2841_v16 = vld [vmem:[%s3177_s0 + $0x58] ss:$8 sps:$4 sm:$0xff]   ;;  %v1335_v1 = vshll.u32 %v2849_v47, 16  ;;  %v1347_v31 = vshrl.u32 %v2849_v47, 16 }
  0xab   :  { %1133 = vmatprep.subr.bf16.mxu0 %v2208_v0  ;;  %1473 = vmatprep.subr.bf16.mxu1 %v2208_v0  ;;  %v1310_v60 = vshll.u32 %v2841_v16, 16  ;;  %v1324_v25 = vshrl.u32 %v2841_v16, 16 }
  0xac   :  { %1947 = vmatprep.mubr.msk.bf16.mxu0 %vm219_vm0, %v2813_v5  ;;  %1969 = vmatprep.mubr.msk.bf16.mxu1 %vm219_vm0, %v2817_v32  ;;  %v1337_v21 = vrot.slane %v1335_v1, 1 }
  0xad   :  { %v1312_v37 = vrot.slane %v1310_v60, 1  ;;  %v1963_v60 = vcombine.low %v1929_v34, %v1929_v34 }
  0xae   :  { %1134 = vmatpush1.bf16.msra.mxu0 %v2325_v18  ;;  %1474 = vmatpush1.bf16.msra.mxu1 %v2325_v18  ;;  %v1305_v18 = vshll.u32 %v2832_v12, 16  ;;  %v1349_v39 = vor.u32 %v1347_v31, %v1337_v21  ;;  %v2982_v31 = vld [vmem:[%s3176_s1 + $0x78] ss:$8 sps:$4 sm:$0xff]  }
  0xaf   :  { %1135 = vmatprep.subr.bf16.mxu0 %v2208_v0  ;;  %1475 = vmatprep.subr.bf16.mxu1 %v2208_v0  ;;  %v1326_v59 = vor.u32 %v1324_v25, %v1312_v37 }
  0xb0   :  { %v1307_v40 = vrot.slane %v1305_v18, 1  ;;  %v1366_v18 = vshll.u32 %v1964_v52, 16  ;;  %v1646_v52 = vshrl.u32 %v2982_v31, 16 }
  0xb2   :  { %1136 = vmatpush1.bf16.msra.mxu0 %v2334_v19  ;;  %1476 = vmatpush1.bf16.msra.mxu1 %v2334_v19  ;;  %v1303_v19 = vshrl.u32 %v2832_v12, 16 }
  0xb3   :  { %1137 = vmatprep.subr.bf16.mxu0 %v2208_v0  ;;  %1477 = vmatprep.subr.bf16.mxu1 %v2208_v0 }
  0xb4   :  { %v1308_v29 = vor.u32 %v1307_v40, %v1303_v19  ;;  %v1345_v40 = vrot.slane %v1343_v27, 1 }
  0xb6   :  { %1138 = vmatpush1.bf16.msra.mxu0 %v2353_v22  ;;  %1478 = vmatpush1.bf16.msra.mxu1 %v2353_v22  ;;  %v2864_v22 = vld [vmem:[%s3177_s0 + $0x68] ss:$8 sps:$4 sm:$0xff]   ;;  %v2881_v14 = vsel %vm487_vm1, %v1308_v29, %v1312_v37  ;;  %v1354_v37 = vshrl.u32 %v2904_v61, 16 }
  0xb7   :  { %1139 = vmatprep.subr.bf16.mxu0 %v2208_v0  ;;  %1479 = vmatprep.subr.bf16.mxu1 %v2208_v0  ;;  %v1328_v58 = vshll.u32 %v2864_v22, 16  ;;  %v1339_v41 = vshrl.u32 %v2864_v22, 16 }
  0xb8   :  { %v1356_v25 = vor.u32 %v1354_v37, %v1345_v40 }
  0xb9   :  { %v1330_v6 = vrot.slane %v1328_v58, 1 }
  0xba   :  { %1140 = vmatpush1.bf16.msra.mxu0 %v2367_v26  ;;  %1480 = vmatpush1.bf16.msra.mxu1 %v2367_v26  ;;  %v2876_v26 = vld [vmem:[%s3177_s0 + $0x7c] ss:$8 sps:$4 sm:$0xff]  }
  0xbb   :  { %1141 = vmatprep.subr.bf16.mxu0 %v2208_v0  ;;  %1481 = vmatprep.subr.bf16.mxu1 %v2208_v0  ;;  %v1350_v3 = vshll.u32 %v2876_v26, 16  ;;  %v2923_v4 = vsel %vm487_vm1, %v1326_v59, %v1330_v6  ;;  %v1362_v23 = vshrl.u32 %v2876_v26, 16  ;;  %v1341_v19 = vor.u32 %v1339_v41, %v1330_v6 }
  0xbd   :  { %v1352_v11 = vrot.slane %v1350_v3, 1  ;;  %v2956_v29 = vsel %vm487_vm1, %v1341_v19, %v1345_v40  ;;  %v1635_v3 = vshll.u32 %v2982_v31, 16 }
  0xbe   :  { %1142 = vmatpush1.bf16.msra.mxu0 %v2378_v30  ;;  %1482 = vmatpush1.bf16.msra.mxu1 %v2378_v30  ;;  %v2895_v30 = vsel %vm487_vm1, %v1334_v35, %v1337_v21  ;;  %v1358_v35 = vshll.u32 %v1963_v60, 16  ;;  %v2964_v21 = vld [vmem:[%s3176_s1 + $0x7c] ss:$8 sps:$4 sm:$0xff]  }
  0xbf   :  { %1232 = vmatprep.subr.bf16.mxu0 %v2208_v0  ;;  %1524 = vmatprep.subr.bf16.mxu1 %v2208_v0  ;;  %v1364_v1 = vor.u32 %v1362_v23, %v1352_v11 }
  0xc0   :  { %v1360_v58 = vrot.slane %v1358_v35, 1 }
  0xc1   :  { %1152 = vmatmul.mubr.bf16.vlgmr.msra.gmra.mrb[16].mxu0 %v2871_v46  ;;  %1492 = vmatmul.mubr.bf16.vlgmr.msra.gmra.mrb[16].mxu1 %v2881_v14 }
  0xc2   :  { %1233 = vmatpush1.bf16.msra.mxu0 %v2398_v36  ;;  %1525 = vmatpush1.bf16.msra.mxu1 %v2398_v36  ;;  %v2918_v36 = vld [vmem:[%s3176_s1 + $0x58] ss:$8 sps:$4 sm:$0xff]  }
  0xc3   :  { %1234 = vmatprep.subr.bf16.mxu0 %v2208_v0  ;;  %1526 = vmatprep.subr.bf16.mxu1 %v2208_v0 }
  0xc4   :  { %1948 = vmatprep.mubr.msk.bf16.mxu0 %vm219_vm0, %v2890_v57  ;;  %1970 = vmatprep.mubr.msk.bf16.mxu1 %vm219_vm0, %v2895_v30 }
  0xc6   :  { %1235 = vmatpush1.bf16.msra.mxu0 %v2417_v43  ;;  %1527 = vmatpush1.bf16.msra.mxu1 %v2417_v43  ;;  %v2937_v43 = vsel %vm487_vm1, %v1349_v39, %v1352_v11 }
  0xc7   :  { %1236 = vmatprep.subr.bf16.mxu0 %v2208_v0  ;;  %1528 = vmatprep.subr.bf16.mxu1 %v2208_v0 }
  0xc9   :  { %1160 = vmatmul.mubr.bf16.gmra.mrb[20].mxu0 %v2918_v36  ;;  %1500 = vmatmul.mubr.bf16.gmra.mrb[20].mxu1 %v2923_v4 }
  0xca   :  { %1237 = vmatpush1.bf16.msra.mxu0 %v2457_v56  ;;  %1529 = vmatpush1.bf16.msra.mxu1 %v2457_v56  ;;  %v1368_v56 = vrot.slane %v1366_v18, 1  ;;  %v3133_v18 = vld [vmem:[%s3178_s3] ss:$0 sm:$0xff] }
  0xcb   :  { %1238 = vmatprep.subr.bf16.mxu0 %v2208_v0  ;;  %1530 = vmatprep.subr.bf16.mxu1 %v2208_v0 }
  0xcc   :  { %1949 = vmatprep.mubr.msk.bf16.mxu0 %vm219_vm0, %v2932_v15  ;;  %1971 = vmatprep.mubr.msk.bf16.mxu1 %vm219_vm0, %v2937_v43 }
  0xce   :  { %1239 = vmatpush1.bf16.msra.mxu0 %v2482_v9  ;;  %1531 = vmatpush1.bf16.msra.mxu1 %v2482_v9  ;;  %v2969_v9 = vsel %vm487_vm1, %v1364_v1, %v1368_v56 }
  0xcf   :  { %1240 = vmatprep.subr.bf16.mxu0 %v2208_v0  ;;  %1532 = vmatprep.subr.bf16.mxu1 %v2208_v0 }
  0xd1   :  { %1168 = vmatmul.mubr.bf16.gmra.mrb[24].mxu0 %v2951_v28  ;;  %1508 = vmatmul.mubr.bf16.gmra.mrb[24].mxu1 %v2956_v29 }
  0xd2   :  { %1241 = vmatpush1.bf16.msra.mxu0 %v2500_v24  ;;  %1533 = vmatpush1.bf16.msra.mxu1 %v2500_v24  ;;  %v2987_v24 = vsel %vm487_vm1, %v1356_v25, %v1360_v58 }
  0xd3   :  { %1242 = vmatprep.subr.bf16.mxu0 %v2208_v0  ;;  %1534 = vmatprep.subr.bf16.mxu1 %v2208_v0 }
  0xd4   :  { %1950 = vmatprep.mubr.msk.bf16.mxu0 %vm219_vm0, %v2964_v21  ;;  %1972 = vmatprep.mubr.msk.bf16.mxu1 %vm219_vm0, %v2969_v9 }
  0xd6   :  { %1243 = vmatpush1.bf16.msra.mxu0 %v2523_v33  ;;  %1535 = vmatpush1.bf16.msra.mxu1 %v2523_v33  ;;  %v1608_v33 = vshll.u32 %v2813_v5, 16 }
  0xd7   :  { %1244 = vmatprep.subr.bf16.mxu0 %v2208_v0  ;;  %1536 = vmatprep.subr.bf16.mxu1 %v2208_v0 }
  0xd9   :  { %1176 = vmatmul.mubr.bf16.gmra.mrb[28].mxu0 %v2982_v31  ;;  %1516 = vmatmul.mubr.bf16.gmra.mrb[28].mxu1 %v2987_v24 }
  0xda   :  { %1245 = vmatpush1.bf16.msra.mxu0 %v2541_v42  ;;  %1537 = vmatpush1.bf16.msra.mxu1 %v2541_v42  ;;  %v1606_v42 = vshrl.u32 %v2813_v5, 16 }
  0xdb   :  { %1246 = vmatprep.subr.bf16.mxu0 %v2208_v0  ;;  %1538 = vmatprep.subr.bf16.mxu1 %v2208_v0 }
  0xdc   :  { %1959 = vmatprep.mubr.msk.bf16.mxu0 %vm219_vm0, %v2773_v2  ;;  %1973 = vmatprep.mubr.msk.bf16.mxu1 %vm219_vm0, %v2813_v5  ;;  %v1620_v5 = vshll.u32 %v2951_v28, 16 }
  0xde   :  { %1247 = vmatpush1.bf16.msra.mxu0 %v2555_v48  ;;  %1539 = vmatpush1.bf16.msra.mxu1 %v2555_v48  ;;  %v1610_v48 = vrot.slane %v1608_v33, 1 }
  0xdf   :  { %1248 = vmatprep.subr.bf16.mxu0 %v2208_v0  ;;  %1540 = vmatprep.subr.bf16.mxu1 %v2208_v0 }
  0xe2   :  { %1249 = vmatpush1.bf16.msra.mxu0 %v2568_v49  ;;  %1541 = vmatpush1.bf16.msra.mxu1 %v2568_v49  ;;  %v1612_v49 = vshll.u32 %v2890_v57, 16 }
  0xe3   :  { %1250 = vmatprep.subr.bf16.mxu0 %v2208_v0  ;;  %1542 = vmatprep.subr.bf16.mxu1 %v2208_v0 }
  0xe6   :  { %1251 = vmatpush1.bf16.msra.mxu0 %v2577_v7  ;;  %1543 = vmatpush1.bf16.msra.mxu1 %v2577_v7  ;;  %v1611_v7 = vor.u32 %v1610_v48, %v1606_v42 }
  0xe7   :  { %1252 = vmatprep.subr.bf16.mxu0 %v2208_v0  ;;  %1544 = vmatprep.subr.bf16.mxu1 %v2208_v0 }
  0xea   :  { %1253 = vmatpush1.bf16.msra.mxu0 %v2586_v50  ;;  %1545 = vmatpush1.bf16.msra.mxu1 %v2586_v50  ;;  %v1614_v50 = vrot.slane %v1612_v49, 1 }
  0xeb   :  { %1254 = vmatprep.subr.bf16.mxu0 %v2208_v0  ;;  %1546 = vmatprep.subr.bf16.mxu1 %v2208_v0 }
  0xee   :  { %1255 = vmatpush1.bf16.msra.mxu0 %v2595_v51  ;;  %1547 = vmatpush1.bf16.msra.mxu1 %v2595_v51  ;;  %v1615_v51 = vsel %vm487_vm1, %v1611_v7, %v1614_v50 }
  0xef   :  { %1386 = vmatprep.subr.bf16.mxu0 %v2208_v0  ;;  %1678 = vmatprep.subr.bf16.mxu1 %v2208_v0 }
  0xf1   :  { %1265 = vmatmul.mubr.bf16.vlgmr.msra.gmra.mrb[16].mxu0 %v2832_v12  ;;  %1557 = vmatmul.mubr.bf16.vlgmr.msra.gmra.mrb[16].mxu1 %v2871_v46  ;;  %v1642_v12 = vshll.u32 %v2964_v21, 16 }
  0xf2   :  { %1387 = vmatpush1.bf16.msra.mxu0 %v2604_v53  ;;  %1679 = vmatpush1.bf16.msra.mxu1 %v2604_v53  ;;  %v1597_v53 = vshll.u32 %v2871_v46, 16 }
  0xf3   :  { %1388 = vmatprep.subr.bf16.mxu0 %v2208_v0  ;;  %1680 = vmatprep.subr.bf16.mxu1 %v2208_v0 }
  0xf4   :  { %1960 = vmatprep.mubr.msk.bf16.mxu0 %vm219_vm0, %v2785_v44  ;;  %1974 = vmatprep.mubr.msk.bf16.mxu1 %vm219_vm0, %v2890_v57  ;;  %v1616_v44 = vshrl.u32 %v2918_v36, 16 }
  0xf6   :  { %1389 = vmatpush1.bf16.msra.mxu0 %v2615_v54  ;;  %1681 = vmatpush1.bf16.msra.mxu1 %v2615_v54  ;;  %v1595_v54 = vshrl.u32 %v2871_v46, 16 }
  0xf7   :  { %1390 = vmatprep.subr.bf16.mxu0 %v2208_v0  ;;  %1682 = vmatprep.subr.bf16.mxu1 %v2208_v0 }
  0xf9   :  { %1273 = vmatmul.mubr.bf16.gmra.mrb[20].mxu0 %v2841_v16  ;;  %1565 = vmatmul.mubr.bf16.gmra.mrb[20].mxu1 %v2918_v36  ;;  %v1622_v16 = vrot.slane %v1620_v5, 1 }
  0xfa   :  { %1391 = vmatpush1.bf16.msra.mxu0 %v2628_v20  ;;  %1683 = vmatpush1.bf16.msra.mxu1 %v2628_v20  ;;  %v1599_v20 = vrot.slane %v1597_v53, 1 }
  0xfb   :  { %1392 = vmatprep.subr.bf16.mxu0 %v2208_v0  ;;  %1684 = vmatprep.subr.bf16.mxu1 %v2208_v0 }
  0xfc   :  { %1961 = vmatprep.mubr.msk.bf16.mxu0 %vm219_vm0, %v2849_v47  ;;  %1975 = vmatprep.mubr.msk.bf16.mxu1 %vm219_vm0, %v2932_v15 }
  0xfe   :  { %1393 = vmatpush1.bf16.msra.mxu0 %v2639_v8  ;;  %1685 = vmatpush1.bf16.msra.mxu1 %v2639_v8  ;;  %v1602_v8 = vshll.u32 %v2918_v36, 16 }
  0xff   :  { %1394 = vmatprep.subr.bf16.mxu0 %v2208_v0  ;;  %1686 = vmatprep.subr.bf16.mxu1 %v2208_v0 }
 0x101   :  { %1281 = vmatmul.mubr.bf16.gmra.mrb[24].mxu0 %v2864_v22  ;;  %1573 = vmatmul.mubr.bf16.gmra.mrb[24].mxu1 %v2951_v28  ;;  %v1644_v22 = vrot.slane %v1642_v12, 1 }
 0x102   :  { %1395 = vmatpush1.bf16.msra.mxu0 %v2653_v55  ;;  %1687 = vmatpush1.bf16.msra.mxu1 %v2653_v55  ;;  %v1624_v55 = vshrl.u32 %v2890_v57, 16  ;;  %v1631_v57 = vshrl.u32 %v2951_v28, 16 }
 0x103   :  { %1396 = vmatprep.subr.bf16.mxu0 %v2208_v0  ;;  %1688 = vmatprep.subr.bf16.mxu1 %v2208_v0 }
 0x104   :  { %1962 = vmatprep.mubr.msk.bf16.mxu0 %vm219_vm0, %v2876_v26  ;;  %1976 = vmatprep.mubr.msk.bf16.mxu1 %vm219_vm0, %v2964_v21 }
 0x106   :  { %1397 = vmatpush1.bf16.msra.mxu0 %v2666_v62  ;;  %1689 = vmatpush1.bf16.msra.mxu1 %v2666_v62  ;;  %v1627_v62 = vshll.u32 %v2932_v15, 16 }
 0x107   :  { %1398 = vmatprep.subr.bf16.mxu0 %v2208_v0  ;;  %1690 = vmatprep.subr.bf16.mxu1 %v2208_v0 }
 0x109   :  { %1289 = vmatmul.mubr.bf16.gmra.mrb[28].mxu0 %v2904_v61  ;;  %1581 = vmatmul.mubr.bf16.gmra.mrb[28].mxu1 %v2982_v31  ;;  %v1637_v61 = vrot.slane %v1635_v3, 1 }
 0x10a   :  { %1399 = vmatpush1.bf16.msra.mxu0 %v2679_v63  ;;  %1691 = vmatpush1.bf16.msra.mxu1 %v2679_v63  ;;  %v1600_v63 = vor.u32 %v1599_v20, %v1595_v54 }
 0x10b   :  { %1400 = vmatprep.subr.bf16.mxu0 %v2208_v0  ;;  %1692 = vmatprep.subr.bf16.mxu1 %v2208_v0 }
 0x10c   :  { %1965 = vmatprep.mubr.msk.bf16.mxu0 %vm219_vm0, %v2817_v32  ;;  %1979 = vmatprep.mubr.msk.bf16.mxu1 %vm219_vm0, %v1615_v51  ;;  %v1639_v32 = vshrl.u32 %v2932_v15, 16 }
 0x10e   :  { %1401 = vmatpush1.bf16.msra.mxu0 %v2691_v10  ;;  %1693 = vmatpush1.bf16.msra.mxu1 %v2691_v10  ;;  %v1604_v10 = vrot.slane %v1602_v8, 1 }
 0x10f   :  { %1402 = vmatprep.subr.bf16.mxu0 %v2208_v0  ;;  %1694 = vmatprep.subr.bf16.mxu1 %v2208_v0 }
 0x110   :  { %v1605_v2 = vsel %vm487_vm1, %v1600_v63, %v1604_v10 }
 0x112   :  { %1403 = vmatpush1.bf16.msra.mxu0 %v2703_v45  ;;  %1695 = vmatpush1.bf16.msra.mxu1 %v2703_v45  ;;  %v1626_v45 = vor.u32 %v1624_v55, %v1614_v50 }
 0x113   :  { %1404 = vmatprep.subr.bf16.mxu0 %v2208_v0  ;;  %1696 = vmatprep.subr.bf16.mxu1 %v2208_v0 }
 0x116   :  { %1405 = vmatpush1.bf16.msra.mxu0 %v2712_v17  ;;  %1697 = vmatpush1.bf16.msra.mxu1 %v2712_v17  ;;  %v1629_v17 = vrot.slane %v1627_v62, 1 }
 0x117   :  { %1406 = vmatprep.subr.bf16.mxu0 %v2208_v0  ;;  %1698 = vmatprep.subr.bf16.mxu1 %v2208_v0 }
 0x118   :  { %v1641_v47 = vor.u32 %v1639_v32, %v1629_v17 }
 0x11a   :  { %1407 = vmatpush1.bf16.msra.mxu0 %v2722_v13  ;;  %1699 = vmatpush1.bf16.msra.mxu1 %v2722_v13  ;;  %v1630_v13 = vsel %vm487_vm1, %v1626_v45, %v1629_v17  ;;  %v1645_v59 = vsel %vm487_vm1, %v1641_v47, %v1644_v22 }
 0x11b   :  { %1408 = vmatprep.subr.bf16.mxu0 %v2208_v0  ;;  %1700 = vmatprep.subr.bf16.mxu1 %v2208_v0  ;;  %v1938_v0 = vld [vmem:[%s3176_s1 + $0x88] sm:$0x11] }
 0x11c   :  { %v1978_v46 = vcombine.high %v1938_v0, %v1938_v0  ;;  %v1977_v34 = vcombine.low %v1938_v0, %v1938_v0 }
 0x11e   :  { %1409 = vmatpush1.bf16.msra.mxu0 %v2735_v38  ;;  %1701 = vmatpush1.bf16.msra.mxu1 %v2735_v38  ;;  %v1618_v38 = vor.u32 %v1616_v44, %v1604_v10  ;;  %v1658_v6 = vshll.u32 %v1978_v46, 16  ;;  %v1650_v41 = vshll.u32 %v1977_v34, 16 }
 0x120   :  { %v1623_v26 = vsel %vm487_vm1, %v1618_v38, %v1622_v16  ;;  %v1660_v39 = vrot.slane %v1658_v6, 1  ;;  %v1652_v15 = vrot.slane %v1650_v41, 1 }
 0x121   :  { %1419 = vmatmul.mubr.bf16.vlgmr.msra.gmra.mrb[16].mxu0 %v2881_v14  ;;  %1711 = vmatmul.mubr.bf16.vlgmr.msra.gmra.mrb[16].mxu1 %v1605_v2  ;;  %v1654_v14 = vshrl.u32 %v2964_v21, 16 }
 0x122   :  { %1966 = vmatprep.mubr.msk.bf16.mxu0 %vm219_vm0, %v2895_v30  ;;  %1980 = vmatprep.mubr.msk.bf16.mxu1 %vm219_vm0, %v1630_v13  ;;  %v1633_v30 = vor.u32 %v1631_v57, %v1622_v16 }
 0x123   :  { %v1656_v36 = vor.u32 %v1654_v14, %v1644_v22 }
 0x124   :  { %v1638_v11 = vsel %vm487_vm1, %v1633_v30, %v1637_v61 }
 0x125   :  { %v1661_v27 = vsel %vm487_vm1, %v1656_v36, %v1660_v39 }
 0x129   :  { %1427 = vmatmul.mubr.bf16.gmra.mrb[20].mxu0 %v2923_v4  ;;  %1719 = vmatmul.mubr.bf16.gmra.mrb[20].mxu1 %v1623_v26  ;;  %v1648_v4 = vor.u32 %v1646_v52, %v1637_v61 }
 0x12a   :  { %1967 = vmatprep.mubr.msk.bf16.mxu0 %vm219_vm0, %v2937_v43  ;;  %1981 = vmatprep.mubr.msk.bf16.mxu1 %vm219_vm0, %v1645_v59 }
 0x12b   :  { %v1653_v43 = vsel %vm487_vm1, %v1648_v4, %v1652_v15 }
 0x131   :  { %1435 = vmatmul.mubr.bf16.gmra.mrb[24].mxu0 %v2956_v29  ;;  %1727 = vmatmul.mubr.bf16.gmra.mrb[24].mxu1 %v1638_v11 }
 0x132   :  { %1968 = vmatprep.mubr.msk.bf16.mxu0 %vm219_vm0, %v2969_v9  ;;  %1982 = vmatprep.mubr.msk.bf16.mxu1 %vm219_vm0, %v1661_v27 }
 0x139   :  { %1443 = vmatmul.mubr.bf16.gmra.mrb[28].mxu0 %v2987_v24  ;;  %1735 = vmatmul.mubr.bf16.gmra.mrb[28].mxu1 %v1653_v43 }
 0x164   :  { %v678_v23 = vpop.f32.mrb[0].mxu0  ;;  %v970_v19 = vpop.f32.mrb[0].mxu1 }
 0x165   :  { %v1009_v40 = vmax.f32 %v678_v23, %v970_v19  ;;  %v680_v60 = vpop.f32.mrb[1].mxu0  ;;  %v972_v28 = vpop.f32.mrb[1].mxu1 }
 0x166   :  { %v681_v1 = vpop.f32.mrb[2].mxu0  ;;  %v973_v56 = vpop.f32.mrb[2].mxu1 }
 0x167   :  { %v1023_v29 = vadd.f32 %v3133_v18, %v1009_v40  ;;  %v1010_v37 = vmax.f32 %v681_v1, %v973_v56  ;;  %v683_v35 = vpop.f32.mrb[3].mxu0  ;;  %v975_v21 = vpop.f32.mrb[3].mxu1 }
 0x169   :  { %v1024_v9 = vadd.f32 %v3133_v18, %v1010_v37  ;;  %v1031_v25 = vmax.f32 %v1023_v29, 0.0 }
 0x16b   :  { %v1032_v58 = vmax.f32 %v1024_v9, 0.0 }
 0x16c   :  { %v686_v31 = vpop.f32.mrb[4].mxu0  ;;  %v978_v24 = vpop.f32.mrb[4].mxu1 }
 0x16d   :  { %v1039_v33 = vmax.f32 %v1031_v25, %v1032_v58  ;;  %v1011_v42 = vmax.f32 %v686_v31, %v978_v24  ;;  %v688_v48 = vpop.f32.mrb[5].mxu0  ;;  %v980_v49 = vpop.f32.mrb[5].mxu1 }
 0x16e   :  { %v689_v7 = vpop.f32.mrb[6].mxu0  ;;  %v981_v50 = vpop.f32.mrb[6].mxu1 }
 0x16f   :  { %v1043_v51 = vpack.c.bf16 %v1039_v33, %v1039_v33  ;;  %v1025_v53 = vadd.f32 %v3133_v18, %v1011_v42  ;;  %v1012_v54 = vmax.f32 %v689_v7, %v981_v50  ;;  %v691_v20 = vpop.f32.mrb[7].mxu0  ;;  %v983_v8 = vpop.f32.mrb[7].mxu1 }
 0x171   :  { %1047 = vst [vmem:[%s3179_s4] sm:$0x3] %v1043_v51  ;;  %v1026_v55 = vadd.f32 %v3133_v18, %v1012_v54  ;;  %v1033_v62 = vmax.f32 %v1025_v53, 0.0 }
 0x173   :  { %v1034_v63 = vmax.f32 %v1026_v55, 0.0 }
 0x174   :  { %v694_v10 = vpop.f32.mrb[8].mxu0  ;;  %v986_v45 = vpop.f32.mrb[8].mxu1 }
 0x175   :  { %v1040_v17 = vmax.f32 %v1033_v62, %v1034_v63  ;;  %v1013_v2 = vmax.f32 %v694_v10, %v986_v45  ;;  %v696_v44 = vpop.f32.mrb[9].mxu0  ;;  %v988_v5 = vpop.f32.mrb[9].mxu1 }
 0x176   :  { %v697_v13 = vpop.f32.mrb[10].mxu0  ;;  %v989_v32 = vpop.f32.mrb[10].mxu1 }
 0x177   :  { %v1044_v12 = vpack.c.bf16 %v1040_v17, %v1040_v17  ;;  %v1027_v0 = vadd.f32 %v3133_v18, %v1013_v2  ;;  %v1014_v38 = vmax.f32 %v697_v13, %v989_v32  ;;  %v699_v16 = vpop.f32.mrb[11].mxu0  ;;  %v991_v47 = vpop.f32.mrb[11].mxu1 }
 0x179   :  { %1048 = vst [vmem:[%s3179_s4 + $0x2] sm:$0x3] %v1044_v12  ;;  %v1028_v22 = vadd.f32 %v3133_v18, %v1014_v38  ;;  %v1035_v46 = vmax.f32 %v1027_v0, 0.0 }
 0x17b   :  { %v1036_v26 = vmax.f32 %v1028_v22, 0.0 }
 0x17c   :  { %v702_v57 = vpop.f32.mrb[12].mxu0  ;;  %v994_v3 = vpop.f32.mrb[12].mxu1 }
 0x17d   :  { %v1041_v59 = vmax.f32 %v1035_v46, %v1036_v26  ;;  %v1015_v14 = vmax.f32 %v702_v57, %v994_v3  ;;  %v704_v6 = vpop.f32.mrb[13].mxu0  ;;  %v996_v30 = vpop.f32.mrb[13].mxu1 }
 0x17e   :  { %v705_v61 = vpop.f32.mrb[14].mxu0  ;;  %v997_v34 = vpop.f32.mrb[14].mxu1 }
 0x17f   :  { %v1045_v36 = vpack.c.bf16 %v1041_v59, %v1041_v59  ;;  %v1029_v39 = vadd.f32 %v3133_v18, %v1015_v14  ;;  %v1016_v11 = vmax.f32 %v705_v61, %v997_v34  ;;  %v707_v52 = vpop.f32.mrb[15].mxu0  ;;  %v999_v41 = vpop.f32.mrb[15].mxu1 }
 0x181   :  { %1049 = vst [vmem:[%s3179_s4 + $0x4] sm:$0x3] %v1045_v36  ;;  %v1030_v27 = vadd.f32 %v3133_v18, %v1016_v11  ;;  %v1037_v4 = vmax.f32 %v1029_v39, 0.0 }
 0x183   :  { %v1038_v15 = vmax.f32 %v1030_v27, 0.0 }
 0x185   :  { %v1042_v43 = vmax.f32 %v1037_v4, %v1038_v15 }
 0x187   :  { %v1046_v23 = vpack.c.bf16 %v1042_v43, %v1042_v43 }
 0x189   :  { %1050 = vst [vmem:[%s3179_s4 + $0x6] sm:$0x3] %v1046_v23 }
 0x1f4   :  { %v1420_v19 = vpop.f32.mrb[16].mxu0  ;;  %v1712_v40 = vpop.f32.mrb[16].mxu1 }
 0x1f5   :  { %v1751_v60 = vmax.f32 %v1420_v19, %v1712_v40  ;;  %v1422_v28 = vpop.f32.mrb[17].mxu0  ;;  %v1714_v1 = vpop.f32.mrb[17].mxu1 }
 0x1f6   :  { %v1423_v56 = vpop.f32.mrb[18].mxu0  ;;  %v1715_v29 = vpop.f32.mrb[18].mxu1 }
 0x1f7   :  { %v1759_v37 = vadd.f32 %v3133_v18, %v1751_v60  ;;  %v1752_v35 = vmax.f32 %v1423_v56, %v1715_v29  ;;  %v1425_v21 = vpop.f32.mrb[19].mxu0  ;;  %v1717_v9 = vpop.f32.mrb[19].mxu1 }
 0x1f9   :  { %v1760_v25 = vadd.f32 %v3133_v18, %v1752_v35  ;;  %v1767_v58 = vmax.f32 %v1759_v37, 0.0 }
 0x1fb   :  { %v1768_v31 = vmax.f32 %v1760_v25, 0.0 }
 0x1fc   :  { %v1428_v24 = vpop.f32.mrb[20].mxu0  ;;  %v1720_v33 = vpop.f32.mrb[20].mxu1 }
 0x1fd   :  { %v1775_v42 = vmax.f32 %v1767_v58, %v1768_v31  ;;  %v1753_v48 = vmax.f32 %v1428_v24, %v1720_v33  ;;  %v1430_v49 = vpop.f32.mrb[21].mxu0  ;;  %v1722_v7 = vpop.f32.mrb[21].mxu1 }
 0x1fe   :  { %v1431_v50 = vpop.f32.mrb[22].mxu0  ;;  %v1723_v51 = vpop.f32.mrb[22].mxu1 }
 0x1ff   :  { %v1779_v53 = vpack.c.bf16 %v1775_v42, %v1775_v42  ;;  %v1761_v54 = vadd.f32 %v3133_v18, %v1753_v48  ;;  %v1754_v20 = vmax.f32 %v1431_v50, %v1723_v51  ;;  %v1433_v8 = vpop.f32.mrb[23].mxu0  ;;  %v1725_v55 = vpop.f32.mrb[23].mxu1 }
 0x201   :  { %1983 = vst [vmem:[%s3179_s4 + $0x8] sm:$0x3] %v1779_v53  ;;  %v1762_v62 = vadd.f32 %v3133_v18, %v1754_v20  ;;  %v1769_v63 = vmax.f32 %v1761_v54, 0.0 }
 0x203   :  { %v1770_v10 = vmax.f32 %v1762_v62, 0.0 }
 0x204   :  { %v1436_v45 = vpop.f32.mrb[24].mxu0  ;;  %v1728_v17 = vpop.f32.mrb[24].mxu1 }
 0x205   :  { %v1776_v2 = vmax.f32 %v1769_v63, %v1770_v10  ;;  %v1755_v44 = vmax.f32 %v1436_v45, %v1728_v17  ;;  %v1438_v5 = vpop.f32.mrb[25].mxu0  ;;  %v1730_v13 = vpop.f32.mrb[25].mxu1 }
 0x206   :  { %v1439_v32 = vpop.f32.mrb[26].mxu0  ;;  %v1731_v12 = vpop.f32.mrb[26].mxu1 }
 0x207   :  { %v1780_v0 = vpack.c.bf16 %v1776_v2, %v1776_v2  ;;  %v1763_v38 = vadd.f32 %v3133_v18, %v1755_v44  ;;  %v1756_v16 = vmax.f32 %v1439_v32, %v1731_v12  ;;  %v1441_v47 = vpop.f32.mrb[27].mxu0  ;;  %v1733_v22 = vpop.f32.mrb[27].mxu1 }
 0x209   :  { %1984 = vst [vmem:[%s3179_s4 + $0xa] sm:$0x3] %v1780_v0  ;;  %v1764_v46 = vadd.f32 %v3133_v18, %v1756_v16  ;;  %v1771_v26 = vmax.f32 %v1763_v38, 0.0 }
 0x20b   :  { %v1772_v57 = vmax.f32 %v1764_v46, 0.0 }
 0x20c   :  { %v1444_v3 = vpop.f32.mrb[28].mxu0  ;;  %v1736_v59 = vpop.f32.mrb[28].mxu1 }
 0x20d   :  { %v1777_v14 = vmax.f32 %v1771_v26, %v1772_v57  ;;  %v1757_v6 = vmax.f32 %v1444_v3, %v1736_v59  ;;  %v1446_v30 = vpop.f32.mrb[29].mxu0  ;;  %v1738_v61 = vpop.f32.mrb[29].mxu1 }
 0x20e   :  { %v1447_v34 = vpop.f32.mrb[30].mxu0  ;;  %v1739_v36 = vpop.f32.mrb[30].mxu1 }
 0x20f   :  { %v1781_v39 = vpack.c.bf16 %v1777_v14, %v1777_v14  ;;  %v1765_v11 = vadd.f32 %v3133_v18, %v1757_v6  ;;  %v1758_v52 = vmax.f32 %v1447_v34, %v1739_v36  ;;  %v1449_v41 = vpop.f32.mrb[31].mxu0  ;;  %v1741_v27 = vpop.f32.mrb[31].mxu1 }
 0x211   :  { %1985 = vst [vmem:[%s3179_s4 + $0xc] sm:$0x3] %v1781_v39  ;;  %v1766_v4 = vadd.f32 %v3133_v18, %v1758_v52  ;;  %v1773_v15 = vmax.f32 %v1765_v11, 0.0 }
 0x213   :  { %v1774_v43 = vmax.f32 %v1766_v4, 0.0 }
 0x215   :  { %v1778_v23 = vmax.f32 %v1773_v15, %v1774_v43 }
 0x217   :  { %v1782_v19 = vpack.c.bf16 %v1778_v23, %v1778_v23 }
 0x219   :  { %1986 = vst [vmem:[%s3179_s4 + $0xe] sm:$0x3] %v1782_v19 }

// kernel: pneumonia_cnn_forward.7
= control target key start
LH: loop header
LB: loop body
LE: loop exit
PB: predicated region body
PF: predicated region fallthrough
CT: control target
= control target key end

     0   :  { %s3943_s1 = inlined_call_operand.vmem [shape: bf16[2048,256], index: 1, kind: input, shape index: {}]   ;;  %s3944_s0 = inlined_call_operand.vmem [shape: bf16[16,2048], index: 0, kind: input, shape index: {}]   ;;  %s3945_s3 = inlined_call_operand.vmem [shape: bf16[256,128], index: 3, kind: input, shape index: {}]   ;;  %s3946_s2 = inlined_call_operand.vmem [shape: f32[1,256], index: 2, kind: input, shape index: {}]   ;;  %s3947_s4 = inlined_call_operand.vmem [shape: f32[1,128], index: 4, kind: input, shape index: {}]   ;;  %s3948_s5 = inlined_call_operand.vmem [shape: f32[16,128], index: 5, kind: output, shape index: {}]  }
   0x1   :  { %v2581_v0 = vld [vmem:[%s3943_s1 + $0x4] ss:$8 sps:$4 sm:$0xff]   ;;  %v2585_v2 = vld [vmem:[%s3943_s1] ss:$8 sps:$4 sm:$0xff]   ;;  %v2587_v4 = vld [vmem:[%s3943_s1 + $0x14] ss:$8 sps:$4 sm:$0xff]  }
   0x2   :  { %v2583_v1 = vld [vmem:[%s3943_s1 + $0x404] ss:$8 sps:$4 sm:$0xff]   ;;  %1665 = vmatprep.subr.bf16.mxu1 %v2581_v0  ;;  %v2586_v3 = vld [vmem:[%s3943_s1 + $0x400] ss:$8 sps:$4 sm:$0xff]   ;;  %v2589_v5 = vld [vmem:[%s3943_s1 + $0x414] ss:$8 sps:$4 sm:$0xff]  }
   0x3   :  { %1837 = vmatprep.subr.bf16.mxu0 %v2583_v1  ;;  %1666 = vmatpush1.bf16.msra.mxu1 %v2585_v2  ;;  %v2591_v6 = vld [vmem:[%s3943_s1 + $0x10] ss:$8 sps:$4 sm:$0xff]   ;;  %v2593_v8 = vld [vmem:[%s3943_s1 + $0x24] ss:$8 sps:$4 sm:$0xff]   ;;  %v2597_v10 = vld [vmem:[%s3943_s1 + $0x20] ss:$8 sps:$4 sm:$0xff]  }
   0x4   :  { %1838 = vmatpush1.bf16.msra.mxu0 %v2586_v3  ;;  %1667 = vmatprep.subr.bf16.mxu1 %v2587_v4  ;;  %v2592_v7 = vld [vmem:[%s3943_s1 + $0x410] ss:$8 sps:$4 sm:$0xff]   ;;  %v2595_v9 = vld [vmem:[%s3943_s1 + $0x424] ss:$8 sps:$4 sm:$0xff]   ;;  %v2598_v11 = vld [vmem:[%s3943_s1 + $0x420] ss:$8 sps:$4 sm:$0xff]  }
   0x5   :  { %1839 = vmatprep.subr.bf16.mxu0 %v2589_v5  ;;  %v2599_v12 = vld [vmem:[%s3943_s1 + $0x34] ss:$8 sps:$4 sm:$0xff]   ;;  %v2603_v14 = vld [vmem:[%s3943_s1 + $0x30] ss:$8 sps:$4 sm:$0xff]   ;;  %v2605_v16 = vld [vmem:[%s3943_s1 + $0x44] ss:$8 sps:$4 sm:$0xff]  }
   0x6   :  { %v2601_v13 = vld [vmem:[%s3943_s1 + $0x434] ss:$8 sps:$4 sm:$0xff]   ;;  %v2604_v15 = vld [vmem:[%s3943_s1 + $0x430] ss:$8 sps:$4 sm:$0xff]   ;;  %v2607_v17 = vld [vmem:[%s3943_s1 + $0x444] ss:$8 sps:$4 sm:$0xff]  }
   0x7   :  { %1668 = vmatpush1.bf16.msra.mxu1 %v2591_v6  ;;  %v2609_v18 = vld [vmem:[%s3943_s1 + $0x40] ss:$8 sps:$4 sm:$0xff]   ;;  %v2611_v20 = vld [vmem:[%s3943_s1 + $0x54] ss:$8 sps:$4 sm:$0xff]   ;;  %v2615_v22 = vld [vmem:[%s3943_s1 + $0x50] ss:$8 sps:$4 sm:$0xff]  }
   0x8   :  { %1840 = vmatpush1.bf16.msra.mxu0 %v2592_v7  ;;  %1669 = vmatprep.subr.bf16.mxu1 %v2593_v8  ;;  %v2610_v19 = vld [vmem:[%s3943_s1 + $0x440] ss:$8 sps:$4 sm:$0xff]   ;;  %v2613_v21 = vld [vmem:[%s3943_s1 + $0x454] ss:$8 sps:$4 sm:$0xff]   ;;  %v2616_v23 = vld [vmem:[%s3943_s1 + $0x450] ss:$8 sps:$4 sm:$0xff]  }
   0x9   :  { %1841 = vmatprep.subr.bf16.mxu0 %v2595_v9  ;;  %v2617_v24 = vld [vmem:[%s3943_s1 + $0x64] ss:$8 sps:$4 sm:$0xff]   ;;  %v2621_v26 = vld [vmem:[%s3943_s1 + $0x60] ss:$8 sps:$4 sm:$0xff]   ;;  %v2623_v28 = vld [vmem:[%s3943_s1 + $0x74] ss:$8 sps:$4 sm:$0xff]  }
   0xa   :  { %v2619_v25 = vld [vmem:[%s3943_s1 + $0x464] ss:$8 sps:$4 sm:$0xff]   ;;  %v2622_v27 = vld [vmem:[%s3943_s1 + $0x460] ss:$8 sps:$4 sm:$0xff]   ;;  %v2625_v29 = vld [vmem:[%s3943_s1 + $0x474] ss:$8 sps:$4 sm:$0xff]  }
   0xb   :  { %1670 = vmatpush1.bf16.msra.mxu1 %v2597_v10  ;;  %v2627_v30 = vld [vmem:[%s3943_s1 + $0x70] ss:$8 sps:$4 sm:$0xff]   ;;  %v2629_v32 = vld [vmem:[%s3943_s1 + $0x84] ss:$8 sps:$4 sm:$0xff]   ;;  %v2633_v34 = vld [vmem:[%s3943_s1 + $0x80] ss:$8 sps:$4 sm:$0xff]  }
   0xc   :  { %1842 = vmatpush1.bf16.msra.mxu0 %v2598_v11  ;;  %1671 = vmatprep.subr.bf16.mxu1 %v2599_v12  ;;  %v2628_v31 = vld [vmem:[%s3943_s1 + $0x470] ss:$8 sps:$4 sm:$0xff]   ;;  %v2631_v33 = vld [vmem:[%s3943_s1 + $0x484] ss:$8 sps:$4 sm:$0xff]   ;;  %v2634_v35 = vld [vmem:[%s3943_s1 + $0x480] ss:$8 sps:$4 sm:$0xff]  }
   0xd   :  { %1843 = vmatprep.subr.bf16.mxu0 %v2601_v13  ;;  %v2635_v36 = vld [vmem:[%s3943_s1 + $0x94] ss:$8 sps:$4 sm:$0xff]   ;;  %v2639_v38 = vld [vmem:[%s3943_s1 + $0x90] ss:$8 sps:$4 sm:$0xff]   ;;  %v2641_v40 = vld [vmem:[%s3943_s1 + $0xa4] ss:$8 sps:$4 sm:$0xff]  }
   0xe   :  { %v2637_v37 = vld [vmem:[%s3943_s1 + $0x494] ss:$8 sps:$4 sm:$0xff]   ;;  %v2640_v39 = vld [vmem:[%s3943_s1 + $0x490] ss:$8 sps:$4 sm:$0xff]   ;;  %v2643_v41 = vld [vmem:[%s3943_s1 + $0x4a4] ss:$8 sps:$4 sm:$0xff]  }
   0xf   :  { %1672 = vmatpush1.bf16.msra.mxu1 %v2603_v14  ;;  %v2645_v42 = vld [vmem:[%s3943_s1 + $0xa0] ss:$8 sps:$4 sm:$0xff]   ;;  %v2647_v44 = vld [vmem:[%s3943_s1 + $0xb4] ss:$8 sps:$4 sm:$0xff]   ;;  %v2651_v46 = vld [vmem:[%s3943_s1 + $0xb0] ss:$8 sps:$4 sm:$0xff]  }
  0x10   :  { %1844 = vmatpush1.bf16.msra.mxu0 %v2604_v15  ;;  %1673 = vmatprep.subr.bf16.mxu1 %v2605_v16  ;;  %v2646_v43 = vld [vmem:[%s3943_s1 + $0x4a0] ss:$8 sps:$4 sm:$0xff]   ;;  %v2649_v45 = vld [vmem:[%s3943_s1 + $0x4b4] ss:$8 sps:$4 sm:$0xff]   ;;  %v2652_v47 = vld [vmem:[%s3943_s1 + $0x4b0] ss:$8 sps:$4 sm:$0xff]  }
  0x11   :  { %1845 = vmatprep.subr.bf16.mxu0 %v2607_v17  ;;  %v33_v48 = vld [vmem:[%s3944_s0] sm:$0xff]  ;;  %v2659_v58 = vld [vmem:[%s3943_s1 + $0xd4] ss:$8 sps:$4 sm:$0xff]   ;;  %v2663_v60 = vld [vmem:[%s3943_s1 + $0xd0] ss:$8 sps:$4 sm:$0xff]  }
  0x12   :  { %v41_v49 = vld [vmem:[%s3944_s0 + $0x40] sm:$0xff]  ;;  %v2661_v59 = vld [vmem:[%s3943_s1 + $0x4d4] ss:$8 sps:$4 sm:$0xff]   ;;  %v2664_v61 = vld [vmem:[%s3943_s1 + $0x4d0] ss:$8 sps:$4 sm:$0xff]  }
  0x13   :  { %1674 = vmatpush1.bf16.msra.mxu1 %v2609_v18  ;;  %v2653_v50 = vld [vmem:[%s3943_s1 + $0xc4] ss:$8 sps:$4 sm:$0xff]   ;;  %v2241_v52 = vcombine.high %v33_v48, %v41_v49  ;;  %v2657_v56 = vld [vmem:[%s3943_s1 + $0xc0] ss:$8 sps:$4 sm:$0xff]   ;;  %v2671_v2 = vld [vmem:[%s3943_s1 + $0xf4] ss:$8 sps:$4 sm:$0xff]   ;;  %v2240_v8 = vcombine.low %v33_v48, %v41_v49 }
  0x14   :  { %1846 = vmatpush1.bf16.msra.mxu0 %v2610_v19  ;;  %1675 = vmatprep.subr.bf16.mxu1 %v2611_v20  ;;  %v2655_v51 = vld [vmem:[%s3943_s1 + $0x4c4] ss:$8 sps:$4 sm:$0xff]   ;;  %v2658_v57 = vld [vmem:[%s3943_s1 + $0x4c0] ss:$8 sps:$4 sm:$0xff]   ;;  %v2673_v3 = vld [vmem:[%s3943_s1 + $0x4f4] ss:$8 sps:$4 sm:$0xff]  }
  0x15   :  { %1847 = vmatprep.subr.bf16.mxu0 %v2613_v21  ;;  %v37_v53 = vld [vmem:[%s3944_s0 + $0x20] sm:$0xff]  ;;  %1697 = vmatprep.mubr.bf16.mxu1 %v2241_v52  ;;  %v2675_v4 = vld [vmem:[%s3943_s1 + $0xf0] ss:$8 sps:$4 sm:$0xff]   ;;  %v2685_v12 = vld [vmem:[%s3943_s1 + $0x114] ss:$8 sps:$4 sm:$0xff]  }
  0x16   :  { %v45_v54 = vld [vmem:[%s3944_s0 + $0x60] sm:$0xff]  ;;  %v2676_v5 = vld [vmem:[%s3943_s1 + $0x4f0] ss:$8 sps:$4 sm:$0xff]   ;;  %v2688_v13 = vld [vmem:[%s3943_s1 + $0x514] ss:$8 sps:$4 sm:$0xff]  }
  0x17   :  { %1676 = vmatpush1.bf16.msra.mxu1 %v2615_v22  ;;  %v2249_v55 = vcombine.high %v37_v53, %v45_v54  ;;  %v2665_v62 = vld [vmem:[%s3943_s1 + $0xe4] ss:$8 sps:$4 sm:$0xff]   ;;  %v2669_v0 = vld [vmem:[%s3943_s1 + $0xe0] ss:$8 sps:$4 sm:$0xff]   ;;  %v2248_v10 = vcombine.low %v37_v53, %v45_v54  ;;  %v2683_v14 = vld [vmem:[%s3943_s1 + $0x110] ss:$8 sps:$4 sm:$0xff]  }
  0x18   :  { %1848 = vmatpush1.bf16.msra.mxu0 %v2616_v23  ;;  %1677 = vmatprep.subr.bf16.mxu1 %v2617_v24  ;;  %v2667_v63 = vld [vmem:[%s3943_s1 + $0x4e4] ss:$8 sps:$4 sm:$0xff]   ;;  %v2670_v1 = vld [vmem:[%s3943_s1 + $0x4e0] ss:$8 sps:$4 sm:$0xff]   ;;  %v2686_v15 = vld [vmem:[%s3943_s1 + $0x510] ss:$8 sps:$4 sm:$0xff]  }
  0x19   :  { %1849 = vmatprep.subr.bf16.mxu0 %v2619_v25  ;;  %1869 = vmatprep.mubr.bf16.mxu0 %v2249_v55  ;;  %v2679_v6 = vld [vmem:[%s3943_s1 + $0x104] ss:$8 sps:$4 sm:$0xff]   ;;  %v2677_v9 = vld [vmem:[%s3943_s1 + $0x100] ss:$8 sps:$4 sm:$0xff]   ;;  %v2697_v20 = vld [vmem:[%s3943_s1 + $0x134] ss:$8 sps:$4 sm:$0xff]  }
  0x1a   :  { %v2682_v7 = vld [vmem:[%s3943_s1 + $0x504] ss:$8 sps:$4 sm:$0xff]   ;;  %v2680_v11 = vld [vmem:[%s3943_s1 + $0x500] ss:$8 sps:$4 sm:$0xff]   ;;  %v2700_v21 = vld [vmem:[%s3943_s1 + $0x534] ss:$8 sps:$4 sm:$0xff]  }
  0x1b   :  { %1678 = vmatpush1.bf16.msra.mxu1 %v2621_v26  ;;  %v2691_v16 = vld [vmem:[%s3943_s1 + $0x124] ss:$8 sps:$4 sm:$0xff]   ;;  %v2689_v18 = vld [vmem:[%s3943_s1 + $0x120] ss:$8 sps:$4 sm:$0xff]   ;;  %v2695_v22 = vld [vmem:[%s3943_s1 + $0x130] ss:$8 sps:$4 sm:$0xff]  }
  0x1c   :  { %1850 = vmatpush1.bf16.msra.mxu0 %v2622_v27  ;;  %1679 = vmatprep.subr.bf16.mxu1 %v2623_v28  ;;  %v2694_v17 = vld [vmem:[%s3943_s1 + $0x524] ss:$8 sps:$4 sm:$0xff]   ;;  %v2692_v19 = vld [vmem:[%s3943_s1 + $0x520] ss:$8 sps:$4 sm:$0xff]   ;;  %v2698_v23 = vld [vmem:[%s3943_s1 + $0x530] ss:$8 sps:$4 sm:$0xff]  }
  0x1d   :  { %1851 = vmatprep.subr.bf16.mxu0 %v2625_v29  ;;  %v2703_v24 = vld [vmem:[%s3943_s1 + $0x144] ss:$8 sps:$4 sm:$0xff]   ;;  %v2701_v26 = vld [vmem:[%s3943_s1 + $0x140] ss:$8 sps:$4 sm:$0xff]   ;;  %v2709_v28 = vld [vmem:[%s3943_s1 + $0x154] ss:$8 sps:$4 sm:$0xff]  }
  0x1e   :  { %v2706_v25 = vld [vmem:[%s3943_s1 + $0x544] ss:$8 sps:$4 sm:$0xff]   ;;  %v2704_v27 = vld [vmem:[%s3943_s1 + $0x540] ss:$8 sps:$4 sm:$0xff]   ;;  %v2712_v29 = vld [vmem:[%s3943_s1 + $0x554] ss:$8 sps:$4 sm:$0xff]  }
  0x1f   :  { %1680 = vmatpush1.bf16.msra.mxu1 %v2627_v30  ;;  %v2707_v30 = vld [vmem:[%s3943_s1 + $0x150] ss:$8 sps:$4 sm:$0xff]   ;;  %v2725_v48 = vld [vmem:[%s3943_s1 + $0x180] ss:$8 sps:$4 sm:$0xff]   ;;  %v2739_v54 = vld [vmem:[%s3943_s1 + $0x1a4] ss:$8 sps:$4 sm:$0xff]  }
  0x20   :  { %1852 = vmatpush1.bf16.msra.mxu0 %v2628_v31  ;;  %1681 = vmatprep.subr.bf16.mxu1 %v2629_v32  ;;  %v2710_v31 = vld [vmem:[%s3943_s1 + $0x550] ss:$8 sps:$4 sm:$0xff]   ;;  %v2715_v32 = vld [vmem:[%s3943_s1 + $0x164] ss:$8 sps:$4 sm:$0xff]   ;;  %v2728_v49 = vld [vmem:[%s3943_s1 + $0x580] ss:$8 sps:$4 sm:$0xff]  }
  0x21   :  { %1853 = vmatprep.subr.bf16.mxu0 %v2631_v33  ;;  %v2718_v33 = vld [vmem:[%s3943_s1 + $0x564] ss:$8 sps:$4 sm:$0xff]   ;;  %v2731_v52 = vld [vmem:[%s3943_s1 + $0x190] ss:$8 sps:$4 sm:$0xff]  }
  0x22   :  { %v2734_v53 = vld [vmem:[%s3943_s1 + $0x590] ss:$8 sps:$4 sm:$0xff]   ;;  %v2742_v55 = vld [vmem:[%s3943_s1 + $0x5a4] ss:$8 sps:$4 sm:$0xff]  }
  0x23   :  { %1682 = vmatpush1.bf16.msra.mxu1 %v2633_v34  ;;  %v2713_v34 = vld [vmem:[%s3943_s1 + $0x160] ss:$8 sps:$4 sm:$0xff]  }
  0x24   :  { %1854 = vmatpush1.bf16.msra.mxu0 %v2634_v35  ;;  %1683 = vmatprep.subr.bf16.mxu1 %v2635_v36  ;;  %v2716_v35 = vld [vmem:[%s3943_s1 + $0x560] ss:$8 sps:$4 sm:$0xff]  }
  0x25   :  { %1855 = vmatprep.subr.bf16.mxu0 %v2637_v37  ;;  %v3310_v36 = vld [vmem:[%s3944_s0 + $0x8] sm:$0xff] }
  0x26   :  { %v3315_v37 = vld [vmem:[%s3944_s0 + $0x48] sm:$0xff] }
  0x27   :  { %1684 = vmatpush1.bf16.msra.mxu1 %v2639_v38  ;;  %v2721_v38 = vld [vmem:[%s3943_s1 + $0x174] ss:$8 sps:$4 sm:$0xff]  }
  0x28   :  { %1856 = vmatpush1.bf16.msra.mxu0 %v2640_v39  ;;  %1685 = vmatprep.subr.bf16.mxu1 %v2641_v40  ;;  %v2724_v39 = vld [vmem:[%s3943_s1 + $0x574] ss:$8 sps:$4 sm:$0xff]   ;;  %v2243_v40 = vcombine.high %v3310_v36, %v3315_v37 }
  0x29   :  { %1857 = vmatprep.subr.bf16.mxu0 %v2643_v41  ;;  %v3328_v41 = vld [vmem:[%s3944_s0 + $0x28] sm:$0xff] }
  0x2b   :  { %1686 = vmatpush1.bf16.msra.mxu1 %v2645_v42  ;;  %v3333_v42 = vld [vmem:[%s3944_s0 + $0x68] sm:$0xff] }
  0x2c   :  { %1858 = vmatpush1.bf16.msra.mxu0 %v2646_v43  ;;  %1687 = vmatprep.subr.bf16.mxu1 %v2647_v44  ;;  %v2251_v43 = vcombine.high %v3328_v41, %v3333_v42  ;;  %v2719_v44 = vld [vmem:[%s3943_s1 + $0x170] ss:$8 sps:$4 sm:$0xff]  }
  0x2d   :  { %1859 = vmatprep.subr.bf16.mxu0 %v2649_v45  ;;  %v2722_v45 = vld [vmem:[%s3943_s1 + $0x570] ss:$8 sps:$4 sm:$0xff]  }
  0x2f   :  { %1688 = vmatpush1.bf16.msra.mxu1 %v2651_v46  ;;  %v2727_v46 = vld [vmem:[%s3943_s1 + $0x184] ss:$8 sps:$4 sm:$0xff]  }
  0x30   :  { %1860 = vmatpush1.bf16.msra.mxu0 %v2652_v47  ;;  %1689 = vmatprep.subr.bf16.mxu1 %v2653_v50  ;;  %v2730_v47 = vld [vmem:[%s3943_s1 + $0x584] ss:$8 sps:$4 sm:$0xff]   ;;  %v2733_v50 = vld [vmem:[%s3943_s1 + $0x194] ss:$8 sps:$4 sm:$0xff]  }
  0x31   :  { %1861 = vmatprep.subr.bf16.mxu0 %v2655_v51  ;;  %v2736_v51 = vld [vmem:[%s3943_s1 + $0x594] ss:$8 sps:$4 sm:$0xff]  }
  0x33   :  { %1690 = vmatpush1.bf16.msra.mxu1 %v2657_v56  ;;  %v2737_v56 = vld [vmem:[%s3943_s1 + $0x1a0] ss:$8 sps:$4 sm:$0xff]  }
  0x34   :  { %1862 = vmatpush1.bf16.msra.mxu0 %v2658_v57  ;;  %1691 = vmatprep.subr.bf16.mxu1 %v2659_v58  ;;  %v2740_v57 = vld [vmem:[%s3943_s1 + $0x5a0] ss:$8 sps:$4 sm:$0xff]   ;;  %v2745_v58 = vld [vmem:[%s3943_s1 + $0x1b4] ss:$8 sps:$4 sm:$0xff]  }
  0x35   :  { %1863 = vmatprep.subr.bf16.mxu0 %v2661_v59  ;;  %v2748_v59 = vld [vmem:[%s3943_s1 + $0x5b4] ss:$8 sps:$4 sm:$0xff]  }
  0x37   :  { %1692 = vmatpush1.bf16.msra.mxu1 %v2663_v60  ;;  %v2743_v60 = vld [vmem:[%s3943_s1 + $0x1b0] ss:$8 sps:$4 sm:$0xff]  }
  0x38   :  { %1864 = vmatpush1.bf16.msra.mxu0 %v2664_v61  ;;  %1693 = vmatprep.subr.bf16.mxu1 %v2665_v62  ;;  %v2746_v61 = vld [vmem:[%s3943_s1 + $0x5b0] ss:$8 sps:$4 sm:$0xff]   ;;  %v2751_v62 = vld [vmem:[%s3943_s1 + $0x1c4] ss:$8 sps:$4 sm:$0xff]  }
  0x39   :  { %1865 = vmatprep.subr.bf16.mxu0 %v2667_v63  ;;  %v2754_v63 = vld [vmem:[%s3943_s1 + $0x5c4] ss:$8 sps:$4 sm:$0xff]  }
  0x3b   :  { %1694 = vmatpush1.bf16.msra.mxu1 %v2669_v0  ;;  %v2749_v0 = vld [vmem:[%s3943_s1 + $0x1c0] ss:$8 sps:$4 sm:$0xff]  }
  0x3c   :  { %1866 = vmatpush1.bf16.msra.mxu0 %v2670_v1  ;;  %1695 = vmatprep.subr.bf16.mxu1 %v2671_v2  ;;  %v2752_v1 = vld [vmem:[%s3943_s1 + $0x5c0] ss:$8 sps:$4 sm:$0xff]   ;;  %v2757_v2 = vld [vmem:[%s3943_s1 + $0x1d4] ss:$8 sps:$4 sm:$0xff]  }
  0x3d   :  { %1867 = vmatprep.subr.bf16.mxu0 %v2673_v3  ;;  %v2760_v3 = vld [vmem:[%s3943_s1 + $0x5d4] ss:$8 sps:$4 sm:$0xff]  }
  0x3f   :  { %1696 = vmatpush1.bf16.msra.mxu1 %v2675_v4  ;;  %v2755_v4 = vld [vmem:[%s3943_s1 + $0x1d0] ss:$8 sps:$4 sm:$0xff]  }
  0x40   :  { %1868 = vmatpush1.bf16.msra.mxu0 %v2676_v5  ;;  %1708 = vmatprep.subr.bf16.mxu1 %v2679_v6  ;;  %v2758_v5 = vld [vmem:[%s3943_s1 + $0x5d0] ss:$8 sps:$4 sm:$0xff]   ;;  %v2763_v6 = vld [vmem:[%s3943_s1 + $0x1e4] ss:$8 sps:$4 sm:$0xff]  }
  0x41   :  { %1880 = vmatprep.subr.bf16.mxu0 %v2682_v7  ;;  %v2766_v7 = vld [vmem:[%s3943_s1 + $0x5e4] ss:$8 sps:$4 sm:$0xff]  }
  0x42   :  { %1698 = vmatmul.mubr.bf16.vlgmr.msra.gmra.mrb[0].mxu1 %v2240_v8  ;;  %v2761_v8 = vld [vmem:[%s3943_s1 + $0x1e0] ss:$8 sps:$4 sm:$0xff]  }
  0x43   :  { %1870 = vmatmul.mubr.bf16.vlgmr.msra.gmra.mrb[0].mxu0 %v2248_v10  ;;  %1709 = vmatpush1.bf16.msra.mxu1 %v2677_v9  ;;  %v2764_v9 = vld [vmem:[%s3943_s1 + $0x5e0] ss:$8 sps:$4 sm:$0xff]   ;;  %v2769_v10 = vld [vmem:[%s3943_s1 + $0x1f4] ss:$8 sps:$4 sm:$0xff]  }
  0x44   :  { %1881 = vmatpush1.bf16.msra.mxu0 %v2680_v11  ;;  %1710 = vmatprep.subr.bf16.mxu1 %v2685_v12  ;;  %v2772_v11 = vld [vmem:[%s3943_s1 + $0x5f4] ss:$8 sps:$4 sm:$0xff]   ;;  %v2767_v12 = vld [vmem:[%s3943_s1 + $0x1f0] ss:$8 sps:$4 sm:$0xff]  }
  0x45   :  { %1882 = vmatprep.subr.bf16.mxu0 %v2688_v13  ;;  %1740 = vmatprep.mubr.bf16.mxu1 %v2243_v40  ;;  %v2770_v13 = vld [vmem:[%s3943_s1 + $0x5f0] ss:$8 sps:$4 sm:$0xff]   ;;  %v2797_v40 = vld [vmem:[%s3943_s1 + $0x240] ss:$8 sps:$4 sm:$0xff]  }
  0x46   :  { %1912 = vmatprep.mubr.bf16.mxu0 %v2251_v43  ;;  %v2808_v43 = vld [vmem:[%s3943_s1 + $0x654] ss:$8 sps:$4 sm:$0xff]  }
  0x47   :  { %1711 = vmatpush1.bf16.msra.mxu1 %v2683_v14  ;;  %v2775_v14 = vld [vmem:[%s3943_s1 + $0x204] ss:$8 sps:$4 sm:$0xff]  }
  0x48   :  { %1883 = vmatpush1.bf16.msra.mxu0 %v2686_v15  ;;  %1712 = vmatprep.subr.bf16.mxu1 %v2691_v16  ;;  %v2778_v15 = vld [vmem:[%s3943_s1 + $0x604] ss:$8 sps:$4 sm:$0xff]   ;;  %v2242_v16 = vcombine.low %v3310_v36, %v3315_v37  ;;  %v2791_v36 = vld [vmem:[%s3943_s1 + $0x230] ss:$8 sps:$4 sm:$0xff]  }
  0x49   :  { %1884 = vmatprep.subr.bf16.mxu0 %v2694_v17  ;;  %v2773_v17 = vld [vmem:[%s3943_s1 + $0x200] ss:$8 sps:$4 sm:$0xff]   ;;  %v2794_v37 = vld [vmem:[%s3943_s1 + $0x630] ss:$8 sps:$4 sm:$0xff]  }
  0x4b   :  { %1713 = vmatpush1.bf16.msra.mxu1 %v2689_v18  ;;  %v2250_v18 = vcombine.low %v3328_v41, %v3333_v42  ;;  %v2800_v41 = vld [vmem:[%s3943_s1 + $0x640] ss:$8 sps:$4 sm:$0xff]   ;;  %v2805_v42 = vld [vmem:[%s3943_s1 + $0x254] ss:$8 sps:$4 sm:$0xff]  }
  0x4c   :  { %1885 = vmatpush1.bf16.msra.mxu0 %v2692_v19  ;;  %1714 = vmatprep.subr.bf16.mxu1 %v2697_v20  ;;  %v2776_v19 = vld [vmem:[%s3943_s1 + $0x600] ss:$8 sps:$4 sm:$0xff]   ;;  %v2781_v20 = vld [vmem:[%s3943_s1 + $0x214] ss:$8 sps:$4 sm:$0xff]  }
  0x4d   :  { %1886 = vmatprep.subr.bf16.mxu0 %v2700_v21  ;;  %v2784_v21 = vld [vmem:[%s3943_s1 + $0x614] ss:$8 sps:$4 sm:$0xff]  }
  0x4f   :  { %1715 = vmatpush1.bf16.msra.mxu1 %v2695_v22  ;;  %v2779_v22 = vld [vmem:[%s3943_s1 + $0x210] ss:$8 sps:$4 sm:$0xff]  }
  0x50   :  { %1887 = vmatpush1.bf16.msra.mxu0 %v2698_v23  ;;  %1716 = vmatprep.subr.bf16.mxu1 %v2703_v24  ;;  %v2782_v23 = vld [vmem:[%s3943_s1 + $0x610] ss:$8 sps:$4 sm:$0xff]  }
  0x51   :  { %1888 = vmatprep.subr.bf16.mxu0 %v2706_v25  ;;  %v3470_v24 = vld [vmem:[%s3944_s0 + $0x10] sm:$0xff] }
  0x52   :  { %v3475_v25 = vld [vmem:[%s3944_s0 + $0x50] sm:$0xff] }
  0x53   :  { %1717 = vmatpush1.bf16.msra.mxu1 %v2701_v26  ;;  %v2787_v26 = vld [vmem:[%s3943_s1 + $0x224] ss:$8 sps:$4 sm:$0xff]  }
  0x54   :  { %1889 = vmatpush1.bf16.msra.mxu0 %v2704_v27  ;;  %1718 = vmatprep.subr.bf16.mxu1 %v2709_v28  ;;  %v2790_v27 = vld [vmem:[%s3943_s1 + $0x624] ss:$8 sps:$4 sm:$0xff]   ;;  %v2245_v28 = vcombine.high %v3470_v24, %v3475_v25 }
  0x55   :  { %1890 = vmatprep.subr.bf16.mxu0 %v2712_v29  ;;  %v3488_v29 = vld [vmem:[%s3944_s0 + $0x30] sm:$0xff] }
  0x57   :  { %1719 = vmatpush1.bf16.msra.mxu1 %v2707_v30  ;;  %v3493_v30 = vld [vmem:[%s3944_s0 + $0x70] sm:$0xff] }
  0x58   :  { %1891 = vmatpush1.bf16.msra.mxu0 %v2710_v31  ;;  %1720 = vmatprep.subr.bf16.mxu1 %v2715_v32  ;;  %v2253_v31 = vcombine.high %v3488_v29, %v3493_v30  ;;  %v2785_v32 = vld [vmem:[%s3943_s1 + $0x220] ss:$8 sps:$4 sm:$0xff]  }
  0x59   :  { %1892 = vmatprep.subr.bf16.mxu0 %v2718_v33  ;;  %v2788_v33 = vld [vmem:[%s3943_s1 + $0x620] ss:$8 sps:$4 sm:$0xff]  }
  0x5b   :  { %1721 = vmatpush1.bf16.msra.mxu1 %v2713_v34  ;;  %v2793_v34 = vld [vmem:[%s3943_s1 + $0x234] ss:$8 sps:$4 sm:$0xff]  }
  0x5c   :  { %1893 = vmatpush1.bf16.msra.mxu0 %v2716_v35  ;;  %1722 = vmatprep.subr.bf16.mxu1 %v2721_v38  ;;  %v2796_v35 = vld [vmem:[%s3943_s1 + $0x634] ss:$8 sps:$4 sm:$0xff]   ;;  %v2799_v38 = vld [vmem:[%s3943_s1 + $0x244] ss:$8 sps:$4 sm:$0xff]  }
  0x5d   :  { %1894 = vmatprep.subr.bf16.mxu0 %v2724_v39  ;;  %v2802_v39 = vld [vmem:[%s3943_s1 + $0x644] ss:$8 sps:$4 sm:$0xff]  }
  0x5f   :  { %1723 = vmatpush1.bf16.msra.mxu1 %v2719_v44  ;;  %v2803_v44 = vld [vmem:[%s3943_s1 + $0x250] ss:$8 sps:$4 sm:$0xff]  }
  0x60   :  { %1895 = vmatpush1.bf16.msra.mxu0 %v2722_v45  ;;  %1724 = vmatprep.subr.bf16.mxu1 %v2727_v46  ;;  %v2806_v45 = vld [vmem:[%s3943_s1 + $0x650] ss:$8 sps:$4 sm:$0xff]   ;;  %v2811_v46 = vld [vmem:[%s3943_s1 + $0x264] ss:$8 sps:$4 sm:$0xff]  }
  0x61   :  { %1896 = vmatprep.subr.bf16.mxu0 %v2730_v47  ;;  %v2814_v47 = vld [vmem:[%s3943_s1 + $0x664] ss:$8 sps:$4 sm:$0xff]  }
  0x63   :  { %1725 = vmatpush1.bf16.msra.mxu1 %v2725_v48  ;;  %v2809_v48 = vld [vmem:[%s3943_s1 + $0x260] ss:$8 sps:$4 sm:$0xff]  }
  0x64   :  { %1897 = vmatpush1.bf16.msra.mxu0 %v2728_v49  ;;  %1726 = vmatprep.subr.bf16.mxu1 %v2733_v50  ;;  %v2812_v49 = vld [vmem:[%s3943_s1 + $0x660] ss:$8 sps:$4 sm:$0xff]   ;;  %v2817_v50 = vld [vmem:[%s3943_s1 + $0x274] ss:$8 sps:$4 sm:$0xff]  }
  0x65   :  { %1898 = vmatprep.subr.bf16.mxu0 %v2736_v51  ;;  %v2820_v51 = vld [vmem:[%s3943_s1 + $0x674] ss:$8 sps:$4 sm:$0xff]  }
  0x67   :  { %1727 = vmatpush1.bf16.msra.mxu1 %v2731_v52  ;;  %v2815_v52 = vld [vmem:[%s3943_s1 + $0x270] ss:$8 sps:$4 sm:$0xff]  }
  0x68   :  { %1899 = vmatpush1.bf16.msra.mxu0 %v2734_v53  ;;  %1728 = vmatprep.subr.bf16.mxu1 %v2739_v54  ;;  %v2818_v53 = vld [vmem:[%s3943_s1 + $0x670] ss:$8 sps:$4 sm:$0xff]   ;;  %v2823_v54 = vld [vmem:[%s3943_s1 + $0x284] ss:$8 sps:$4 sm:$0xff]  }
  0x69   :  { %1900 = vmatprep.subr.bf16.mxu0 %v2742_v55  ;;  %v2826_v55 = vld [vmem:[%s3943_s1 + $0x684] ss:$8 sps:$4 sm:$0xff]  }
  0x6b   :  { %1729 = vmatpush1.bf16.msra.mxu1 %v2737_v56  ;;  %v2821_v56 = vld [vmem:[%s3943_s1 + $0x280] ss:$8 sps:$4 sm:$0xff]  }
  0x6c   :  { %1901 = vmatpush1.bf16.msra.mxu0 %v2740_v57  ;;  %1730 = vmatprep.subr.bf16.mxu1 %v2745_v58  ;;  %v2824_v57 = vld [vmem:[%s3943_s1 + $0x680] ss:$8 sps:$4 sm:$0xff]   ;;  %v2829_v58 = vld [vmem:[%s3943_s1 + $0x294] ss:$8 sps:$4 sm:$0xff]  }
  0x6d   :  { %1902 = vmatprep.subr.bf16.mxu0 %v2748_v59  ;;  %v2832_v59 = vld [vmem:[%s3943_s1 + $0x694] ss:$8 sps:$4 sm:$0xff]  }
  0x6f   :  { %1731 = vmatpush1.bf16.msra.mxu1 %v2743_v60  ;;  %v2827_v60 = vld [vmem:[%s3943_s1 + $0x290] ss:$8 sps:$4 sm:$0xff]  }
  0x70   :  { %1903 = vmatpush1.bf16.msra.mxu0 %v2746_v61  ;;  %1732 = vmatprep.subr.bf16.mxu1 %v2751_v62  ;;  %v2830_v61 = vld [vmem:[%s3943_s1 + $0x690] ss:$8 sps:$4 sm:$0xff]   ;;  %v2835_v62 = vld [vmem:[%s3943_s1 + $0x2a4] ss:$8 sps:$4 sm:$0xff]  }
  0x71   :  { %1904 = vmatprep.subr.bf16.mxu0 %v2754_v63  ;;  %v2838_v63 = vld [vmem:[%s3943_s1 + $0x6a4] ss:$8 sps:$4 sm:$0xff]  }
  0x73   :  { %1733 = vmatpush1.bf16.msra.mxu1 %v2749_v0  ;;  %v2833_v0 = vld [vmem:[%s3943_s1 + $0x2a0] ss:$8 sps:$4 sm:$0xff]  }
  0x74   :  { %1905 = vmatpush1.bf16.msra.mxu0 %v2752_v1  ;;  %1734 = vmatprep.subr.bf16.mxu1 %v2757_v2  ;;  %v2836_v1 = vld [vmem:[%s3943_s1 + $0x6a0] ss:$8 sps:$4 sm:$0xff]   ;;  %v2841_v2 = vld [vmem:[%s3943_s1 + $0x2b4] ss:$8 sps:$4 sm:$0xff]  }
  0x75   :  { %1906 = vmatprep.subr.bf16.mxu0 %v2760_v3  ;;  %v2844_v3 = vld [vmem:[%s3943_s1 + $0x6b4] ss:$8 sps:$4 sm:$0xff]  }
  0x77   :  { %1735 = vmatpush1.bf16.msra.mxu1 %v2755_v4  ;;  %v2839_v4 = vld [vmem:[%s3943_s1 + $0x2b0] ss:$8 sps:$4 sm:$0xff]  }
  0x78   :  { %1907 = vmatpush1.bf16.msra.mxu0 %v2758_v5  ;;  %1736 = vmatprep.subr.bf16.mxu1 %v2763_v6  ;;  %v2842_v5 = vld [vmem:[%s3943_s1 + $0x6b0] ss:$8 sps:$4 sm:$0xff]   ;;  %v2847_v6 = vld [vmem:[%s3943_s1 + $0x2c4] ss:$8 sps:$4 sm:$0xff]  }
  0x79   :  { %1908 = vmatprep.subr.bf16.mxu0 %v2766_v7  ;;  %v2850_v7 = vld [vmem:[%s3943_s1 + $0x6c4] ss:$8 sps:$4 sm:$0xff]  }
  0x7b   :  { %1737 = vmatpush1.bf16.msra.mxu1 %v2761_v8  ;;  %v2845_v8 = vld [vmem:[%s3943_s1 + $0x2c0] ss:$8 sps:$4 sm:$0xff]  }
  0x7c   :  { %1909 = vmatpush1.bf16.msra.mxu0 %v2764_v9  ;;  %1738 = vmatprep.subr.bf16.mxu1 %v2769_v10  ;;  %v2848_v9 = vld [vmem:[%s3943_s1 + $0x6c0] ss:$8 sps:$4 sm:$0xff]   ;;  %v2853_v10 = vld [vmem:[%s3943_s1 + $0x2d4] ss:$8 sps:$4 sm:$0xff]  }
  0x7d   :  { %1910 = vmatprep.subr.bf16.mxu0 %v2772_v11  ;;  %v2856_v11 = vld [vmem:[%s3943_s1 + $0x6d4] ss:$8 sps:$4 sm:$0xff]  }
  0x7f   :  { %1739 = vmatpush1.bf16.msra.mxu1 %v2767_v12  ;;  %v2851_v12 = vld [vmem:[%s3943_s1 + $0x2d0] ss:$8 sps:$4 sm:$0xff]  }
  0x80   :  { %1911 = vmatpush1.bf16.msra.mxu0 %v2770_v13  ;;  %1751 = vmatprep.subr.bf16.mxu1 %v2775_v14  ;;  %v2854_v13 = vld [vmem:[%s3943_s1 + $0x6d0] ss:$8 sps:$4 sm:$0xff]   ;;  %v2859_v14 = vld [vmem:[%s3943_s1 + $0x2e4] ss:$8 sps:$4 sm:$0xff]  }
  0x81   :  { %1923 = vmatprep.subr.bf16.mxu0 %v2778_v15  ;;  %v2862_v15 = vld [vmem:[%s3943_s1 + $0x6e4] ss:$8 sps:$4 sm:$0xff]  }
  0x82   :  { %1741 = vmatmul.mubr.bf16.vlgmr.msra.gmra.mrb[0].mxu1 %v2242_v16  ;;  %v2857_v16 = vld [vmem:[%s3943_s1 + $0x2e0] ss:$8 sps:$4 sm:$0xff]  }
  0x83   :  { %1913 = vmatmul.mubr.bf16.vlgmr.msra.gmra.mrb[0].mxu0 %v2250_v18  ;;  %1752 = vmatpush1.bf16.msra.mxu1 %v2773_v17  ;;  %v2860_v17 = vld [vmem:[%s3943_s1 + $0x6e0] ss:$8 sps:$4 sm:$0xff]   ;;  %v2865_v18 = vld [vmem:[%s3943_s1 + $0x2f4] ss:$8 sps:$4 sm:$0xff]  }
  0x84   :  { %1924 = vmatpush1.bf16.msra.mxu0 %v2776_v19  ;;  %1753 = vmatprep.subr.bf16.mxu1 %v2781_v20  ;;  %v2868_v19 = vld [vmem:[%s3943_s1 + $0x6f4] ss:$8 sps:$4 sm:$0xff]   ;;  %v2863_v20 = vld [vmem:[%s3943_s1 + $0x2f0] ss:$8 sps:$4 sm:$0xff]  }
  0x85   :  { %1925 = vmatprep.subr.bf16.mxu0 %v2784_v21  ;;  %1783 = vmatprep.mubr.bf16.mxu1 %v2245_v28  ;;  %v2866_v21 = vld [vmem:[%s3943_s1 + $0x6f0] ss:$8 sps:$4 sm:$0xff]   ;;  %v2252_v28 = vcombine.low %v3488_v29, %v3493_v30  ;;  %v2877_v29 = vld [vmem:[%s3943_s1 + $0x314] ss:$8 sps:$4 sm:$0xff]  }
  0x86   :  { %1955 = vmatprep.mubr.bf16.mxu0 %v2253_v31  ;;  %v3677_v31 = vld [vmem:[%s3944_s0 + $0x58] sm:$0xff] }
  0x87   :  { %1754 = vmatpush1.bf16.msra.mxu1 %v2779_v22  ;;  %v2871_v22 = vld [vmem:[%s3943_s1 + $0x304] ss:$8 sps:$4 sm:$0xff]   ;;  %v2880_v30 = vld [vmem:[%s3943_s1 + $0x714] ss:$8 sps:$4 sm:$0xff]  }
  0x88   :  { %1926 = vmatpush1.bf16.msra.mxu0 %v2782_v23  ;;  %1755 = vmatprep.subr.bf16.mxu1 %v2787_v26  ;;  %v2874_v23 = vld [vmem:[%s3943_s1 + $0x704] ss:$8 sps:$4 sm:$0xff]   ;;  %v3668_v26 = vld [vmem:[%s3944_s0 + $0x18] sm:$0xff] }
  0x89   :  { %1927 = vmatprep.subr.bf16.mxu0 %v2790_v27  ;;  %v2244_v27 = vcombine.low %v3470_v24, %v3475_v25  ;;  %v2869_v24 = vld [vmem:[%s3943_s1 + $0x300] ss:$8 sps:$4 sm:$0xff]  }
  0x8a   :  { %v2872_v25 = vld [vmem:[%s3943_s1 + $0x700] ss:$8 sps:$4 sm:$0xff]  }
  0x8b   :  { %1756 = vmatpush1.bf16.msra.mxu1 %v2785_v32  ;;  %v3682_v32 = vld [vmem:[%s3944_s0 + $0x38] sm:$0xff] }
  0x8c   :  { %1928 = vmatpush1.bf16.msra.mxu0 %v2788_v33  ;;  %1757 = vmatprep.subr.bf16.mxu1 %v2793_v34  ;;  %v3687_v33 = vld [vmem:[%s3944_s0 + $0x78] sm:$0xff]  ;;  %v2247_v34 = vcombine.high %v3668_v26, %v3677_v31 }
  0x8d   :  { %1929 = vmatprep.subr.bf16.mxu0 %v2796_v35  ;;  %v2255_v35 = vcombine.high %v3682_v32, %v3687_v33 }
  0x8f   :  { %1758 = vmatpush1.bf16.msra.mxu1 %v2791_v36  ;;  %v2875_v36 = vld [vmem:[%s3943_s1 + $0x310] ss:$8 sps:$4 sm:$0xff]  }
  0x90   :  { %1930 = vmatpush1.bf16.msra.mxu0 %v2794_v37  ;;  %1759 = vmatprep.subr.bf16.mxu1 %v2799_v38  ;;  %v2878_v37 = vld [vmem:[%s3943_s1 + $0x710] ss:$8 sps:$4 sm:$0xff]   ;;  %v2883_v38 = vld [vmem:[%s3943_s1 + $0x324] ss:$8 sps:$4 sm:$0xff]  }
  0x91   :  { %1931 = vmatprep.subr.bf16.mxu0 %v2802_v39  ;;  %v2886_v39 = vld [vmem:[%s3943_s1 + $0x724] ss:$8 sps:$4 sm:$0xff]  }
  0x93   :  { %1760 = vmatpush1.bf16.msra.mxu1 %v2797_v40  ;;  %v2881_v40 = vld [vmem:[%s3943_s1 + $0x320] ss:$8 sps:$4 sm:$0xff]  }
  0x94   :  { %1932 = vmatpush1.bf16.msra.mxu0 %v2800_v41  ;;  %1761 = vmatprep.subr.bf16.mxu1 %v2805_v42  ;;  %v2884_v41 = vld [vmem:[%s3943_s1 + $0x720] ss:$8 sps:$4 sm:$0xff]   ;;  %v2889_v42 = vld [vmem:[%s3943_s1 + $0x334] ss:$8 sps:$4 sm:$0xff]  }
  0x95   :  { %1933 = vmatprep.subr.bf16.mxu0 %v2808_v43  ;;  %v2892_v43 = vld [vmem:[%s3943_s1 + $0x734] ss:$8 sps:$4 sm:$0xff]  }
  0x97   :  { %1762 = vmatpush1.bf16.msra.mxu1 %v2803_v44  ;;  %v2887_v44 = vld [vmem:[%s3943_s1 + $0x330] ss:$8 sps:$4 sm:$0xff]  }
  0x98   :  { %1934 = vmatpush1.bf16.msra.mxu0 %v2806_v45  ;;  %1763 = vmatprep.subr.bf16.mxu1 %v2811_v46  ;;  %v2890_v45 = vld [vmem:[%s3943_s1 + $0x730] ss:$8 sps:$4 sm:$0xff]   ;;  %v2895_v46 = vld [vmem:[%s3943_s1 + $0x344] ss:$8 sps:$4 sm:$0xff]  }
  0x99   :  { %1935 = vmatprep.subr.bf16.mxu0 %v2814_v47  ;;  %v2898_v47 = vld [vmem:[%s3943_s1 + $0x744] ss:$8 sps:$4 sm:$0xff]  }
  0x9b   :  { %1764 = vmatpush1.bf16.msra.mxu1 %v2809_v48  ;;  %v2893_v48 = vld [vmem:[%s3943_s1 + $0x340] ss:$8 sps:$4 sm:$0xff]  }
  0x9c   :  { %1936 = vmatpush1.bf16.msra.mxu0 %v2812_v49  ;;  %1765 = vmatprep.subr.bf16.mxu1 %v2817_v50  ;;  %v2896_v49 = vld [vmem:[%s3943_s1 + $0x740] ss:$8 sps:$4 sm:$0xff]   ;;  %v2901_v50 = vld [vmem:[%s3943_s1 + $0x354] ss:$8 sps:$4 sm:$0xff]  }
  0x9d   :  { %1937 = vmatprep.subr.bf16.mxu0 %v2820_v51  ;;  %v2904_v51 = vld [vmem:[%s3943_s1 + $0x754] ss:$8 sps:$4 sm:$0xff]  }
  0x9f   :  { %1766 = vmatpush1.bf16.msra.mxu1 %v2815_v52  ;;  %v2899_v52 = vld [vmem:[%s3943_s1 + $0x350] ss:$8 sps:$4 sm:$0xff]  }
  0xa0   :  { %1938 = vmatpush1.bf16.msra.mxu0 %v2818_v53  ;;  %1767 = vmatprep.subr.bf16.mxu1 %v2823_v54  ;;  %v2902_v53 = vld [vmem:[%s3943_s1 + $0x750] ss:$8 sps:$4 sm:$0xff]   ;;  %v2907_v54 = vld [vmem:[%s3943_s1 + $0x364] ss:$8 sps:$4 sm:$0xff]  }
  0xa1   :  { %1939 = vmatprep.subr.bf16.mxu0 %v2826_v55  ;;  %v2910_v55 = vld [vmem:[%s3943_s1 + $0x764] ss:$8 sps:$4 sm:$0xff]  }
  0xa3   :  { %1768 = vmatpush1.bf16.msra.mxu1 %v2821_v56  ;;  %v2905_v56 = vld [vmem:[%s3943_s1 + $0x360] ss:$8 sps:$4 sm:$0xff]  }
  0xa4   :  { %1940 = vmatpush1.bf16.msra.mxu0 %v2824_v57  ;;  %1769 = vmatprep.subr.bf16.mxu1 %v2829_v58  ;;  %v2908_v57 = vld [vmem:[%s3943_s1 + $0x760] ss:$8 sps:$4 sm:$0xff]   ;;  %v2913_v58 = vld [vmem:[%s3943_s1 + $0x374] ss:$8 sps:$4 sm:$0xff]  }
  0xa5   :  { %1941 = vmatprep.subr.bf16.mxu0 %v2832_v59  ;;  %v2916_v59 = vld [vmem:[%s3943_s1 + $0x774] ss:$8 sps:$4 sm:$0xff]  }
  0xa7   :  { %1770 = vmatpush1.bf16.msra.mxu1 %v2827_v60  ;;  %v2911_v60 = vld [vmem:[%s3943_s1 + $0x370] ss:$8 sps:$4 sm:$0xff]  }
  0xa8   :  { %1942 = vmatpush1.bf16.msra.mxu0 %v2830_v61  ;;  %1771 = vmatprep.subr.bf16.mxu1 %v2835_v62  ;;  %v2914_v61 = vld [vmem:[%s3943_s1 + $0x770] ss:$8 sps:$4 sm:$0xff]   ;;  %v2919_v62 = vld [vmem:[%s3943_s1 + $0x384] ss:$8 sps:$4 sm:$0xff]  }
  0xa9   :  { %1943 = vmatprep.subr.bf16.mxu0 %v2838_v63  ;;  %v2922_v63 = vld [vmem:[%s3943_s1 + $0x784] ss:$8 sps:$4 sm:$0xff]  }
  0xab   :  { %1772 = vmatpush1.bf16.msra.mxu1 %v2833_v0  ;;  %v2917_v0 = vld [vmem:[%s3943_s1 + $0x380] ss:$8 sps:$4 sm:$0xff]  }
  0xac   :  { %1944 = vmatpush1.bf16.msra.mxu0 %v2836_v1  ;;  %1773 = vmatprep.subr.bf16.mxu1 %v2841_v2  ;;  %v2920_v1 = vld [vmem:[%s3943_s1 + $0x780] ss:$8 sps:$4 sm:$0xff]   ;;  %v2925_v2 = vld [vmem:[%s3943_s1 + $0x394] ss:$8 sps:$4 sm:$0xff]  }
  0xad   :  { %1945 = vmatprep.subr.bf16.mxu0 %v2844_v3  ;;  %v2928_v3 = vld [vmem:[%s3943_s1 + $0x794] ss:$8 sps:$4 sm:$0xff]  }
  0xaf   :  { %1774 = vmatpush1.bf16.msra.mxu1 %v2839_v4  ;;  %v2923_v4 = vld [vmem:[%s3943_s1 + $0x390] ss:$8 sps:$4 sm:$0xff]  }
  0xb0   :  { %1946 = vmatpush1.bf16.msra.mxu0 %v2842_v5  ;;  %1775 = vmatprep.subr.bf16.mxu1 %v2847_v6  ;;  %v2926_v5 = vld [vmem:[%s3943_s1 + $0x790] ss:$8 sps:$4 sm:$0xff]   ;;  %v2931_v6 = vld [vmem:[%s3943_s1 + $0x3a4] ss:$8 sps:$4 sm:$0xff]  }
  0xb1   :  { %1947 = vmatprep.subr.bf16.mxu0 %v2850_v7  ;;  %v2934_v7 = vld [vmem:[%s3943_s1 + $0x7a4] ss:$8 sps:$4 sm:$0xff]  }
  0xb3   :  { %1776 = vmatpush1.bf16.msra.mxu1 %v2845_v8  ;;  %v2929_v8 = vld [vmem:[%s3943_s1 + $0x3a0] ss:$8 sps:$4 sm:$0xff]  }
  0xb4   :  { %1948 = vmatpush1.bf16.msra.mxu0 %v2848_v9  ;;  %1777 = vmatprep.subr.bf16.mxu1 %v2853_v10  ;;  %v2932_v9 = vld [vmem:[%s3943_s1 + $0x7a0] ss:$8 sps:$4 sm:$0xff]   ;;  %v2937_v10 = vld [vmem:[%s3943_s1 + $0x3b4] ss:$8 sps:$4 sm:$0xff]  }
  0xb5   :  { %1949 = vmatprep.subr.bf16.mxu0 %v2856_v11  ;;  %v2940_v11 = vld [vmem:[%s3943_s1 + $0x7b4] ss:$8 sps:$4 sm:$0xff]  }
  0xb7   :  { %1778 = vmatpush1.bf16.msra.mxu1 %v2851_v12  ;;  %v2935_v12 = vld [vmem:[%s3943_s1 + $0x3b0] ss:$8 sps:$4 sm:$0xff]  }
  0xb8   :  { %1950 = vmatpush1.bf16.msra.mxu0 %v2854_v13  ;;  %1779 = vmatprep.subr.bf16.mxu1 %v2859_v14  ;;  %v2938_v13 = vld [vmem:[%s3943_s1 + $0x7b0] ss:$8 sps:$4 sm:$0xff]   ;;  %v2943_v14 = vld [vmem:[%s3943_s1 + $0x3c4] ss:$8 sps:$4 sm:$0xff]  }
  0xb9   :  { %1951 = vmatprep.subr.bf16.mxu0 %v2862_v15  ;;  %v2946_v15 = vld [vmem:[%s3943_s1 + $0x7c4] ss:$8 sps:$4 sm:$0xff]  }
  0xbb   :  { %1780 = vmatpush1.bf16.msra.mxu1 %v2857_v16  ;;  %v2941_v16 = vld [vmem:[%s3943_s1 + $0x3c0] ss:$8 sps:$4 sm:$0xff]  }
  0xbc   :  { %1952 = vmatpush1.bf16.msra.mxu0 %v2860_v17  ;;  %1781 = vmatprep.subr.bf16.mxu1 %v2865_v18  ;;  %v2944_v17 = vld [vmem:[%s3943_s1 + $0x7c0] ss:$8 sps:$4 sm:$0xff]   ;;  %v2949_v18 = vld [vmem:[%s3943_s1 + $0x3d4] ss:$8 sps:$4 sm:$0xff]  }
  0xbd   :  { %1953 = vmatprep.subr.bf16.mxu0 %v2868_v19  ;;  %v2952_v19 = vld [vmem:[%s3943_s1 + $0x7d4] ss:$8 sps:$4 sm:$0xff]  }
  0xbf   :  { %1782 = vmatpush1.bf16.msra.mxu1 %v2863_v20  ;;  %v2947_v20 = vld [vmem:[%s3943_s1 + $0x3d0] ss:$8 sps:$4 sm:$0xff]  }
  0xc0   :  { %1954 = vmatpush1.bf16.msra.mxu0 %v2866_v21  ;;  %1794 = vmatprep.subr.bf16.mxu1 %v2871_v22  ;;  %v2950_v21 = vld [vmem:[%s3943_s1 + $0x7d0] ss:$8 sps:$4 sm:$0xff]   ;;  %v2955_v22 = vld [vmem:[%s3943_s1 + $0x3e4] ss:$8 sps:$4 sm:$0xff]  }
  0xc1   :  { %1966 = vmatprep.subr.bf16.mxu0 %v2874_v23  ;;  %v2958_v23 = vld [vmem:[%s3943_s1 + $0x7e4] ss:$8 sps:$4 sm:$0xff]  }
  0xc2   :  { %1784 = vmatmul.mubr.bf16.vlgmr.msra.gmra.mrb[0].mxu1 %v2244_v27  ;;  %v2953_v27 = vld [vmem:[%s3943_s1 + $0x3e0] ss:$8 sps:$4 sm:$0xff]  }
  0xc3   :  { %1956 = vmatmul.mubr.bf16.vlgmr.msra.gmra.mrb[0].mxu0 %v2252_v28  ;;  %1795 = vmatpush1.bf16.msra.mxu1 %v2869_v24  ;;  %v2956_v28 = vld [vmem:[%s3943_s1 + $0x7e0] ss:$8 sps:$4 sm:$0xff]   ;;  %v2961_v24 = vld [vmem:[%s3943_s1 + $0x3f4] ss:$8 sps:$4 sm:$0xff]  }
  0xc4   :  { %1967 = vmatpush1.bf16.msra.mxu0 %v2872_v25  ;;  %1796 = vmatprep.subr.bf16.mxu1 %v2877_v29  ;;  %v2964_v25 = vld [vmem:[%s3943_s1 + $0x7f4] ss:$8 sps:$4 sm:$0xff]   ;;  %v2959_v29 = vld [vmem:[%s3943_s1 + $0x3f0] ss:$8 sps:$4 sm:$0xff]  }
  0xc5   :  { %1968 = vmatprep.subr.bf16.mxu0 %v2880_v30  ;;  %1826 = vmatprep.mubr.bf16.mxu1 %v2247_v34  ;;  %v2962_v30 = vld [vmem:[%s3943_s1 + $0x7f0] ss:$8 sps:$4 sm:$0xff]   ;;  %v2965_v34 = vld [vmem:[%s3945_s3 + $0x40] sm:$0xff]  }
  0xc6   :  { %1998 = vmatprep.mubr.bf16.mxu0 %v2255_v35  ;;  %v2246_v35 = vcombine.low %v3668_v26, %v3677_v31  ;;  %v2968_v26 = vld [vmem:[%s3945_s3 + $0x8] sm:$0xff]   ;;  %v2969_v31 = vld [vmem:[%s3945_s3 + $0x50] sm:$0xff]  }
  0xc7   :  { %1797 = vmatpush1.bf16.msra.mxu1 %v2875_v36  ;;  %v2254_v36 = vcombine.low %v3682_v32, %v3687_v33  ;;  %v2970_v32 = vld [vmem:[%s3945_s3 + $0x10] sm:$0xff]   ;;  %v2971_v33 = vld [vmem:[%s3945_s3 + $0x58] sm:$0xff]  }
  0xc8   :  { %1969 = vmatpush1.bf16.msra.mxu0 %v2878_v37  ;;  %1798 = vmatprep.subr.bf16.mxu1 %v2883_v38  ;;  %v2966_v37 = vld [vmem:[%s3945_s3] sm:$0xff]   ;;  %v2967_v38 = vld [vmem:[%s3945_s3 + $0x48] sm:$0xff]  }
  0xc9   :  { %1970 = vmatprep.subr.bf16.mxu0 %v2886_v39  ;;  %v2972_v39 = vld [vmem:[%s3945_s3 + $0x18] sm:$0xff]  }
  0xcb   :  { %1799 = vmatpush1.bf16.msra.mxu1 %v2881_v40  ;;  %v2973_v40 = vld [vmem:[%s3945_s3 + $0x60] sm:$0xff]  }
  0xcc   :  { %1971 = vmatpush1.bf16.msra.mxu0 %v2884_v41  ;;  %1800 = vmatprep.subr.bf16.mxu1 %v2889_v42  ;;  %v2974_v41 = vld [vmem:[%s3945_s3 + $0x20] sm:$0xff]   ;;  %v2975_v42 = vld [vmem:[%s3945_s3 + $0x68] sm:$0xff]  }
  0xcd   :  { %1972 = vmatprep.subr.bf16.mxu0 %v2892_v43  ;;  %v2976_v43 = vld [vmem:[%s3945_s3 + $0x28] sm:$0xff]  }
  0xcf   :  { %1801 = vmatpush1.bf16.msra.mxu1 %v2887_v44  ;;  %v2977_v44 = vld [vmem:[%s3945_s3 + $0x70] sm:$0xff]  }
  0xd0   :  { %1973 = vmatpush1.bf16.msra.mxu0 %v2890_v45  ;;  %1802 = vmatprep.subr.bf16.mxu1 %v2895_v46  ;;  %v2978_v45 = vld [vmem:[%s3945_s3 + $0x30] sm:$0xff]   ;;  %v2979_v46 = vld [vmem:[%s3945_s3 + $0x78] sm:$0xff]  }
  0xd1   :  { %1974 = vmatprep.subr.bf16.mxu0 %v2898_v47  ;;  %v2980_v47 = vld [vmem:[%s3945_s3 + $0x38] sm:$0xff]  }
  0xd3   :  { %1803 = vmatpush1.bf16.msra.mxu1 %v2893_v48  ;;  %v2026_v48 = vlaneseq }
  0xd4   :  { %1975 = vmatpush1.bf16.msra.mxu0 %v2896_v49  ;;  %1804 = vmatprep.subr.bf16.mxu1 %v2901_v50 }
  0xd5   :  { %1976 = vmatprep.subr.bf16.mxu0 %v2904_v51  ;;  %v2027_v49 = vshrl.u32 %v2026_v48, 7  ;;  %v2024_v51 = vld [vmem:[%s3946_s2] sm:$0x3] }
  0xd7   :  { %1805 = vmatpush1.bf16.msra.mxu1 %v2899_v52  ;;  %v2028_v50 = vsub.s32 0, %v2027_v49  ;;  %v2032_v52 = vsub.s32 1, %v2027_v49 }
  0xd8   :  { %1977 = vmatpush1.bf16.msra.mxu0 %v2902_v53  ;;  %1806 = vmatprep.subr.bf16.mxu1 %v2907_v54 }
  0xd9   :  { %1978 = vmatprep.subr.bf16.mxu0 %v2910_v55  ;;  %v2029_v53 = vrot.slane %v2024_v51, %v2028_v50 }
  0xdb   :  { %1807 = vmatpush1.bf16.msra.mxu1 %v2905_v56  ;;  %v2033_v56 = vrot.slane %v2024_v51, %v2032_v52 }
  0xdc   :  { %1979 = vmatpush1.bf16.msra.mxu0 %v2908_v57  ;;  %1808 = vmatprep.subr.bf16.mxu1 %v2913_v58 }
  0xdd   :  { %1980 = vmatprep.subr.bf16.mxu0 %v2916_v59 }
  0xdf   :  { %1809 = vmatpush1.bf16.msra.mxu1 %v2911_v60 }
  0xe0   :  { %1981 = vmatpush1.bf16.msra.mxu0 %v2914_v61  ;;  %1810 = vmatprep.subr.bf16.mxu1 %v2919_v62 }
  0xe1   :  { %1982 = vmatprep.subr.bf16.mxu0 %v2922_v63 }
  0xe3   :  { %1811 = vmatpush1.bf16.msra.mxu1 %v2917_v0 }
  0xe4   :  { %1983 = vmatpush1.bf16.msra.mxu0 %v2920_v1  ;;  %1812 = vmatprep.subr.bf16.mxu1 %v2925_v2 }
  0xe5   :  { %1984 = vmatprep.subr.bf16.mxu0 %v2928_v3 }
  0xe7   :  { %1813 = vmatpush1.bf16.msra.mxu1 %v2923_v4 }
  0xe8   :  { %1985 = vmatpush1.bf16.msra.mxu0 %v2926_v5  ;;  %1814 = vmatprep.subr.bf16.mxu1 %v2931_v6 }
  0xe9   :  { %1986 = vmatprep.subr.bf16.mxu0 %v2934_v7 }
  0xeb   :  { %1815 = vmatpush1.bf16.msra.mxu1 %v2929_v8 }
  0xec   :  { %1987 = vmatpush1.bf16.msra.mxu0 %v2932_v9  ;;  %1816 = vmatprep.subr.bf16.mxu1 %v2937_v10 }
  0xed   :  { %1988 = vmatprep.subr.bf16.mxu0 %v2940_v11 }
  0xef   :  { %1817 = vmatpush1.bf16.msra.mxu1 %v2935_v12 }
  0xf0   :  { %1989 = vmatpush1.bf16.msra.mxu0 %v2938_v13  ;;  %1818 = vmatprep.subr.bf16.mxu1 %v2943_v14  ;;  %v2512_v14 = vld [vmem:[%s3947_s4] ss:$0 sm:$0xff] }
  0xf1   :  { %1990 = vmatprep.subr.bf16.mxu0 %v2946_v15 }
  0xf3   :  { %1819 = vmatpush1.bf16.msra.mxu1 %v2941_v16 }
  0xf4   :  { %1991 = vmatpush1.bf16.msra.mxu0 %v2944_v17  ;;  %1820 = vmatprep.subr.bf16.mxu1 %v2949_v18 }
  0xf5   :  { %1992 = vmatprep.subr.bf16.mxu0 %v2952_v19 }
  0xf7   :  { %1821 = vmatpush1.bf16.msra.mxu1 %v2947_v20 }
  0xf8   :  { %1993 = vmatpush1.bf16.msra.mxu0 %v2950_v21  ;;  %1822 = vmatprep.subr.bf16.mxu1 %v2955_v22 }
  0xf9   :  { %1994 = vmatprep.subr.bf16.mxu0 %v2958_v23 }
  0xfb   :  { %1823 = vmatpush1.bf16.msra.mxu1 %v2953_v27 }
  0xfc   :  { %1995 = vmatpush1.bf16.msra.mxu0 %v2956_v28  ;;  %1824 = vmatprep.subr.bf16.mxu1 %v2961_v24 }
  0xfd   :  { %1996 = vmatprep.subr.bf16.mxu0 %v2964_v25 }
  0xff   :  { %1825 = vmatpush1.bf16.msra.mxu1 %v2959_v29 }
 0x100   :  { %1997 = vmatpush1.bf16.msra.mxu0 %v2962_v30  ;;  %2531 = vmatprep.subr.bf16.mxu1 %v2965_v34 }
 0x102   :  { %1827 = vmatmul.mubr.bf16.vlgmr.msra.gmra.mrb[0].mxu1 %v2246_v35 }
 0x103   :  { %1999 = vmatmul.mubr.bf16.vlgmr.msra.gmra.mrb[0].mxu0 %v2254_v36  ;;  %2532 = vmatpush3.bf16.msra.mxu1 %v2966_v37 }
 0x104   :  { %2533 = vmatprep.subr.bf16.mxu1 %v2967_v38 }
 0x107   :  { %2534 = vmatpush3.bf16.msra.mxu1 %v2968_v26 }
 0x108   :  { %2535 = vmatprep.subr.bf16.mxu1 %v2969_v31 }
 0x10b   :  { %2536 = vmatpush3.bf16.msra.mxu1 %v2970_v32 }
 0x10c   :  { %2537 = vmatprep.subr.bf16.mxu1 %v2971_v33 }
 0x10f   :  { %2538 = vmatpush3.bf16.msra.mxu1 %v2972_v39 }
 0x110   :  { %2539 = vmatprep.subr.bf16.mxu1 %v2973_v40 }
 0x113   :  { %2540 = vmatpush3.bf16.msra.mxu1 %v2974_v41 }
 0x114   :  { %2541 = vmatprep.subr.bf16.mxu1 %v2975_v42 }
 0x117   :  { %2542 = vmatpush3.bf16.msra.mxu1 %v2976_v43 }
 0x118   :  { %2543 = vmatprep.subr.bf16.mxu1 %v2977_v44 }
 0x11b   :  { %2544 = vmatpush3.bf16.msra.mxu1 %v2978_v45 }
 0x11c   :  { %2545 = vmatprep.subr.bf16.mxu1 %v2979_v46 }
 0x11f   :  { %2546 = vmatpush3.bf16.msra.mxu1 %v2980_v47 }
 0x1d5   :  { %v1828_v54 = vpop.f32.mrb[0].mxu1 }
 0x1d6   :  { %v2000_v55 = vpop.f32.mrb[0].mxu0  ;;  %v1830_v58 = vpop.f32.mrb[1].mxu1 }
 0x1d7   :  { %v2553_v57 = vadd.f32 %v2000_v55, %v1828_v54  ;;  %v2002_v59 = vpop.f32.mrb[1].mxu0  ;;  %v1832_v61 = vpop.f32.mrb[2].mxu1 }
 0x1d8   :  { %v2554_v60 = vadd.f32 %v2002_v59, %v1830_v58  ;;  %v2004_v62 = vpop.f32.mrb[2].mxu0  ;;  %v1834_v1 = vpop.f32.mrb[3].mxu1 }
 0x1d9   :  { %v2036_v63 = vadd.f32 %v2553_v57, %v2029_v53  ;;  %v2555_v0 = vadd.f32 %v2004_v62, %v1832_v61  ;;  %v2006_v2 = vpop.f32.mrb[3].mxu0 }
 0x1da   :  { %v2037_v3 = vadd.f32 %v2554_v60, %v2033_v56  ;;  %v2556_v4 = vadd.f32 %v2006_v2, %v1834_v1 }
 0x1db   :  { %v2038_v5 = vadd.f32 %v2555_v0, %v2029_v53  ;;  %v2040_v7 = vmax.f32 %v2036_v63, 0.0 }
 0x1dc   :  { %v2039_v6 = vadd.f32 %v2556_v4, %v2033_v56  ;;  %v2041_v9 = vmax.f32 %v2037_v3, 0.0 }
 0x1dd   :  { %v2042_v8 = vmax.f32 %v2038_v5, 0.0 }
 0x1de   :  { %v2043_v10 = vmax.f32 %v2039_v6, 0.0 }
 0x1df   :  { %v2044_v11 = vpack.c.bf16 %v2042_v8, %v2040_v7 }
 0x1e0   :  { %v2045_v12 = vpack.c.bf16 %v2043_v10, %v2041_v9 }
 0x1e2   :  { %2213 = vmatprep.mubr.bf16.mxu1 %v2045_v12 }
 0x1e3   :  { %2214 = vmatmul.mubr.bf16.vlgmr.msra.gmra.mrb[4].mxu1 %v2044_v11 }
 0x2b6   :  { %v2547_v13 = vpop.f32.mrb[4].mxu1 }
 0x2b7   :  { %v2548_v15 = vpop.f32.mrb[5].mxu1 }
 0x2b8   :  { %v2549_v16 = vadd.f32 %v2548_v15, %v2547_v13  ;;  %v2550_v17 = vpop.f32.mrb[6].mxu1 }
 0x2b9   :  { %v2551_v18 = vpop.f32.mrb[7].mxu1 }
 0x2ba   :  { %v2216_v19 = vadd.f32 %v2549_v16, %v2512_v14  ;;  %v2552_v20 = vadd.f32 %v2551_v18, %v2550_v17 }
 0x2bc   :  { %v2529_v21 = vmul.f32 -1.442695, %v2216_v19  ;;  %v2219_v22 = vadd.f32 %v2552_v20, %v2512_v14 }
 0x2be   :  { %2981 = vpow2.f32 %v2529_v21  ;;  %v2530_v23 = vmul.f32 -1.442695, %v2219_v22 }
 0x2c0   :  { %2983 = vpow2.f32 %v2530_v23 }
 0x2c8   :  { %v2982_v27 = vpop.eup %2981 }
 0x2c9   :  { %v2228_v28 = vadd.f32 1.0, %v2982_v27 }
 0x2ca   :  { %v2984_v24 = vpop.eup %2983 }
 0x2cb   :  { %2985 = vrcp.f32 %v2228_v28  ;;  %v2229_v25 = vadd.f32 1.0, %v2984_v24 }
 0x2cd   :  { %2987 = vrcp.f32 %v2229_v25 }
 0x2d5   :  { %v2986_v29 = vpop.eup %2985 }
 0x2d6   :  { %2234 = vst [vmem:[%s3948_s5] sm:$0xff] %v2986_v29 }
 0x2d7   :  { %v2988_v30 = vpop.eup %2987 }
 0x2d8   :  { %2235 = vst [vmem:[%s3948_s5 + $0x8] sm:$0xff] %v2988_v30 }

// kernel: pneumonia_cnn_forward.4
= control target key start
LH: loop header
LB: loop body
LE: loop exit
PB: predicated region body
PF: predicated region fallthrough
CT: control target
= control target key end

     0   :  { %vm603_vm0 = vcmask 1043456   ;;  %vm458_vm1 = vcmask 64512   ;;  %vm1767_vm2 = vsmask.f32 7424  ;;  %vm4768_vm3 = vcmask 257024   ;;  %s17161_s2 = inlined_call_operand.vmem [shape: bf16[3,8,32], index: 2, kind: input, shape index: {}]   ;;  %s17162_s1 = inlined_call_operand.vmem [shape: bf16[2,792,8], index: 1, kind: input, shape index: {}]   ;;  %s17163_s0 = inlined_call_operand.vmem [shape: bf16[2,792,8], index: 0, kind: input, shape index: {}]   ;;  %s17164_s3 = inlined_call_operand.vmem [shape: f32[1,32], index: 3, kind: input, shape index: {}]   ;;  %s17165_s4 = inlined_call_operand.vmem [shape: bf16[2,16,16,32], index: 4, kind: output, shape index: {}]  }
   0x1   :  { %v9566_v0 = vld [vmem:[%s17161_s2 + $0x4] sm:$0xf]  ;;  %v13240_v3 = vld [vmem:[%s17162_s1 + $0x8] sm:$0xff]   ;;  %v18_v4 = vld [vmem:[%s17161_s2] sm:$0xf] }
   0x2   :  { %13227 = vmatprep.subr.msk.bf16.mxu0 %vm603_vm0, %v9566_v0  ;;  %v13623_v1 = vsel %vm603_vm0, %v9566_v0, 0  ;;  %v13239_v2 = vld [vmem:[%s17162_s1] sm:$0xff]   ;;  %13230 = vmatprep.subr.msk.bf16.mxu1 %vm603_vm0, %v9566_v0  ;;  %v13242_v6 = vld [vmem:[%s17163_s0 + $0x8] sm:$0xff]   ;;  %v13647_v7 = vsel %vm603_vm0, %v18_v4, 0  ;;  %v13243_v8 = vld [vmem:[%s17163_s0 + $0x10] sm:$0xff]  }
   0x3   :  { %11284 = vmatpush3.bf16.msra.mxu0 %v13623_v1  ;;  %11578 = vmatpush3.bf16.msra.mxu1 %v13623_v1  ;;  %v13241_v5 = vld [vmem:[%s17163_s0] sm:$0xff]   ;;  %17288 = vst [vmem:[#allocation2_spill] sm:$0xff] %v13647_v7  ;;  %v1774_v11 = vshll.u32 %v13242_v6, 16  ;;  %v1778_v12 = vshrl.u32 %v13242_v6, 16  ;;  %v1781_v13 = vshll.u32 %v13243_v8, 16  ;;  %v13244_v14 = vld [vmem:[%s17162_s1 + $0x10] sm:$0xff]  }
   0x4   :  { %11285 = vmatprep.mubr.msk.bf16.mxu0 %vm458_vm1, %v13239_v2  ;;  %13228 = vmatprep.subr.msk.bf16.mxu0 %vm603_vm0, %v18_v4  ;;  %v1768_v9 = vshrl.u32 %v13241_v5, 16  ;;  %v1770_v10 = vshll.u32 %v13241_v5, 16  ;;  %v13245_v17 = vld [vmem:[%s17162_s1 + $0x18] sm:$0xff]   ;;  %v1785_v20 = vshrl.u32 %v13243_v8, 16  ;;  %v13247_v24 = vld [vmem:[%s17163_s0 + $0x20] sm:$0xff]   ;;  %v13250_v32 = vld [vmem:[%s17163_s0 + $0x28] sm:$0xff]  }
   0x5   :  { %13231 = vmatprep.subr.msk.bf16.mxu1 %vm603_vm0, %v18_v4  ;;  %v1776_v16 = vrot.slane %v1774_v11, 1  ;;  %v13246_v18 = vld [vmem:[%s17163_s0 + $0x18] sm:$0xff]   ;;  %v1783_v19 = vrot.slane %v1781_v13, 1  ;;  %v13248_v26 = vld [vmem:[%s17162_s1 + $0x20] sm:$0xff]   ;;  %v1795_v31 = vshll.u32 %v13247_v24, 16  ;;  %v1799_v33 = vshrl.u32 %v13247_v24, 16 }
   0x6   :  { %11286 = vmatmul.mubr.msk.bf16.vlgmr.msra.gmra.mrb[0].mxu0 %vm458_vm1, %v13240_v3  ;;  %v1772_v15 = vrot.slane %v1770_v10, 1  ;;  %v1788_v23 = vshll.u32 %v13246_v18, 16  ;;  %v1792_v25 = vshrl.u32 %v13246_v18, 16  ;;  %v13251_v34 = vld [vmem:[%s17163_s0 + $0x30] sm:$0xff]   ;;  %v1802_v37 = vshll.u32 %v13250_v32, 16  ;;  %v13249_v39 = vld [vmem:[%s17162_s1 + $0x28] sm:$0xff]  }
   0x7   :  { %11382 = vmatpush3.bf16.msra.mxu0 %v13647_v7  ;;  %11289 = vmatprep.mubr.msk.bf16.mxu0 %vm458_vm1, %v13244_v14  ;;  %v1780_v22 = vor.u32 %v1778_v12, %v1776_v16  ;;  %v1787_v27 = vor.u32 %v1785_v20, %v1783_v19  ;;  %v1797_v36 = vrot.slane %v1795_v31, 1  ;;  %v13252_v42 = vld [vmem:[%s17162_s1 + $0x30] sm:$0xff]   ;;  %v1809_v43 = vshll.u32 %v13251_v34, 16  ;;  %v13254_v44 = vld [vmem:[%s17163_s0 + $0x38] sm:$0xff]   ;;  %v13255_v51 = vld [vmem:[%s17163_s0 + $0x40] sm:$0xff]  }
   0x8   :  { %v1773_v21 = vor.u32 %v1772_v15, %v1768_v9  ;;  %v1790_v30 = vrot.slane %v1788_v23, 1  ;;  %v1804_v41 = vrot.slane %v1802_v37, 1  ;;  %v1806_v46 = vshrl.u32 %v13250_v32, 16  ;;  %v13258_v55 = vld [vmem:[%s17163_s0 + $0x48] sm:$0xff]   ;;  %v13253_v56 = vld [vmem:[%s17162_s1 + $0x38] sm:$0xff]   ;;  %v13256_v58 = vld [vmem:[%s17162_s1 + $0x40] sm:$0xff]  }
   0x9   :  { %v13674_v29 = vsel %vm1767_vm2, %v1780_v22, %v1783_v19  ;;  %v1801_v40 = vor.u32 %v1799_v33, %v1797_v36  ;;  %v1813_v48 = vshrl.u32 %v13251_v34, 16  ;;  %v1816_v49 = vshll.u32 %v13254_v44, 16  ;;  %v13259_v2 = vld [vmem:[%s17163_s0 + $0x50] sm:$0xff]   ;;  %v13262_v6 = vld [vmem:[%s17163_s0 + $0x58] sm:$0xff]   ;;  %v13257_v8 = vld [vmem:[%s17162_s1 + $0x48] sm:$0xff]  }
   0xa   :  { %v13671_v28 = vsel %vm1767_vm2, %v1773_v21, %v1776_v16  ;;  %v13688_v35 = vsel %vm1767_vm2, %v1787_v27, %v1790_v30  ;;  %v1794_v38 = vor.u32 %v1792_v25, %v1790_v30  ;;  %v1811_v50 = vrot.slane %v1809_v43, 1  ;;  %v13260_v10 = vld [vmem:[%s17162_s1 + $0x50] sm:$0xff]   ;;  %v13266_v21 = vld [vmem:[%s17163_s0 + $0x68] sm:$0xff]   ;;  %v13261_v22 = vld [vmem:[%s17162_s1 + $0x58] sm:$0xff]  }
   0xb   :  { %11579 = vmatprep.mubr.msk.bf16.mxu1 %vm458_vm1, %v13671_v28  ;;  %v13707_v47 = vsel %vm1767_vm2, %v1801_v40, %v1804_v41  ;;  %v1808_v52 = vor.u32 %v1806_v46, %v1804_v41  ;;  %v1818_v54 = vrot.slane %v1816_v49, 1  ;;  %v1823_v57 = vshll.u32 %v13255_v51, 16  ;;  %v13264_v24 = vld [vmem:[%s17162_s1 + $0x60] sm:$0xff]   ;;  %v13267_v33 = vld [vmem:[%s17163_s0 + $0x70] sm:$0xff]  }
   0xc   :  { %11580 = vmatmul.mubr.msk.bf16.vlgmr.msra.gmra.mrb[0].mxu1 %vm458_vm1, %v13674_v29  ;;  %v13704_v45 = vsel %vm1767_vm2, %v1794_v38, %v1797_v36  ;;  %v1815_v53 = vor.u32 %v1813_v48, %v1811_v50  ;;  %v1820_v60 = vshrl.u32 %v13254_v44, 16  ;;  %v1827_v62 = vshrl.u32 %v13255_v51, 16  ;;  %v13270_v38 = vld [vmem:[%s17163_s0 + $0x78] sm:$0xff]   ;;  %v13268_v41 = vld [vmem:[%s17162_s1 + $0x70] sm:$0xff]  }
   0xd   :  { %11676 = vmatpush3.bf16.msra.mxu1 %v13647_v7  ;;  %11583 = vmatprep.mubr.msk.bf16.mxu1 %vm458_vm1, %v13688_v35  ;;  %v13728_v59 = vsel %vm1767_vm2, %v1808_v52, %v1811_v50  ;;  %v1830_v63 = vshll.u32 %v13258_v55, 16  ;;  %v1825_v0 = vrot.slane %v1823_v57, 1  ;;  %v1837_v9 = vshll.u32 %v13259_v2, 16  ;;  %v13271_v50 = vld [vmem:[%s17163_s0 + $0x80] sm:$0xff]  }
   0xe   :  { %11290 = vmatmul.mubr.msk.bf16.gmra.mrb[4].mxu0 %vm458_vm1, %v13245_v17  ;;  %v13731_v61 = vsel %vm1767_vm2, %v1815_v53, %v1818_v54  ;;  %v1822_v3 = vor.u32 %v1820_v60, %v1818_v54  ;;  %v1834_v12 = vshrl.u32 %v13258_v55, 16  ;;  %v1841_v14 = vshrl.u32 %v13259_v2, 16  ;;  %v13263_v17 = vld [vmem:[%s17163_s0 + $0x60] sm:$0xff]   ;;  %v13274_v54 = vld [vmem:[%s17163_s0 + $0x88] sm:$0xff]   ;;  %v13269_v55 = vld [vmem:[%s17162_s1 + $0x78] sm:$0xff]  }
   0xf   :  { %11293 = vmatprep.mubr.msk.bf16.mxu0 %vm458_vm1, %v13248_v26  ;;  %v1829_v4 = vor.u32 %v1827_v62, %v1825_v0  ;;  %v1832_v5 = vrot.slane %v1830_v63, 1  ;;  %v1844_v15 = vshll.u32 %v13262_v6, 16  ;;  %v1839_v16 = vrot.slane %v1837_v9, 1  ;;  %v13272_v57 = vld [vmem:[%s17162_s1 + $0x80] sm:$0xff]   ;;  %v13273_v9 = vld [vmem:[%s17162_s1 + $0x88] sm:$0xff]  }
  0x10   :  { %v13752_v11 = vsel %vm1767_vm2, %v1822_v3, %v1825_v0  ;;  %v1851_v23 = vshll.u32 %v13263_v17, 16  ;;  %v1848_v26 = vshrl.u32 %v13262_v6, 16  ;;  %v1855_v30 = vshrl.u32 %v13263_v17, 16  ;;  %v13275_v3 = vld [vmem:[%s17163_s0 + $0x90] sm:$0xff]  }
  0x11   :  { %v13755_v13 = vsel %vm1767_vm2, %v1829_v4, %v1832_v5  ;;  %v1836_v18 = vor.u32 %v1834_v12, %v1832_v5  ;;  %v1843_v19 = vor.u32 %v1841_v14, %v1839_v16  ;;  %v1846_v20 = vrot.slane %v1844_v15, 1  ;;  %v13276_v12 = vld [vmem:[%s17162_s1 + $0x90] sm:$0xff]  }
  0x12   :  { %17289 = vst [vmem:[#allocation3_spill] sm:$0xff] %v13755_v13  ;;  %v1858_v31 = vshll.u32 %v13266_v21, 16  ;;  %v1853_v32 = vrot.slane %v1851_v23, 1  ;;  %v1865_v40 = vshll.u32 %v13267_v33, 16  ;;  %v1862_v43 = vshrl.u32 %v13266_v21, 16 }
  0x13   :  { %v13776_v25 = vsel %vm1767_vm2, %v1836_v18, %v1839_v16  ;;  %v13779_v27 = vsel %vm1767_vm2, %v1843_v19, %v1846_v20  ;;  %v1850_v34 = vor.u32 %v1848_v26, %v1846_v20  ;;  %v1869_v46 = vshrl.u32 %v13267_v33, 16  ;;  %v13279_v16 = vld [vmem:[%s17163_s0 + $0xa0] sm:$0xff]   ;;  %v13860_v20 = vld [vmem:[%s17163_s0 + $0xa8] sm:$0xff]  }
  0x14   :  { %11584 = vmatmul.mubr.msk.bf16.gmra.mrb[4].mxu1 %vm458_vm1, %v13704_v45  ;;  %17290 = vst [vmem:[#allocation4_spill] sm:$0xff] %v13776_v25  ;;  %17291 = vst [vmem:[#allocation5_spill] sm:$0xff] %v13779_v27  ;;  %v1857_v36 = vor.u32 %v1855_v30, %v1853_v32  ;;  %v1860_v37 = vrot.slane %v1858_v31, 1  ;;  %v1872_v48 = vshll.u32 %v13270_v38, 16  ;;  %v1867_v49 = vrot.slane %v1865_v40, 1  ;;  %v13875_v31 = vld [vmem:[%s17163_s0 + $0xb8] sm:$0xff]  }
  0x15   :  { %11587 = vmatprep.mubr.msk.bf16.mxu1 %vm458_vm1, %v13707_v47  ;;  %v1876_v60 = vshrl.u32 %v13270_v38, 16  ;;  %v1883_v63 = vshrl.u32 %v13271_v50, 16  ;;  %v1886_v0 = vshll.u32 %v13274_v54, 16  ;;  %v1890_v15 = vshrl.u32 %v13274_v54, 16  ;;  %v13888_v38 = vld [vmem:[%s17163_s0 + $0xc0] sm:$0xff]   ;;  %v13916_v54 = vld [vmem:[%s17163_s0 + $0xd8] sm:$0xff]  }
  0x16   :  { %11294 = vmatmul.mubr.msk.bf16.gmra.mrb[8].mxu0 %vm458_vm1, %v13249_v39  ;;  %v13265_v39 = vld [vmem:[%s17162_s1 + $0x68] sm:$0xff]   ;;  %v13803_v44 = vsel %vm1767_vm2, %v1857_v36, %v1860_v37  ;;  %v1864_v51 = vor.u32 %v1862_v43, %v1860_v37  ;;  %v1871_v52 = vor.u32 %v1869_v46, %v1867_v49  ;;  %v1874_v53 = vrot.slane %v1872_v48, 1  ;;  %v13280_v36 = vld [vmem:[%s17162_s1 + $0xa0] sm:$0xff]  }
  0x17   :  { %11297 = vmatprep.mubr.msk.bf16.mxu0 %vm458_vm1, %v13252_v42  ;;  %v13800_v42 = vsel %vm1767_vm2, %v1850_v34, %v1853_v32  ;;  %17293 = vst [vmem:[#allocation7_spill] sm:$0xff] %v13803_v44  ;;  %v1888_v6 = vrot.slane %v1886_v0, 1  ;;  %v1897_v18 = vshrl.u32 %v13275_v3, 16  ;;  %v13277_v32 = vld [vmem:[%s17162_s1 + $0x98] sm:$0xff]   ;;  %v1914_v33 = vshll.u32 %v13860_v20, 16  ;;  %v13284_v0 = vld [vmem:[%s17162_s1 + $0xb0] sm:$0xff]  }
  0x18   :  { %17292 = vst [vmem:[#allocation6_spill] sm:$0xff] %v13800_v42  ;;  %v13827_v62 = vsel %vm1767_vm2, %v1871_v52, %v1874_v53  ;;  %v1878_v4 = vor.u32 %v1876_v60, %v1874_v53  ;;  %v1911_v40 = vshrl.u32 %v13279_v16, 16  ;;  %v1928_v48 = vshll.u32 %v13875_v31, 16  ;;  %v13908_v52 = vld [vmem:[%s17163_s0 + $0xd0] sm:$0xff]  }
  0x19   :  { %17295 = vst [vmem:[#allocation9_spill] sm:$0xff] %v13827_v62  ;;  %v1892_v23 = vor.u32 %v1890_v15, %v1888_v6 }
  0x1c   :  { %11588 = vmatmul.mubr.msk.bf16.gmra.mrb[8].mxu1 %vm458_vm1, %v13728_v59 }
  0x1d   :  { %11591 = vmatprep.mubr.msk.bf16.mxu1 %vm458_vm1, %v13731_v61 }
  0x1e   :  { %11298 = vmatmul.mubr.msk.bf16.gmra.mrb[12].mxu0 %vm458_vm1, %v13253_v56  ;;  %v1879_v56 = vshll.u32 %v13271_v50, 16  ;;  %v1918_v50 = vshrl.u32 %v13860_v20, 16  ;;  %v13955_v20 = vld [vmem:[%s17163_s0 + $0xf0] sm:$0xff]  }
  0x1f   :  { %11301 = vmatprep.mubr.msk.bf16.mxu0 %vm458_vm1, %v13256_v58  ;;  %v13824_v58 = vsel %vm1767_vm2, %v1864_v51, %v1867_v49  ;;  %v1916_v49 = vrot.slane %v1914_v33, 1 }
  0x20   :  { %17294 = vst [vmem:[#allocation8_spill] sm:$0xff] %v13824_v58  ;;  %v1881_v2 = vrot.slane %v1879_v56, 1  ;;  %v13281_v56 = vld [vmem:[%s17162_s1 + $0xa8] sm:$0xff]  }
  0x22   :  { %v1885_v5 = vor.u32 %v1883_v63, %v1881_v2  ;;  %v13848_v14 = vsel %vm1767_vm2, %v1878_v4, %v1881_v2  ;;  %v1930_v2 = vrot.slane %v1928_v48, 1  ;;  %v1949_v4 = vshll.u32 %v13908_v52, 16 }
  0x23   :  { %17296 = vst [vmem:[#allocation10_spill] sm:$0xff] %v13848_v14 }
  0x24   :  { %11592 = vmatmul.mubr.msk.bf16.gmra.mrb[12].mxu1 %vm458_vm1, %v13752_v11  ;;  %v13854_v17 = vsel %vm1767_vm2, %v1885_v5, %v1888_v6  ;;  %v13933_v5 = vld [vmem:[%s17163_s0 + $0xe0] sm:$0xff]   ;;  %v1939_v6 = vshrl.u32 %v13888_v38, 16 }
  0x25   :  { %11595 = vmatprep.mubr.msk.bf16.mxu1 %vm458_vm1, %v13755_v13  ;;  %17297 = vst [vmem:[#allocation11_spill] sm:$0xff] %v13854_v17 }
  0x26   :  { %11302 = vmatmul.mubr.msk.bf16.gmra.mrb[16].mxu0 %vm458_vm1, %v13257_v8  ;;  %v13278_v8 = vld [vmem:[%s17163_s0 + $0x98] sm:$0xff]  }
  0x27   :  { %11305 = vmatprep.mubr.msk.bf16.mxu0 %vm458_vm1, %v13260_v10  ;;  %v1893_v10 = vshll.u32 %v13275_v3, 16  ;;  %v1900_v19 = vshll.u32 %v13278_v8, 16  ;;  %v1904_v34 = vshrl.u32 %v13278_v8, 16  ;;  %v1932_v3 = vshrl.u32 %v13875_v31, 16 }
  0x28   :  { %v1956_v8 = vshll.u32 %v13916_v54, 16  ;;  %v1920_v31 = vor.u32 %v1918_v50, %v1916_v49  ;;  %v14004_v50 = vld [vmem:[%s17163_s0 + $0x110] sm:$0xff]  }
  0x29   :  { %v1895_v21 = vrot.slane %v1893_v10, 1  ;;  %v1902_v30 = vrot.slane %v1900_v19, 1 }
  0x2b   :  { %v1899_v26 = vor.u32 %v1897_v18, %v1895_v21 }
  0x2c   :  { %11596 = vmatmul.mubr.msk.bf16.gmra.mrb[16].mxu1 %vm458_vm1, %v13776_v25  ;;  %v14511_v25 = vld [vmem:[%s17162_s1 + $0x178] sm:$0xff]  }
  0x2d   :  { %11599 = vmatprep.mubr.msk.bf16.mxu1 %vm458_vm1, %v13779_v27  ;;  %v13899_v43 = vsel %vm1767_vm2, %v1899_v26, %v1902_v30 }
  0x2e   :  { %11306 = vmatmul.mubr.msk.bf16.gmra.mrb[20].mxu0 %vm458_vm1, %v13261_v22  ;;  %v13868_v22 = vld [vmem:[%s17163_s0 + $0xb0] sm:$0xff]   ;;  %17299 = vst [vmem:[#allocation13_spill] sm:$0xff] %v13899_v43 }
  0x2f   :  { %11309 = vmatprep.mubr.msk.bf16.mxu0 %vm458_vm1, %v13264_v24  ;;  %v1907_v24 = vshll.u32 %v13279_v16, 16  ;;  %v1921_v37 = vshll.u32 %v13868_v22, 16  ;;  %v1925_v51 = vshrl.u32 %v13868_v22, 16  ;;  %v13946_v16 = vld [vmem:[%s17163_s0 + $0xe8] sm:$0xff]   ;;  %v1963_v22 = vshll.u32 %v13933_v5, 16 }
  0x30   :  { %v1970_v33 = vshll.u32 %v13946_v16, 16 }
  0x31   :  { %v1909_v46 = vrot.slane %v1907_v24, 1  ;;  %v1923_v53 = vrot.slane %v1921_v37, 1  ;;  %v13989_v37 = vld [vmem:[%s17162_s1 + $0xc0] sm:$0xff]  }
  0x33   :  { %v1913_v63 = vor.u32 %v1911_v40, %v1909_v46  ;;  %v13995_v40 = vld [vmem:[%s17163_s0 + $0x108] sm:$0xff]  }
  0x34   :  { %11600 = vmatmul.mubr.msk.bf16.gmra.mrb[20].mxu1 %vm458_vm1, %v13800_v42 }
  0x35   :  { %11603 = vmatprep.mubr.msk.bf16.mxu1 %vm458_vm1, %v13803_v44  ;;  %v13949_v18 = vsel %vm1767_vm2, %v1913_v63, %v1916_v49  ;;  %v14197_v44 = vld [vmem:[%s17162_s1 + $0xe8] sm:$0xff]  }
  0x36   :  { %11310 = vmatmul.mubr.msk.bf16.gmra.mrb[24].mxu0 %vm458_vm1, %v13265_v39  ;;  %v13891_v39 = vsel %vm1767_vm2, %v1892_v23, %v1895_v21  ;;  %17301 = vst [vmem:[#allocation15_spill] sm:$0xff] %v13949_v18  ;;  %v13958_v21 = vrot.slane %v1949_v4, 1  ;;  %v13964_v23 = vrot.slane %v1956_v8, 1  ;;  %v14022_v4 = vld [vmem:[%s17163_s0 + $0x118] sm:$0xff]   ;;  %v14030_v8 = vld [vmem:[%s17163_s0 + $0x120] sm:$0xff]  }
  0x37   :  { %11313 = vmatprep.mubr.msk.bf16.mxu0 %vm458_vm1, %v13268_v41  ;;  %17298 = vst [vmem:[#allocation12_spill] sm:$0xff] %v13891_v39  ;;  %v13896_v41 = vld [vmem:[%s17163_s0 + $0xc8] sm:$0xff]   ;;  %v2012_v63 = vshll.u32 %v14022_v4, 16 }
  0x38   :  { %v1942_v60 = vshll.u32 %v13896_v41, 16 }
  0x3c   :  { %11604 = vmatmul.mubr.msk.bf16.gmra.mrb[24].mxu1 %vm458_vm1, %v13824_v58 }
  0x3d   :  { %11607 = vmatprep.mubr.msk.bf16.mxu1 %vm458_vm1, %v13827_v62 }
  0x3e   :  { %11314 = vmatmul.mubr.msk.bf16.gmra.mrb[28].mxu0 %vm458_vm1, %v13269_v55  ;;  %v1906_v55 = vor.u32 %v1904_v34, %v1902_v30  ;;  %v13971_v30 = vld [vmem:[%s17163_s0 + $0xf8] sm:$0xff]   ;;  %v13984_v34 = vld [vmem:[%s17163_s0 + $0x100] sm:$0xff]  }
  0x3f   :  { %11317 = vmatprep.mubr.msk.bf16.mxu0 %vm458_vm1, %v13272_v57  ;;  %v1935_v57 = vshll.u32 %v13888_v38, 16  ;;  %v1977_v38 = vshll.u32 %v13955_v20, 16  ;;  %v1984_v49 = vshll.u32 %v13971_v30, 16 }
  0x41   :  { %v1937_v10 = vrot.slane %v1935_v57, 1 }
  0x43   :  { %v1941_v48 = vor.u32 %v1939_v6, %v1937_v10  ;;  %v14097_v6 = vld [vmem:[%s17163_s0 + $0x140] sm:$0xff]  }
  0x44   :  { %11608 = vmatmul.mubr.msk.bf16.gmra.mrb[28].mxu1 %vm458_vm1, %v13848_v14  ;;  %v17310_v14 = vshrl.u32 %v13916_v54, 16 }
  0x45   :  { %11611 = vmatprep.mubr.msk.bf16.mxu1 %vm458_vm1, %v13854_v17 }
  0x46   :  { %11318 = vmatmul.mubr.msk.bf16.gmra.mrb[32].mxu0 %vm458_vm1, %v13273_v9  ;;  %v13938_v9 = vsel %vm1767_vm2, %v1906_v55, %v1909_v46  ;;  %v13997_v46 = vrot.slane %v1963_v22, 1  ;;  %v14009_v55 = vrot.slane %v1970_v33, 1  ;;  %v14036_v22 = vrot.slane %v1984_v49, 1  ;;  %v14053_v49 = vld [vmem:[%s17163_s0 + $0x128] sm:$0xff]  }
  0x47   :  { %11321 = vmatprep.mubr.msk.bf16.mxu0 %vm458_vm1, %v13276_v12  ;;  %17300 = vst [vmem:[#allocation14_spill] sm:$0xff] %v13938_v9  ;;  %v13940_v12 = vrot.slane %v1942_v60, 1  ;;  %v14015_v60 = vrot.slane %v1977_v38, 1  ;;  %v1934_v33 = vor.u32 %v1932_v3, %v1930_v2  ;;  %v2026_v7 = vshll.u32 %v14053_v49, 16 }
  0x48   :  { %v1962_v58 = vor.u32 %v17310_v14, %v13964_v23  ;;  %v14210_v14 = vld [vmem:[%s17162_s1 + $0xf0] sm:$0xff]  }
  0x49   :  { %v14073_v24 = vsel %vm1767_vm2, %v1934_v33, %v1937_v10  ;;  %v14083_v15 = vsel %vm1767_vm2, %v1941_v48, %v13940_v12  ;;  %v14089_v10 = vrot.slane %v2012_v63, 1  ;;  %v14107_v63 = vld [vmem:[%s17163_s0 + $0x148] sm:$0xff]   ;;  %v14123_v48 = vld [vmem:[%s17163_s0 + $0x150] sm:$0xff]  }
  0x4a   :  { %17304 = vst [vmem:[#allocation18_spill] sm:$0xff] %v14073_v24  ;;  %17305 = vst [vmem:[#allocation19_spill] sm:$0xff] %v14083_v15 }
  0x4c   :  { %11612 = vmatmul.mubr.msk.bf16.gmra.mrb[32].mxu1 %vm458_vm1, %v13891_v39  ;;  %v2061_v39 = vshll.u32 %v14123_v48, 16 }
  0x4d   :  { %11615 = vmatprep.mubr.msk.bf16.mxu1 %vm458_vm1, %v13899_v43  ;;  %v2047_v43 = vshll.u32 %v14097_v6, 16 }
  0x4e   :  { %11322 = vmatmul.mubr.msk.bf16.gmra.mrb[36].mxu0 %vm458_vm1, %v13277_v32  ;;  %v13978_v32 = vld [vmem:[%s17162_s1 + $0xb8] sm:$0xff]  }
  0x4f   :  { %11325 = vmatprep.mubr.msk.bf16.mxu0 %vm458_vm1, %v13280_v36  ;;  %v1927_v36 = vor.u32 %v1925_v51, %v1923_v53  ;;  %v14007_v51 = vsel %vm1767_vm2, %v1920_v31, %v1923_v53  ;;  %v2005_v31 = vshll.u32 %v14004_v50, 16  ;;  %v2019_v53 = vshll.u32 %v14030_v8, 16 }
  0x50   :  { %17302 = vst [vmem:[#allocation16_spill] sm:$0xff] %v14007_v51 }
  0x51   :  { %v14013_v57 = vsel %vm1767_vm2, %v1927_v36, %v1930_v2  ;;  %v14044_v36 = vld [vmem:[%s17162_s1 + $0xc8] sm:$0xff]   ;;  %v14058_v2 = vld [vmem:[%s17162_s1 + $0xd0] sm:$0xff]   ;;  %v14069_v26 = vrot.slane %v2005_v31, 1  ;;  %v14091_v33 = vrot.slane %v2019_v53, 1  ;;  %v17306_v53 = vshrl.u32 %v13896_v41, 16  ;;  %v14131_v41 = vld [vmem:[%s17162_s1 + $0xe0] sm:$0xff]  }
  0x52   :  { %17303 = vst [vmem:[#allocation17_spill] sm:$0xff] %v14013_v57 }
  0x53   :  { %v1948_v19 = vor.u32 %v17306_v53, %v13940_v12  ;;  %v14133_v12 = vrot.slane %v2026_v7, 1  ;;  %v2054_v7 = vshll.u32 %v14107_v63, 16 }
  0x54   :  { %11616 = vmatmul.mubr.msk.bf16.gmra.mrb[36].mxu1 %vm458_vm1, %v13938_v9  ;;  %v14141_v9 = vld [vmem:[%s17163_s0 + $0x158] sm:$0xff]  }
  0x55   :  { %11619 = vmatprep.mubr.msk.bf16.mxu1 %vm458_vm1, %v13949_v18  ;;  %v2068_v62 = vshll.u32 %v14141_v9, 16 }
  0x56   :  { %11326 = vmatmul.mubr.msk.bf16.gmra.mrb[40].mxu0 %vm458_vm1, %v13281_v56  ;;  %v1991_v56 = vshll.u32 %v13984_v34, 16 }
  0x57   :  { %11329 = vmatprep.mubr.msk.bf16.mxu0 %vm458_vm1, %v13284_v0  ;;  %v1998_v0 = vshll.u32 %v13995_v40, 16  ;;  %v14212_v54 = vrot.slane %v2068_v62, 1 }
  0x58   :  { %v14046_v38 = vrot.slane %v1991_v56, 1  ;;  %v14065_v56 = vld [vmem:[%s17163_s0 + $0x130] sm:$0xff]  }
  0x59   :  { %v14060_v3 = vrot.slane %v1998_v0, 1  ;;  %v14079_v0 = vld [vmem:[%s17163_s0 + $0x138] sm:$0xff]   ;;  %v2033_v31 = vshll.u32 %v14065_v56, 16 }
  0x5b   :  { %v14135_v53 = vrot.slane %v2033_v31, 1  ;;  %v14153_v31 = vsel %vm1767_vm2, %v1948_v19, %v13958_v21  ;;  %v14171_v19 = vrot.slane %v2047_v43, 1  ;;  %v14186_v43 = vrot.slane %v2054_v7, 1 }
  0x5c   :  { %11620 = vmatmul.mubr.msk.bf16.gmra.mrb[40].mxu1 %vm458_vm1, %v14007_v51  ;;  %v17307_v51 = vshrl.u32 %v13908_v52, 16  ;;  %v14147_v52 = vld [vmem:[%s17163_s0 + $0x160] sm:$0xff]   ;;  %17308 = vst [vmem:[#allocation20_spill] sm:$0xff] %v14153_v31  ;;  %v17311_v7 = vshrl.u32 %v13933_v5, 16 }
  0x5d   :  { %11623 = vmatprep.mubr.msk.bf16.mxu1 %vm458_vm1, %v14013_v57  ;;  %v2040_v57 = vshll.u32 %v14079_v0, 16 }
  0x5e   :  { %11330 = vmatmul.mubr.msk.bf16.gmra.mrb[44].mxu0 %vm458_vm1, %v13978_v32 }
  0x5f   :  { %11333 = vmatprep.mubr.msk.bf16.mxu0 %vm458_vm1, %v13989_v37  ;;  %v14155_v18 = vrot.slane %v2040_v57, 1  ;;  %v2075_v57 = vshll.u32 %v14147_v52, 16 }
  0x64   :  { %11624 = vmatmul.mubr.msk.bf16.gmra.mrb[44].mxu1 %vm458_vm1, %v14073_v24  ;;  %v14117_v24 = vld [vmem:[%s17162_s1 + $0xd8] sm:$0xff]  }
  0x65   :  { %11627 = vmatprep.mubr.msk.bf16.mxu1 %vm458_vm1, %v14083_v15  ;;  %v1955_v15 = vor.u32 %v17307_v51, %v13958_v21  ;;  %v14167_v51 = vld [vmem:[%s17161_s2 + $0x8] sm:$0xf]  ;;  %v1969_v21 = vor.u32 %v17311_v7, %v13997_v46  ;;  %v14248_v7 = vld [vmem:[%s17162_s1 + $0x100] sm:$0xff]  }
  0x66   :  { %11334 = vmatmul.mubr.msk.bf16.gmra.mrb[48].mxu0 %vm458_vm1, %v14044_v36  ;;  %13229 = vmatprep.subr.msk.bf16.mxu0 %vm603_vm0, %v14167_v51 }
  0x67   :  { %11337 = vmatprep.mubr.msk.bf16.mxu0 %vm458_vm1, %v14058_v2  ;;  %v14160_v17 = vsel %vm1767_vm2, %v1955_v15, %v13964_v23  ;;  %v14178_v15 = vld [vmem:[%s17163_s0 + $0x168] sm:$0xff]   ;;  %13232 = vmatprep.subr.msk.bf16.mxu1 %vm603_vm0, %v14167_v51  ;;  %v14224_v5 = vsel %vm1767_vm2, %v1969_v21, %v14009_v55  ;;  %v17315_v21 = vshrl.u32 %v13955_v20, 16  ;;  %v17318_v20 = vshrl.u32 %v13971_v30, 16 }
  0x68   :  { %17309 = vst [vmem:[#allocation21_spill] sm:$0xff] %v14160_v17  ;;  %17313 = vst [vmem:[#allocation23_spill] sm:$0xff] %v14224_v5 }
  0x6c   :  { %11628 = vmatmul.mubr.msk.bf16.gmra.mrb[48].mxu1 %vm458_vm1, %v14153_v31  ;;  %v14199_v31 = vrot.slane %v2061_v39, 1  ;;  %v14215_v39 = vrot.slane %v2075_v57, 1  ;;  %v1983_v57 = vor.u32 %v17315_v21, %v14015_v60  ;;  %v14280_v21 = vld [vmem:[%s17162_s1 + $0x110] sm:$0xff]  }
  0x6d   :  { %11631 = vmatprep.mubr.msk.bf16.mxu1 %vm458_vm1, %v14160_v17  ;;  %v14220_v17 = vsel %vm1767_vm2, %v1962_v58, %v13997_v46  ;;  %v17314_v58 = vshrl.u32 %v13946_v16, 16  ;;  %v14240_v46 = vld [vmem:[%s17162_s1 + $0xf8] sm:$0xff]  }
  0x6e   :  { %11338 = vmatmul.mubr.msk.bf16.gmra.mrb[52].mxu0 %vm458_vm1, %v14117_v24  ;;  %17312 = vst [vmem:[#allocation22_spill] sm:$0xff] %v14220_v17  ;;  %v14256_v16 = vsel %vm1767_vm2, %v1983_v57, %v14036_v22 }
  0x6f   :  { %11341 = vmatprep.mubr.msk.bf16.mxu0 %vm458_vm1, %v14131_v41  ;;  %v1976_v62 = vor.u32 %v17314_v58, %v14009_v55  ;;  %17317 = vst [vmem:[#allocation25_spill] sm:$0xff] %v14256_v16  ;;  %v1990_v55 = vor.u32 %v17318_v20, %v14036_v22  ;;  %v17319_v58 = vshrl.u32 %v13984_v34, 16  ;;  %v17322_v22 = vshrl.u32 %v13995_v40, 16  ;;  %v14304_v20 = vld [vmem:[%s17162_s1 + $0x118] sm:$0xff]  }
  0x71   :  { %v14252_v42 = vsel %vm1767_vm2, %v1976_v62, %v14015_v60  ;;  %v14272_v60 = vld [vmem:[%s17162_s1 + $0x108] sm:$0xff]   ;;  %v1997_v62 = vor.u32 %v17319_v58, %v14046_v38  ;;  %v14284_v57 = vsel %vm1767_vm2, %v1990_v55, %v14046_v38  ;;  %v2004_v38 = vor.u32 %v17322_v22, %v14060_v3 }
  0x72   :  { %17316 = vst [vmem:[#allocation24_spill] sm:$0xff] %v14252_v42  ;;  %17320 = vst [vmem:[#allocation26_spill] sm:$0xff] %v14284_v57  ;;  %v17323_v55 = vshrl.u32 %v14004_v50, 16 }
  0x73   :  { %v14288_v30 = vsel %vm1767_vm2, %v1997_v62, %v14060_v3  ;;  %v14312_v62 = vld [vmem:[%s17162_s1 + $0x120] sm:$0xff]   ;;  %v14316_v23 = vsel %vm1767_vm2, %v2004_v38, %v14069_v26  ;;  %v14336_v38 = vld [vmem:[%s17162_s1 + $0x128] sm:$0xff]  }
  0x74   :  { %11632 = vmatmul.mubr.msk.bf16.gmra.mrb[52].mxu1 %vm458_vm1, %v14220_v17  ;;  %17321 = vst [vmem:[#allocation27_spill] sm:$0xff] %v14288_v30  ;;  %v2011_v58 = vor.u32 %v17323_v55, %v14069_v26  ;;  %17324 = vst [vmem:[#allocation28_spill] sm:$0xff] %v14316_v23  ;;  %v17326_v26 = vshrl.u32 %v14022_v4, 16  ;;  %v17327_v55 = vshrl.u32 %v14030_v8, 16 }
  0x75   :  { %11635 = vmatprep.mubr.msk.bf16.mxu1 %vm458_vm1, %v14224_v5 }
  0x76   :  { %11342 = vmatmul.mubr.msk.bf16.gmra.mrb[56].mxu0 %vm458_vm1, %v14197_v44  ;;  %v14320_v3 = vsel %vm1767_vm2, %v2011_v58, %v14089_v10  ;;  %v2018_v22 = vor.u32 %v17326_v26, %v14089_v10  ;;  %v2025_v58 = vor.u32 %v17327_v55, %v14091_v33  ;;  %v17331_v55 = vshrl.u32 %v14065_v56, 16 }
  0x77   :  { %11345 = vmatprep.mubr.msk.bf16.mxu0 %vm458_vm1, %v14210_v14  ;;  %17325 = vst [vmem:[#allocation29_spill] sm:$0xff] %v14320_v3 }
  0x78   :  { %v14352_v10 = vsel %vm1767_vm2, %v2025_v58, %v14133_v12  ;;  %v2039_v58 = vor.u32 %v17331_v55, %v14135_v53  ;;  %v17335_v55 = vshrl.u32 %v14097_v6, 16 }
  0x79   :  { %17329 = vst [vmem:[#allocation31_spill] sm:$0xff] %v14352_v10 }
  0x7c   :  { %11636 = vmatmul.mubr.msk.bf16.gmra.mrb[56].mxu1 %vm458_vm1, %v14252_v42 }
  0x7d   :  { %11639 = vmatprep.mubr.msk.bf16.mxu1 %vm458_vm1, %v14256_v16 }
  0x7e   :  { %11346 = vmatmul.mubr.msk.bf16.gmra.mrb[60].mxu0 %vm458_vm1, %v14240_v46 }
  0x7f   :  { %11349 = vmatprep.mubr.msk.bf16.mxu0 %vm458_vm1, %v14248_v7 }
  0x84   :  { %11640 = vmatmul.mubr.msk.bf16.gmra.mrb[60].mxu1 %vm458_vm1, %v14284_v57 }
  0x85   :  { %11643 = vmatprep.mubr.msk.bf16.mxu1 %vm458_vm1, %v14288_v30  ;;  %v17344_v30 = vshll.u32 %v14178_v15, 16 }
  0x86   :  { %11350 = vmatmul.mubr.msk.bf16.gmra.mrb[64].mxu0 %vm458_vm1, %v14272_v60 }
  0x87   :  { %11353 = vmatprep.mubr.msk.bf16.mxu0 %vm458_vm1, %v14280_v21  ;;  %v2084_v57 = vrot.slane %v17344_v30, 1 }
  0x8c   :  { %11644 = vmatmul.mubr.msk.bf16.gmra.mrb[64].mxu1 %vm458_vm1, %v14316_v23  ;;  %v14344_v23 = vld [vmem:[%s17162_s1 + $0x130] sm:$0xff]  }
  0x8d   :  { %11647 = vmatprep.mubr.msk.bf16.mxu1 %vm458_vm1, %v14320_v3  ;;  %v14348_v3 = vsel %vm1767_vm2, %v2018_v22, %v14091_v33  ;;  %v17330_v33 = vshrl.u32 %v14053_v49, 16  ;;  %v14368_v22 = vld [vmem:[%s17162_s1 + $0x138] sm:$0xff]  }
  0x8e   :  { %11354 = vmatmul.mubr.msk.bf16.gmra.mrb[68].mxu0 %vm458_vm1, %v14304_v20  ;;  %17328 = vst [vmem:[#allocation30_spill] sm:$0xff] %v14348_v3 }
  0x8f   :  { %11357 = vmatprep.mubr.msk.bf16.mxu0 %vm458_vm1, %v14312_v62  ;;  %v2032_v26 = vor.u32 %v17330_v33, %v14133_v12  ;;  %v14384_v12 = vsel %vm1767_vm2, %v2039_v58, %v14155_v18  ;;  %v2053_v58 = vor.u32 %v17335_v55, %v14171_v19  ;;  %v17339_v55 = vshrl.u32 %v14123_v48, 16 }
  0x90   :  { %17333 = vst [vmem:[#allocation33_spill] sm:$0xff] %v14384_v12 }
  0x94   :  { %11648 = vmatmul.mubr.msk.bf16.gmra.mrb[68].mxu1 %vm458_vm1, %v14348_v3  ;;  %v14376_v3 = vld [vmem:[%s17162_s1 + $0x140] sm:$0xff]  }
  0x95   :  { %11651 = vmatprep.mubr.msk.bf16.mxu1 %vm458_vm1, %v14352_v10  ;;  %v14380_v10 = vsel %vm1767_vm2, %v2032_v26, %v14135_v53  ;;  %v17334_v53 = vshrl.u32 %v14079_v0, 16  ;;  %v14400_v26 = vld [vmem:[%s17162_s1 + $0x148] sm:$0xff]  }
  0x96   :  { %11358 = vmatmul.mubr.msk.bf16.gmra.mrb[72].mxu0 %vm458_vm1, %v14336_v38  ;;  %17332 = vst [vmem:[#allocation32_spill] sm:$0xff] %v14380_v10 }
  0x97   :  { %11361 = vmatprep.mubr.msk.bf16.mxu0 %vm458_vm1, %v14344_v23  ;;  %v2046_v33 = vor.u32 %v17334_v53, %v14155_v18  ;;  %v14416_v18 = vsel %vm1767_vm2, %v2053_v58, %v14186_v43  ;;  %v2067_v58 = vor.u32 %v17339_v55, %v14199_v31  ;;  %v17343_v55 = vshrl.u32 %v14147_v52, 16 }
  0x98   :  { %17337 = vst [vmem:[#allocation35_spill] sm:$0xff] %v14416_v18 }
  0x9c   :  { %11652 = vmatmul.mubr.msk.bf16.gmra.mrb[72].mxu1 %vm458_vm1, %v14380_v10  ;;  %v14408_v10 = vld [vmem:[%s17162_s1 + $0x150] sm:$0xff]  }
  0x9d   :  { %11655 = vmatprep.mubr.msk.bf16.mxu1 %vm458_vm1, %v14384_v12  ;;  %v14412_v12 = vsel %vm1767_vm2, %v2046_v33, %v14171_v19  ;;  %v17338_v19 = vshrl.u32 %v14107_v63, 16  ;;  %v14432_v33 = vld [vmem:[%s17162_s1 + $0x158] sm:$0xff]  }
  0x9e   :  { %11362 = vmatmul.mubr.msk.bf16.gmra.mrb[76].mxu0 %vm458_vm1, %v14368_v22  ;;  %17336 = vst [vmem:[#allocation34_spill] sm:$0xff] %v14412_v12 }
  0x9f   :  { %11365 = vmatprep.mubr.msk.bf16.mxu0 %vm458_vm1, %v14376_v3  ;;  %v2060_v53 = vor.u32 %v17338_v19, %v14186_v43  ;;  %v14448_v43 = vsel %vm1767_vm2, %v2067_v58, %v14212_v54  ;;  %v14453_v19 = vld [vmem:[%s17163_s0 + $0x170] sm:$0xff]   ;;  %v2081_v58 = vor.u32 %v17343_v55, %v14215_v39 }
  0xa0   :  { %17341 = vst [vmem:[#allocation37_spill] sm:$0xff] %v14448_v43  ;;  %v2089_v16 = vshll.u32 %v14453_v19, 16  ;;  %v2093_v42 = vshrl.u32 %v14453_v19, 16 }
  0xa1   :  { %v14493_v55 = vsel %vm1767_vm2, %v2081_v58, %v2084_v57 }
  0xa2   :  { %17346 = vst [vmem:[#allocation39_spill] sm:$0xff] %v14493_v55  ;;  %v2091_v17 = vrot.slane %v2089_v16, 1 }
  0xa4   :  { %11656 = vmatmul.mubr.msk.bf16.gmra.mrb[76].mxu1 %vm458_vm1, %v14412_v12  ;;  %v14440_v12 = vld [vmem:[%s17162_s1 + $0x160] sm:$0xff]   ;;  %v2095_v58 = vor.u32 %v2093_v42, %v2091_v17 }
  0xa5   :  { %11659 = vmatprep.mubr.msk.bf16.mxu1 %vm458_vm1, %v14416_v18  ;;  %v14444_v18 = vsel %vm1767_vm2, %v2060_v53, %v14199_v31  ;;  %v17342_v31 = vshrl.u32 %v14141_v9, 16  ;;  %v13435_v42 = vld [vmem:[%s17163_s0] sm:$0xff]  }
  0xa6   :  { %11366 = vmatmul.mubr.msk.bf16.gmra.mrb[80].mxu0 %vm458_vm1, %v14400_v26  ;;  %17340 = vst [vmem:[#allocation36_spill] sm:$0xff] %v14444_v18 }
  0xa7   :  { %11369 = vmatprep.mubr.msk.bf16.mxu0 %vm458_vm1, %v14408_v10  ;;  %v2074_v53 = vor.u32 %v17342_v31, %v14212_v54  ;;  %v14485_v54 = vld [vmem:[%s17162_s1 + $0x170] sm:$0xff]   ;;  %v2086_v31 = vshrl.u32 %v14178_v15, 16 }
  0xa9   :  { %v14489_v30 = vsel %vm1767_vm2, %v2074_v53, %v14215_v39  ;;  %v2088_v39 = vor.u32 %v2086_v31, %v2084_v57  ;;  %v13335_v53 = vld [vmem:[%s17163_s0 + $0x180] ss:$0 sps:$4 sm:$0x11]   ;;  %v14535_v31 = vsel %vm603_vm0, %v14167_v51, 0  ;;  %v13439_v51 = vld [vmem:[%s17161_s2 + $0x4] sm:$0xf] }
  0xaa   :  { %17345 = vst [vmem:[#allocation38_spill] sm:$0xff] %v14489_v30  ;;  %v2104_v13 = vshll.u32 %v13335_v53, 16  ;;  %17350 = vst [vmem:[#allocation43_spill] sm:$0xff] %v14535_v31  ;;  %v14566_v53 = vld [vmem:[%s17162_s1 + $0x8] sm:$0xff]  }
  0xab   :  { %v14514_v16 = vsel %vm1767_vm2, %v2088_v39, %v2091_v17  ;;  %v13436_v39 = vld [vmem:[%s17163_s0 + $0x8] sm:$0xff]  }
  0xac   :  { %11660 = vmatmul.mubr.msk.bf16.gmra.mrb[80].mxu1 %vm458_vm1, %v14444_v18  ;;  %v14474_v18 = vld [vmem:[%s17163_s0 + $0x178] sm:$0xff]   ;;  %17347 = vst [vmem:[#allocation40_spill] sm:$0xff] %v14514_v16 }
  0xad   :  { %11663 = vmatprep.mubr.msk.bf16.mxu1 %vm458_vm1, %v14448_v43  ;;  %v14479_v43 = vld [vmem:[%s17162_s1 + $0x168] sm:$0xff]   ;;  %v2096_v5 = vshll.u32 %v14474_v18, 16 }
  0xae   :  { %11370 = vmatmul.mubr.msk.bf16.gmra.mrb[84].mxu0 %vm458_vm1, %v14432_v33 }
  0xaf   :  { %11373 = vmatprep.mubr.msk.bf16.mxu0 %vm458_vm1, %v14440_v12  ;;  %v2098_v27 = vrot.slane %v2096_v5, 1  ;;  %v2106_v5 = vrot.slane %v2104_v13, 1  ;;  %v14547_v13 = vld [vmem:[%s17162_s1] sm:$0xff]  }
  0xb4   :  { %11664 = vmatmul.mubr.msk.bf16.gmra.mrb[84].mxu1 %vm458_vm1, %v14489_v30  ;;  %v2100_v30 = vshrl.u32 %v14474_v18, 16 }
  0xb5   :  { %11667 = vmatprep.mubr.msk.bf16.mxu1 %vm458_vm1, %v14493_v55  ;;  %v14518_v55 = vsel %vm1767_vm2, %v2095_v58, %v2098_v27  ;;  %v13442_v58 = vld [vmem:[%s17163_s0 + $0x20] sm:$0xff]  }
  0xb6   :  { %11374 = vmatmul.mubr.msk.bf16.gmra.mrb[88].mxu0 %vm458_vm1, %v14479_v43  ;;  %17348 = vst [vmem:[#allocation41_spill] sm:$0xff] %v14518_v55  ;;  %v2102_v17 = vor.u32 %v2100_v30, %v2098_v27  ;;  %v13438_v27 = vld [vmem:[%s17163_s0 + $0x10] sm:$0xff]   ;;  %v13440_v30 = vld [vmem:[%s17163_s0 + $0x18] sm:$0xff]  }
  0xb7   :  { %11377 = vmatprep.mubr.msk.bf16.mxu0 %vm458_vm1, %v14485_v54 }
  0xb8   :  { %v14531_v57 = vsel %vm1767_vm2, %v2102_v17, %v2106_v5  ;;  %v13444_v17 = vld [vmem:[%s17163_s0 + $0x28] sm:$0xff]   ;;  %v14590_v5 = vld [vmem:[%s17162_s1 + $0x18] sm:$0xff]  }
  0xb9   :  { %17349 = vst [vmem:[#allocation42_spill] sm:$0xff] %v14531_v57 }
  0xbc   :  { %11668 = vmatmul.mubr.msk.bf16.gmra.mrb[88].mxu1 %vm458_vm1, %v14514_v16  ;;  %v14678_v16 = vld [vmem:[%s17162_s1 + $0x58] sm:$0xff]  }
  0xbd   :  { %11671 = vmatprep.mubr.msk.bf16.mxu1 %vm458_vm1, %v14518_v55  ;;  %v14667_v55 = vld [vmem:[%s17162_s1 + $0x50] sm:$0xff]   ;;  %17352 = vst [vmem:[#allocation45_spill] sm:$0xff] %v14678_v16 }
  0xbe   :  { %11378 = vmatmul.mubr.msk.bf16.gmra.mrb[92].mxu0 %vm458_vm1, %v14511_v25  ;;  %17351 = vst [vmem:[#allocation44_spill] sm:$0xff] %v14667_v55 }
  0xbf   :  { %11383 = vmatprep.mubr.msk.bf16.mxu0 %vm458_vm1, %v13435_v42  ;;  %v14578_v42 = vld [vmem:[%s17162_s1 + $0x10] sm:$0xff]  }
  0xc4   :  { %11672 = vmatmul.mubr.msk.bf16.gmra.mrb[92].mxu1 %vm458_vm1, %v14531_v57  ;;  %v14656_v57 = vld [vmem:[%s17162_s1 + $0x48] sm:$0xff]  }
  0xc5   :  { %11677 = vmatprep.mubr.msk.bf16.mxu1 %vm458_vm1, %v14547_v13 }
  0xc6   :  { %11384 = vmatmul.mubr.msk.bf16.vlgmr.msra.gmra.mrb[0].mxu0 %vm458_vm1, %v13436_v39  ;;  %v13446_v39 = vld [vmem:[%s17163_s0 + $0x30] sm:$0xff]  }
  0xc7   :  { %11480 = vmatpush3.bf16.msra.mxu0 %v14535_v31  ;;  %11387 = vmatprep.mubr.msk.bf16.mxu0 %vm458_vm1, %v13438_v27  ;;  %v14601_v27 = vld [vmem:[%s17162_s1 + $0x20] sm:$0xff]  }
  0xc8   :  { %13233 = vmatprep.subr.msk.bf16.mxu0 %vm603_vm0, %v13439_v51 }
  0xcc   :  { %11678 = vmatmul.mubr.msk.bf16.vlgmr.msra.gmra.mrb[0].mxu1 %vm458_vm1, %v14566_v53 }
  0xcd   :  { %11774 = vmatpush3.bf16.msra.mxu1 %v14535_v31  ;;  %11681 = vmatprep.mubr.msk.bf16.mxu1 %vm458_vm1, %v14578_v42  ;;  %v14645_v31 = vld [vmem:[%s17162_s1 + $0x40] sm:$0xff]  }
  0xce   :  { %11388 = vmatmul.mubr.msk.bf16.gmra.mrb[4].mxu0 %vm458_vm1, %v13440_v30  ;;  %13236 = vmatprep.subr.msk.bf16.mxu1 %vm603_vm0, %v13439_v51  ;;  %v13448_v51 = vld [vmem:[%s17163_s0 + $0x38] sm:$0xff]   ;;  %v14612_v30 = vld [vmem:[%s17162_s1 + $0x28] sm:$0xff]  }
  0xcf   :  { %11391 = vmatprep.mubr.msk.bf16.mxu0 %vm458_vm1, %v13442_v58  ;;  %v13450_v58 = vld [vmem:[%s17163_s0 + $0x40] sm:$0xff]  }
  0xd4   :  { %11682 = vmatmul.mubr.msk.bf16.gmra.mrb[4].mxu1 %vm458_vm1, %v14590_v5 }
  0xd5   :  { %11685 = vmatprep.mubr.msk.bf16.mxu1 %vm458_vm1, %v14601_v27 }
  0xd6   :  { %11392 = vmatmul.mubr.msk.bf16.gmra.mrb[8].mxu0 %vm458_vm1, %v13444_v17  ;;  %v14623_v17 = vld [vmem:[%s17162_s1 + $0x30] sm:$0xff]  }
  0xd7   :  { %11395 = vmatprep.mubr.msk.bf16.mxu0 %vm458_vm1, %v13446_v39  ;;  %v13452_v39 = vld [vmem:[%s17163_s0 + $0x48] sm:$0xff]  }
  0xdc   :  { %11686 = vmatmul.mubr.msk.bf16.gmra.mrb[8].mxu1 %vm458_vm1, %v14612_v30 }
  0xdd   :  { %11689 = vmatprep.mubr.msk.bf16.mxu1 %vm458_vm1, %v14623_v17 }
  0xde   :  { %11396 = vmatmul.mubr.msk.bf16.gmra.mrb[12].mxu0 %vm458_vm1, %v13448_v51  ;;  %v14634_v51 = vld [vmem:[%s17162_s1 + $0x38] sm:$0xff]  }
  0xdf   :  { %11399 = vmatprep.mubr.msk.bf16.mxu0 %vm458_vm1, %v13450_v58  ;;  %v13454_v58 = vld [vmem:[%s17163_s0 + $0x50] sm:$0xff]  }
  0xe4   :  { %11690 = vmatmul.mubr.msk.bf16.gmra.mrb[12].mxu1 %vm458_vm1, %v14634_v51 }
  0xe5   :  { %11693 = vmatprep.mubr.msk.bf16.mxu1 %vm458_vm1, %v14645_v31 }
  0xe6   :  { %11400 = vmatmul.mubr.msk.bf16.gmra.mrb[16].mxu0 %vm458_vm1, %v13452_v39  ;;  %v13456_v39 = vld [vmem:[%s17163_s0 + $0x58] sm:$0xff]  }
  0xe7   :  { %11403 = vmatprep.mubr.msk.bf16.mxu0 %vm458_vm1, %v13454_v58  ;;  %v13458_v58 = vld [vmem:[%s17163_s0 + $0x60] sm:$0xff]  }
  0xec   :  { %11694 = vmatmul.mubr.msk.bf16.gmra.mrb[16].mxu1 %vm458_vm1, %v14656_v57 }
  0xed   :  { %11697 = vmatprep.mubr.msk.bf16.mxu1 %vm458_vm1, %v14667_v55  ;;  %v14689_v55 = vld [vmem:[%s17162_s1 + $0x60] sm:$0xff]  }
  0xee   :  { %11404 = vmatmul.mubr.msk.bf16.gmra.mrb[20].mxu0 %vm458_vm1, %v13456_v39  ;;  %v13460_v39 = vld [vmem:[%s17163_s0 + $0x68] sm:$0xff]   ;;  %17353 = vst [vmem:[#allocation46_spill] sm:$0xff] %v14689_v55 }
  0xef   :  { %11407 = vmatprep.mubr.msk.bf16.mxu0 %vm458_vm1, %v13458_v58  ;;  %v13462_v58 = vld [vmem:[%s17163_s0 + $0x70] sm:$0xff]  }
  0xf4   :  { %11698 = vmatmul.mubr.msk.bf16.gmra.mrb[20].mxu1 %vm458_vm1, %v14678_v16  ;;  %v14700_v16 = vld [vmem:[%s17162_s1 + $0x68] sm:$0xff]  }
  0xf5   :  { %11701 = vmatprep.mubr.msk.bf16.mxu1 %vm458_vm1, %v14689_v55  ;;  %17354 = vst [vmem:[#allocation47_spill] sm:$0xff] %v14700_v16  ;;  %v14711_v55 = vld [vmem:[%s17162_s1 + $0x70] sm:$0xff]  }
  0xf6   :  { %11408 = vmatmul.mubr.msk.bf16.gmra.mrb[24].mxu0 %vm458_vm1, %v13460_v39  ;;  %v13464_v39 = vld [vmem:[%s17163_s0 + $0x78] sm:$0xff]   ;;  %17355 = vst [vmem:[#allocation48_spill] sm:$0xff] %v14711_v55 }
  0xf7   :  { %11411 = vmatprep.mubr.msk.bf16.mxu0 %vm458_vm1, %v13462_v58  ;;  %v13466_v58 = vld [vmem:[%s17163_s0 + $0x80] sm:$0xff]  }
  0xfc   :  { %11702 = vmatmul.mubr.msk.bf16.gmra.mrb[24].mxu1 %vm458_vm1, %v14700_v16  ;;  %v14722_v16 = vld [vmem:[%s17162_s1 + $0x78] sm:$0xff]  }
  0xfd   :  { %11705 = vmatprep.mubr.msk.bf16.mxu1 %vm458_vm1, %v14711_v55  ;;  %17356 = vst [vmem:[#allocation49_spill] sm:$0xff] %v14722_v16  ;;  %v14733_v55 = vld [vmem:[%s17162_s1 + $0x80] sm:$0xff]  }
  0xfe   :  { %11412 = vmatmul.mubr.msk.bf16.gmra.mrb[28].mxu0 %vm458_vm1, %v13464_v39  ;;  %v13468_v39 = vld [vmem:[%s17163_s0 + $0x88] sm:$0xff]   ;;  %17357 = vst [vmem:[#allocation50_spill] sm:$0xff] %v14733_v55 }
  0xff   :  { %11415 = vmatprep.mubr.msk.bf16.mxu0 %vm458_vm1, %v13466_v58  ;;  %v13470_v58 = vld [vmem:[%s17163_s0 + $0x90] sm:$0xff]  }
 0x104   :  { %11706 = vmatmul.mubr.msk.bf16.gmra.mrb[28].mxu1 %vm458_vm1, %v14722_v16  ;;  %v14744_v16 = vld [vmem:[%s17162_s1 + $0x88] sm:$0xff]  }
 0x105   :  { %11709 = vmatprep.mubr.msk.bf16.mxu1 %vm458_vm1, %v14733_v55  ;;  %17358 = vst [vmem:[#allocation51_spill] sm:$0xff] %v14744_v16  ;;  %v14755_v55 = vld [vmem:[%s17162_s1 + $0x90] sm:$0xff]  }
 0x106   :  { %11416 = vmatmul.mubr.msk.bf16.gmra.mrb[32].mxu0 %vm458_vm1, %v13468_v39  ;;  %v13472_v39 = vld [vmem:[%s17163_s0 + $0x98] sm:$0xff]   ;;  %17359 = vst [vmem:[#allocation52_spill] sm:$0xff] %v14755_v55 }
 0x107   :  { %11419 = vmatprep.mubr.msk.bf16.mxu0 %vm458_vm1, %v13470_v58  ;;  %v13474_v58 = vld [vmem:[%s17163_s0 + $0xa0] sm:$0xff]  }
 0x10c   :  { %11710 = vmatmul.mubr.msk.bf16.gmra.mrb[32].mxu1 %vm458_vm1, %v14744_v16  ;;  %v14766_v16 = vld [vmem:[%s17162_s1 + $0x98] sm:$0xff]  }
 0x10d   :  { %11713 = vmatprep.mubr.msk.bf16.mxu1 %vm458_vm1, %v14755_v55  ;;  %17360 = vst [vmem:[#allocation53_spill] sm:$0xff] %v14766_v16  ;;  %v14777_v55 = vld [vmem:[%s17162_s1 + $0xa0] sm:$0xff]  }
 0x10e   :  { %11420 = vmatmul.mubr.msk.bf16.gmra.mrb[36].mxu0 %vm458_vm1, %v13472_v39  ;;  %v13476_v39 = vld [vmem:[%s17163_s0 + $0xa8] sm:$0xff]   ;;  %17361 = vst [vmem:[#allocation54_spill] sm:$0xff] %v14777_v55 }
 0x10f   :  { %11423 = vmatprep.mubr.msk.bf16.mxu0 %vm458_vm1, %v13474_v58  ;;  %v13478_v58 = vld [vmem:[%s17163_s0 + $0xb0] sm:$0xff]  }
 0x114   :  { %11714 = vmatmul.mubr.msk.bf16.gmra.mrb[36].mxu1 %vm458_vm1, %v14766_v16  ;;  %v14788_v16 = vld [vmem:[%s17162_s1 + $0xa8] sm:$0xff]  }
 0x115   :  { %11717 = vmatprep.mubr.msk.bf16.mxu1 %vm458_vm1, %v14777_v55  ;;  %v14799_v55 = vld [vmem:[%s17162_s1 + $0xb0] sm:$0xff]  }
 0x116   :  { %11424 = vmatmul.mubr.msk.bf16.gmra.mrb[40].mxu0 %vm458_vm1, %v13476_v39  ;;  %v13480_v39 = vld [vmem:[%s17163_s0 + $0xb8] sm:$0xff]   ;;  %17362 = vst [vmem:[#allocation55_spill] sm:$0xff] %v14799_v55 }
 0x117   :  { %11427 = vmatprep.mubr.msk.bf16.mxu0 %vm458_vm1, %v13478_v58  ;;  %v13482_v58 = vld [vmem:[%s17163_s0 + $0xc0] sm:$0xff]  }
 0x11c   :  { %11718 = vmatmul.mubr.msk.bf16.gmra.mrb[40].mxu1 %vm458_vm1, %v14788_v16 }
 0x11d   :  { %11721 = vmatprep.mubr.msk.bf16.mxu1 %vm458_vm1, %v14799_v55  ;;  %v13486_v55 = vld [vmem:[%s17163_s0 + $0xd8] sm:$0xff]  }
 0x11e   :  { %11428 = vmatmul.mubr.msk.bf16.gmra.mrb[44].mxu0 %vm458_vm1, %v13480_v39  ;;  %v13484_v39 = vld [vmem:[%s17163_s0 + $0xc8] sm:$0xff]  }
 0x11f   :  { %11431 = vmatprep.mubr.msk.bf16.mxu0 %vm458_vm1, %v13482_v58  ;;  %v13485_v58 = vld [vmem:[%s17163_s0 + $0xd0] sm:$0xff]  }
 0x124   :  { %11722 = vmatmul.mubr.msk.bf16.gmra.mrb[44].mxu1 %vm458_vm1, %v13978_v32  ;;  %v13487_v32 = vld [vmem:[%s17163_s0 + $0xe0] sm:$0xff]  }
 0x125   :  { %11725 = vmatprep.mubr.msk.bf16.mxu1 %vm458_vm1, %v13989_v37  ;;  %v13488_v37 = vld [vmem:[%s17163_s0 + $0xe8] sm:$0xff]  }
 0x126   :  { %11432 = vmatmul.mubr.msk.bf16.gmra.mrb[48].mxu0 %vm458_vm1, %v13484_v39 }
 0x127   :  { %11435 = vmatprep.mubr.msk.bf16.mxu0 %vm458_vm1, %v13485_v58 }
 0x12c   :  { %11726 = vmatmul.mubr.msk.bf16.gmra.mrb[48].mxu1 %vm458_vm1, %v14044_v36  ;;  %v13489_v36 = vld [vmem:[%s17163_s0 + $0xf0] sm:$0xff]  }
 0x12d   :  { %11729 = vmatprep.mubr.msk.bf16.mxu1 %vm458_vm1, %v14058_v2  ;;  %v13490_v2 = vld [vmem:[%s17163_s0 + $0xf8] sm:$0xff]  }
 0x12e   :  { %11436 = vmatmul.mubr.msk.bf16.gmra.mrb[52].mxu0 %vm458_vm1, %v13486_v55 }
 0x12f   :  { %11439 = vmatprep.mubr.msk.bf16.mxu0 %vm458_vm1, %v13487_v32  ;;  %v17364_v32 = vld [vmem:[#allocation44_spill] sm:$0xff] }
 0x134   :  { %11730 = vmatmul.mubr.msk.bf16.gmra.mrb[52].mxu1 %vm458_vm1, %v14117_v24 }
 0x135   :  { %11733 = vmatprep.mubr.msk.bf16.mxu1 %vm458_vm1, %v14131_v41  ;;  %v13491_v41 = vld [vmem:[%s17161_s2] sm:$0xf] }
 0x136   :  { %11440 = vmatmul.mubr.msk.bf16.gmra.mrb[56].mxu0 %vm458_vm1, %v13488_v37  ;;  %v3546_v37 = vshll.u32 %v17364_v32, 16 }
 0x137   :  { %11443 = vmatprep.mubr.msk.bf16.mxu0 %vm458_vm1, %v13489_v36  ;;  %v3543_v36 = vshrl.u32 %v14656_v57, 16 }
 0x13c   :  { %11734 = vmatmul.mubr.msk.bf16.gmra.mrb[56].mxu1 %vm458_vm1, %v14197_v44  ;;  %v3479_v44 = vshll.u32 %v14547_v13, 16 }
 0x13d   :  { %11737 = vmatprep.mubr.msk.bf16.mxu1 %vm458_vm1, %v14210_v14 }
 0x13e   :  { %11444 = vmatmul.mubr.msk.bf16.gmra.mrb[60].mxu0 %vm458_vm1, %v13490_v2  ;;  %v3481_v24 = vrot.slane %v3479_v44, 1  ;;  %v17365_v44 = vld [vmem:[#allocation45_spill] sm:$0xff] }
 0x13f   :  { %11447 = vmatprep.mubr.msk.bf16.mxu0 %vm458_vm1, %v13984_v34  ;;  %v3483_v34 = vshll.u32 %v14566_v53, 16 }
 0x144   :  { %11738 = vmatmul.mubr.msk.bf16.gmra.mrb[60].mxu1 %vm458_vm1, %v14240_v46 }
 0x145   :  { %11741 = vmatprep.mubr.msk.bf16.mxu1 %vm458_vm1, %v14248_v7 }
 0x146   :  { %11448 = vmatmul.mubr.msk.bf16.gmra.mrb[64].mxu0 %vm458_vm1, %v13995_v40 }
 0x147   :  { %11451 = vmatprep.mubr.msk.bf16.mxu0 %vm458_vm1, %v14004_v50  ;;  %v3485_v50 = vrot.slane %v3483_v34, 1  ;;  %v3548_v34 = vrot.slane %v3546_v37, 1 }
 0x14c   :  { %11742 = vmatmul.mubr.msk.bf16.gmra.mrb[64].mxu1 %vm458_vm1, %v14272_v60 }
 0x14d   :  { %11745 = vmatprep.mubr.msk.bf16.mxu1 %vm458_vm1, %v14280_v21 }
 0x14e   :  { %11452 = vmatmul.mubr.msk.bf16.gmra.mrb[68].mxu0 %vm458_vm1, %v14022_v4  ;;  %v3490_v4 = vshll.u32 %v14578_v42, 16 }
 0x14f   :  { %11455 = vmatprep.mubr.msk.bf16.mxu0 %vm458_vm1, %v14030_v8  ;;  %v3487_v8 = vshrl.u32 %v14566_v53, 16  ;;  %v3532_v53 = vshll.u32 %v14645_v31, 16 }
 0x154   :  { %11746 = vmatmul.mubr.msk.bf16.gmra.mrb[68].mxu1 %vm458_vm1, %v14304_v20  ;;  %v3518_v20 = vshll.u32 %v14623_v17, 16 }
 0x155   :  { %11749 = vmatprep.mubr.msk.bf16.mxu1 %vm458_vm1, %v14312_v62 }
 0x156   :  { %11456 = vmatmul.mubr.msk.bf16.gmra.mrb[72].mxu0 %vm458_vm1, %v14053_v49 }
 0x157   :  { %11459 = vmatprep.mubr.msk.bf16.mxu0 %vm458_vm1, %v14065_v56  ;;  %v3494_v56 = vshrl.u32 %v14578_v42, 16 }
 0x15c   :  { %11750 = vmatmul.mubr.msk.bf16.gmra.mrb[72].mxu1 %vm458_vm1, %v14336_v38 }
 0x15d   :  { %11753 = vmatprep.mubr.msk.bf16.mxu1 %vm458_vm1, %v14344_v23  ;;  %v3508_v23 = vshrl.u32 %v14601_v27, 16 }
 0x15e   :  { %11460 = vmatmul.mubr.msk.bf16.gmra.mrb[76].mxu0 %vm458_vm1, %v14079_v0  ;;  %v3489_v0 = vor.u32 %v3487_v8, %v3485_v50  ;;  %v17368_v8 = vld [vmem:[#allocation46_spill] sm:$0xff] }
 0x15f   :  { %11463 = vmatprep.mubr.msk.bf16.mxu0 %vm458_vm1, %v14097_v6  ;;  %v3497_v6 = vshll.u32 %v14590_v5, 16 }
 0x164   :  { %11754 = vmatmul.mubr.msk.bf16.gmra.mrb[76].mxu1 %vm458_vm1, %v14368_v22 }
 0x165   :  { %11757 = vmatprep.mubr.msk.bf16.mxu1 %vm458_vm1, %v14376_v3 }
 0x166   :  { %11464 = vmatmul.mubr.msk.bf16.gmra.mrb[80].mxu0 %vm458_vm1, %v14107_v63  ;;  %v3499_v63 = vrot.slane %v3497_v6, 1  ;;  %v3557_v6 = vshrl.u32 %v17365_v44, 16 }
 0x167   :  { %11467 = vmatprep.mubr.msk.bf16.mxu0 %vm458_vm1, %v14123_v48 }
 0x16c   :  { %11758 = vmatmul.mubr.msk.bf16.gmra.mrb[80].mxu1 %vm458_vm1, %v14400_v26 }
 0x16d   :  { %11761 = vmatprep.mubr.msk.bf16.mxu1 %vm458_vm1, %v14408_v10 }
 0x16e   :  { %11468 = vmatmul.mubr.msk.bf16.gmra.mrb[84].mxu0 %vm458_vm1, %v14141_v9  ;;  %v3477_v9 = vshrl.u32 %v14547_v13, 16 }
 0x16f   :  { %11471 = vmatprep.mubr.msk.bf16.mxu0 %vm458_vm1, %v14147_v52 }
 0x170   :  { %v3482_v40 = vor.u32 %v3481_v24, %v3477_v9  ;;  %v3553_v9 = vshll.u32 %v17365_v44, 16  ;;  %v17366_v24 = vld [vmem:[#allocation4_spill] sm:$0xff] }
 0x172   :  { %v3486_v49 = vsel %vm1767_vm2, %v3482_v40, %v3485_v50  ;;  %v17367_v40 = vld [vmem:[#allocation5_spill] sm:$0xff] }
 0x174   :  { %11762 = vmatmul.mubr.msk.bf16.gmra.mrb[84].mxu1 %vm458_vm1, %v14432_v33 }
 0x175   :  { %11765 = vmatprep.mubr.msk.bf16.mxu1 %vm458_vm1, %v14440_v12 }
 0x176   :  { %11472 = vmatmul.mubr.msk.bf16.gmra.mrb[88].mxu0 %vm458_vm1, %v14178_v15  ;;  %v3501_v15 = vshrl.u32 %v14590_v5, 16  ;;  %v3529_v5 = vshrl.u32 %v14634_v51, 16 }
 0x177   :  { %11475 = vmatprep.mubr.msk.bf16.mxu0 %vm458_vm1, %v14453_v19 }
 0x178   :  { %v3503_v7 = vor.u32 %v3501_v15, %v3499_v63 }
 0x17c   :  { %11766 = vmatmul.mubr.msk.bf16.gmra.mrb[88].mxu1 %vm458_vm1, %v14479_v43 }
 0x17d   :  { %11769 = vmatprep.mubr.msk.bf16.mxu1 %vm458_vm1, %v14485_v54 }
 0x17e   :  { %11476 = vmatmul.mubr.msk.bf16.gmra.mrb[92].mxu0 %vm458_vm1, %v14474_v18  ;;  %v3522_v18 = vshrl.u32 %v14623_v17, 16  ;;  %v17363_v17 = vld [vmem:[#allocation3_spill] sm:$0xff] }
 0x17f   :  { %11481 = vmatprep.mubr.msk.bf16.mxu0 %vm458_vm1, %v13671_v28  ;;  %v3492_v28 = vrot.slane %v3490_v4, 1 }
 0x181   :  { %v3496_v48 = vor.u32 %v3494_v56, %v3492_v28  ;;  %v3493_v52 = vsel %vm1767_vm2, %v3489_v0, %v3492_v28  ;;  %v3564_v0 = vshrl.u32 %v17368_v8, 16 }
 0x183   :  { %v3500_v14 = vsel %vm1767_vm2, %v3496_v48, %v3499_v63  ;;  %v17369_v48 = vld [vmem:[#allocation47_spill] sm:$0xff] }
 0x184   :  { %11770 = vmatmul.mubr.msk.bf16.gmra.mrb[92].mxu1 %vm458_vm1, %v14511_v25  ;;  %v3567_v63 = vshll.u32 %v17369_v48, 16 }
 0x185   :  { %11775 = vmatprep.mubr.msk.bf16.mxu1 %vm458_vm1, %v3486_v49  ;;  %v3560_v49 = vshll.u32 %v17368_v8, 16 }
 0x186   :  { %11482 = vmatmul.mubr.msk.bf16.vlgmr.msra.gmra.mrb[0].mxu0 %vm458_vm1, %v13674_v29  ;;  %v3504_v29 = vshll.u32 %v14601_v27, 16 }
 0x187   :  { %11872 = vmatpush3.bf16.msra.mxu0 %v13623_v1  ;;  %11485 = vmatprep.mubr.msk.bf16.mxu0 %vm458_vm1, %v13688_v35  ;;  %v3511_v35 = vshll.u32 %v14612_v30, 16 }
 0x188   :  { %13234 = vmatprep.subr.msk.bf16.mxu0 %vm603_vm0, %v13491_v41  ;;  %v3506_v46 = vrot.slane %v3504_v29, 1  ;;  %v3562_v29 = vrot.slane %v3560_v49, 1 }
 0x189   :  { %v3513_v21 = vrot.slane %v3511_v35, 1  ;;  %v17372_v35 = vld [vmem:[#allocation48_spill] sm:$0xff] }
 0x18a   :  { %v3510_v60 = vor.u32 %v3508_v23, %v3506_v46  ;;  %v3507_v62 = vsel %vm1767_vm2, %v3503_v7, %v3506_v46  ;;  %v3569_v23 = vrot.slane %v3567_v63, 1  ;;  %v3574_v46 = vshll.u32 %v17372_v35, 16 }
 0x18c   :  { %11776 = vmatmul.mubr.msk.bf16.vlgmr.msra.gmra.mrb[0].mxu1 %vm458_vm1, %v3493_v52  ;;  %v3514_v38 = vsel %vm1767_vm2, %v3510_v60, %v3513_v21  ;;  %v17371_v52 = vld [vmem:[#allocation7_spill] sm:$0xff]  ;;  %v3571_v60 = vshrl.u32 %v17369_v48, 16 }
 0x18d   :  { %12166 = vmatpush3.bf16.msra.mxu1 %v13623_v1  ;;  %11779 = vmatprep.mubr.msk.bf16.mxu1 %vm458_vm1, %v3500_v14  ;;  %v3520_v1 = vrot.slane %v3518_v20, 1  ;;  %v3566_v14 = vor.u32 %v3564_v0, %v3562_v29  ;;  %v3578_v20 = vshrl.u32 %v17372_v35, 16 }
 0x18e   :  { %11486 = vmatmul.mubr.msk.bf16.gmra.mrb[4].mxu0 %vm458_vm1, %v13704_v45  ;;  %13237 = vmatprep.subr.msk.bf16.mxu1 %vm603_vm0, %v13491_v41  ;;  %v3515_v45 = vshrl.u32 %v14612_v30, 16  ;;  %v3539_v30 = vshll.u32 %v14656_v57, 16  ;;  %v3555_v57 = vrot.slane %v3553_v9, 1  ;;  %v17370_v41 = vld [vmem:[#allocation6_spill] sm:$0xff] }
 0x18f   :  { %11489 = vmatprep.mubr.msk.bf16.mxu0 %vm458_vm1, %v13707_v47  ;;  %v3525_v47 = vshll.u32 %v14634_v51, 16  ;;  %v3524_v55 = vor.u32 %v3522_v18, %v3520_v1  ;;  %v3576_v18 = vrot.slane %v3574_v46, 1  ;;  %v17387_v46 = vld [vmem:[#allocation55_spill] sm:$0xff] }
 0x190   :  { %v3517_v19 = vor.u32 %v3515_v45, %v3513_v21  ;;  %v3541_v51 = vrot.slane %v3539_v30, 1  ;;  %v3559_v15 = vor.u32 %v3557_v6, %v3555_v57  ;;  %v3570_v21 = vsel %vm1767_vm2, %v3566_v14, %v3569_v23  ;;  %v17377_v30 = vld [vmem:[#allocation51_spill] sm:$0xff] }
 0x191   :  { %v3527_v13 = vrot.slane %v3525_v47, 1  ;;  %v17375_v47 = vld [vmem:[#allocation9_spill] sm:$0xff] }
 0x192   :  { %v3521_v42 = vsel %vm1767_vm2, %v3517_v19, %v3520_v1  ;;  %v3545_v50 = vor.u32 %v3543_v36, %v3541_v51  ;;  %v3563_v7 = vsel %vm1767_vm2, %v3559_v15, %v3562_v29  ;;  %v3573_v1 = vor.u32 %v3571_v60, %v3569_v23  ;;  %v17385_v29 = vld [vmem:[#allocation14_spill] sm:$0xff]  ;;  %v17386_v15 = vld [vmem:[#allocation15_spill] sm:$0xff] }
 0x193   :  { %v3528_v27 = vsel %vm1767_vm2, %v3524_v55, %v3527_v13  ;;  %v3531_v39 = vor.u32 %v3529_v5, %v3527_v13  ;;  %v3580_v19 = vor.u32 %v3578_v20, %v3576_v18  ;;  %v17376_v13 = vld [vmem:[#allocation50_spill] sm:$0xff] }
 0x194   :  { %11780 = vmatmul.mubr.msk.bf16.gmra.mrb[4].mxu1 %vm458_vm1, %v3507_v62  ;;  %v3549_v56 = vsel %vm1767_vm2, %v3545_v50, %v3548_v34  ;;  %v17373_v62 = vld [vmem:[#allocation49_spill] sm:$0xff] }
 0x195   :  { %11783 = vmatprep.mubr.msk.bf16.mxu1 %vm458_vm1, %v3514_v38  ;;  %v3581_v45 = vshll.u32 %v17373_v62, 16  ;;  %v17374_v38 = vld [vmem:[#allocation8_spill] sm:$0xff]  ;;  %v3585_v5 = vshrl.u32 %v17373_v62, 16  ;;  %v3634_v62 = vshrl.u32 %v17387_v46, 16 }
 0x196   :  { %11490 = vmatmul.mubr.msk.bf16.gmra.mrb[8].mxu0 %vm458_vm1, %v13728_v59  ;;  %v3536_v59 = vshrl.u32 %v14645_v31, 16 }
 0x197   :  { %11493 = vmatprep.mubr.msk.bf16.mxu0 %vm458_vm1, %v13731_v61  ;;  %v3534_v61 = vrot.slane %v3532_v53, 1  ;;  %v3583_v55 = vrot.slane %v3581_v45, 1  ;;  %v3588_v53 = vshll.u32 %v17376_v13, 16  ;;  %v13492_v45 = vld [vmem:[%s17162_s1 + $0xb8] sm:$0xff]  }
 0x199   :  { %v3538_v58 = vor.u32 %v3536_v59, %v3534_v61  ;;  %v3535_v31 = vsel %vm1767_vm2, %v3531_v39, %v3534_v61  ;;  %v3592_v59 = vshrl.u32 %v17376_v13, 16  ;;  %v3595_v61 = vshll.u32 %v17377_v30, 16  ;;  %v13493_v13 = vld [vmem:[%s17162_s1 + $0xc0] sm:$0xff]  }
 0x19a   :  { %v3590_v39 = vrot.slane %v3588_v53, 1  ;;  %v3644_v53 = vshll.u32 %v13493_v13, 16 }
 0x19b   :  { %v3542_v2 = vsel %vm1767_vm2, %v3538_v58, %v3541_v51  ;;  %v17379_v58 = vld [vmem:[#allocation11_spill] sm:$0xff]  ;;  %v3587_v51 = vor.u32 %v3585_v5, %v3583_v55  ;;  %v3597_v37 = vrot.slane %v3595_v61, 1  ;;  %v3641_v5 = vshrl.u32 %v13492_v45, 16 }
 0x19c   :  { %11784 = vmatmul.mubr.msk.bf16.gmra.mrb[8].mxu1 %vm458_vm1, %v3521_v42  ;;  %v3577_v42 = vsel %vm1767_vm2, %v3573_v1, %v3576_v18  ;;  %v17388_v18 = vld [vmem:[#allocation16_spill] sm:$0xff]  ;;  %v17389_v1 = vld [vmem:[#allocation17_spill] sm:$0xff] }
 0x19d   :  { %11787 = vmatprep.mubr.msk.bf16.mxu1 %vm458_vm1, %v3528_v27  ;;  %v3584_v27 = vsel %vm1767_vm2, %v3580_v19, %v3583_v55 }
 0x19e   :  { %11494 = vmatmul.mubr.msk.bf16.gmra.mrb[12].mxu0 %vm458_vm1, %v13752_v11  ;;  %v3550_v11 = vshrl.u32 %v17364_v32, 16  ;;  %v3594_v32 = vor.u32 %v3592_v59, %v3590_v39  ;;  %v3648_v59 = vshrl.u32 %v13493_v13, 16 }
 0x19f   :  { %11497 = vmatprep.mubr.msk.bf16.mxu0 %vm458_vm1, %v17363_v17  ;;  %v17378_v17 = vld [vmem:[#allocation10_spill] sm:$0xff] }
 0x1a0   :  { %v3552_v4 = vor.u32 %v3550_v11, %v3548_v34  ;;  %v3599_v11 = vshrl.u32 %v17377_v30, 16  ;;  %v3598_v44 = vsel %vm1767_vm2, %v3594_v32, %v3597_v37  ;;  %v13494_v30 = vld [vmem:[%s17162_s1 + $0xc8] sm:$0xff]  }
 0x1a1   :  { %v3651_v61 = vshll.u32 %v13494_v30, 16 }
 0x1a2   :  { %v3556_v28 = vsel %vm1767_vm2, %v3552_v4, %v3555_v57  ;;  %v17383_v4 = vld [vmem:[#allocation13_spill] sm:$0xff]  ;;  %v3601_v57 = vor.u32 %v3599_v11, %v3597_v37  ;;  %v3655_v11 = vshrl.u32 %v13494_v30, 16 }
 0x1a3   :  { %v3653_v37 = vrot.slane %v3651_v61, 1  ;;  %v13502_v61 = vld [vmem:[%s17162_s1 + $0x108] sm:$0xff]  }
 0x1a4   :  { %11788 = vmatmul.mubr.msk.bf16.gmra.mrb[12].mxu1 %vm458_vm1, %v3535_v31  ;;  %v17380_v31 = vld [vmem:[#allocation52_spill] sm:$0xff] }
 0x1a5   :  { %11791 = vmatprep.mubr.msk.bf16.mxu1 %vm458_vm1, %v3542_v2  ;;  %v3602_v36 = vshll.u32 %v17380_v31, 16  ;;  %v3591_v2 = vsel %vm1767_vm2, %v3587_v51, %v3590_v39  ;;  %v3606_v9 = vshrl.u32 %v17380_v31, 16  ;;  %v3646_v39 = vrot.slane %v3644_v53, 1  ;;  %v13495_v31 = vld [vmem:[%s17162_s1 + $0xd0] sm:$0xff]   ;;  %v13501_v53 = vld [vmem:[%s17162_s1 + $0x100] sm:$0xff]  }
 0x1a6   :  { %11498 = vmatmul.mubr.msk.bf16.gmra.mrb[16].mxu0 %vm458_vm1, %v17366_v24  ;;  %v17381_v24 = vld [vmem:[#allocation53_spill] sm:$0xff]  ;;  %v3704_v30 = vshrl.u32 %v13501_v53, 16 }
 0x1a7   :  { %11501 = vmatprep.mubr.msk.bf16.mxu0 %vm458_vm1, %v17367_v40  ;;  %v3609_v34 = vshll.u32 %v17381_v24, 16  ;;  %v17382_v40 = vld [vmem:[#allocation12_spill] sm:$0xff]  ;;  %v3604_v50 = vrot.slane %v3602_v36, 1  ;;  %v3613_v0 = vshrl.u32 %v17381_v24, 16  ;;  %v3650_v32 = vor.u32 %v3648_v59, %v3646_v39  ;;  %v13496_v24 = vld [vmem:[%s17162_s1 + $0xd8] sm:$0xff]  }
 0x1a8   :  { %v3658_v36 = vshll.u32 %v13495_v31, 16 }
 0x1a9   :  { %v3608_v8 = vor.u32 %v3606_v9, %v3604_v50  ;;  %v3611_v49 = vrot.slane %v3609_v34, 1  ;;  %v3662_v9 = vshrl.u32 %v13495_v31, 16  ;;  %v3665_v34 = vshll.u32 %v13496_v24, 16 }
 0x1ab   :  { %v3612_v48 = vsel %vm1767_vm2, %v3608_v8, %v3611_v49  ;;  %v3615_v14 = vor.u32 %v3613_v0, %v3611_v49  ;;  %v3667_v49 = vrot.slane %v3665_v34, 1  ;;  %v3669_v0 = vshrl.u32 %v13496_v24, 16  ;;  %v13504_v34 = vld [vmem:[%s17162_s1 + $0x118] sm:$0xff]  }
 0x1ac   :  { %11792 = vmatmul.mubr.msk.bf16.gmra.mrb[16].mxu1 %vm458_vm1, %v3549_v56  ;;  %v17384_v56 = vld [vmem:[#allocation54_spill] sm:$0xff] }
 0x1ad   :  { %11795 = vmatprep.mubr.msk.bf16.mxu1 %vm458_vm1, %v3556_v28  ;;  %v3616_v6 = vshll.u32 %v17384_v56, 16  ;;  %v3605_v28 = vsel %vm1767_vm2, %v3601_v57, %v3604_v50  ;;  %v3620_v63 = vshrl.u32 %v17384_v56, 16  ;;  %v3660_v50 = vrot.slane %v3658_v36, 1  ;;  %v13497_v56 = vld [vmem:[%s17162_s1 + $0xe0] sm:$0xff]   ;;  %v13503_v36 = vld [vmem:[%s17162_s1 + $0x110] sm:$0xff]  }
 0x1ae   :  { %11502 = vmatmul.mubr.msk.bf16.gmra.mrb[20].mxu0 %vm458_vm1, %v17370_v41  ;;  %v3623_v41 = vshll.u32 %v14788_v16, 16  ;;  %v3657_v57 = vor.u32 %v3655_v11, %v3653_v37  ;;  %v3718_v24 = vshrl.u32 %v13503_v36, 16 }
 0x1af   :  { %11505 = vmatprep.mubr.msk.bf16.mxu0 %vm458_vm1, %v17371_v52  ;;  %v3618_v52 = vrot.slane %v3616_v6, 1  ;;  %v3664_v8 = vor.u32 %v3662_v9, %v3660_v50  ;;  %v3672_v6 = vshll.u32 %v13497_v56, 16 }
 0x1b0   :  { %v3625_v35 = vrot.slane %v3623_v41, 1  ;;  %v13498_v41 = vld [vmem:[%s17162_s1 + $0xe8] sm:$0xff]  }
 0x1b1   :  { %v3622_v23 = vor.u32 %v3620_v63, %v3618_v52  ;;  %v3619_v60 = vsel %vm1767_vm2, %v3615_v14, %v3618_v52  ;;  %v3676_v63 = vshrl.u32 %v13497_v56, 16  ;;  %v17394_v52 = vld [vmem:[#allocation22_spill] sm:$0xff]  ;;  %v17395_v14 = vld [vmem:[#allocation23_spill] sm:$0xff] }
 0x1b3   :  { %v3626_v20 = vsel %vm1767_vm2, %v3622_v23, %v3625_v35  ;;  %v3671_v23 = vor.u32 %v3669_v0, %v3667_v49 }
 0x1b4   :  { %11796 = vmatmul.mubr.msk.bf16.gmra.mrb[20].mxu1 %vm458_vm1, %v3563_v7  ;;  %v3630_v7 = vshll.u32 %v17387_v46, 16 }
 0x1b5   :  { %11799 = vmatprep.mubr.msk.bf16.mxu1 %vm458_vm1, %v3570_v21  ;;  %v3627_v21 = vshrl.u32 %v14788_v16, 16 }
 0x1b6   :  { %11506 = vmatmul.mubr.msk.bf16.gmra.mrb[24].mxu0 %vm458_vm1, %v17374_v38  ;;  %v3637_v38 = vshll.u32 %v13492_v45, 16 }
 0x1b7   :  { %11509 = vmatprep.mubr.msk.bf16.mxu0 %vm458_vm1, %v17375_v47  ;;  %v3632_v47 = vrot.slane %v3630_v7, 1  ;;  %v3629_v16 = vor.u32 %v3627_v21, %v3625_v35  ;;  %v13499_v7 = vld [vmem:[%s17162_s1 + $0xf0] sm:$0xff]  }
 0x1b8   :  { %v3639_v55 = vrot.slane %v3637_v38, 1  ;;  %v3690_v45 = vshrl.u32 %v13499_v7, 16  ;;  %v13500_v38 = vld [vmem:[%s17162_s1 + $0xf8] sm:$0xff]  }
 0x1b9   :  { %v3636_v19 = vor.u32 %v3634_v62, %v3632_v47 }
 0x1ba   :  { %v3643_v51 = vor.u32 %v3641_v5, %v3639_v55 }
 0x1bc   :  { %11800 = vmatmul.mubr.msk.bf16.gmra.mrb[24].mxu1 %vm458_vm1, %v3577_v42  ;;  %v3633_v42 = vsel %vm1767_vm2, %v3629_v16, %v3632_v47  ;;  %v17396_v47 = vld [vmem:[#allocation24_spill] sm:$0xff]  ;;  %v17397_v16 = vld [vmem:[#allocation25_spill] sm:$0xff] }
 0x1bd   :  { %11803 = vmatprep.mubr.msk.bf16.mxu1 %vm458_vm1, %v3584_v27  ;;  %v3640_v27 = vsel %vm1767_vm2, %v3636_v19, %v3639_v55 }
 0x1be   :  { %11510 = vmatmul.mubr.msk.bf16.gmra.mrb[28].mxu0 %vm458_vm1, %v17378_v17  ;;  %v17390_v17 = vld [vmem:[#allocation18_spill] sm:$0xff] }
 0x1bf   :  { %11513 = vmatprep.mubr.msk.bf16.mxu0 %vm458_vm1, %v17379_v58  ;;  %v17391_v58 = vld [vmem:[#allocation19_spill] sm:$0xff] }
 0x1c4   :  { %11804 = vmatmul.mubr.msk.bf16.gmra.mrb[28].mxu1 %vm458_vm1, %v3591_v2  ;;  %v3647_v2 = vsel %vm1767_vm2, %v3643_v51, %v3646_v39  ;;  %v17398_v39 = vld [vmem:[#allocation26_spill] sm:$0xff]  ;;  %v17399_v51 = vld [vmem:[#allocation27_spill] sm:$0xff] }
 0x1c5   :  { %11807 = vmatprep.mubr.msk.bf16.mxu1 %vm458_vm1, %v3598_v44  ;;  %v3654_v44 = vsel %vm1767_vm2, %v3650_v32, %v3653_v37 }
 0x1c6   :  { %11514 = vmatmul.mubr.msk.bf16.gmra.mrb[32].mxu0 %vm458_vm1, %v17382_v40  ;;  %v17392_v40 = vld [vmem:[#allocation20_spill] sm:$0xff] }
 0x1c7   :  { %11517 = vmatprep.mubr.msk.bf16.mxu0 %vm458_vm1, %v17383_v4  ;;  %v17393_v4 = vld [vmem:[#allocation21_spill] sm:$0xff] }
 0x1cc   :  { %11808 = vmatmul.mubr.msk.bf16.gmra.mrb[32].mxu1 %vm458_vm1, %v3605_v28  ;;  %v3661_v28 = vsel %vm1767_vm2, %v3657_v57, %v3660_v50  ;;  %v17400_v50 = vld [vmem:[#allocation28_spill] sm:$0xff]  ;;  %v17401_v57 = vld [vmem:[#allocation29_spill] sm:$0xff] }
 0x1cd   :  { %11811 = vmatprep.mubr.msk.bf16.mxu1 %vm458_vm1, %v3612_v48  ;;  %v3668_v48 = vsel %vm1767_vm2, %v3664_v8, %v3667_v49 }
 0x1ce   :  { %11518 = vmatmul.mubr.msk.bf16.gmra.mrb[36].mxu0 %vm458_vm1, %v17385_v29  ;;  %v3679_v29 = vshll.u32 %v13498_v41, 16 }
 0x1cf   :  { %11521 = vmatprep.mubr.msk.bf16.mxu0 %vm458_vm1, %v17386_v15  ;;  %v3674_v15 = vrot.slane %v3672_v6, 1  ;;  %v13505_v6 = vld [vmem:[%s17162_s1 + $0x120] sm:$0xff]  }
 0x1d0   :  { %v3681_v46 = vrot.slane %v3679_v29, 1  ;;  %v13506_v29 = vld [vmem:[%s17162_s1 + $0x128] sm:$0xff]  }
 0x1d1   :  { %v3678_v35 = vor.u32 %v3676_v63, %v3674_v15  ;;  %v3675_v21 = vsel %vm1767_vm2, %v3671_v23, %v3674_v15  ;;  %v17402_v15 = vld [vmem:[#allocation30_spill] sm:$0xff]  ;;  %v17403_v23 = vld [vmem:[#allocation31_spill] sm:$0xff] }
 0x1d3   :  { %v3682_v62 = vsel %vm1767_vm2, %v3678_v35, %v3681_v46 }
 0x1d4   :  { %11812 = vmatmul.mubr.msk.bf16.gmra.mrb[36].mxu1 %vm458_vm1, %v3619_v60  ;;  %v3686_v60 = vshll.u32 %v13499_v7, 16 }
 0x1d5   :  { %11815 = vmatprep.mubr.msk.bf16.mxu1 %vm458_vm1, %v3626_v20  ;;  %v3683_v20 = vshrl.u32 %v13498_v41, 16  ;;  %v3732_v41 = vshrl.u32 %v13505_v6, 16 }
 0x1d6   :  { %11522 = vmatmul.mubr.msk.bf16.gmra.mrb[40].mxu0 %vm458_vm1, %v17388_v18  ;;  %v3693_v18 = vshll.u32 %v13500_v38, 16 }
 0x1d7   :  { %11525 = vmatprep.mubr.msk.bf16.mxu0 %vm458_vm1, %v17389_v1  ;;  %v3688_v1 = vrot.slane %v3686_v60, 1  ;;  %v3685_v19 = vor.u32 %v3683_v20, %v3681_v46  ;;  %v13507_v60 = vld [vmem:[%s17162_s1 + $0x130] sm:$0xff]  }
 0x1d8   :  { %v3695_v13 = vrot.slane %v3693_v18, 1  ;;  %v3749_v18 = vshll.u32 %v14368_v22, 16  ;;  %v13508_v22 = vld [vmem:[%s17162_s1 + $0x138] sm:$0xff]  }
 0x1d9   :  { %v3692_v55 = vor.u32 %v3690_v45, %v3688_v1  ;;  %v3689_v5 = vsel %vm1767_vm2, %v3685_v19, %v3688_v1 }
 0x1db   :  { %v3696_v59 = vsel %vm1767_vm2, %v3692_v55, %v3695_v13 }
 0x1dc   :  { %11816 = vmatmul.mubr.msk.bf16.gmra.mrb[40].mxu1 %vm458_vm1, %v3633_v42  ;;  %v3700_v42 = vshll.u32 %v13501_v53, 16  ;;  %v3756_v53 = vshll.u32 %v14376_v3, 16 }
 0x1dd   :  { %11819 = vmatprep.mubr.msk.bf16.mxu1 %vm458_vm1, %v3640_v27  ;;  %v3697_v27 = vshrl.u32 %v13500_v38, 16  ;;  %v3746_v38 = vshrl.u32 %v13507_v60, 16 }
 0x1de   :  { %11526 = vmatmul.mubr.msk.bf16.gmra.mrb[44].mxu0 %vm458_vm1, %v17390_v17  ;;  %v3707_v17 = vshll.u32 %v13502_v61, 16  ;;  %v3758_v3 = vrot.slane %v3756_v53, 1  ;;  %v13341_v53 = vld [vmem:[%s17163_s0 + $0x19c] sm:$0xff]  }
 0x1df   :  { %11529 = vmatprep.mubr.msk.bf16.mxu0 %vm458_vm1, %v17391_v58  ;;  %v3702_v58 = vrot.slane %v3700_v42, 1  ;;  %v3699_v32 = vor.u32 %v3697_v27, %v3695_v13  ;;  %v3751_v13 = vrot.slane %v3749_v18, 1  ;;  %v3809_v18 = vshrl.u32 %v14511_v25, 16 }
 0x1e0   :  { %v3709_v31 = vrot.slane %v3707_v17, 1  ;;  %v17406_v17 = vld [vmem:[#allocation34_spill] sm:$0xff] }
 0x1e1   :  { %v3706_v37 = vor.u32 %v3704_v30, %v3702_v58  ;;  %v3703_v11 = vsel %vm1767_vm2, %v3699_v32, %v3702_v58 }
 0x1e3   :  { %v3710_v9 = vsel %vm1767_vm2, %v3706_v37, %v3709_v31  ;;  %v3770_v37 = vshll.u32 %v14408_v10, 16 }
 0x1e4   :  { %11820 = vmatmul.mubr.msk.bf16.gmra.mrb[44].mxu1 %vm458_vm1, %v3647_v2  ;;  %v3714_v2 = vshll.u32 %v13503_v36, 16  ;;  %v3767_v36 = vshrl.u32 %v14400_v26, 16 }
 0x1e5   :  { %11823 = vmatprep.mubr.msk.bf16.mxu1 %vm458_vm1, %v3654_v44  ;;  %v3711_v44 = vshrl.u32 %v13502_v61, 16  ;;  %v3763_v61 = vshll.u32 %v14400_v26, 16 }
 0x1e6   :  { %11530 = vmatmul.mubr.msk.bf16.gmra.mrb[48].mxu0 %vm458_vm1, %v17392_v40  ;;  %v3721_v40 = vshll.u32 %v13504_v34, 16 }
 0x1e7   :  { %11533 = vmatprep.mubr.msk.bf16.mxu0 %vm458_vm1, %v17393_v4  ;;  %v3716_v4 = vrot.slane %v3714_v2, 1  ;;  %v3713_v8 = vor.u32 %v3711_v44, %v3709_v31  ;;  %v3765_v32 = vrot.slane %v3763_v61, 1  ;;  %v3777_v44 = vshll.u32 %v14432_v33, 16 }
 0x1e8   :  { %v3723_v56 = vrot.slane %v3721_v40, 1 }
 0x1e9   :  { %v3720_v49 = vor.u32 %v3718_v24, %v3716_v4  ;;  %v3717_v0 = vsel %vm1767_vm2, %v3713_v8, %v3716_v4  ;;  %v3772_v24 = vrot.slane %v3770_v37, 1  ;;  %v3769_v40 = vor.u32 %v3767_v36, %v3765_v32 }
 0x1ea   :  { %v3779_v26 = vrot.slane %v3777_v44, 1  ;;  %v3784_v4 = vshll.u32 %v14440_v12, 16  ;;  %v13348_v44 = vld [vmem:[%s17163_s0 + $0x1b4] sm:$0xff]  }
 0x1eb   :  { %v3724_v63 = vsel %vm1767_vm2, %v3720_v49, %v3723_v56  ;;  %v3788_v49 = vshrl.u32 %v14440_v12, 16 }
 0x1ec   :  { %11824 = vmatmul.mubr.msk.bf16.gmra.mrb[48].mxu1 %vm458_vm1, %v3661_v28  ;;  %v3728_v28 = vshll.u32 %v13505_v6, 16  ;;  %v17410_v6 = vld [vmem:[#allocation38_spill] sm:$0xff] }
 0x1ed   :  { %11827 = vmatprep.mubr.msk.bf16.mxu1 %vm458_vm1, %v3668_v48  ;;  %v3725_v48 = vshrl.u32 %v13504_v34, 16  ;;  %v17409_v34 = vld [vmem:[#allocation37_spill] sm:$0xff] }
 0x1ee   :  { %11534 = vmatmul.mubr.msk.bf16.gmra.mrb[52].mxu0 %vm458_vm1, %v17394_v52  ;;  %v3735_v52 = vshll.u32 %v13506_v29, 16 }
 0x1ef   :  { %11537 = vmatprep.mubr.msk.bf16.mxu0 %vm458_vm1, %v17395_v14  ;;  %v3730_v14 = vrot.slane %v3728_v28, 1  ;;  %v3727_v35 = vor.u32 %v3725_v48, %v3723_v56  ;;  %v3791_v56 = vshll.u32 %v14479_v43, 16  ;;  %v3786_v28 = vrot.slane %v3784_v4, 1 }
 0x1f0   :  { %v3737_v7 = vrot.slane %v3735_v52, 1 }
 0x1f1   :  { %v3734_v46 = vor.u32 %v3732_v41, %v3730_v14  ;;  %v3731_v20 = vsel %vm1767_vm2, %v3727_v35, %v3730_v14  ;;  %v3798_v41 = vshll.u32 %v14485_v54, 16  ;;  %v3805_v14 = vshll.u32 %v14511_v25, 16  ;;  %v17412_v35 = vld [vmem:[#allocation40_spill] sm:$0xff] }
 0x1f3   :  { %v3738_v45 = vsel %vm1767_vm2, %v3734_v46, %v3737_v7  ;;  %v3800_v46 = vrot.slane %v3798_v41, 1 }
 0x1f4   :  { %11828 = vmatmul.mubr.msk.bf16.gmra.mrb[52].mxu1 %vm458_vm1, %v3675_v21  ;;  %v3742_v21 = vshll.u32 %v13507_v60, 16 }
 0x1f5   :  { %11831 = vmatprep.mubr.msk.bf16.mxu1 %vm458_vm1, %v3682_v62  ;;  %v3739_v62 = vshrl.u32 %v13506_v29, 16  ;;  %v3795_v29 = vshrl.u32 %v14479_v43, 16 }
 0x1f6   :  { %11538 = vmatmul.mubr.msk.bf16.gmra.mrb[56].mxu0 %vm458_vm1, %v17396_v47  ;;  %v17404_v47 = vld [vmem:[#allocation32_spill] sm:$0xff]  ;;  %v3744_v1 = vrot.slane %v3742_v21, 1  ;;  %v3807_v21 = vrot.slane %v3805_v14, 1 }
 0x1f7   :  { %11541 = vmatprep.mubr.msk.bf16.mxu0 %vm458_vm1, %v17397_v16  ;;  %v17405_v16 = vld [vmem:[#allocation33_spill] sm:$0xff]  ;;  %v3741_v19 = vor.u32 %v3739_v62, %v3737_v7 }
 0x1f8   :  { %v3748_v55 = vor.u32 %v3746_v38, %v3744_v1  ;;  %v17413_v7 = vld [vmem:[#allocation41_spill] sm:$0xff]  ;;  %v3811_v25 = vor.u32 %v3809_v18, %v3807_v21 }
 0x1f9   :  { %v3745_v42 = vsel %vm1767_vm2, %v3741_v19, %v3744_v1 }
 0x1fa   :  { %v3752_v27 = vsel %vm1767_vm2, %v3748_v55, %v3751_v13 }
 0x1fc   :  { %11832 = vmatmul.mubr.msk.bf16.gmra.mrb[56].mxu1 %vm458_vm1, %v3689_v5  ;;  %v3753_v5 = vshrl.u32 %v13508_v22, 16 }
 0x1fd   :  { %11835 = vmatprep.mubr.msk.bf16.mxu1 %vm458_vm1, %v3696_v59  ;;  %v13509_v59 = vld [vmem:[%s17162_s1 + $0x140] sm:$0xff]  }
 0x1fe   :  { %11542 = vmatmul.mubr.msk.bf16.gmra.mrb[60].mxu0 %vm458_vm1, %v17398_v39  ;;  %v3760_v30 = vshrl.u32 %v13509_v59, 16  ;;  %v17407_v39 = vld [vmem:[#allocation35_spill] sm:$0xff]  ;;  %v3755_v58 = vor.u32 %v3753_v5, %v3751_v13  ;;  %v17414_v13 = vld [vmem:[#allocation42_spill] sm:$0xff]  ;;  %v13338_v59 = vld [vmem:[%s17162_s1 + $0x194] sm:$0xff]  }
 0x1ff   :  { %11545 = vmatprep.mubr.msk.bf16.mxu0 %vm458_vm1, %v17399_v51 }
 0x200   :  { %v3762_v51 = vor.u32 %v3760_v30, %v3758_v3  ;;  %v3759_v31 = vsel %vm1767_vm2, %v3755_v58, %v3758_v3  ;;  %v6551_v30 = vshll.u32 %v13341_v53, 16  ;;  %v13342_v3 = vld [vmem:[%s17162_s1 + $0x19c] sm:$0xff]   ;;  %v6555_v58 = vshrl.u32 %v13341_v53, 16 }
 0x202   :  { %v3766_v2 = vsel %vm1767_vm2, %v3762_v51, %v3765_v32  ;;  %v17415_v32 = vld [vmem:[#allocation2_spill] sm:$0xff]  ;;  %v6553_v37 = vrot.slane %v6551_v30, 1  ;;  %v13355_v30 = vld [vmem:[%s17162_s1 + $0x1d4] sm:$0xff]  }
 0x204   :  { %11836 = vmatmul.mubr.msk.bf16.gmra.mrb[60].mxu1 %vm458_vm1, %v3703_v11  ;;  %v3774_v11 = vshrl.u32 %v14408_v10, 16  ;;  %v3773_v10 = vsel %vm1767_vm2, %v3769_v40, %v3772_v24  ;;  %v13346_v40 = vld [vmem:[%s17162_s1 + $0x1ac] sm:$0xff]  }
 0x205   :  { %11839 = vmatprep.mubr.msk.bf16.mxu1 %vm458_vm1, %v3710_v9  ;;  %v17408_v9 = vld [vmem:[#allocation36_spill] sm:$0xff] }
 0x206   :  { %11546 = vmatmul.mubr.msk.bf16.gmra.mrb[64].mxu0 %vm458_vm1, %v17400_v50  ;;  %v3776_v50 = vor.u32 %v3774_v11, %v3772_v24  ;;  %v13343_v24 = vld [vmem:[%s17162_s1 + $0x1a4] sm:$0xff]  }
 0x207   :  { %11549 = vmatprep.mubr.msk.bf16.mxu0 %vm458_vm1, %v17401_v57  ;;  %v3781_v57 = vshrl.u32 %v14432_v33, 16  ;;  %v3793_v33 = vrot.slane %v3791_v56, 1 }
 0x208   :  { %v3780_v8 = vsel %vm1767_vm2, %v3776_v50, %v3779_v26 }
 0x209   :  { %v3783_v48 = vor.u32 %v3781_v57, %v3779_v26  ;;  %v3797_v43 = vor.u32 %v3795_v29, %v3793_v33  ;;  %v6572_v57 = vshll.u32 %v13348_v44, 16 }
 0x20b   :  { %v3787_v12 = vsel %vm1767_vm2, %v3783_v48, %v3786_v28  ;;  %v3801_v38 = vsel %vm1767_vm2, %v3797_v43, %v3800_v46  ;;  %v13347_v48 = vld [vmem:[%s17162_s1 + $0x1b4] sm:$0xff]  }
 0x20c   :  { %11840 = vmatmul.mubr.msk.bf16.gmra.mrb[64].mxu1 %vm458_vm1, %v3717_v0  ;;  %v17411_v0 = vld [vmem:[#allocation39_spill] sm:$0xff] }
 0x20d   :  { %11843 = vmatprep.mubr.msk.bf16.mxu1 %vm458_vm1, %v3724_v63  ;;  %v3790_v63 = vor.u32 %v3788_v49, %v3786_v28  ;;  %v13349_v49 = vld [vmem:[%s17163_s0 + $0x1bc] sm:$0xff]   ;;  %v6574_v28 = vrot.slane %v6572_v57, 1 }
 0x20e   :  { %11550 = vmatmul.mubr.msk.bf16.gmra.mrb[68].mxu0 %vm458_vm1, %v17402_v15  ;;  %v3802_v15 = vshrl.u32 %v14485_v54, 16  ;;  %v13336_v54 = vld [vmem:[%s17162_s1 + $0x180] ss:$0 sps:$4 sm:$0x11]  }
 0x20f   :  { %11553 = vmatprep.mubr.msk.bf16.mxu0 %vm458_vm1, %v17403_v23  ;;  %v3794_v52 = vsel %vm1767_vm2, %v3790_v63, %v3793_v33  ;;  %v13339_v23 = vld [vmem:[%s17163_s0 + $0x18c] sm:$0xff]   ;;  %v6579_v63 = vshll.u32 %v13349_v49, 16  ;;  %v13350_v33 = vld [vmem:[%s17162_s1 + $0x1bc] sm:$0xff]  }
 0x210   :  { %v3804_v60 = vor.u32 %v3802_v15, %v3800_v46  ;;  %v6540_v62 = vshll.u32 %v13339_v23, 16 }
 0x211   :  { %v6581_v14 = vrot.slane %v6579_v63, 1  ;;  %v15386_v63 = vld [vmem:[%s17163_s0 + $0x1f4] sm:$0xff]  }
 0x212   :  { %v3808_v1 = vsel %vm1767_vm2, %v3804_v60, %v3807_v21  ;;  %v6542_v19 = vrot.slane %v6540_v62, 1  ;;  %v13351_v21 = vld [vmem:[%s17162_s1 + $0x1c4] sm:$0xff]  }
 0x214   :  { %11844 = vmatmul.mubr.msk.bf16.gmra.mrb[68].mxu1 %vm458_vm1, %v3731_v20  ;;  %v13340_v20 = vld [vmem:[%s17163_s0 + $0x194] sm:$0xff]  }
 0x215   :  { %11847 = vmatprep.mubr.msk.bf16.mxu1 %vm458_vm1, %v3738_v45  ;;  %v13337_v45 = vld [vmem:[%s17162_s1 + $0x18c] sm:$0xff]   ;;  %v6544_v55 = vshll.u32 %v13340_v20, 16 }
 0x216   :  { %11554 = vmatmul.mubr.msk.bf16.gmra.mrb[72].mxu0 %vm458_vm1, %v17404_v47  ;;  %v3813_v47 = vshll.u32 %v13336_v54, 16  ;;  %v13356_v54 = vld [vmem:[%s17163_s0 + $0x1d4] sm:$0xff]  }
 0x217   :  { %11557 = vmatprep.mubr.msk.bf16.mxu0 %vm458_vm1, %v17405_v16  ;;  %v6538_v16 = vshrl.u32 %v13339_v23, 16  ;;  %v6546_v5 = vrot.slane %v6544_v55, 1  ;;  %v13353_v23 = vld [vmem:[%s17163_s0 + $0x1cc] sm:$0xff]   ;;  %v13357_v55 = vld [vmem:[%s17163_s0 + $0x1dc] sm:$0xff]  }
 0x218   :  { %v6593_v62 = vshll.u32 %v13353_v23, 16 }
 0x219   :  { %v6543_v22 = vor.u32 %v6542_v19, %v6538_v16  ;;  %v6597_v16 = vshrl.u32 %v13353_v23, 16  ;;  %v6600_v19 = vshll.u32 %v13356_v54, 16 }
 0x21c   :  { %11848 = vmatmul.mubr.msk.bf16.gmra.mrb[72].mxu1 %vm458_vm1, %v3745_v42  ;;  %v3815_v42 = vrot.slane %v3813_v47, 1 }
 0x21d   :  { %11851 = vmatprep.mubr.msk.bf16.mxu1 %vm458_vm1, %v3752_v27  ;;  %v13344_v27 = vld [vmem:[%s17163_s0 + $0x1a4] sm:$0xff]  }
 0x21e   :  { %11558 = vmatmul.mubr.msk.bf16.gmra.mrb[76].mxu0 %vm458_vm1, %v17406_v17  ;;  %v3816_v61 = vsel %vm1767_vm2, %v3811_v25, %v3815_v42  ;;  %v6548_v17 = vshrl.u32 %v13340_v20, 16  ;;  %v6558_v51 = vshll.u32 %v13344_v27, 16  ;;  %v6562_v26 = vshrl.u32 %v13344_v27, 16  ;;  %v15347_v25 = vld [vmem:[%s17163_s0 + $0x1e4] sm:$0xff]  }
 0x21f   :  { %11561 = vmatprep.mubr.msk.bf16.mxu0 %vm458_vm1, %v17407_v39  ;;  %v15253_v39 = vsel %vm1767_vm2, %v6543_v22, %v6546_v5 }
 0x220   :  { %v6550_v36 = vor.u32 %v6548_v17, %v6546_v5  ;;  %v6560_v11 = vrot.slane %v6558_v51, 1  ;;  %v6602_v5 = vrot.slane %v6600_v19, 1  ;;  %v15357_v17 = vld [vmem:[%s17164_s3] ss:$0 sm:$0xff]  ;;  %v6604_v51 = vshrl.u32 %v13356_v54, 16 }
 0x222   :  { %v15278_v50 = vsel %vm1767_vm2, %v6550_v36, %v6553_v37  ;;  %v6564_v56 = vor.u32 %v6562_v26, %v6560_v11 }
 0x224   :  { %11852 = vmatmul.mubr.msk.bf16.gmra.mrb[76].mxu1 %vm458_vm1, %v3759_v31  ;;  %v13345_v31 = vld [vmem:[%s17163_s0 + $0x1ac] sm:$0xff]  }
 0x225   :  { %11855 = vmatprep.mubr.msk.bf16.mxu1 %vm458_vm1, %v3766_v2  ;;  %v6557_v2 = vor.u32 %v6555_v58, %v6553_v37 }
 0x226   :  { %11562 = vmatmul.mubr.msk.bf16.gmra.mrb[80].mxu0 %vm458_vm1, %v17408_v9  ;;  %v13510_v9 = vld [vmem:[%s17161_s2 + $0x8] sm:$0xf] }
 0x227   :  { %11565 = vmatprep.mubr.msk.bf16.mxu0 %vm458_vm1, %v17409_v34  ;;  %v6565_v34 = vshll.u32 %v13345_v31, 16  ;;  %v15281_v4 = vsel %vm1767_vm2, %v6557_v2, %v6560_v11  ;;  %v6611_v11 = vshrl.u32 %v13357_v55, 16 }
 0x228   :  { %17416 = vst [vmem:[#allocation3_spill] sm:$0xff] %v15281_v4 }
 0x22c   :  { %11856 = vmatmul.mubr.msk.bf16.gmra.mrb[80].mxu1 %vm458_vm1, %v3773_v10  ;;  %v6569_v10 = vshrl.u32 %v13345_v31, 16 }
 0x22d   :  { %11859 = vmatprep.mubr.msk.bf16.mxu1 %vm458_vm1, %v3780_v8  ;;  %v6567_v8 = vrot.slane %v6565_v34, 1 }
 0x22e   :  { %11566 = vmatmul.mubr.msk.bf16.gmra.mrb[84].mxu0 %vm458_vm1, %v17410_v6 }
 0x22f   :  { %11569 = vmatprep.mubr.msk.bf16.mxu0 %vm458_vm1, %v17411_v0  ;;  %v6571_v6 = vor.u32 %v6569_v10, %v6567_v8  ;;  %v13352_v0 = vld [vmem:[%s17163_s0 + $0x1c4] sm:$0xff]   ;;  %v15304_v41 = vsel %vm1767_vm2, %v6564_v56, %v6567_v8  ;;  %v6606_v8 = vor.u32 %v6604_v51, %v6602_v5 }
 0x230   :  { %17417 = vst [vmem:[#allocation44_spill] sm:$0xff] %v15304_v41  ;;  %v6586_v15 = vshll.u32 %v13352_v0, 16  ;;  %v6590_v47 = vshrl.u32 %v13352_v0, 16 }
 0x231   :  { %v15307_v29 = vsel %vm1767_vm2, %v6571_v6, %v6574_v28 }
 0x232   :  { %17418 = vst [vmem:[#allocation45_spill] sm:$0xff] %v15307_v29  ;;  %v6588_v43 = vrot.slane %v6586_v15, 1 }
 0x234   :  { %11860 = vmatmul.mubr.msk.bf16.gmra.mrb[84].mxu1 %vm458_vm1, %v3787_v12  ;;  %v6576_v12 = vshrl.u32 %v13348_v44, 16  ;;  %v6592_v53 = vor.u32 %v6590_v47, %v6588_v43  ;;  %v6614_v44 = vshll.u32 %v15347_v25, 16 }
 0x235   :  { %11863 = vmatprep.mubr.msk.bf16.mxu1 %vm458_vm1, %v3794_v52  ;;  %v6583_v52 = vshrl.u32 %v13349_v49, 16  ;;  %v13361_v49 = vld [vmem:[%s17163_s0 + $0x1ec] sm:$0xff]  }
 0x236   :  { %11570 = vmatmul.mubr.msk.bf16.gmra.mrb[88].mxu0 %vm458_vm1, %v17412_v35  ;;  %v6578_v35 = vor.u32 %v6576_v12, %v6574_v28  ;;  %v6616_v28 = vrot.slane %v6614_v44, 1  ;;  %v6625_v19 = vshrl.u32 %v13361_v49, 16  ;;  %v6632_v44 = vshrl.u32 %v15386_v63, 16 }
 0x237   :  { %11573 = vmatprep.mubr.msk.bf16.mxu0 %vm458_vm1, %v17413_v7  ;;  %v6585_v7 = vor.u32 %v6583_v52, %v6581_v14  ;;  %v13359_v52 = vld [vmem:[%s17162_s1 + $0x1e4] sm:$0xff]  }
 0x238   :  { %v15330_v18 = vsel %vm1767_vm2, %v6578_v35, %v6581_v14 }
 0x239   :  { %17419 = vst [vmem:[#allocation4_spill] sm:$0xff] %v15330_v18 }
 0x23c   :  { %11864 = vmatmul.mubr.msk.bf16.gmra.mrb[88].mxu1 %vm458_vm1, %v3801_v38 }
 0x23d   :  { %11867 = vmatprep.mubr.msk.bf16.mxu1 %vm458_vm1, %v3808_v1  ;;  %v15333_v1 = vsel %vm1767_vm2, %v6585_v7, %v6588_v43  ;;  %v6621_v7 = vshll.u32 %v13361_v49, 16  ;;  %v13362_v43 = vld [vmem:[%s17162_s1 + $0x1ec] sm:$0xff]  }
 0x23e   :  { %11574 = vmatmul.mubr.msk.bf16.gmra.mrb[92].mxu0 %vm458_vm1, %v17414_v13  ;;  %17420 = vst [vmem:[#allocation5_spill] sm:$0xff] %v15333_v1  ;;  %v6595_v13 = vrot.slane %v6593_v62, 1 }
 0x23f   :  { %11873 = vmatprep.mubr.msk.bf16.mxu0 %vm458_vm1, %v13337_v45  ;;  %v13354_v45 = vld [vmem:[%s17162_s1 + $0x1cc] sm:$0xff]  }
 0x240   :  { %v6599_v22 = vor.u32 %v6597_v16, %v6595_v13  ;;  %v15365_v2 = vsel %vm1767_vm2, %v6592_v53, %v6595_v13  ;;  %v6623_v53 = vrot.slane %v6621_v7, 1 }
 0x241   :  { %17421 = vst [vmem:[#allocation46_spill] sm:$0xff] %v15365_v2 }
 0x242   :  { %v15369_v34 = vsel %vm1767_vm2, %v6599_v22, %v6602_v5 }
 0x243   :  { %17422 = vst [vmem:[#allocation47_spill] sm:$0xff] %v15369_v34 }
 0x244   :  { %11868 = vmatmul.mubr.msk.bf16.gmra.mrb[92].mxu1 %vm458_vm1, %v3816_v61  ;;  %v6607_v61 = vshll.u32 %v13357_v55, 16  ;;  %v6628_v55 = vshll.u32 %v15386_v63, 16  ;;  %v13369_v63 = vld [vmem:[%s17163_s0 + $0x20c] sm:$0xff]  }
 0x245   :  { %12167 = vmatprep.mubr.msk.bf16.mxu1 %vm458_vm1, %v15253_v39 }
 0x246   :  { %11874 = vmatmul.mubr.msk.bf16.vlgmr.msra.gmra.mrb[96].mxu0 %vm458_vm1, %v13338_v59  ;;  %v6609_v10 = vrot.slane %v6607_v61, 1  ;;  %v15422_v61 = vld [vmem:[%s17163_s0 + $0x204] sm:$0xff]  }
 0x247   :  { %11970 = vmatpush3.bf16.msra.mxu0 %v17415_v32  ;;  %11877 = vmatprep.mubr.msk.bf16.mxu0 %vm458_vm1, %v13342_v3 }
 0x248   :  { %13235 = vmatprep.subr.msk.bf16.mxu0 %vm603_vm0, %v13510_v9  ;;  %v6613_v6 = vor.u32 %v6611_v11, %v6609_v10 }
 0x24a   :  { %v15400_v62 = vsel %vm1767_vm2, %v6613_v6, %v6616_v28 }
 0x24b   :  { %17424 = vst [vmem:[#allocation7_spill] sm:$0xff] %v15400_v62 }
 0x24c   :  { %12168 = vmatmul.mubr.msk.bf16.vlgmr.msra.gmra.mrb[96].mxu1 %vm458_vm1, %v15278_v50 }
 0x24d   :  { %12264 = vmatpush3.bf16.msra.mxu1 %v17415_v32  ;;  %12171 = vmatprep.mubr.msk.bf16.mxu1 %vm458_vm1, %v15281_v4  ;;  %v13358_v32 = vld [vmem:[%s17162_s1 + $0x1dc] sm:$0xff]  }
 0x24e   :  { %11878 = vmatmul.mubr.msk.bf16.gmra.mrb[100].mxu0 %vm458_vm1, %v13343_v24  ;;  %13238 = vmatprep.subr.msk.bf16.mxu1 %vm603_vm0, %v13510_v9 }
 0x24f   :  { %11881 = vmatprep.mubr.msk.bf16.mxu0 %vm458_vm1, %v13346_v40 }
 0x254   :  { %12172 = vmatmul.mubr.msk.bf16.gmra.mrb[100].mxu1 %vm458_vm1, %v15304_v41 }
 0x255   :  { %12175 = vmatprep.mubr.msk.bf16.mxu1 %vm458_vm1, %v15307_v29 }
 0x256   :  { %11882 = vmatmul.mubr.msk.bf16.gmra.mrb[104].mxu0 %vm458_vm1, %v13347_v48 }
 0x257   :  { %11885 = vmatprep.mubr.msk.bf16.mxu0 %vm458_vm1, %v13350_v33 }
 0x259   :  { %v11483_v46 = vpop.f32.mrb[0].mxu0 }
 0x25a   :  { %v2289_v60 = vpop.f32.mrb[1].mxu0  ;;  %v15393_v46 = vsel %vm1767_vm2, %v6606_v8, %v6609_v10 }
 0x25b   :  { %v11484_v20 = vpop.f32.mrb[2].mxu0  ;;  %17423 = vst [vmem:[#allocation6_spill] sm:$0xff] %v15393_v46 }
 0x25c   :  { %v15327_v38 = vpop.f32.mrb[3].mxu0  ;;  %12176 = vmatmul.mubr.msk.bf16.gmra.mrb[104].mxu1 %vm458_vm1, %v15330_v18 }
 0x25d   :  { %12179 = vmatprep.mubr.msk.bf16.mxu1 %vm458_vm1, %v15333_v1 }
 0x25e   :  { %11886 = vmatmul.mubr.msk.bf16.gmra.mrb[108].mxu0 %vm458_vm1, %v13351_v21 }
 0x25f   :  { %11889 = vmatprep.mubr.msk.bf16.mxu0 %vm458_vm1, %v13354_v45  ;;  %v11777_v27 = vpop.f32.mrb[0].mxu1  ;;  %v6618_v45 = vshrl.u32 %v15347_v25, 16  ;;  %v13365_v25 = vld [vmem:[%s17163_s0 + $0x1fc] sm:$0xff]  }
 0x260   :  { %v3995_v3 = vpop.f32.mrb[1].mxu1  ;;  %v6639_v6 = vshrl.u32 %v13365_v25, 16 }
 0x261   :  { %v15349_v42 = vpop.f32.mrb[4].mxu0  ;;  %v4410_v37 = vmax.f32 %v2289_v60, %v3995_v3  ;;  %v11778_v31 = vpop.f32.mrb[2].mxu1  ;;  %v6620_v5 = vor.u32 %v6618_v45, %v6616_v28  ;;  %v6642_v28 = vshll.u32 %v15422_v61, 16 }
 0x262   :  { %v2304_v59 = vpop.f32.mrb[5].mxu0  ;;  %v4412_v9 = vmax.f32 %v11484_v20, %v11778_v31  ;;  %v3998_v24 = vpop.f32.mrb[3].mxu1 }
 0x263   :  { %v15359_v58 = vpop.f32.mrb[6].mxu0  ;;  %v4480_v40 = vadd.f32 %v15357_v17, %v4410_v37  ;;  %v4411_v26 = vmax.f32 %v15327_v38, %v3998_v24  ;;  %v13366_v24 = vld [vmem:[%s17162_s1 + $0x1fc] sm:$0xff]  }
 0x264   :  { %v2307_v36 = vpop.f32.mrb[7].mxu0  ;;  %v4482_v57 = vadd.f32 %v15357_v17, %v4412_v9  ;;  %12180 = vmatmul.mubr.msk.bf16.gmra.mrb[108].mxu1 %vm458_vm1, %v15365_v2  ;;  %v6635_v9 = vshll.u32 %v13365_v25, 16  ;;  %v13370_v25 = vld [vmem:[%s17162_s1 + $0x20c] sm:$0xff]  }
 0x265   :  { %v4544_v56 = vmax.f32 %v4480_v40, 0.0  ;;  %12183 = vmatprep.mubr.msk.bf16.mxu1 %vm458_vm1, %v15369_v34  ;;  %v4481_v54 = vadd.f32 %v15357_v17, %v4411_v26 }
 0x266   :  { %11890 = vmatmul.mubr.msk.bf16.gmra.mrb[112].mxu0 %vm458_vm1, %v13355_v30  ;;  %v4546_v0 = vmax.f32 %v4482_v57, 0.0  ;;  %v6630_v30 = vrot.slane %v6628_v55, 1  ;;  %v15435_v57 = vsel %vm1767_vm2, %v6620_v5, %v6623_v53 }
 0x267   :  { %11893 = vmatprep.mubr.msk.bf16.mxu0 %vm458_vm1, %v13358_v32  ;;  %v11781_v33 = vpop.f32.mrb[4].mxu1  ;;  %v13363_v32 = vld [vmem:[%s17162_s1 + $0x1f4] sm:$0xff]   ;;  %17425 = vst [vmem:[#allocation48_spill] sm:$0xff] %v15435_v57 }
 0x268   :  { %v4608_v15 = vmax.f32 %v4544_v56, %v4546_v0  ;;  %v4414_v14 = vmax.f32 %v15349_v42, %v11781_v33  ;;  %v4010_v23 = vpop.f32.mrb[5].mxu1  ;;  %v4545_v42 = vmax.f32 %v4481_v54, 0.0  ;;  %v6644_v54 = vrot.slane %v6642_v28, 1  ;;  %v13371_v28 = vld [vmem:[%s17162_s1 + $0x214] sm:$0xff]  }
 0x269   :  { %v11491_v48 = vpop.f32.mrb[8].mxu0  ;;  %v4413_v60 = vmax.f32 %v2304_v59, %v4010_v23  ;;  %v11782_v21 = vpop.f32.mrb[6].mxu1  ;;  %v6627_v59 = vor.u32 %v6625_v19, %v6623_v53  ;;  %v15460_v23 = vld [vmem:[%s17163_s0 + $0x214] sm:$0xff]   ;;  %v6646_v53 = vshrl.u32 %v15422_v61, 16 }
 0x26a   :  { %v2319_v12 = vpop.f32.mrb[9].mxu0  ;;  %v10631_v38 = vpack.c.bf16 %v4608_v15, %v4608_v15  ;;  %v4415_v47 = vmax.f32 %v15359_v58, %v11782_v21  ;;  %v4013_v16 = vpop.f32.mrb[7].mxu1  ;;  %v4484_v0 = vadd.f32 %v15357_v17, %v4414_v14  ;;  %v6637_v15 = vrot.slane %v6635_v9, 1 }
 0x26b   :  { %v11492_v35 = vpop.f32.mrb[10].mxu0  ;;  %v4483_v13 = vadd.f32 %v15357_v17, %v4413_v60  ;;  %v15439_v56 = vsel %vm1767_vm2, %v6627_v59, %v6630_v30  ;;  %v6653_v59 = vshrl.u32 %v13369_v63, 16 }
 0x26c   :  { %v2321_v20 = vpop.f32.mrb[11].mxu0  ;;  %4769 = vst.msk [vmem:[%s17165_s4] sm:$0xf] %vm4768_vm3, %v10631_v38  ;;  %12184 = vmatmul.mubr.msk.bf16.gmra.mrb[112].mxu1 %vm458_vm1, %v15393_v46  ;;  %v4485_v37 = vadd.f32 %v15357_v17, %v4415_v47  ;;  %17426 = vst [vmem:[#allocation49_spill] sm:$0xff] %v15439_v56  ;;  %v4548_v60 = vmax.f32 %v4484_v0, 0.0  ;;  %v13367_v38 = vld [vmem:[%s17162_s1 + $0x204] sm:$0xff]  }
 0x26d   :  { %v4547_v22 = vmax.f32 %v4483_v13, 0.0  ;;  %12187 = vmatprep.mubr.msk.bf16.mxu1 %vm458_vm1, %v15400_v62  ;;  %v6649_v47 = vshll.u32 %v13369_v63, 16 }
 0x26e   :  { %11894 = vmatmul.mubr.msk.bf16.gmra.mrb[116].mxu0 %vm458_vm1, %v13359_v52  ;;  %v4549_v33 = vmax.f32 %v4485_v37, 0.0  ;;  %v6634_v52 = vor.u32 %v6632_v44, %v6630_v30  ;;  %v6656_v30 = vshll.u32 %v15460_v23, 16  ;;  %v6648_v44 = vor.u32 %v6646_v53, %v6644_v54 }
 0x26f   :  { %11897 = vmatprep.mubr.msk.bf16.mxu0 %vm458_vm1, %v13362_v43  ;;  %v4609_v3 = vmax.f32 %v4545_v42, %v4547_v22  ;;  %v11785_v58 = vpop.f32.mrb[8].mxu1  ;;  %v6641_v43 = vor.u32 %v6639_v6, %v6637_v15 }
 0x270   :  { %v4417_v31 = vmax.f32 %v11491_v48, %v11785_v58  ;;  %v4025_v36 = vpop.f32.mrb[9].mxu1  ;;  %v15470_v13 = vsel %vm1767_vm2, %v6634_v52, %v6637_v15  ;;  %v13374_v15 = vld [vmem:[%s17162_s1 + $0x21c] sm:$0xff]  }
 0x271   :  { %v11495_v27 = vpop.f32.mrb[12].mxu0  ;;  %v10632_v40 = vpack.c.bf16 %v4609_v3, %v4609_v3  ;;  %v11786_v26 = vpop.f32.mrb[10].mxu1  ;;  %17427 = vst [vmem:[#allocation8_spill] sm:$0xff] %v15470_v13  ;;  %v15482_v61 = vsel %vm1767_vm2, %v6641_v43, %v6644_v54 }
 0x272   :  { %v2333_v51 = vpop.f32.mrb[13].mxu0  ;;  %v4487_v8 = vadd.f32 %v15357_v17, %v4417_v31  ;;  %v4027_v49 = vpop.f32.mrb[11].mxu1  ;;  %17428 = vst [vmem:[#allocation9_spill] sm:$0xff] %v15482_v61  ;;  %v6651_v31 = vrot.slane %v6649_v47, 1 }
 0x273   :  { %v11496_v11 = vpop.f32.mrb[14].mxu0  ;;  %4770 = vst.msk [vmem:[%s17165_s4 + $0x4] sm:$0xf] %vm4768_vm3, %v10632_v40  ;;  %v4416_v48 = vmax.f32 %v2321_v20, %v4027_v49  ;;  %v6658_v40 = vrot.slane %v6656_v30, 1 }
 0x274   :  { %v15432_v10 = vpop.f32.mrb[15].mxu0  ;;  %v4551_v12 = vmax.f32 %v4487_v8, 0.0  ;;  %12188 = vmatmul.mubr.msk.bf16.gmra.mrb[116].mxu1 %vm458_vm1, %v15435_v57  ;;  %v15503_v8 = vld [vmem:[%s17163_s0 + $0x224] sm:$0xff]  }
 0x275   :  { %v4486_v14 = vadd.f32 %v15357_v17, %v4416_v48  ;;  %12191 = vmatprep.mubr.msk.bf16.mxu1 %vm458_vm1, %v15439_v56 }
 0x276   :  { %11898 = vmatmul.mubr.msk.bf16.gmra.mrb[120].mxu0 %vm458_vm1, %v13363_v32  ;;  %v4611_v35 = vmax.f32 %v4549_v33, %v4551_v12  ;;  %v15510_v12 = vsel %vm1767_vm2, %v6648_v44, %v6651_v31 }
 0x277   :  { %11901 = vmatprep.mubr.msk.bf16.mxu0 %vm458_vm1, %v13366_v24  ;;  %v4550_v21 = vmax.f32 %v4486_v14, 0.0  ;;  %v11789_v20 = vpop.f32.mrb[12].mxu1  ;;  %v6655_v24 = vor.u32 %v6653_v59, %v6651_v31  ;;  %17429 = vst [vmem:[#allocation50_spill] sm:$0xff] %v15510_v12 }
 0x278   :  { %v10634_v16 = vpack.c.bf16 %v4611_v35, %v4611_v35  ;;  %v4039_v19 = vpop.f32.mrb[13].mxu1 }
 0x279   :  { %v15462_v7 = vpop.f32.mrb[16].mxu0  ;;  %v4610_v42 = vmax.f32 %v4548_v60, %v4550_v21  ;;  %v4418_v22 = vmax.f32 %v2333_v51, %v4039_v19  ;;  %v11790_v5 = vpop.f32.mrb[14].mxu1  ;;  %v15517_v60 = vsel %vm1767_vm2, %v6655_v24, %v6658_v40 }
 0x27a   :  { %v2348_v45 = vpop.f32.mrb[17].mxu0  ;;  %4772 = vst.msk [vmem:[%s17165_s4 + $0xc] sm:$0xf] %vm4768_vm3, %v10634_v16  ;;  %v4420_v3 = vmax.f32 %v11496_v11, %v11790_v5  ;;  %v4042_v58 = vpop.f32.mrb[15].mxu1  ;;  %v13373_v11 = vld [vmem:[%s17163_s0 + $0x21c] sm:$0xff]   ;;  %17430 = vst [vmem:[#allocation51_spill] sm:$0xff] %v15517_v60 }
 0x27b   :  { %v15467_v55 = vpop.f32.mrb[18].mxu0  ;;  %v10633_v32 = vpack.c.bf16 %v4610_v42, %v4610_v42  ;;  %v4488_v37 = vadd.f32 %v15357_v17, %v4418_v22  ;;  %v4419_v51 = vmax.f32 %v15432_v10, %v4042_v58  ;;  %v6663_v52 = vshll.u32 %v13373_v11, 16  ;;  %v13375_v58 = vld [vmem:[%s17162_s1 + $0x224] sm:$0xff]  }
 0x27c   :  { %v2351_v27 = vpop.f32.mrb[19].mxu0  ;;  %v4490_v36 = vadd.f32 %v15357_v17, %v4420_v3  ;;  %12192 = vmatmul.mubr.msk.bf16.gmra.mrb[120].mxu1 %vm458_vm1, %v15470_v13  ;;  %v6667_v47 = vshrl.u32 %v13373_v11, 16  ;;  %v6670_v16 = vshll.u32 %v15503_v8, 16  ;;  %v13378_v11 = vld [vmem:[%s17162_s1 + $0x22c] sm:$0xff]  }
 0x27d   :  { %4771 = vst.msk [vmem:[%s17165_s4 + $0x8] sm:$0xf] %vm4768_vm3, %v10633_v32  ;;  %v4552_v9 = vmax.f32 %v4488_v37, 0.0  ;;  %12195 = vmatprep.mubr.msk.bf16.mxu1 %vm458_vm1, %v15482_v61  ;;  %v4489_v14 = vadd.f32 %v15357_v17, %v4419_v51  ;;  %v15539_v27 = vld [vmem:[%s17163_s0 + $0x234] sm:$0xff]  }
 0x27e   :  { %11902 = vmatmul.mubr.msk.bf16.gmra.mrb[124].mxu0 %vm458_vm1, %v13367_v38  ;;  %v4554_v26 = vmax.f32 %v4490_v36, 0.0  ;;  %v6672_v5 = vrot.slane %v6670_v16, 1  ;;  %v6674_v36 = vshrl.u32 %v15503_v8, 16  ;;  %v6684_v8 = vshll.u32 %v15539_v27, 16 }
 0x27f   :  { %11905 = vmatprep.mubr.msk.bf16.mxu0 %vm458_vm1, %v13370_v25  ;;  %v11793_v49 = vpop.f32.mrb[16].mxu1 }
 0x280   :  { %v4612_v0 = vmax.f32 %v4552_v9, %v4554_v26  ;;  %v4422_v48 = vmax.f32 %v15462_v7, %v11793_v49  ;;  %v4054_v63 = vpop.f32.mrb[17].mxu1  ;;  %v6660_v7 = vshrl.u32 %v15460_v23, 16  ;;  %v6665_v23 = vrot.slane %v6663_v52, 1 }
 0x281   :  { %v11503_v10 = vpop.f32.mrb[20].mxu0  ;;  %v4421_v35 = vmax.f32 %v2348_v45, %v4054_v63  ;;  %v11794_v43 = vpop.f32.mrb[18].mxu1  ;;  %v13377_v45 = vld [vmem:[%s17163_s0 + $0x22c] sm:$0xff]  }
 0x282   :  { %v2363_v6 = vpop.f32.mrb[21].mxu0  ;;  %v10635_v21 = vpack.c.bf16 %v4612_v0, %v4612_v0  ;;  %v4423_v20 = vmax.f32 %v15467_v55, %v11794_v43  ;;  %v4057_v38 = vpop.f32.mrb[19].mxu1  ;;  %v4553_v55 = vmax.f32 %v4489_v14, 0.0  ;;  %v6662_v25 = vor.u32 %v6660_v7, %v6658_v40  ;;  %v15577_v43 = vld [vmem:[%s17163_s0 + $0x244] sm:$0xff]  }
 0x283   :  { %v11504_v33 = vpop.f32.mrb[22].mxu0  ;;  %v4491_v19 = vadd.f32 %v15357_v17, %v4421_v35  ;;  %v6669_v22 = vor.u32 %v6667_v47, %v6665_v23  ;;  %v6677_v44 = vshll.u32 %v13377_v45, 16  ;;  %v4492_v0 = vadd.f32 %v15357_v17, %v4422_v48 }
 0x284   :  { %v2365_v54 = vpop.f32.mrb[23].mxu0  ;;  %4773 = vst.msk [vmem:[%s17165_s4 + $0x10] sm:$0xf] %vm4768_vm3, %v10635_v21  ;;  %12196 = vmatmul.mubr.msk.bf16.gmra.mrb[124].mxu1 %vm458_vm1, %v15510_v12  ;;  %v4493_v32 = vadd.f32 %v15357_v17, %v4423_v20  ;;  %v15552_v26 = vsel %vm1767_vm2, %v6662_v25, %v6665_v23  ;;  %v13381_v33 = vld [vmem:[%s17163_s0 + $0x23c] sm:$0xff]   ;;  %v6676_v14 = vor.u32 %v6674_v36, %v6672_v5  ;;  %v6686_v20 = vrot.slane %v6684_v8, 1  ;;  %v13379_v23 = vld [vmem:[%s17162_s1 + $0x234] sm:$0xff]  }
 0x285   :  { %v4555_v53 = vmax.f32 %v4491_v19, 0.0  ;;  %12199 = vmatprep.mubr.msk.bf16.mxu1 %vm458_vm1, %v15517_v60  ;;  %17431 = vst [vmem:[#allocation10_spill] sm:$0xff] %v15552_v26  ;;  %v6679_v35 = vrot.slane %v6677_v44, 1  ;;  %v4556_v38 = vmax.f32 %v4492_v0, 0.0 }
 0x286   :  { %11906 = vmatmul.mubr.msk.bf16.gmra.mrb[128].mxu0 %vm458_vm1, %v13371_v28  ;;  %v6681_v28 = vshrl.u32 %v13377_v45, 16  ;;  %v4557_v52 = vmax.f32 %v4493_v32, 0.0  ;;  %v6691_v45 = vshll.u32 %v13381_v33, 16 }
 0x287   :  { %11909 = vmatprep.mubr.msk.bf16.mxu0 %vm458_vm1, %v13374_v15  ;;  %v4613_v59 = vmax.f32 %v4553_v55, %v4555_v53  ;;  %v11797_v30 = vpop.f32.mrb[20].mxu1 }
 0x288   :  { %v4425_v37 = vmax.f32 %v11503_v10, %v11797_v30  ;;  %v4069_v51 = vpop.f32.mrb[21].mxu1  ;;  %v15556_v10 = vsel %vm1767_vm2, %v6669_v22, %v6672_v5  ;;  %v6683_v21 = vor.u32 %v6681_v28, %v6679_v35  ;;  %v6688_v22 = vshrl.u32 %v15539_v27, 16  ;;  %v13382_v5 = vld [vmem:[%s17162_s1 + $0x23c] sm:$0xff]  }
 0x289   :  { %v11507_v42 = vpop.f32.mrb[24].mxu0  ;;  %v10636_v9 = vpack.c.bf16 %v4613_v59, %v4613_v59  ;;  %v11798_v24 = vpop.f32.mrb[22].mxu1  ;;  %17432 = vst [vmem:[#allocation11_spill] sm:$0xff] %v15556_v10  ;;  %v6698_v51 = vshll.u32 %v15577_v43, 16 }
 0x28a   :  { %v2377_v3 = vpop.f32.mrb[25].mxu0  ;;  %v4495_v49 = vadd.f32 %v15357_v17, %v4425_v37  ;;  %v4071_v6 = vpop.f32.mrb[23].mxu1  ;;  %v15587_v42 = vsel %vm1767_vm2, %v6676_v14, %v6679_v35  ;;  %v6695_v37 = vshrl.u32 %v13381_v33, 16  ;;  %v15599_v27 = vsel %vm1767_vm2, %v6683_v21, %v6686_v20  ;;  %v15620_v33 = vld [vmem:[%s17163_s0 + $0x254] sm:$0xff]   ;;  %v13383_v14 = vld [vmem:[%s17162_s1 + $0x244] sm:$0xff]  }
 0x28b   :  { %v11508_v31 = vpop.f32.mrb[26].mxu0  ;;  %4774 = vst.msk [vmem:[%s17165_s4 + $0x14] sm:$0xf] %vm4768_vm3, %v10636_v9  ;;  %v4424_v63 = vmax.f32 %v2365_v54, %v4071_v6  ;;  %17433 = vst [vmem:[#allocation52_spill] sm:$0xff] %v15587_v42  ;;  %v6693_v24 = vrot.slane %v6691_v45, 1  ;;  %v6690_v6 = vor.u32 %v6688_v22, %v6686_v20  ;;  %v6700_v8 = vrot.slane %v6698_v51, 1 }
 0x28c   :  { %v15549_v40 = vpop.f32.mrb[27].mxu0  ;;  %v4559_v15 = vmax.f32 %v4495_v49, 0.0  ;;  %12200 = vmatmul.mubr.msk.bf16.gmra.mrb[128].mxu1 %vm458_vm1, %v15552_v26  ;;  %17434 = vst [vmem:[#allocation53_spill] sm:$0xff] %v15599_v27 }
 0x28d   :  { %v4494_v48 = vadd.f32 %v15357_v17, %v4424_v63  ;;  %12203 = vmatprep.mubr.msk.bf16.mxu1 %vm458_vm1, %v15556_v10  ;;  %v6697_v28 = vor.u32 %v6695_v37, %v6693_v24  ;;  %v15627_v20 = vsel %vm1767_vm2, %v6690_v6, %v6693_v24  ;;  %v13387_v6 = vld [vmem:[%s17162_s1 + $0x254] sm:$0xff]  }
 0x28e   :  { %11910 = vmatmul.mubr.msk.bf16.gmra.mrb[132].mxu0 %vm458_vm1, %v13375_v58  ;;  %v4615_v54 = vmax.f32 %v4557_v52, %v4559_v15  ;;  %17435 = vst [vmem:[#allocation12_spill] sm:$0xff] %v15627_v20 }
 0x28f   :  { %11913 = vmatprep.mubr.msk.bf16.mxu0 %vm458_vm1, %v13378_v11  ;;  %v4558_v47 = vmax.f32 %v4494_v48, 0.0  ;;  %v11801_v16 = vpop.f32.mrb[24].mxu1 }
 0x290   :  { %v10638_v55 = vpack.c.bf16 %v4615_v54, %v4615_v54  ;;  %v4083_v53 = vpop.f32.mrb[25].mxu1 }
 0x291   :  { %v15579_v7 = vpop.f32.mrb[28].mxu0  ;;  %v4614_v59 = vmax.f32 %v4556_v38, %v4558_v47  ;;  %v4426_v30 = vmax.f32 %v2377_v3, %v4083_v53  ;;  %v11802_v58 = vpop.f32.mrb[26].mxu1  ;;  %v13386_v47 = vld [vmem:[%s17162_s1 + $0x24c] sm:$0xff]   ;;  %v15634_v53 = vsel %vm1767_vm2, %v6697_v28, %v6700_v8 }
 0x292   :  { %v2392_v19 = vpop.f32.mrb[29].mxu0  ;;  %4776 = vst.msk [vmem:[%s17165_s4 + $0x1c] sm:$0xf] %vm4768_vm3, %v10638_v55  ;;  %v4428_v36 = vmax.f32 %v11508_v31, %v11802_v58  ;;  %v4086_v44 = vpop.f32.mrb[27].mxu1  ;;  %v13385_v31 = vld [vmem:[%s17163_s0 + $0x24c] sm:$0xff]   ;;  %17436 = vst [vmem:[#allocation13_spill] sm:$0xff] %v15634_v53 }
 0x293   :  { %v15584_v25 = vpop.f32.mrb[30].mxu0  ;;  %v10637_v11 = vpack.c.bf16 %v4614_v59, %v4614_v59  ;;  %v4496_v9 = vadd.f32 %v15357_v17, %v4426_v30  ;;  %v4427_v3 = vmax.f32 %v15549_v40, %v4086_v44  ;;  %v6705_v38 = vshll.u32 %v13385_v31, 16 }
 0x294   :  { %v2395_v32 = vpop.f32.mrb[31].mxu0  ;;  %v4498_v49 = vadd.f32 %v15357_v17, %v4428_v36  ;;  %12204 = vmatmul.mubr.msk.bf16.gmra.mrb[132].mxu1 %vm458_vm1, %v15587_v42  ;;  %v6709_v30 = vshrl.u32 %v13385_v31, 16  ;;  %v6712_v58 = vshll.u32 %v15620_v33, 16 }
 0x295   :  { %4775 = vst.msk [vmem:[%s17165_s4 + $0x18] sm:$0xf] %vm4768_vm3, %v10637_v11  ;;  %v4560_v40 = vmax.f32 %v4496_v9, 0.0  ;;  %12207 = vmatprep.mubr.msk.bf16.mxu1 %vm458_vm1, %v15599_v27  ;;  %v4497_v16 = vadd.f32 %v15357_v17, %v4427_v3  ;;  %v15656_v9 = vld [vmem:[%s17163_s0 + $0x264] sm:$0xff]  }
 0x296   :  { %11914 = vmatmul.mubr.msk.bf16.gmra.mrb[136].mxu0 %vm458_vm1, %v13379_v23  ;;  %v4562_v0 = vmax.f32 %v4498_v49, 0.0  ;;  %v6714_v11 = vrot.slane %v6712_v58, 1 }
 0x297   :  { %11917 = vmatprep.mubr.msk.bf16.mxu0 %vm458_vm1, %v13382_v5  ;;  %v11805_v52 = vpop.f32.mrb[28].mxu1 }
 0x298   :  { %v4616_v35 = vmax.f32 %v4560_v40, %v4562_v0  ;;  %v4430_v48 = vmax.f32 %v15579_v7, %v11805_v52  ;;  %v4098_v54 = vpop.f32.mrb[29].mxu1  ;;  %v6702_v7 = vshrl.u32 %v15577_v43, 16  ;;  %v6707_v43 = vrot.slane %v6705_v38, 1 }
 0x299   :  { %v11515_v63 = vpop.f32.mrb[32].mxu0  ;;  %v4429_v23 = vmax.f32 %v2392_v19, %v4098_v54  ;;  %v11806_v45 = vpop.f32.mrb[30].mxu1  ;;  %v13389_v19 = vld [vmem:[%s17163_s0 + $0x25c] sm:$0xff]   ;;  %v6716_v0 = vshrl.u32 %v15620_v33, 16  ;;  %v6726_v33 = vshll.u32 %v15656_v9, 16 }
 0x29a   :  { %v2407_v15 = vpop.f32.mrb[33].mxu0  ;;  %v10639_v22 = vpack.c.bf16 %v4616_v35, %v4616_v35  ;;  %v4431_v5 = vmax.f32 %v15584_v25, %v11806_v45  ;;  %v4101_v59 = vpop.f32.mrb[31].mxu1  ;;  %v4561_v25 = vmax.f32 %v4497_v16, 0.0  ;;  %v6704_v51 = vor.u32 %v6702_v7, %v6700_v8  ;;  %v13393_v7 = vld [vmem:[%s17163_s0 + $0x26c] sm:$0xff]  }
 0x29b   :  { %v11516_v21 = vpop.f32.mrb[34].mxu0  ;;  %v4499_v32 = vadd.f32 %v15357_v17, %v4429_v23  ;;  %v6711_v44 = vor.u32 %v6709_v30, %v6707_v43  ;;  %v6719_v52 = vshll.u32 %v13389_v19, 16  ;;  %v13390_v15 = vld [vmem:[%s17162_s1 + $0x25c] sm:$0xff]   ;;  %v6723_v16 = vshrl.u32 %v13389_v19, 16 }
 0x29c   :  { %v2409_v55 = vpop.f32.mrb[35].mxu0  ;;  %4777 = vst.msk [vmem:[%s17165_s4 + $0x20] sm:$0xf] %vm4768_vm3, %v10639_v22  ;;  %12208 = vmatmul.mubr.msk.bf16.gmra.mrb[136].mxu1 %vm458_vm1, %v15627_v20  ;;  %v4501_v31 = vadd.f32 %v15357_v17, %v4431_v5  ;;  %v15669_v21 = vsel %vm1767_vm2, %v6704_v51, %v6707_v43  ;;  %v4500_v23 = vadd.f32 %v15357_v17, %v4430_v48  ;;  %v6728_v19 = vrot.slane %v6726_v33, 1 }
 0x29d   :  { %v4563_v37 = vmax.f32 %v4499_v32, 0.0  ;;  %12211 = vmatprep.mubr.msk.bf16.mxu1 %vm458_vm1, %v15634_v53  ;;  %17437 = vst [vmem:[#allocation54_spill] sm:$0xff] %v15669_v21  ;;  %v6718_v59 = vor.u32 %v6716_v0, %v6714_v11  ;;  %v6721_v30 = vrot.slane %v6719_v52, 1 }
 0x29e   :  { %11918 = vmatmul.mubr.msk.bf16.gmra.mrb[140].mxu0 %vm458_vm1, %v13383_v14  ;;  %v4565_v22 = vmax.f32 %v4501_v31, 0.0 }
 0x29f   :  { %11921 = vmatprep.mubr.msk.bf16.mxu0 %vm458_vm1, %v13386_v47  ;;  %v4617_v3 = vmax.f32 %v4561_v25, %v4563_v37  ;;  %v11809_v24 = vpop.f32.mrb[32].mxu1  ;;  %v6725_v43 = vor.u32 %v6723_v16, %v6721_v30  ;;  %v4564_v25 = vmax.f32 %v4500_v23, 0.0  ;;  %v15704_v31 = vsel %vm1767_vm2, %v6718_v59, %v6721_v30 }
 0x2a0   :  { %v4433_v40 = vmax.f32 %v11515_v63, %v11809_v24  ;;  %v4113_v28 = vpop.f32.mrb[33].mxu1  ;;  %v15673_v63 = vsel %vm1767_vm2, %v6711_v44, %v6714_v11  ;;  %v13391_v44 = vld [vmem:[%s17162_s1 + $0x264] sm:$0xff]   ;;  %v6733_v11 = vshll.u32 %v13393_v7, 16  ;;  %17439 = vst [vmem:[#allocation15_spill] sm:$0xff] %v15704_v31 }
 0x2a1   :  { %v11519_v36 = vpop.f32.mrb[36].mxu0  ;;  %v10640_v14 = vpack.c.bf16 %v4617_v3, %v4617_v3  ;;  %v11810_v35 = vpop.f32.mrb[34].mxu1  ;;  %17438 = vst [vmem:[#allocation14_spill] sm:$0xff] %v15673_v63  ;;  %v13394_v28 = vld [vmem:[%s17162_s1 + $0x26c] sm:$0xff]  }
 0x2a2   :  { %v2421_v49 = vpop.f32.mrb[37].mxu0  ;;  %v4503_v38 = vadd.f32 %v15357_v17, %v4433_v40  ;;  %v4115_v47 = vpop.f32.mrb[35].mxu1  ;;  %v6730_v40 = vshrl.u32 %v15656_v9, 16  ;;  %v6737_v35 = vshrl.u32 %v13393_v7, 16  ;;  %v15716_v9 = vsel %vm1767_vm2, %v6725_v43, %v6728_v19 }
 0x2a3   :  { %v11520_v8 = vpop.f32.mrb[38].mxu0  ;;  %4778 = vst.msk [vmem:[%s17165_s4 + $0x24] sm:$0xf] %vm4768_vm3, %v10640_v14  ;;  %v4432_v45 = vmax.f32 %v2409_v55, %v4115_v47  ;;  %v15694_v55 = vld [vmem:[%s17163_s0 + $0x274] sm:$0xff]   ;;  %17440 = vst [vmem:[#allocation55_spill] sm:$0xff] %v15716_v9 }
 0x2a4   :  { %v15666_v54 = vpop.f32.mrb[39].mxu0  ;;  %v4567_v5 = vmax.f32 %v4503_v38, 0.0  ;;  %12212 = vmatmul.mubr.msk.bf16.gmra.mrb[140].mxu1 %vm458_vm1, %v15669_v21  ;;  %v6740_v38 = vshll.u32 %v15694_v55, 16 }
 0x2a5   :  { %v4502_v48 = vadd.f32 %v15357_v17, %v4432_v45  ;;  %12215 = vmatprep.mubr.msk.bf16.mxu1 %vm458_vm1, %v15673_v63  ;;  %v6735_v45 = vrot.slane %v6733_v11, 1 }
 0x2a6   :  { %11922 = vmatmul.mubr.msk.bf16.gmra.mrb[144].mxu0 %vm458_vm1, %v13387_v6  ;;  %v4619_v58 = vmax.f32 %v4565_v22, %v4567_v5  ;;  %v6732_v22 = vor.u32 %v6730_v40, %v6728_v19  ;;  %v6742_v59 = vrot.slane %v6740_v38, 1  ;;  %v15749_v40 = vld [vmem:[%s17162_s1 + $0x27c] sm:$0xff]  }
 0x2a7   :  { %11925 = vmatprep.mubr.msk.bf16.mxu0 %vm458_vm1, %v13390_v15  ;;  %v4566_v37 = vmax.f32 %v4502_v48, 0.0  ;;  %v11813_v51 = vpop.f32.mrb[36].mxu1  ;;  %v6739_v5 = vor.u32 %v6737_v35, %v6735_v45 }
 0x2a8   :  { %v10642_v3 = vpack.c.bf16 %v4619_v58, %v4619_v58  ;;  %v4127_v24 = vpop.f32.mrb[37].mxu1  ;;  %v15737_v58 = vld [vmem:[%s17163_s0 + $0x284] sm:$0xff]  }
 0x2a9   :  { %v15696_v32 = vpop.f32.mrb[40].mxu0  ;;  %v4618_v0 = vmax.f32 %v4564_v25, %v4566_v37  ;;  %v4434_v52 = vmax.f32 %v2421_v49, %v4127_v24  ;;  %v11814_v15 = vpop.f32.mrb[38].mxu1  ;;  %v13395_v25 = vld [vmem:[%s17162_s1 + $0x274] sm:$0xff]  }
 0x2aa   :  { %v2436_v36 = vpop.f32.mrb[41].mxu0  ;;  %4780 = vst.msk [vmem:[%s17165_s4 + $0x2c] sm:$0xf] %vm4768_vm3, %v10642_v3  ;;  %v4436_v47 = vmax.f32 %v11520_v8, %v11814_v15  ;;  %v4130_v16 = vpop.f32.mrb[39].mxu1  ;;  %v13397_v8 = vld [vmem:[%s17163_s0 + $0x27c] sm:$0xff]   ;;  %v15744_v3 = vsel %vm1767_vm2, %v6732_v22, %v6735_v45 }
 0x2ab   :  { %v15701_v6 = vpop.f32.mrb[42].mxu0  ;;  %v10641_v33 = vpack.c.bf16 %v4618_v0, %v4618_v0  ;;  %v4504_v23 = vadd.f32 %v15357_v17, %v4434_v52  ;;  %v4435_v49 = vmax.f32 %v15666_v54, %v4130_v16  ;;  %17441 = vst [vmem:[#allocation16_spill] sm:$0xff] %v15744_v3  ;;  %v6747_v24 = vshll.u32 %v13397_v8, 16 }
 0x2ac   :  { %v2439_v14 = vpop.f32.mrb[43].mxu0  ;;  %v4506_v7 = vadd.f32 %v15357_v17, %v4436_v47  ;;  %12216 = vmatmul.mubr.msk.bf16.gmra.mrb[144].mxu1 %vm458_vm1, %v15704_v31  ;;  %v6751_v16 = vshrl.u32 %v13397_v8, 16 }
 0x2ad   :  { %4779 = vst.msk [vmem:[%s17165_s4 + $0x28] sm:$0xf] %vm4768_vm3, %v10641_v33  ;;  %v4568_v54 = vmax.f32 %v4504_v23, 0.0  ;;  %12219 = vmatprep.mubr.msk.bf16.mxu1 %vm458_vm1, %v15716_v9  ;;  %v15753_v14 = vsel %vm1767_vm2, %v6739_v5, %v6742_v59  ;;  %v6754_v33 = vshll.u32 %v15737_v58, 16 }
 0x2ae   :  { %11926 = vmatmul.mubr.msk.bf16.gmra.mrb[148].mxu0 %vm458_vm1, %v13391_v44  ;;  %v4570_v30 = vmax.f32 %v4506_v7, 0.0  ;;  %17442 = vst [vmem:[#allocation17_spill] sm:$0xff] %v15753_v14 }
 0x2af   :  { %11929 = vmatprep.mubr.msk.bf16.mxu0 %vm458_vm1, %v13394_v28  ;;  %v11817_v43 = vpop.f32.mrb[40].mxu1  ;;  %v4505_v28 = vadd.f32 %v15357_v17, %v4435_v49  ;;  %v6756_v8 = vrot.slane %v6754_v33, 1 }
 0x2b0   :  { %v4620_v37 = vmax.f32 %v4568_v54, %v4570_v30  ;;  %v4438_v51 = vmax.f32 %v15696_v32, %v11817_v43  ;;  %v4142_v44 = vpop.f32.mrb[41].mxu1  ;;  %v6744_v32 = vshrl.u32 %v15694_v55, 16  ;;  %v6749_v55 = vrot.slane %v6747_v24, 1  ;;  %v15778_v54 = vld [vmem:[%s17163_s0 + $0x294] sm:$0xff]  }
 0x2b1   :  { %v11527_v48 = vpop.f32.mrb[44].mxu0  ;;  %v4437_v0 = vmax.f32 %v2436_v36, %v4142_v44  ;;  %v11818_v52 = vpop.f32.mrb[42].mxu1  ;;  %v15771_v36 = vld [vmem:[%s17163_s0 + $0x28c] sm:$0xff]  }
 0x2b2   :  { %v2451_v19 = vpop.f32.mrb[45].mxu0  ;;  %v10643_v35 = vpack.c.bf16 %v4620_v37, %v4620_v37  ;;  %v4439_v38 = vmax.f32 %v15701_v6, %v11818_v52  ;;  %v4145_v47 = vpop.f32.mrb[43].mxu1  ;;  %v4569_v6 = vmax.f32 %v4505_v28, 0.0  ;;  %v6746_v45 = vor.u32 %v6744_v32, %v6742_v59  ;;  %v15791_v28 = vld [vmem:[%s17162_s1 + $0x28c] sm:$0xff]  }
 0x2b3   :  { %v11528_v11 = vpop.f32.mrb[46].mxu0  ;;  %v4507_v23 = vadd.f32 %v15357_v17, %v4437_v0  ;;  %v6753_v22 = vor.u32 %v6751_v16, %v6749_v55  ;;  %v15783_v19 = vld [vmem:[%s17162_s1 + $0x284] sm:$0xff]   ;;  %v6761_v24 = vshll.u32 %v15771_v36, 16  ;;  %v6768_v16 = vshll.u32 %v15778_v54, 16 }
 0x2b4   :  { %v2453_v15 = vpop.f32.mrb[47].mxu0  ;;  %4781 = vst.msk [vmem:[%s17165_s4 + $0x30] sm:$0xf] %vm4768_vm3, %v10643_v35  ;;  %12220 = vmatmul.mubr.msk.bf16.gmra.mrb[148].mxu1 %vm458_vm1, %v15744_v3  ;;  %v6758_v11 = vshrl.u32 %v15737_v58, 16  ;;  %v15796_v35 = vsel %vm1767_vm2, %v6746_v45, %v6749_v55  ;;  %v6765_v58 = vshrl.u32 %v15771_v36, 16  ;;  %v4508_v33 = vadd.f32 %v15357_v17, %v4438_v51  ;;  %v15814_v55 = vld [vmem:[%s17163_s0 + $0x29c] sm:$0xff]  }
 0x2b5   :  { %v4571_v49 = vmax.f32 %v4507_v23, 0.0  ;;  %12223 = vmatprep.mubr.msk.bf16.mxu1 %vm458_vm1, %v15753_v14  ;;  %17443 = vst [vmem:[#allocation18_spill] sm:$0xff] %v15796_v35  ;;  %v15800_v47 = vsel %vm1767_vm2, %v6753_v22, %v6756_v8  ;;  %v6763_v45 = vrot.slane %v6761_v24, 1  ;;  %v15833_v24 = vld [vmem:[%s17162_s1 + $0x294] sm:$0xff]  }
 0x2b6   :  { %11930 = vmatmul.mubr.msk.bf16.gmra.mrb[152].mxu0 %vm458_vm1, %v13395_v25  ;;  %v4509_v25 = vadd.f32 %v15357_v17, %v4439_v38  ;;  %17444 = vst [vmem:[#allocation19_spill] sm:$0xff] %v15800_v47  ;;  %v6760_v51 = vor.u32 %v6758_v11, %v6756_v8  ;;  %v4572_v8 = vmax.f32 %v4508_v33, 0.0 }
 0x2b7   :  { %11933 = vmatprep.mubr.msk.bf16.mxu0 %vm458_vm1, %v15749_v40  ;;  %v4621_v5 = vmax.f32 %v4569_v6, %v4571_v49  ;;  %v11821_v30 = vpop.f32.mrb[44].mxu1 }
 0x2b8   :  { %v4441_v37 = vmax.f32 %v11527_v48, %v11821_v30  ;;  %v4157_v59 = vpop.f32.mrb[45].mxu1  ;;  %v4573_v6 = vmax.f32 %v4509_v25, 0.0  ;;  %v6767_v30 = vor.u32 %v6765_v58, %v6763_v45  ;;  %v6770_v25 = vrot.slane %v6768_v16, 1  ;;  %v15845_v16 = vld [vmem:[%s17162_s1 + $0x29c] sm:$0xff]  }
 0x2b9   :  { %v11531_v7 = vpop.f32.mrb[48].mxu0  ;;  %v10644_v0 = vpack.c.bf16 %v4621_v5, %v4621_v5  ;;  %v11822_v52 = vpop.f32.mrb[46].mxu1  ;;  %v6772_v58 = vshrl.u32 %v15778_v54, 16 }
 0x2ba   :  { %v2465_v43 = vpop.f32.mrb[49].mxu0  ;;  %v4511_v48 = vadd.f32 %v15357_v17, %v4441_v37  ;;  %v4159_v38 = vpop.f32.mrb[47].mxu1  ;;  %v15826_v7 = vld [vmem:[%s17163_s0 + $0x2a4] sm:$0xff]  }
 0x2bb   :  { %v11532_v44 = vpop.f32.mrb[50].mxu0  ;;  %4782 = vst.msk [vmem:[%s17165_s4 + $0x34] sm:$0xf] %vm4768_vm3, %v10644_v0  ;;  %v4440_v23 = vmax.f32 %v2453_v15, %v4159_v38  ;;  %v6775_v0 = vshll.u32 %v15814_v55, 16 }
 0x2bc   :  { %v15793_v32 = vpop.f32.mrb[51].mxu0  ;;  %v4575_v49 = vmax.f32 %v4511_v48, 0.0  ;;  %12224 = vmatmul.mubr.msk.bf16.gmra.mrb[152].mxu1 %vm458_vm1, %v15796_v35 }
 0x2bd   :  { %v4510_v15 = vadd.f32 %v15357_v17, %v4440_v23  ;;  %12227 = vmatprep.mubr.msk.bf16.mxu1 %vm458_vm1, %v15800_v47  ;;  %v15839_v23 = vsel %vm1767_vm2, %v6760_v51, %v6763_v45  ;;  %v15854_v47 = vsel %vm1767_vm2, %v6767_v30, %v6770_v25 }
 0x2be   :  { %11934 = vmatmul.mubr.msk.bf16.gmra.mrb[156].mxu0 %vm458_vm1, %v15783_v19  ;;  %v4623_v22 = vmax.f32 %v4573_v6, %v4575_v49  ;;  %17445 = vst [vmem:[#allocation20_spill] sm:$0xff] %v15839_v23  ;;  %17446 = vst [vmem:[#allocation21_spill] sm:$0xff] %v15854_v47 }
 0x2bf   :  { %11937 = vmatprep.mubr.msk.bf16.mxu0 %vm458_vm1, %v15791_v28  ;;  %v4574_v37 = vmax.f32 %v4510_v15, 0.0  ;;  %v11825_v59 = vpop.f32.mrb[48].mxu1 }
 0x2c0   :  { %v10646_v52 = vpack.c.bf16 %v4623_v22, %v4623_v22  ;;  %v4171_v48 = vpop.f32.mrb[49].mxu1  ;;  %v6779_v59 = vshrl.u32 %v15814_v55, 16  ;;  %v6782_v22 = vshll.u32 %v15826_v7, 16 }
 0x2c1   :  { %v15828_v5 = vpop.f32.mrb[52].mxu0  ;;  %v4622_v33 = vmax.f32 %v4572_v8, %v4574_v37  ;;  %v4442_v6 = vmax.f32 %v2465_v43, %v4171_v48  ;;  %v11826_v49 = vpop.f32.mrb[50].mxu1  ;;  %v6777_v37 = vrot.slane %v6775_v0, 1 }
 0x2c2   :  { %v2480_v11 = vpop.f32.mrb[53].mxu0  ;;  %4784 = vst.msk [vmem:[%s17165_s4 + $0x3c] sm:$0xf] %vm4768_vm3, %v10646_v52  ;;  %v4444_v51 = vmax.f32 %v11532_v44, %v11826_v49  ;;  %v4174_v45 = vpop.f32.mrb[51].mxu1  ;;  %v6774_v52 = vor.u32 %v6772_v58, %v6770_v25  ;;  %v15868_v44 = vld [vmem:[%s17163_s0 + $0x2ac] sm:$0xff]   ;;  %v6784_v0 = vrot.slane %v6782_v22, 1 }
 0x2c3   :  { %v15836_v38 = vpop.f32.mrb[54].mxu0  ;;  %v10645_v35 = vpack.c.bf16 %v4622_v33, %v4622_v33  ;;  %v4512_v8 = vadd.f32 %v15357_v17, %v4442_v6  ;;  %v4443_v43 = vmax.f32 %v15793_v32, %v4174_v45  ;;  %v6781_v30 = vor.u32 %v6779_v59, %v6777_v37  ;;  %v15879_v33 = vld [vmem:[%s17163_s0 + $0x2b4] sm:$0xff]  }
 0x2c4   :  { %v2483_v15 = vpop.f32.mrb[55].mxu0  ;;  %v4514_v48 = vadd.f32 %v15357_v17, %v4444_v51  ;;  %12228 = vmatmul.mubr.msk.bf16.gmra.mrb[156].mxu1 %vm458_vm1, %v15839_v23  ;;  %v15888_v22 = vsel %vm1767_vm2, %v6774_v52, %v6777_v37 }
 0x2c5   :  { %4783 = vst.msk [vmem:[%s17165_s4 + $0x38] sm:$0xf] %vm4768_vm3, %v10645_v35  ;;  %v4576_v32 = vmax.f32 %v4512_v8, 0.0  ;;  %12231 = vmatprep.mubr.msk.bf16.mxu1 %vm458_vm1, %v15854_v47  ;;  %v15884_v15 = vld [vmem:[%s17162_s1 + $0x2a4] sm:$0xff]   ;;  %17447 = vst [vmem:[#allocation22_spill] sm:$0xff] %v15888_v22  ;;  %v6789_v8 = vshll.u32 %v15868_v44, 16 }
 0x2c6   :  { %11938 = vmatmul.mubr.msk.bf16.gmra.mrb[160].mxu0 %vm458_vm1, %v15833_v24  ;;  %v4578_v25 = vmax.f32 %v4514_v48, 0.0  ;;  %v15894_v48 = vld [vmem:[%s17162_s1 + $0x2ac] sm:$0xff]  }
 0x2c7   :  { %11941 = vmatprep.mubr.msk.bf16.mxu0 %vm458_vm1, %v15845_v16  ;;  %v11829_v6 = vpop.f32.mrb[52].mxu1 }
 0x2c8   :  { %v4624_v35 = vmax.f32 %v4576_v32, %v4578_v25  ;;  %v4446_v51 = vmax.f32 %v15828_v5, %v11829_v6  ;;  %v4186_v45 = vpop.f32.mrb[53].mxu1  ;;  %v15898_v32 = vsel %vm1767_vm2, %v6781_v30, %v6784_v0  ;;  %v6786_v5 = vshrl.u32 %v15826_v7, 16 }
 0x2c9   :  { %v11539_v58 = vpop.f32.mrb[56].mxu0  ;;  %v4445_v47 = vmax.f32 %v2480_v11, %v4186_v45  ;;  %v11830_v23 = vpop.f32.mrb[54].mxu1  ;;  %17448 = vst [vmem:[#allocation23_spill] sm:$0xff] %v15898_v32  ;;  %v6793_v6 = vshrl.u32 %v15868_v44, 16  ;;  %v6791_v11 = vrot.slane %v6789_v8, 1  ;;  %v15925_v45 = vld [vmem:[%s17163_s0 + $0x2c4] sm:$0xff]  }
 0x2ca   :  { %v2495_v49 = vpop.f32.mrb[57].mxu0  ;;  %v10647_v25 = vpack.c.bf16 %v4624_v35, %v4624_v35  ;;  %v4447_v37 = vmax.f32 %v15836_v38, %v11830_v23  ;;  %v4189_v52 = vpop.f32.mrb[55].mxu1  ;;  %v15918_v38 = vld [vmem:[%s17163_s0 + $0x2bc] sm:$0xff]   ;;  %v6788_v23 = vor.u32 %v6786_v5, %v6784_v0  ;;  %v6810_v63 = vshll.u32 %v15925_v45, 16 }
 0x2cb   :  { %v11540_v59 = vpop.f32.mrb[58].mxu0  ;;  %v4513_v49 = vadd.f32 %v15357_v17, %v4443_v43  ;;  %v4515_v3 = vadd.f32 %v15357_v17, %v4445_v47  ;;  %v6795_v30 = vor.u32 %v6793_v6, %v6791_v11 }
 0x2cc   :  { %v2497_v14 = vpop.f32.mrb[59].mxu0  ;;  %v6796_v59 = vshll.u32 %v15879_v33, 16  ;;  %4785 = vst.msk [vmem:[%s17165_s4 + $0x40] sm:$0xf] %vm4768_vm3, %v10647_v25  ;;  %12232 = vmatmul.mubr.msk.bf16.gmra.mrb[160].mxu1 %vm458_vm1, %v15888_v22  ;;  %v15948_v31 = vsel %vm1767_vm2, %v6788_v23, %v6791_v11  ;;  %v15966_v11 = vld [vmem:[%s17163_s0 + $0x2cc] sm:$0xff]  }
 0x2cd   :  { %v4577_v17 = vmax.f32 %v4513_v49, 0.0  ;;  %v4579_v47 = vmax.f32 %v4515_v3, 0.0  ;;  %12235 = vmatprep.mubr.msk.bf16.mxu1 %vm458_vm1, %v15898_v32  ;;  %v15930_v49 = vld [vmem:[%s17162_s1 + $0x2b4] sm:$0xff]   ;;  %v15935_v3 = vld [vmem:[%s17164_s3] ss:$0 sm:$0xff]  ;;  %17449 = vst [vmem:[#allocation24_spill] sm:$0xff] %v15948_v31 }
 0x2ce   :  { %11942 = vmatmul.mubr.msk.bf16.gmra.mrb[164].mxu0 %vm458_vm1, %v15884_v15  ;;  %v6798_v35 = vrot.slane %v6796_v59, 1  ;;  %v4517_v0 = vadd.f32 %v15935_v3, %v4447_v37  ;;  %v4516_v21 = vadd.f32 %v15935_v3, %v4446_v51  ;;  %v6821_v42 = vshrl.u32 %v15966_v11, 16 }
 0x2cf   :  { %11945 = vmatprep.mubr.msk.bf16.mxu0 %vm458_vm1, %v15894_v48  ;;  %v4625_v8 = vmax.f32 %v4577_v17, %v4579_v47  ;;  %v11833_v25 = vpop.f32.mrb[56].mxu1  ;;  %v6803_v17 = vshll.u32 %v15918_v38, 16  ;;  %v15943_v47 = vld [vmem:[%s17162_s1 + $0x2bc] sm:$0xff]  }
 0x2d0   :  { %v4449_v5 = vmax.f32 %v11539_v58, %v11833_v25  ;;  %v4201_v6 = vpop.f32.mrb[57].mxu1  ;;  %v15952_v25 = vsel %vm1767_vm2, %v6795_v30, %v6798_v35  ;;  %v4581_v23 = vmax.f32 %v4517_v0, 0.0 }
 0x2d1   :  { %v11543_v43 = vpop.f32.mrb[60].mxu0  ;;  %v10648_v32 = vpack.c.bf16 %v4625_v8, %v4625_v8  ;;  %v11834_v22 = vpop.f32.mrb[58].mxu1  ;;  %17450 = vst [vmem:[#allocation25_spill] sm:$0xff] %v15952_v25  ;;  %v6807_v6 = vshrl.u32 %v15918_v38, 16  ;;  %v6805_v8 = vrot.slane %v6803_v17, 1 }
 0x2d2   :  { %v2509_v52 = vpop.f32.mrb[61].mxu0  ;;  %v6800_v43 = vshrl.u32 %v15879_v33, 16  ;;  %v4519_v58 = vadd.f32 %v15935_v3, %v4449_v5  ;;  %v4203_v37 = vpop.f32.mrb[59].mxu1 }
 0x2d3   :  { %v11544_v59 = vpop.f32.mrb[62].mxu0  ;;  %4786 = vst.msk [vmem:[%s17165_s4 + $0x44] sm:$0xf] %vm4768_vm3, %v10648_v32  ;;  %v4448_v22 = vmax.f32 %v2497_v14, %v4203_v37  ;;  %v15978_v32 = vld [vmem:[%s17163_s0 + $0x2d4] sm:$0xff]   ;;  %v6812_v37 = vrot.slane %v6810_v63, 1  ;;  %v6814_v63 = vshrl.u32 %v15925_v45, 16 }
 0x2d4   :  { %v15945_v9 = vpop.f32.mrb[63].mxu0  ;;  %v4583_v30 = vmax.f32 %v4519_v58, 0.0  ;;  %12236 = vmatmul.mubr.msk.bf16.gmra.mrb[164].mxu1 %vm458_vm1, %v15948_v31  ;;  %v6802_v51 = vor.u32 %v6800_v43, %v6798_v35  ;;  %v6809_v58 = vor.u32 %v6807_v6, %v6805_v8  ;;  %v4580_v35 = vmax.f32 %v4516_v21, 0.0  ;;  %v15997_v21 = vld [vmem:[%s17162_s1 + $0x2cc] sm:$0xff]  }
 0x2d5   :  { %v4518_v14 = vadd.f32 %v15935_v3, %v4448_v22  ;;  %12239 = vmatprep.mubr.msk.bf16.mxu1 %vm458_vm1, %v15952_v25  ;;  %v15985_v22 = vld [vmem:[%s17162_s1 + $0x2c4] sm:$0xff]   ;;  %v6817_v25 = vshll.u32 %v15966_v11, 16 }
 0x2d6   :  { %11946 = vmatmul.mubr.msk.bf16.gmra.mrb[168].mxu0 %vm458_vm1, %v15930_v49  ;;  %v4627_v0 = vmax.f32 %v4581_v23, %v4583_v30  ;;  %v15991_v23 = vsel %vm1767_vm2, %v6802_v51, %v6805_v8  ;;  %v16006_v10 = vsel %vm1767_vm2, %v6809_v58, %v6812_v37 }
 0x2d7   :  { %11949 = vmatprep.mubr.msk.bf16.mxu0 %vm458_vm1, %v15943_v47  ;;  %v4582_v43 = vmax.f32 %v4518_v14, 0.0  ;;  %v11837_v17 = vpop.f32.mrb[60].mxu1  ;;  %17451 = vst [vmem:[#allocation26_spill] sm:$0xff] %v15991_v23  ;;  %17452 = vst [vmem:[#allocation27_spill] sm:$0xff] %v16006_v10 }
 0x2d8   :  { %v10650_v53 = vpack.c.bf16 %v4627_v0, %v4627_v0  ;;  %v4215_v20 = vpop.f32.mrb[61].mxu1  ;;  %v6824_v0 = vshll.u32 %v15978_v32, 16 }
 0x2d9   :  { %v15980_v5 = vpop.f32.mrb[64].mxu0  ;;  %v4626_v6 = vmax.f32 %v4580_v35, %v4582_v43  ;;  %v4450_v30 = vmax.f32 %v2509_v52, %v4215_v20  ;;  %v11838_v14 = vpop.f32.mrb[62].mxu1  ;;  %v6819_v52 = vrot.slane %v6817_v25, 1 }
 0x2da   :  { %v2524_v31 = vpop.f32.mrb[65].mxu0  ;;  %4788 = vst.msk [vmem:[%s17165_s4 + $0x4c] sm:$0xf] %vm4768_vm3, %v10650_v53  ;;  %v4452_v51 = vmax.f32 %v11544_v59, %v11838_v14  ;;  %v4218_v8 = vpop.f32.mrb[63].mxu1  ;;  %v6816_v53 = vor.u32 %v6814_v63, %v6812_v37  ;;  %v16020_v59 = vld [vmem:[%s17163_s0 + $0x2dc] sm:$0xff]   ;;  %v6826_v58 = vrot.slane %v6824_v0, 1 }
 0x2db   :  { %v15988_v27 = vpop.f32.mrb[66].mxu0  ;;  %v10649_v26 = vpack.c.bf16 %v4626_v6, %v4626_v6  ;;  %v4520_v35 = vadd.f32 %v15935_v3, %v4450_v30  ;;  %v4451_v20 = vmax.f32 %v15945_v9, %v4218_v8  ;;  %v6823_v25 = vor.u32 %v6821_v42, %v6819_v52  ;;  %v16031_v6 = vld [vmem:[%s17163_s0 + $0x2e4] sm:$0xff]  }
 0x2dc   :  { %v2527_v17 = vpop.f32.mrb[67].mxu0  ;;  %v4522_v43 = vadd.f32 %v15935_v3, %v4452_v51  ;;  %12240 = vmatmul.mubr.msk.bf16.gmra.mrb[168].mxu1 %vm458_vm1, %v15991_v23  ;;  %v16040_v0 = vsel %vm1767_vm2, %v6816_v53, %v6819_v52  ;;  %v6842_v13 = vshrl.u32 %v16031_v6, 16 }
 0x2dd   :  { %4787 = vst.msk [vmem:[%s17165_s4 + $0x48] sm:$0xf] %vm4768_vm3, %v10649_v26  ;;  %v4584_v9 = vmax.f32 %v4520_v35, 0.0  ;;  %12243 = vmatprep.mubr.msk.bf16.mxu1 %vm458_vm1, %v16006_v10  ;;  %v16036_v17 = vld [vmem:[%s17162_s1 + $0x2d4] sm:$0xff]   ;;  %17453 = vst [vmem:[#allocation28_spill] sm:$0xff] %v16040_v0  ;;  %v6831_v35 = vshll.u32 %v16020_v59, 16 }
 0x2de   :  { %11950 = vmatmul.mubr.msk.bf16.gmra.mrb[172].mxu0 %vm458_vm1, %v15985_v22  ;;  %v4586_v37 = vmax.f32 %v4522_v43, 0.0  ;;  %v16046_v43 = vld [vmem:[%s17162_s1 + $0x2dc] sm:$0xff]  }
 0x2df   :  { %11953 = vmatprep.mubr.msk.bf16.mxu0 %vm458_vm1, %v15997_v21  ;;  %v11841_v30 = vpop.f32.mrb[64].mxu1 }
 0x2e0   :  { %v4628_v26 = vmax.f32 %v4584_v9, %v4586_v37  ;;  %v4454_v51 = vmax.f32 %v15980_v5, %v11841_v30  ;;  %v4230_v8 = vpop.f32.mrb[65].mxu1  ;;  %v16050_v9 = vsel %vm1767_vm2, %v6823_v25, %v6826_v58  ;;  %v6828_v5 = vshrl.u32 %v15978_v32, 16 }
 0x2e1   :  { %v11551_v63 = vpop.f32.mrb[68].mxu0  ;;  %v4453_v10 = vmax.f32 %v2524_v31, %v4230_v8  ;;  %v11842_v23 = vpop.f32.mrb[66].mxu1  ;;  %17454 = vst [vmem:[#allocation29_spill] sm:$0xff] %v16050_v9  ;;  %v6835_v30 = vshrl.u32 %v16020_v59, 16  ;;  %v6833_v31 = vrot.slane %v6831_v35, 1  ;;  %v16077_v35 = vld [vmem:[%s17163_s0 + $0x2f4] sm:$0xff]  }
 0x2e2   :  { %v2539_v14 = vpop.f32.mrb[69].mxu0  ;;  %v10651_v37 = vpack.c.bf16 %v4628_v26, %v4628_v26  ;;  %v4455_v52 = vmax.f32 %v15988_v27, %v11842_v23  ;;  %v4233_v53 = vpop.f32.mrb[67].mxu1  ;;  %v16070_v27 = vld [vmem:[%s17163_s0 + $0x2ec] sm:$0xff]   ;;  %v6852_v56 = vshll.u32 %v16077_v35, 16 }
 0x2e3   :  { %v11552_v42 = vpop.f32.mrb[70].mxu0  ;;  %v4521_v14 = vadd.f32 %v15935_v3, %v4451_v20  ;;  %v4523_v12 = vadd.f32 %v15935_v3, %v4453_v10  ;;  %v6830_v20 = vor.u32 %v6828_v5, %v6826_v58  ;;  %v6837_v26 = vor.u32 %v6835_v30, %v6833_v31 }
 0x2e4   :  { %v2541_v60 = vpop.f32.mrb[71].mxu0  ;;  %v6838_v42 = vshll.u32 %v16031_v6, 16  ;;  %4789 = vst.msk [vmem:[%s17165_s4 + $0x50] sm:$0xf] %vm4768_vm3, %v10651_v37  ;;  %12244 = vmatmul.mubr.msk.bf16.gmra.mrb[172].mxu1 %vm458_vm1, %v16040_v0  ;;  %v6845_v30 = vshll.u32 %v16070_v27, 16 }
 0x2e5   :  { %v4585_v10 = vmax.f32 %v4521_v14, 0.0  ;;  %v4587_v23 = vmax.f32 %v4523_v12, 0.0  ;;  %12247 = vmatprep.mubr.msk.bf16.mxu1 %vm458_vm1, %v16050_v9  ;;  %v16082_v14 = vld [vmem:[%s17162_s1 + $0x2e4] sm:$0xff]   ;;  %v4525_v12 = vadd.f32 %v15935_v3, %v4455_v52  ;;  %v16094_v61 = vsel %vm1767_vm2, %v6830_v20, %v6833_v31 }
 0x2e6   :  { %11954 = vmatmul.mubr.msk.bf16.gmra.mrb[176].mxu0 %vm458_vm1, %v16036_v17  ;;  %v6840_v8 = vrot.slane %v6838_v42, 1  ;;  %v16089_v42 = vld [vmem:[%s17162_s1 + $0x2ec] sm:$0xff]   ;;  %17455 = vst [vmem:[#allocation30_spill] sm:$0xff] %v16094_v61 }
 0x2e7   :  { %11957 = vmatprep.mubr.msk.bf16.mxu0 %vm458_vm1, %v16046_v43  ;;  %v4629_v37 = vmax.f32 %v4585_v10, %v4587_v23  ;;  %v11845_v53 = vpop.f32.mrb[68].mxu1 }
 0x2e8   :  { %v4457_v9 = vmax.f32 %v11551_v63, %v11845_v53  ;;  %v4245_v58 = vpop.f32.mrb[69].mxu1  ;;  %v16099_v53 = vsel %vm1767_vm2, %v6837_v26, %v6840_v8  ;;  %v6847_v26 = vrot.slane %v6845_v30, 1  ;;  %v16127_v30 = vld [vmem:[%s17163_s0 + $0x304] sm:$0xff]  }
 0x2e9   :  { %v11555_v25 = vpop.f32.mrb[72].mxu0  ;;  %v10652_v10 = vpack.c.bf16 %v4629_v37, %v4629_v37  ;;  %v11846_v23 = vpop.f32.mrb[70].mxu1  ;;  %17456 = vst [vmem:[#allocation31_spill] sm:$0xff] %v16099_v53  ;;  %v6849_v58 = vshrl.u32 %v16070_v27, 16  ;;  %v4524_v37 = vadd.f32 %v15935_v3, %v4454_v51  ;;  %v16117_v51 = vld [vmem:[%s17163_s0 + $0x2fc] sm:$0xff]  }
 0x2ea   :  { %v2553_v0 = vpop.f32.mrb[73].mxu0  ;;  %v4527_v63 = vadd.f32 %v15935_v3, %v4457_v9  ;;  %v4247_v52 = vpop.f32.mrb[71].mxu1  ;;  %v4589_v9 = vmax.f32 %v4525_v12, 0.0  ;;  %v6863_v18 = vshrl.u32 %v16117_v51, 16 }
 0x2eb   :  { %v11556_v5 = vpop.f32.mrb[74].mxu0  ;;  %4790 = vst.msk [vmem:[%s17165_s4 + $0x54] sm:$0xf] %vm4768_vm3, %v10652_v10  ;;  %v4456_v31 = vmax.f32 %v2541_v60, %v4247_v52  ;;  %v6844_v60 = vor.u32 %v6842_v13, %v6840_v8  ;;  %v6854_v52 = vrot.slane %v6852_v56, 1  ;;  %v6856_v56 = vshrl.u32 %v16077_v35, 16 }
 0x2ec   :  { %v16091_v25 = vpop.f32.mrb[75].mxu0  ;;  %v4591_v20 = vmax.f32 %v4527_v63, 0.0  ;;  %12248 = vmatmul.mubr.msk.bf16.gmra.mrb[176].mxu1 %vm458_vm1, %v16094_v61  ;;  %v6851_v63 = vor.u32 %v6849_v58, %v6847_v26  ;;  %v4588_v61 = vmax.f32 %v4524_v37, 0.0  ;;  %v6859_v58 = vshll.u32 %v16117_v51, 16  ;;  %v16141_v37 = vld [vmem:[%s17162_s1 + $0x2fc] sm:$0xff]  }
 0x2ed   :  { %v4526_v10 = vadd.f32 %v15935_v3, %v4456_v31  ;;  %12251 = vmatprep.mubr.msk.bf16.mxu1 %vm458_vm1, %v16099_v53  ;;  %v16132_v31 = vld [vmem:[%s17162_s1 + $0x2f4] sm:$0xff]   ;;  %v16144_v34 = vsel %vm1767_vm2, %v6844_v60, %v6847_v26 }
 0x2ee   :  { %11958 = vmatmul.mubr.msk.bf16.gmra.mrb[180].mxu0 %vm458_vm1, %v16082_v14  ;;  %v4631_v12 = vmax.f32 %v4589_v9, %v4591_v20  ;;  %17457 = vst [vmem:[#allocation32_spill] sm:$0xff] %v16144_v34  ;;  %v16151_v1 = vsel %vm1767_vm2, %v6851_v63, %v6854_v52  ;;  %v6861_v60 = vrot.slane %v6859_v58, 1 }
 0x2ef   :  { %11961 = vmatprep.mubr.msk.bf16.mxu0 %vm458_vm1, %v16089_v42  ;;  %v4590_v57 = vmax.f32 %v4526_v10, 0.0  ;;  %v11849_v62 = vpop.f32.mrb[72].mxu1  ;;  %17458 = vst [vmem:[#allocation33_spill] sm:$0xff] %v16151_v1 }
 0x2f0   :  { %v10654_v13 = vpack.c.bf16 %v4631_v12, %v4631_v12  ;;  %v4259_v8 = vpop.f32.mrb[73].mxu1 }
 0x2f1   :  { %v16122_v23 = vpop.f32.mrb[76].mxu0  ;;  %v4630_v62 = vmax.f32 %v4588_v61, %v4590_v57  ;;  %v4458_v20 = vmax.f32 %v2553_v0, %v4259_v8  ;;  %v11850_v10 = vpop.f32.mrb[74].mxu1  ;;  %v6866_v57 = vshll.u32 %v16127_v30, 16 }
 0x2f2   :  { %v2568_v46 = vpop.f32.mrb[77].mxu0  ;;  %4792 = vst.msk [vmem:[%s17165_s4 + $0x5c] sm:$0xf] %vm4768_vm3, %v10654_v13  ;;  %v4460_v12 = vmax.f32 %v11556_v5, %v11850_v10  ;;  %v4262_v2 = vpop.f32.mrb[75].mxu1  ;;  %v6858_v5 = vor.u32 %v6856_v56, %v6854_v52  ;;  %v6865_v52 = vor.u32 %v6863_v18, %v6861_v60 }
 0x2f3   :  { %v16134_v9 = vpop.f32.mrb[78].mxu0  ;;  %v10653_v61 = vpack.c.bf16 %v4630_v62, %v4630_v62  ;;  %v4528_v0 = vadd.f32 %v15935_v3, %v4458_v20  ;;  %v6868_v8 = vrot.slane %v6866_v57, 1  ;;  %v16176_v62 = vld [vmem:[%s17162_s1 + $0x304] sm:$0xff]  }
 0x2f4   :  { %v2571_v53 = vpop.f32.mrb[79].mxu0  ;;  %v4530_v26 = vadd.f32 %v15935_v3, %v4460_v12  ;;  %12252 = vmatmul.mubr.msk.bf16.gmra.mrb[180].mxu1 %vm458_vm1, %v16144_v34 }
 0x2f5   :  { %v4459_v53 = vmax.f32 %v16091_v25, %v4262_v2  ;;  %4791 = vst.msk [vmem:[%s17165_s4 + $0x58] sm:$0xf] %vm4768_vm3, %v10653_v61  ;;  %v4592_v63 = vmax.f32 %v4528_v0, 0.0  ;;  %12255 = vmatprep.mubr.msk.bf16.mxu1 %vm458_vm1, %v16151_v1  ;;  %v13433_v2 = vld [vmem:[%s17163_s0 + $0x30c] ss:$0 sps:$4 sm:$0x11]   ;;  %v16180_v0 = vsel %vm1767_vm2, %v6858_v5, %v6861_v60 }
 0x2f6   :  { %11962 = vmatmul.mubr.msk.bf16.gmra.mrb[184].mxu0 %vm458_vm1, %v16132_v31  ;;  %v4594_v25 = vmax.f32 %v4530_v26, 0.0  ;;  %17459 = vst [vmem:[#allocation34_spill] sm:$0xff] %v16180_v0  ;;  %v6874_v34 = vshll.u32 %v13433_v2, 16 }
 0x2f7   :  { %11965 = vmatprep.mubr.msk.bf16.mxu0 %vm458_vm1, %v16141_v37  ;;  %v11853_v56 = vpop.f32.mrb[76].mxu1  ;;  %v4529_v26 = vadd.f32 %v15935_v3, %v4459_v53 }
 0x2f8   :  { %v4632_v20 = vmax.f32 %v4592_v63, %v4594_v25  ;;  %v4462_v10 = vmax.f32 %v16122_v23, %v11853_v56  ;;  %v4274_v12 = vpop.f32.mrb[77].mxu1  ;;  %v16186_v63 = vsel %vm1767_vm2, %v6865_v52, %v6868_v8  ;;  %v6876_v53 = vrot.slane %v6874_v34, 1 }
 0x2f9   :  { %v11563_v13 = vpop.f32.mrb[80].mxu0  ;;  %v4461_v1 = vmax.f32 %v2568_v46, %v4274_v12  ;;  %v11854_v18 = vpop.f32.mrb[78].mxu1  ;;  %17460 = vst [vmem:[#allocation35_spill] sm:$0xff] %v16186_v63  ;;  %v4593_v46 = vmax.f32 %v4529_v26, 0.0 }
 0x2fa   :  { %v2583_v58 = vpop.f32.mrb[81].mxu0  ;;  %v10655_v29 = vpack.c.bf16 %v4632_v20, %v4632_v20  ;;  %v4463_v41 = vmax.f32 %v16134_v9, %v11854_v18  ;;  %v4277_v4 = vpop.f32.mrb[79].mxu1  ;;  %v4532_v34 = vadd.f32 %v15935_v3, %v4462_v10 }
 0x2fb   :  { %v11564_v61 = vpop.f32.mrb[82].mxu0  ;;  %v6870_v58 = vshrl.u32 %v16127_v30, 16  ;;  %v4531_v23 = vadd.f32 %v15935_v3, %v4461_v1  ;;  %v13512_v4 = vld [vmem:[%s17163_s0 + $0x18c] sm:$0xff]  }
 0x2fc   :  { %v2585_v57 = vpop.f32.mrb[83].mxu0  ;;  %4793 = vst.msk [vmem:[%s17165_s4 + $0x60] sm:$0xf] %vm4768_vm3, %v10655_v29  ;;  %12256 = vmatmul.mubr.msk.bf16.gmra.mrb[184].mxu1 %vm458_vm1, %v16180_v0  ;;  %v4533_v25 = vadd.f32 %v15935_v3, %v4463_v41  ;;  %v16539_v0 = vld [vmem:[%s17162_s1 + $0x254] sm:$0xff]  }
 0x2fd   :  { %v4595_v9 = vmax.f32 %v4531_v23, 0.0  ;;  %12259 = vmatprep.mubr.msk.bf16.mxu1 %vm458_vm1, %v16186_v63  ;;  %v6872_v1 = vor.u32 %v6870_v58, %v6868_v8  ;;  %v16528_v63 = vld [vmem:[%s17162_s1 + $0x24c] sm:$0xff]   ;;  %17464 = vst [vmem:[#allocation38_spill] sm:$0xff] %v16539_v0 }
 0x2fe   :  { %11966 = vmatmul.mubr.msk.bf16.gmra.mrb[188].mxu0 %vm458_vm1, %v16176_v62  ;;  %v4597_v8 = vmax.f32 %v4533_v25, 0.0  ;;  %17463 = vst [vmem:[#allocation37_spill] sm:$0xff] %v16528_v63 }
 0x2ff   :  { %11971 = vmatprep.mubr.msk.bf16.mxu0 %vm458_vm1, %v13512_v4  ;;  %v4633_v60 = vmax.f32 %v4593_v46, %v4595_v9  ;;  %v11857_v2 = vpop.f32.mrb[80].mxu1  ;;  %v16205_v26 = vsel %vm1767_vm2, %v6872_v1, %v6876_v53  ;;  %v17462_v46 = vld [vmem:[#allocation43_spill] sm:$0xff] }
 0x300   :  { %v4465_v52 = vmax.f32 %v11563_v13, %v11857_v2  ;;  %v4289_v56 = vpop.f32.mrb[81].mxu1  ;;  %17461 = vst [vmem:[#allocation36_spill] sm:$0xff] %v16205_v26  ;;  %v13513_v13 = vld [vmem:[%s17163_s0 + $0x194] sm:$0xff]   ;;  %v16224_v9 = vld [vmem:[%s17162_s1 + $0x18c] sm:$0xff]  }
 0x301   :  { %v11567_v5 = vpop.f32.mrb[84].mxu0  ;;  %v10656_v12 = vpack.c.bf16 %v4633_v60, %v4633_v60  ;;  %v11858_v61 = vpop.f32.mrb[82].mxu1 }
 0x302   :  { %v2597_v29 = vpop.f32.mrb[85].mxu0  ;;  %v4535_v23 = vadd.f32 %v15935_v3, %v4465_v52  ;;  %v4291_v4 = vpop.f32.mrb[83].mxu1  ;;  %v4596_v5 = vmax.f32 %v4532_v34, 0.0 }
 0x303   :  { %v11568_v20 = vpop.f32.mrb[86].mxu0  ;;  %4794 = vst.msk [vmem:[%s17165_s4 + $0x64] sm:$0xf] %vm4768_vm3, %v10656_v12  ;;  %v4464_v41 = vmax.f32 %v2585_v57, %v4291_v4  ;;  %v13515_v57 = vld [vmem:[%s17163_s0 + $0x19c] sm:$0xff]  }
 0x304   :  { %v2600_v18 = vpop.f32.mrb[87].mxu0  ;;  %v4599_v58 = vmax.f32 %v4535_v23, 0.0  ;;  %12260 = vmatmul.mubr.msk.bf16.gmra.mrb[188].mxu1 %vm458_vm1, %v16205_v26 }
 0x305   :  { %v4534_v10 = vadd.f32 %v15935_v3, %v4464_v41  ;;  %12265 = vmatprep.mubr.msk.bf16.mxu1 %vm458_vm1, %v16224_v9 }
 0x306   :  { %11972 = vmatmul.mubr.msk.bf16.vlgmr.msra.gmra.mrb[96].mxu0 %vm458_vm1, %v13513_v13  ;;  %v4635_v1 = vmax.f32 %v4597_v8, %v4599_v58 }
 0x307   :  { %12068 = vmatpush3.bf16.msra.mxu0 %v17462_v46  ;;  %11975 = vmatprep.mubr.msk.bf16.mxu0 %vm458_vm1, %v13515_v57  ;;  %v4598_v60 = vmax.f32 %v4534_v10, 0.0  ;;  %v11861_v2 = vpop.f32.mrb[84].mxu1  ;;  %v13516_v57 = vld [vmem:[%s17163_s0 + $0x1a4] sm:$0xff]  }
 0x308   :  { %v10658_v52 = vpack.c.bf16 %v4635_v1, %v4635_v1  ;;  %v4303_v56 = vpop.f32.mrb[85].mxu1  ;;  %v16247_v1 = vld [vmem:[%s17162_s1 + $0x194] sm:$0xff]  }
 0x309   :  { %v16232_v53 = vpop.f32.mrb[88].mxu0  ;;  %v4634_v61 = vmax.f32 %v4596_v5, %v4598_v60  ;;  %v4466_v23 = vmax.f32 %v2597_v29, %v4303_v56  ;;  %v11862_v4 = vpop.f32.mrb[86].mxu1  ;;  %v16263_v5 = vld [vmem:[%s17162_s1 + $0x19c] sm:$0xff]  }
 0x30a   :  { %v2612_v25 = vpop.f32.mrb[89].mxu0  ;;  %4796 = vst.msk [vmem:[%s17165_s4 + $0x6c] sm:$0xf] %vm4768_vm3, %v10658_v52  ;;  %v4468_v13 = vmax.f32 %v11568_v20, %v11862_v4  ;;  %v4306_v8 = vpop.f32.mrb[87].mxu1  ;;  %v13518_v20 = vld [vmem:[%s17163_s0 + $0x1ac] sm:$0xff]  }
 0x30b   :  { %v11572_v12 = vpop.f32.mrb[90].mxu0  ;;  %v10657_v58 = vpack.c.bf16 %v4634_v61, %v4634_v61  ;;  %v4536_v34 = vadd.f32 %v15935_v3, %v4466_v23  ;;  %v4467_v10 = vmax.f32 %v2600_v18, %v4306_v8 }
 0x30c   :  { %v2615_v41 = vpop.f32.mrb[91].mxu0  ;;  %v4538_v29 = vadd.f32 %v15935_v3, %v4468_v13  ;;  %12266 = vmatmul.mubr.msk.bf16.vlgmr.msra.gmra.mrb[96].mxu1 %vm458_vm1, %v16247_v1 }
 0x30d   :  { %4795 = vst.msk [vmem:[%s17165_s4 + $0x68] sm:$0xf] %vm4768_vm3, %v10657_v58  ;;  %v4600_v18 = vmax.f32 %v4536_v34, 0.0  ;;  %12362 = vmatpush3.bf16.msra.mxu1 %v17462_v46  ;;  %12269 = vmatprep.mubr.msk.bf16.mxu1 %vm458_vm1, %v16263_v5  ;;  %v4537_v13 = vadd.f32 %v15935_v3, %v4467_v10 }
 0x30e   :  { %11976 = vmatmul.mubr.msk.bf16.gmra.mrb[100].mxu0 %vm458_vm1, %v13516_v57  ;;  %v4602_v60 = vmax.f32 %v4538_v29, 0.0  ;;  %v13520_v29 = vld [vmem:[%s17163_s0 + $0x1b4] sm:$0xff]  }
 0x30f   :  { %11979 = vmatprep.mubr.msk.bf16.mxu0 %vm458_vm1, %v13518_v20  ;;  %v11865_v52 = vpop.f32.mrb[88].mxu1 }
 0x310   :  { %v4636_v61 = vmax.f32 %v4600_v18, %v4602_v60  ;;  %v4470_v23 = vmax.f32 %v16232_v53, %v11865_v52  ;;  %v4318_v4 = vpop.f32.mrb[89].mxu1  ;;  %v16281_v53 = vld [vmem:[%s17162_s1 + $0x1a4] sm:$0xff]   ;;  %v16292_v18 = vld [vmem:[%s17162_s1 + $0x1ac] sm:$0xff]  }
 0x311   :  { %v11575_v2 = vpop.f32.mrb[92].mxu0  ;;  %v4469_v46 = vmax.f32 %v2612_v25, %v4318_v4  ;;  %v11866_v8 = vpop.f32.mrb[90].mxu1  ;;  %v13522_v25 = vld [vmem:[%s17163_s0 + $0x1bc] sm:$0xff]  }
 0x312   :  { %v2627_v56 = vpop.f32.mrb[93].mxu0  ;;  %v10659_v34 = vpack.c.bf16 %v4636_v61, %v4636_v61  ;;  %v4471_v57 = vmax.f32 %v11572_v12, %v11866_v8  ;;  %v4321_v20 = vpop.f32.mrb[91].mxu1  ;;  %v4601_v12 = vmax.f32 %v4537_v13, 0.0 }
 0x313   :  { %v11576_v41 = vpop.f32.mrb[94].mxu0  ;;  %v4539_v26 = vadd.f32 %v15935_v3, %v4469_v46  ;;  %v13524_v20 = vld [vmem:[%s17163_s0 + $0x1c4] sm:$0xff]  }
 0x314   :  { %v2629_v58 = vpop.f32.mrb[95].mxu0  ;;  %4797 = vst.msk [vmem:[%s17165_s4 + $0x70] sm:$0xf] %vm4768_vm3, %v10659_v34  ;;  %12270 = vmatmul.mubr.msk.bf16.gmra.mrb[100].mxu1 %vm458_vm1, %v16281_v53  ;;  %v4541_v56 = vadd.f32 %v15935_v3, %v4471_v57 }
 0x315   :  { %v4603_v10 = vmax.f32 %v4539_v26, 0.0  ;;  %12273 = vmatprep.mubr.msk.bf16.mxu1 %vm458_vm1, %v16292_v18  ;;  %v4540_v26 = vadd.f32 %v15935_v3, %v4470_v23  ;;  %v13526_v23 = vld [vmem:[%s17163_s0 + $0x1cc] sm:$0xff]  }
 0x316   :  { %11980 = vmatmul.mubr.msk.bf16.gmra.mrb[104].mxu0 %vm458_vm1, %v13520_v29  ;;  %v16310_v29 = vld [vmem:[%s17162_s1 + $0x1b4] sm:$0xff]  }
 0x317   :  { %11983 = vmatprep.mubr.msk.bf16.mxu0 %vm458_vm1, %v13522_v25  ;;  %v4637_v60 = vmax.f32 %v4601_v12, %v4603_v10  ;;  %v11869_v52 = vpop.f32.mrb[92].mxu1  ;;  %v16322_v25 = vld [vmem:[%s17162_s1 + $0x1bc] sm:$0xff]   ;;  %v4604_v10 = vmax.f32 %v4540_v26, 0.0  ;;  %v13534_v26 = vld [vmem:[%s17163_s0 + $0x1ec] sm:$0xff]  }
 0x318   :  { %v4473_v61 = vmax.f32 %v11575_v2, %v11869_v52  ;;  %v4333_v4 = vpop.f32.mrb[93].mxu1  ;;  %v4605_v2 = vmax.f32 %v4541_v56, 0.0 }
 0x319   :  { %v10660_v41 = vpack.c.bf16 %v4637_v60, %v4637_v60  ;;  %v11870_v46 = vpop.f32.mrb[94].mxu1  ;;  %v16337_v4 = vld [vmem:[%s17162_s1 + $0x1c4] sm:$0xff]  }
 0x31a   :  { %v4543_v8 = vadd.f32 %v15935_v3, %v4473_v61  ;;  %v4335_v13 = vpop.f32.mrb[95].mxu1  ;;  %v16352_v46 = vld [vmem:[%s17162_s1 + $0x1cc] sm:$0xff]  }
 0x31b   :  { %4798 = vst.msk [vmem:[%s17165_s4 + $0x74] sm:$0xf] %vm4768_vm3, %v10660_v41  ;;  %v4472_v34 = vmax.f32 %v2629_v58, %v4335_v13  ;;  %v13530_v41 = vld [vmem:[%s17163_s0 + $0x1dc] sm:$0xff]   ;;  %v16363_v13 = vld [vmem:[%s17162_s1 + $0x1d4] sm:$0xff]  }
 0x31c   :  { %v4607_v57 = vmax.f32 %v4543_v8, 0.0  ;;  %12274 = vmatmul.mubr.msk.bf16.gmra.mrb[104].mxu1 %vm458_vm1, %v16310_v29  ;;  %v13532_v8 = vld [vmem:[%s17163_s0 + $0x1e4] sm:$0xff]  }
 0x31d   :  { %v4542_v58 = vadd.f32 %v15935_v3, %v4472_v34  ;;  %12277 = vmatprep.mubr.msk.bf16.mxu1 %vm458_vm1, %v16322_v25  ;;  %v13528_v3 = vld [vmem:[%s17163_s0 + $0x1d4] sm:$0xff]   ;;  %v16374_v34 = vld [vmem:[%s17162_s1 + $0x1dc] sm:$0xff]  }
 0x31e   :  { %11984 = vmatmul.mubr.msk.bf16.gmra.mrb[108].mxu0 %vm458_vm1, %v13524_v20  ;;  %v4639_v12 = vmax.f32 %v4605_v2, %v4607_v57  ;;  %v13536_v20 = vld [vmem:[%s17163_s0 + $0x1f4] sm:$0xff]   ;;  %v16385_v2 = vld [vmem:[%s17162_s1 + $0x1e4] sm:$0xff]   ;;  %v13538_v57 = vld [vmem:[%s17163_s0 + $0x1fc] sm:$0xff]  }
 0x31f   :  { %11987 = vmatprep.mubr.msk.bf16.mxu0 %vm458_vm1, %v13526_v23  ;;  %v4606_v60 = vmax.f32 %v4542_v58, 0.0  ;;  %v16396_v23 = vld [vmem:[%s17162_s1 + $0x1ec] sm:$0xff]   ;;  %v13540_v58 = vld [vmem:[%s17163_s0 + $0x204] sm:$0xff]  }
 0x320   :  { %v10662_v52 = vpack.c.bf16 %v4639_v12, %v4639_v12  ;;  %v16407_v12 = vld [vmem:[%s17162_s1 + $0x1f4] sm:$0xff]  }
 0x321   :  { %v4638_v56 = vmax.f32 %v4604_v10, %v4606_v60  ;;  %v13542_v10 = vld [vmem:[%s17163_s0 + $0x20c] sm:$0xff]   ;;  %v16418_v60 = vld [vmem:[%s17162_s1 + $0x1fc] sm:$0xff]  }
 0x322   :  { %4800 = vst.msk [vmem:[%s17165_s4 + $0x7c] sm:$0xf] %vm4768_vm3, %v10662_v52  ;;  %v13544_v52 = vld [vmem:[%s17163_s0 + $0x214] sm:$0xff]  }
 0x323   :  { %v10661_v61 = vpack.c.bf16 %v4638_v56, %v4638_v56  ;;  %v16429_v56 = vld [vmem:[%s17162_s1 + $0x204] sm:$0xff]  }
 0x324   :  { %12278 = vmatmul.mubr.msk.bf16.gmra.mrb[108].mxu1 %vm458_vm1, %v16337_v4 }
 0x325   :  { %4799 = vst.msk [vmem:[%s17165_s4 + $0x78] sm:$0xf] %vm4768_vm3, %v10661_v61  ;;  %12281 = vmatprep.mubr.msk.bf16.mxu1 %vm458_vm1, %v16352_v46  ;;  %v13546_v61 = vld [vmem:[%s17163_s0 + $0x21c] sm:$0xff]  }
 0x326   :  { %11988 = vmatmul.mubr.msk.bf16.gmra.mrb[112].mxu0 %vm458_vm1, %v13528_v3  ;;  %v16440_v3 = vld [vmem:[%s17162_s1 + $0x20c] sm:$0xff]  }
 0x327   :  { %11991 = vmatprep.mubr.msk.bf16.mxu0 %vm458_vm1, %v13530_v41  ;;  %v13548_v41 = vld [vmem:[%s17163_s0 + $0x224] sm:$0xff]  }
 0x32c   :  { %12282 = vmatmul.mubr.msk.bf16.gmra.mrb[112].mxu1 %vm458_vm1, %v16363_v13 }
 0x32d   :  { %12285 = vmatprep.mubr.msk.bf16.mxu1 %vm458_vm1, %v16374_v34 }
 0x32e   :  { %11992 = vmatmul.mubr.msk.bf16.gmra.mrb[116].mxu0 %vm458_vm1, %v13532_v8  ;;  %v16451_v8 = vld [vmem:[%s17162_s1 + $0x214] sm:$0xff]  }
 0x32f   :  { %11995 = vmatprep.mubr.msk.bf16.mxu0 %vm458_vm1, %v13534_v26  ;;  %v13550_v26 = vld [vmem:[%s17163_s0 + $0x22c] sm:$0xff]  }
 0x334   :  { %12286 = vmatmul.mubr.msk.bf16.gmra.mrb[116].mxu1 %vm458_vm1, %v16385_v2 }
 0x335   :  { %12289 = vmatprep.mubr.msk.bf16.mxu1 %vm458_vm1, %v16396_v23 }
 0x336   :  { %11996 = vmatmul.mubr.msk.bf16.gmra.mrb[120].mxu0 %vm458_vm1, %v13536_v20  ;;  %v16462_v20 = vld [vmem:[%s17162_s1 + $0x21c] sm:$0xff]  }
 0x337   :  { %11999 = vmatprep.mubr.msk.bf16.mxu0 %vm458_vm1, %v13538_v57  ;;  %v13552_v57 = vld [vmem:[%s17163_s0 + $0x234] sm:$0xff]  }
 0x33c   :  { %12290 = vmatmul.mubr.msk.bf16.gmra.mrb[120].mxu1 %vm458_vm1, %v16407_v12 }
 0x33d   :  { %12293 = vmatprep.mubr.msk.bf16.mxu1 %vm458_vm1, %v16418_v60 }
 0x33e   :  { %12000 = vmatmul.mubr.msk.bf16.gmra.mrb[124].mxu0 %vm458_vm1, %v13540_v58  ;;  %v16473_v58 = vld [vmem:[%s17162_s1 + $0x224] sm:$0xff]  }
 0x33f   :  { %12003 = vmatprep.mubr.msk.bf16.mxu0 %vm458_vm1, %v13542_v10  ;;  %v13554_v10 = vld [vmem:[%s17163_s0 + $0x23c] sm:$0xff]  }
 0x344   :  { %12294 = vmatmul.mubr.msk.bf16.gmra.mrb[124].mxu1 %vm458_vm1, %v16429_v56 }
 0x345   :  { %12297 = vmatprep.mubr.msk.bf16.mxu1 %vm458_vm1, %v16440_v3 }
 0x346   :  { %12004 = vmatmul.mubr.msk.bf16.gmra.mrb[128].mxu0 %vm458_vm1, %v13544_v52  ;;  %v16484_v52 = vld [vmem:[%s17162_s1 + $0x22c] sm:$0xff]  }
 0x347   :  { %12007 = vmatprep.mubr.msk.bf16.mxu0 %vm458_vm1, %v13546_v61  ;;  %v13556_v61 = vld [vmem:[%s17163_s0 + $0x244] sm:$0xff]  }
 0x34c   :  { %12298 = vmatmul.mubr.msk.bf16.gmra.mrb[128].mxu1 %vm458_vm1, %v16451_v8 }
 0x34d   :  { %12301 = vmatprep.mubr.msk.bf16.mxu1 %vm458_vm1, %v16462_v20 }
 0x34e   :  { %12008 = vmatmul.mubr.msk.bf16.gmra.mrb[132].mxu0 %vm458_vm1, %v13548_v41  ;;  %v16495_v41 = vld [vmem:[%s17162_s1 + $0x234] sm:$0xff]  }
 0x34f   :  { %12011 = vmatprep.mubr.msk.bf16.mxu0 %vm458_vm1, %v13550_v26  ;;  %v13558_v26 = vld [vmem:[%s17163_s0 + $0x24c] sm:$0xff]  }
 0x354   :  { %12302 = vmatmul.mubr.msk.bf16.gmra.mrb[132].mxu1 %vm458_vm1, %v16473_v58 }
 0x355   :  { %12305 = vmatprep.mubr.msk.bf16.mxu1 %vm458_vm1, %v16484_v52 }
 0x356   :  { %12012 = vmatmul.mubr.msk.bf16.gmra.mrb[136].mxu0 %vm458_vm1, %v13552_v57  ;;  %v16506_v57 = vld [vmem:[%s17162_s1 + $0x23c] sm:$0xff]  }
 0x357   :  { %12015 = vmatprep.mubr.msk.bf16.mxu0 %vm458_vm1, %v13554_v10  ;;  %v13560_v10 = vld [vmem:[%s17163_s0 + $0x254] sm:$0xff]  }
 0x35c   :  { %12306 = vmatmul.mubr.msk.bf16.gmra.mrb[136].mxu1 %vm458_vm1, %v16495_v41 }
 0x35d   :  { %12309 = vmatprep.mubr.msk.bf16.mxu1 %vm458_vm1, %v16506_v57 }
 0x35e   :  { %12016 = vmatmul.mubr.msk.bf16.gmra.mrb[140].mxu0 %vm458_vm1, %v13556_v61  ;;  %v16517_v61 = vld [vmem:[%s17162_s1 + $0x244] sm:$0xff]  }
 0x35f   :  { %12019 = vmatprep.mubr.msk.bf16.mxu0 %vm458_vm1, %v13558_v26  ;;  %v13562_v26 = vld [vmem:[%s17163_s0 + $0x25c] sm:$0xff]  }
 0x364   :  { %12310 = vmatmul.mubr.msk.bf16.gmra.mrb[140].mxu1 %vm458_vm1, %v16517_v61 }
 0x365   :  { %12313 = vmatprep.mubr.msk.bf16.mxu1 %vm458_vm1, %v16528_v63  ;;  %v16550_v63 = vld [vmem:[%s17162_s1 + $0x25c] sm:$0xff]  }
 0x366   :  { %12020 = vmatmul.mubr.msk.bf16.gmra.mrb[144].mxu0 %vm458_vm1, %v13560_v10  ;;  %v13564_v10 = vld [vmem:[%s17163_s0 + $0x264] sm:$0xff]   ;;  %17465 = vst [vmem:[#allocation39_spill] sm:$0xff] %v16550_v63 }
 0x367   :  { %12023 = vmatprep.mubr.msk.bf16.mxu0 %vm458_vm1, %v13562_v26  ;;  %v13566_v26 = vld [vmem:[%s17163_s0 + $0x26c] sm:$0xff]  }
 0x36c   :  { %12314 = vmatmul.mubr.msk.bf16.gmra.mrb[144].mxu1 %vm458_vm1, %v16539_v0  ;;  %v16561_v0 = vld [vmem:[%s17162_s1 + $0x264] sm:$0xff]  }
 0x36d   :  { %12317 = vmatprep.mubr.msk.bf16.mxu1 %vm458_vm1, %v16550_v63  ;;  %17466 = vst [vmem:[#allocation40_spill] sm:$0xff] %v16561_v0  ;;  %v16572_v63 = vld [vmem:[%s17162_s1 + $0x26c] sm:$0xff]  }
 0x36e   :  { %12024 = vmatmul.mubr.msk.bf16.gmra.mrb[148].mxu0 %vm458_vm1, %v13564_v10  ;;  %v13568_v10 = vld [vmem:[%s17163_s0 + $0x274] sm:$0xff]  }
 0x36f   :  { %12027 = vmatprep.mubr.msk.bf16.mxu0 %vm458_vm1, %v13566_v26  ;;  %v13570_v26 = vld [vmem:[%s17163_s0 + $0x27c] sm:$0xff]  }
 0x374   :  { %12318 = vmatmul.mubr.msk.bf16.gmra.mrb[148].mxu1 %vm458_vm1, %v16561_v0  ;;  %v16583_v0 = vld [vmem:[%s17162_s1 + $0x274] sm:$0xff]  }
 0x375   :  { %12321 = vmatprep.mubr.msk.bf16.mxu1 %vm458_vm1, %v16572_v63 }
 0x376   :  { %12028 = vmatmul.mubr.msk.bf16.gmra.mrb[152].mxu0 %vm458_vm1, %v13568_v10  ;;  %v13572_v10 = vld [vmem:[%s17163_s0 + $0x284] sm:$0xff]  }
 0x377   :  { %12031 = vmatprep.mubr.msk.bf16.mxu0 %vm458_vm1, %v13570_v26 }
 0x37c   :  { %12322 = vmatmul.mubr.msk.bf16.gmra.mrb[152].mxu1 %vm458_vm1, %v16583_v0 }
 0x37d   :  { %12325 = vmatprep.mubr.msk.bf16.mxu1 %vm458_vm1, %v15749_v40  ;;  %v8246_v40 = vshll.u32 %v16224_v9, 16 }
 0x37e   :  { %12032 = vmatmul.mubr.msk.bf16.gmra.mrb[156].mxu0 %vm458_vm1, %v13572_v10  ;;  %v8303_v10 = vshrl.u32 %v16352_v46, 16 }
 0x37f   :  { %12035 = vmatprep.mubr.msk.bf16.mxu0 %vm458_vm1, %v15771_v36  ;;  %v8244_v36 = vshrl.u32 %v16224_v9, 16  ;;  %v17471_v9 = vld [vmem:[#allocation5_spill] sm:$0xff] }
 0x384   :  { %12326 = vmatmul.mubr.msk.bf16.gmra.mrb[156].mxu1 %vm458_vm1, %v15783_v19  ;;  %v8250_v19 = vshll.u32 %v16247_v1, 16 }
 0x385   :  { %12329 = vmatprep.mubr.msk.bf16.mxu1 %vm458_vm1, %v15791_v28 }
 0x386   :  { %12036 = vmatmul.mubr.msk.bf16.gmra.mrb[160].mxu0 %vm458_vm1, %v15778_v54  ;;  %v8248_v54 = vrot.slane %v8246_v40, 1  ;;  %v8306_v40 = vshll.u32 %v16363_v13, 16 }
 0x387   :  { %12039 = vmatprep.mubr.msk.bf16.mxu0 %vm458_vm1, %v15814_v55  ;;  %v8252_v55 = vrot.slane %v8250_v19, 1  ;;  %v17473_v19 = vld [vmem:[#allocation47_spill] sm:$0xff] }
 0x388   :  { %v8249_v28 = vor.u32 %v8248_v54, %v8244_v36  ;;  %v17472_v36 = vld [vmem:[#allocation46_spill] sm:$0xff] }
 0x38c   :  { %12330 = vmatmul.mubr.msk.bf16.gmra.mrb[160].mxu1 %vm458_vm1, %v15833_v24  ;;  %v8254_v24 = vshrl.u32 %v16247_v1, 16 }
 0x38d   :  { %12333 = vmatprep.mubr.msk.bf16.mxu1 %vm458_vm1, %v15845_v16  ;;  %v8253_v16 = vsel %vm1767_vm2, %v8249_v28, %v8252_v55 }
 0x38e   :  { %12040 = vmatmul.mubr.msk.bf16.gmra.mrb[164].mxu0 %vm458_vm1, %v15826_v7  ;;  %v8257_v7 = vshll.u32 %v16263_v5, 16 }
 0x38f   :  { %12043 = vmatprep.mubr.msk.bf16.mxu0 %vm458_vm1, %v15868_v44  ;;  %v8261_v44 = vshrl.u32 %v16263_v5, 16 }
 0x394   :  { %12334 = vmatmul.mubr.msk.bf16.gmra.mrb[164].mxu1 %vm458_vm1, %v15884_v15  ;;  %v17467_v15 = vld [vmem:[#allocation3_spill] sm:$0xff] }
 0x395   :  { %12337 = vmatprep.mubr.msk.bf16.mxu1 %vm458_vm1, %v15894_v48  ;;  %v8256_v48 = vor.u32 %v8254_v24, %v8252_v55  ;;  %v8310_v24 = vshrl.u32 %v16363_v13, 16 }
 0x396   :  { %12044 = vmatmul.mubr.msk.bf16.gmra.mrb[168].mxu0 %vm458_vm1, %v15879_v33  ;;  %v8264_v33 = vshll.u32 %v16281_v53, 16 }
 0x397   :  { %12047 = vmatprep.mubr.msk.bf16.mxu0 %vm458_vm1, %v15918_v38 }
 0x39c   :  { %12338 = vmatmul.mubr.msk.bf16.gmra.mrb[168].mxu1 %vm458_vm1, %v15930_v49  ;;  %v8271_v49 = vshll.u32 %v16292_v18, 16 }
 0x39d   :  { %12341 = vmatprep.mubr.msk.bf16.mxu1 %vm458_vm1, %v15943_v47 }
 0x39e   :  { %12048 = vmatmul.mubr.msk.bf16.gmra.mrb[172].mxu0 %vm458_vm1, %v15925_v45  ;;  %v8266_v45 = vrot.slane %v8264_v33, 1  ;;  %v8320_v33 = vshll.u32 %v16385_v2, 16 }
 0x39f   :  { %12051 = vmatprep.mubr.msk.bf16.mxu0 %vm458_vm1, %v15966_v11  ;;  %v8268_v11 = vshrl.u32 %v16281_v53, 16 }
 0x3a0   :  { %v8322_v13 = vrot.slane %v8320_v33, 1  ;;  %v8380_v33 = vshrl.u32 %v16473_v58, 16 }
 0x3a4   :  { %12342 = vmatmul.mubr.msk.bf16.gmra.mrb[172].mxu1 %vm458_vm1, %v15985_v22  ;;  %v8278_v22 = vshll.u32 %v16310_v29, 16 }
 0x3a5   :  { %12345 = vmatprep.mubr.msk.bf16.mxu1 %vm458_vm1, %v15997_v21  ;;  %v17468_v21 = vld [vmem:[#allocation44_spill] sm:$0xff] }
 0x3a6   :  { %12052 = vmatmul.mubr.msk.bf16.gmra.mrb[176].mxu0 %vm458_vm1, %v15978_v32  ;;  %v8275_v32 = vshrl.u32 %v16292_v18, 16  ;;  %v8299_v18 = vshll.u32 %v16352_v46, 16 }
 0x3a7   :  { %12055 = vmatprep.mubr.msk.bf16.mxu0 %vm458_vm1, %v16020_v59  ;;  %v8273_v59 = vrot.slane %v8271_v49, 1  ;;  %v8327_v49 = vshll.u32 %v16396_v23, 16 }
 0x3a8   :  { %v8301_v54 = vrot.slane %v8299_v18, 1  ;;  %v8362_v18 = vshll.u32 %v16451_v8, 16 }
 0x3aa   :  { %v8305_v55 = vor.u32 %v8303_v10, %v8301_v54 }
 0x3ac   :  { %12346 = vmatmul.mubr.msk.bf16.gmra.mrb[176].mxu1 %vm458_vm1, %v16036_v17  ;;  %v8270_v17 = vor.u32 %v8268_v11, %v8266_v45 }
 0x3ad   :  { %12349 = vmatprep.mubr.msk.bf16.mxu1 %vm458_vm1, %v16046_v43  ;;  %v8277_v43 = vor.u32 %v8275_v32, %v8273_v59  ;;  %v8334_v32 = vshll.u32 %v16407_v12, 16 }
 0x3ae   :  { %12056 = vmatmul.mubr.msk.bf16.gmra.mrb[180].mxu0 %vm458_vm1, %v16031_v6  ;;  %v17469_v6 = vld [vmem:[#allocation45_spill] sm:$0xff] }
 0x3af   :  { %12059 = vmatprep.mubr.msk.bf16.mxu0 %vm458_vm1, %v16070_v27  ;;  %v8280_v27 = vrot.slane %v8278_v22, 1  ;;  %v17476_v22 = vld [vmem:[#allocation48_spill] sm:$0xff] }
 0x3b4   :  { %12350 = vmatmul.mubr.msk.bf16.gmra.mrb[180].mxu1 %vm458_vm1, %v16082_v14  ;;  %v8274_v14 = vsel %vm1767_vm2, %v8270_v17, %v8273_v59  ;;  %v17477_v59 = vld [vmem:[#allocation49_spill] sm:$0xff] }
 0x3b5   :  { %12353 = vmatprep.mubr.msk.bf16.mxu1 %vm458_vm1, %v16089_v42  ;;  %v8282_v42 = vshrl.u32 %v16310_v29, 16 }
 0x3b6   :  { %12060 = vmatmul.mubr.msk.bf16.gmra.mrb[184].mxu0 %vm458_vm1, %v16077_v35  ;;  %v8285_v35 = vshll.u32 %v16322_v25, 16 }
 0x3b7   :  { %12063 = vmatprep.mubr.msk.bf16.mxu0 %vm458_vm1, %v16117_v51  ;;  %v8281_v51 = vsel %vm1767_vm2, %v8277_v43, %v8280_v27  ;;  %v8284_v1 = vor.u32 %v8282_v42, %v8280_v27  ;;  %v8341_v43 = vshll.u32 %v16418_v60, 16  ;;  %v8338_v27 = vshrl.u32 %v16407_v12, 16 }
 0x3b8   :  { %v8348_v42 = vshll.u32 %v16429_v56, 16 }
 0x3ba   :  { %v8350_v12 = vrot.slane %v8348_v42, 1  ;;  %v17489_v42 = vld [vmem:[#allocation38_spill] sm:$0xff] }
 0x3bc   :  { %12354 = vmatmul.mubr.msk.bf16.gmra.mrb[184].mxu1 %vm458_vm1, %v16132_v31  ;;  %v8292_v31 = vshll.u32 %v16337_v4, 16 }
 0x3bd   :  { %12357 = vmatprep.mubr.msk.bf16.mxu1 %vm458_vm1, %v16141_v37  ;;  %v17470_v37 = vld [vmem:[#allocation4_spill] sm:$0xff] }
 0x3be   :  { %12064 = vmatmul.mubr.msk.bf16.gmra.mrb[188].mxu0 %vm458_vm1, %v16127_v30  ;;  %v8289_v30 = vshrl.u32 %v16322_v25, 16  ;;  %v8294_v53 = vrot.slane %v8292_v31, 1  ;;  %v8296_v25 = vshrl.u32 %v16337_v4, 16  ;;  %v8308_v4 = vrot.slane %v8306_v40, 1  ;;  %v17479_v31 = vld [vmem:[#allocation9_spill] sm:$0xff] }
 0x3bf   :  { %12069 = vmatprep.mubr.msk.bf16.mxu0 %vm458_vm1, %v15253_v39  ;;  %v8259_v39 = vrot.slane %v8257_v7, 1  ;;  %v8313_v7 = vshll.u32 %v16374_v34, 16 }
 0x3c0   :  { %v8298_v28 = vor.u32 %v8296_v25, %v8294_v53 }
 0x3c1   :  { %v8263_v38 = vor.u32 %v8261_v44, %v8259_v39  ;;  %v8260_v47 = vsel %vm1767_vm2, %v8256_v48, %v8259_v39  ;;  %v8317_v44 = vshrl.u32 %v16374_v34, 16  ;;  %v17474_v39 = vld [vmem:[#allocation6_spill] sm:$0xff]  ;;  %v17475_v48 = vld [vmem:[#allocation7_spill] sm:$0xff] }
 0x3c2   :  { %v8302_v46 = vsel %vm1767_vm2, %v8298_v28, %v8301_v54  ;;  %v8366_v54 = vshrl.u32 %v16451_v8, 16  ;;  %v8373_v28 = vshrl.u32 %v16462_v20, 16 }
 0x3c4   :  { %12358 = vmatmul.mubr.msk.bf16.gmra.mrb[188].mxu1 %vm458_vm1, %v16176_v62  ;;  %v8287_v62 = vrot.slane %v8285_v35, 1 }
 0x3c5   :  { %12363 = vmatprep.mubr.msk.bf16.mxu1 %vm458_vm1, %v8253_v16  ;;  %v8309_v16 = vsel %vm1767_vm2, %v8305_v55, %v8308_v4  ;;  %v8376_v55 = vshll.u32 %v16473_v58, 16 }
 0x3c6   :  { %12070 = vmatmul.mubr.msk.bf16.vlgmr.msra.gmra.mrb[96].mxu0 %vm458_vm1, %v15278_v50  ;;  %v8267_v50 = vsel %vm1767_vm2, %v8263_v38, %v8266_v45  ;;  %v8291_v5 = vor.u32 %v8289_v30, %v8287_v62  ;;  %v8288_v29 = vsel %vm1767_vm2, %v8284_v1, %v8287_v62  ;;  %v8312_v38 = vor.u32 %v8310_v24, %v8308_v4  ;;  %v17482_v4 = vld [vmem:[#allocation10_spill] sm:$0xff] }
 0x3c7   :  { %12073 = vmatprep.mubr.msk.bf16.mxu0 %vm458_vm1, %v17467_v15  ;;  %v8315_v15 = vrot.slane %v8313_v7, 1  ;;  %v8343_v30 = vrot.slane %v8341_v43, 1  ;;  %v8352_v1 = vshrl.u32 %v16429_v56, 16  ;;  %v8364_v56 = vrot.slane %v8362_v18, 1  ;;  %v17488_v43 = vld [vmem:[#allocation37_spill] sm:$0xff] }
 0x3c8   :  { %v8295_v26 = vsel %vm1767_vm2, %v8291_v5, %v8294_v53  ;;  %v8359_v53 = vshrl.u32 %v16440_v3, 16  ;;  %v8378_v8 = vrot.slane %v8376_v55, 1 }
 0x3c9   :  { %v8319_v45 = vor.u32 %v8317_v44, %v8315_v15  ;;  %v8316_v34 = vsel %vm1767_vm2, %v8312_v38, %v8315_v15  ;;  %v8354_v10 = vor.u32 %v8352_v1, %v8350_v12  ;;  %v8368_v24 = vor.u32 %v8366_v54, %v8364_v56  ;;  %v17484_v38 = vld [vmem:[#allocation52_spill] sm:$0xff] }
 0x3ca   :  { %v8383_v44 = vshll.u32 %v16484_v52, 16  ;;  %v8387_v15 = vshrl.u32 %v16484_v52, 16  ;;  %v8439_v54 = vshll.u32 %v16572_v63, 16 }
 0x3cb   :  { %v8323_v11 = vsel %vm1767_vm2, %v8319_v45, %v8322_v13 }
 0x3cc   :  { %12364 = vmatmul.mubr.msk.bf16.vlgmr.msra.gmra.mrb[96].mxu1 %vm458_vm1, %v8260_v47  ;;  %v8324_v47 = vshrl.u32 %v16385_v2, 16  ;;  %v8336_v2 = vrot.slane %v8334_v32, 1  ;;  %v8385_v45 = vrot.slane %v8383_v44, 1  ;;  %v8401_v32 = vshrl.u32 %v16506_v57, 16 }
 0x3cd   :  { %12367 = vmatprep.mubr.msk.bf16.mxu1 %vm458_vm1, %v8267_v50  ;;  %v8331_v50 = vshrl.u32 %v16396_v23, 16 }
 0x3ce   :  { %12074 = vmatmul.mubr.msk.bf16.gmra.mrb[100].mxu0 %vm458_vm1, %v17468_v21  ;;  %v8329_v21 = vrot.slane %v8327_v49, 1  ;;  %v8382_v49 = vor.u32 %v8380_v33, %v8378_v8 }
 0x3cf   :  { %12077 = vmatprep.mubr.msk.bf16.mxu0 %vm458_vm1, %v17469_v6  ;;  %v8326_v6 = vor.u32 %v8324_v47, %v8322_v13  ;;  %v17485_v13 = vld [vmem:[#allocation53_spill] sm:$0xff]  ;;  %v8397_v47 = vshll.u32 %v16506_v57, 16 }
 0x3d0   :  { %v8333_v17 = vor.u32 %v8331_v50, %v8329_v21  ;;  %v8386_v52 = vsel %vm1767_vm2, %v8382_v49, %v8385_v45  ;;  %v17498_v49 = vld [vmem:[#allocation18_spill] sm:$0xff] }
 0x3d1   :  { %v8330_v23 = vsel %vm1767_vm2, %v8326_v6, %v8329_v21  ;;  %v17486_v21 = vld [vmem:[#allocation12_spill] sm:$0xff]  ;;  %v17487_v6 = vld [vmem:[#allocation13_spill] sm:$0xff] }
 0x3d2   :  { %v8337_v35 = vsel %vm1767_vm2, %v8333_v17, %v8336_v2 }
 0x3d4   :  { %12368 = vmatmul.mubr.msk.bf16.gmra.mrb[100].mxu1 %vm458_vm1, %v8274_v14  ;;  %v8345_v14 = vshrl.u32 %v16418_v60, 16 }
 0x3d5   :  { %12371 = vmatprep.mubr.msk.bf16.mxu1 %vm458_vm1, %v8281_v51  ;;  %v17478_v51 = vld [vmem:[#allocation8_spill] sm:$0xff] }
 0x3d6   :  { %12078 = vmatmul.mubr.msk.bf16.gmra.mrb[104].mxu0 %vm458_vm1, %v17470_v37  ;;  %v8340_v37 = vor.u32 %v8338_v27, %v8336_v2  ;;  %v8347_v62 = vor.u32 %v8345_v14, %v8343_v30  ;;  %v8408_v27 = vshrl.u32 %v16517_v61, 16  ;;  %v8415_v14 = vshrl.u32 %v17488_v43, 16 }
 0x3d7   :  { %12081 = vmatprep.mubr.msk.bf16.mxu0 %vm458_vm1, %v17471_v9  ;;  %v8355_v9 = vshll.u32 %v16440_v3, 16 }
 0x3d8   :  { %v8344_v60 = vsel %vm1767_vm2, %v8340_v37, %v8343_v30  ;;  %v8351_v5 = vsel %vm1767_vm2, %v8347_v62, %v8350_v12  ;;  %v17490_v30 = vld [vmem:[#allocation54_spill] sm:$0xff] }
 0x3d9   :  { %v8357_v25 = vrot.slane %v8355_v9, 1  ;;  %v17491_v37 = vld [vmem:[#allocation14_spill] sm:$0xff]  ;;  %v17492_v9 = vld [vmem:[#allocation39_spill] sm:$0xff] }
 0x3da   :  { %v8429_v18 = vshrl.u32 %v17492_v9, 16 }
 0x3db   :  { %v8361_v40 = vor.u32 %v8359_v53, %v8357_v25  ;;  %v8358_v3 = vsel %vm1767_vm2, %v8354_v10, %v8357_v25 }
 0x3dc   :  { %12372 = vmatmul.mubr.msk.bf16.gmra.mrb[104].mxu1 %vm458_vm1, %v8288_v29  ;;  %v17480_v29 = vld [vmem:[#allocation50_spill] sm:$0xff] }
 0x3dd   :  { %12375 = vmatprep.mubr.msk.bf16.mxu1 %vm458_vm1, %v8295_v26  ;;  %v17481_v26 = vld [vmem:[#allocation51_spill] sm:$0xff] }
 0x3de   :  { %12082 = vmatmul.mubr.msk.bf16.gmra.mrb[108].mxu0 %vm458_vm1, %v17472_v36  ;;  %v8369_v36 = vshll.u32 %v16462_v20, 16 }
 0x3df   :  { %12085 = vmatprep.mubr.msk.bf16.mxu0 %vm458_vm1, %v17473_v19  ;;  %v8365_v19 = vsel %vm1767_vm2, %v8361_v40, %v8364_v56  ;;  %v17495_v40 = vld [vmem:[#allocation55_spill] sm:$0xff] }
 0x3e0   :  { %v8371_v7 = vrot.slane %v8369_v36, 1 }
 0x3e2   :  { %v8372_v20 = vsel %vm1767_vm2, %v8368_v24, %v8371_v7  ;;  %v8441_v24 = vrot.slane %v8439_v54, 1  ;;  %v17505_v54 = vld [vmem:[#allocation25_spill] sm:$0xff] }
 0x3e4   :  { %12376 = vmatmul.mubr.msk.bf16.gmra.mrb[108].mxu1 %vm458_vm1, %v8302_v46  ;;  %v17483_v46 = vld [vmem:[#allocation11_spill] sm:$0xff] }
 0x3e5   :  { %12379 = vmatprep.mubr.msk.bf16.mxu1 %vm458_vm1, %v8309_v16  ;;  %v8375_v16 = vor.u32 %v8373_v28, %v8371_v7  ;;  %v8446_v7 = vshll.u32 %v16583_v0, 16 }
 0x3e6   :  { %12086 = vmatmul.mubr.msk.bf16.gmra.mrb[112].mxu0 %vm458_vm1, %v17474_v39 }
 0x3e7   :  { %12089 = vmatprep.mubr.msk.bf16.mxu0 %vm458_vm1, %v17475_v48  ;;  %v8379_v39 = vsel %vm1767_vm2, %v8375_v16, %v8378_v8  ;;  %v8390_v48 = vshll.u32 %v16495_v41, 16  ;;  %v17497_v16 = vld [vmem:[#allocation17_spill] sm:$0xff] }
 0x3e9   :  { %v8392_v58 = vrot.slane %v8390_v48, 1 }
 0x3ec   :  { %12380 = vmatmul.mubr.msk.bf16.gmra.mrb[112].mxu1 %vm458_vm1, %v8316_v34  ;;  %v8389_v34 = vor.u32 %v8387_v15, %v8385_v45  ;;  %v8450_v15 = vshrl.u32 %v16583_v0, 16  ;;  %v13575_v45 = vld [vmem:[%s17162_s1 + $0x284] sm:$0xff]  }
 0x3ed   :  { %12383 = vmatprep.mubr.msk.bf16.mxu1 %vm458_vm1, %v8323_v11  ;;  %v8394_v11 = vshrl.u32 %v16495_v41, 16 }
 0x3ee   :  { %12090 = vmatmul.mubr.msk.bf16.gmra.mrb[116].mxu0 %vm458_vm1, %v17476_v22  ;;  %v8393_v50 = vsel %vm1767_vm2, %v8389_v34, %v8392_v58  ;;  %v8404_v22 = vshll.u32 %v16517_v61, 16 }
 0x3ef   :  { %12093 = vmatprep.mubr.msk.bf16.mxu0 %vm458_vm1, %v17477_v59  ;;  %v8399_v59 = vrot.slane %v8397_v47, 1  ;;  %v8396_v17 = vor.u32 %v8394_v11, %v8392_v58  ;;  %v17499_v58 = vld [vmem:[#allocation19_spill] sm:$0xff] }
 0x3f0   :  { %v8406_v41 = vrot.slane %v8404_v22, 1  ;;  %v13576_v11 = vld [vmem:[%s17162_s1 + $0x28c] sm:$0xff]   ;;  %v8464_v22 = vshrl.u32 %v13575_v45, 16 }
 0x3f1   :  { %v8403_v2 = vor.u32 %v8401_v32, %v8399_v59  ;;  %v8400_v57 = vsel %vm1767_vm2, %v8396_v17, %v8399_v59  ;;  %v8471_v59 = vshrl.u32 %v13576_v11, 16 }
 0x3f2   :  { %v8410_v62 = vor.u32 %v8408_v27, %v8406_v41 }
 0x3f4   :  { %12384 = vmatmul.mubr.msk.bf16.gmra.mrb[116].mxu1 %vm458_vm1, %v8330_v23  ;;  %v8411_v23 = vshll.u32 %v17488_v43, 16  ;;  %v17501_v43 = vld [vmem:[#allocation21_spill] sm:$0xff] }
 0x3f5   :  { %12387 = vmatprep.mubr.msk.bf16.mxu1 %vm458_vm1, %v8337_v35  ;;  %v8407_v35 = vsel %vm1767_vm2, %v8403_v2, %v8406_v41  ;;  %v17500_v2 = vld [vmem:[#allocation20_spill] sm:$0xff] }
 0x3f6   :  { %12094 = vmatmul.mubr.msk.bf16.gmra.mrb[120].mxu0 %vm458_vm1, %v17478_v51  ;;  %v8418_v51 = vshll.u32 %v17489_v42, 16 }
 0x3f7   :  { %12097 = vmatprep.mubr.msk.bf16.mxu0 %vm458_vm1, %v17479_v31  ;;  %v8413_v31 = vrot.slane %v8411_v23, 1 }
 0x3f8   :  { %v8420_v61 = vrot.slane %v8418_v51, 1 }
 0x3f9   :  { %v8417_v12 = vor.u32 %v8415_v14, %v8413_v31  ;;  %v8414_v1 = vsel %vm1767_vm2, %v8410_v62, %v8413_v31 }
 0x3fb   :  { %v8421_v53 = vsel %vm1767_vm2, %v8417_v12, %v8420_v61  ;;  %v17502_v12 = vld [vmem:[#allocation22_spill] sm:$0xff] }
 0x3fc   :  { %12388 = vmatmul.mubr.msk.bf16.gmra.mrb[120].mxu1 %vm458_vm1, %v8344_v60  ;;  %v8425_v60 = vshll.u32 %v17492_v9, 16  ;;  %v17503_v9 = vld [vmem:[#allocation23_spill] sm:$0xff] }
 0x3fd   :  { %12391 = vmatprep.mubr.msk.bf16.mxu1 %vm458_vm1, %v8351_v5  ;;  %v8422_v5 = vshrl.u32 %v17489_v42, 16 }
 0x3fe   :  { %12098 = vmatmul.mubr.msk.bf16.gmra.mrb[124].mxu0 %vm458_vm1, %v17480_v29  ;;  %v17493_v29 = vld [vmem:[#allocation40_spill] sm:$0xff]  ;;  %v8427_v10 = vrot.slane %v8425_v60, 1 }
 0x3ff   :  { %12101 = vmatprep.mubr.msk.bf16.mxu0 %vm458_vm1, %v17481_v26  ;;  %v8432_v25 = vshll.u32 %v17493_v29, 16  ;;  %v17494_v26 = vld [vmem:[#allocation15_spill] sm:$0xff]  ;;  %v8424_v56 = vor.u32 %v8422_v5, %v8420_v61  ;;  %v8436_v28 = vshrl.u32 %v17493_v29, 16 }
 0x400   :  { %v8431_v36 = vor.u32 %v8429_v18, %v8427_v10 }
 0x404   :  { %12392 = vmatmul.mubr.msk.bf16.gmra.mrb[124].mxu1 %vm458_vm1, %v8358_v3  ;;  %v8434_v3 = vrot.slane %v8432_v25, 1 }
 0x405   :  { %12395 = vmatprep.mubr.msk.bf16.mxu1 %vm458_vm1, %v8365_v19  ;;  %v8428_v19 = vsel %vm1767_vm2, %v8424_v56, %v8427_v10 }
 0x406   :  { %12102 = vmatmul.mubr.msk.bf16.gmra.mrb[128].mxu0 %vm458_vm1, %v17482_v4  ;;  %v8435_v55 = vsel %vm1767_vm2, %v8431_v36, %v8434_v3  ;;  %v8443_v4 = vshrl.u32 %v16572_v63, 16  ;;  %v8438_v8 = vor.u32 %v8436_v28, %v8434_v3  ;;  %v13574_v63 = vld [vmem:[%s17162_s1 + $0x27c] sm:$0xff]   ;;  %v17504_v36 = vld [vmem:[#allocation24_spill] sm:$0xff] }
 0x407   :  { %12105 = vmatprep.mubr.msk.bf16.mxu0 %vm458_vm1, %v17483_v46  ;;  %v17496_v46 = vld [vmem:[#allocation16_spill] sm:$0xff]  ;;  %v8453_v33 = vshll.u32 %v13574_v63, 16 }
 0x408   :  { %v8445_v44 = vor.u32 %v8443_v4, %v8441_v24  ;;  %v13582_v4 = vld [vmem:[%s17162_s1 + $0x2bc] sm:$0xff]  }
 0x409   :  { %v8455_v34 = vrot.slane %v8453_v33, 1 }
 0x40c   :  { %12396 = vmatmul.mubr.msk.bf16.gmra.mrb[128].mxu1 %vm458_vm1, %v8372_v20  ;;  %v8448_v20 = vrot.slane %v8446_v7, 1  ;;  %v8509_v7 = vshll.u32 %v13582_v4, 16 }
 0x40d   :  { %12399 = vmatprep.mubr.msk.bf16.mxu1 %vm458_vm1, %v8379_v39  ;;  %v8442_v39 = vsel %vm1767_vm2, %v8438_v8, %v8441_v24  ;;  %v8513_v8 = vshrl.u32 %v13582_v4, 16  ;;  %v17514_v4 = vld [vmem:[#allocation34_spill] sm:$0xff] }
 0x40e   :  { %12106 = vmatmul.mubr.msk.bf16.gmra.mrb[132].mxu0 %vm458_vm1, %v17484_v38  ;;  %v8449_v48 = vsel %vm1767_vm2, %v8445_v44, %v8448_v20  ;;  %v8457_v38 = vshrl.u32 %v13574_v63, 16  ;;  %v8452_v0 = vor.u32 %v8450_v15, %v8448_v20  ;;  %v13583_v44 = vld [vmem:[%s17162_s1 + $0x2c4] sm:$0xff]   ;;  %v8511_v33 = vrot.slane %v8509_v7, 1 }
 0x40f   :  { %12109 = vmatprep.mubr.msk.bf16.mxu0 %vm458_vm1, %v17485_v13  ;;  %v8460_v13 = vshll.u32 %v13575_v45, 16  ;;  %v8516_v20 = vshll.u32 %v13583_v44, 16  ;;  %v17506_v63 = vld [vmem:[#allocation26_spill] sm:$0xff]  ;;  %v13584_v45 = vld [vmem:[%s17162_s1 + $0x2cc] sm:$0xff]  }
 0x410   :  { %v8459_v47 = vor.u32 %v8457_v38, %v8455_v34  ;;  %v8456_v32 = vsel %vm1767_vm2, %v8452_v0, %v8455_v34  ;;  %v8520_v34 = vshrl.u32 %v13583_v44, 16  ;;  %v8527_v0 = vshrl.u32 %v13584_v45, 16 }
 0x411   :  { %v8518_v38 = vrot.slane %v8516_v20, 1 }
 0x414   :  { %12400 = vmatmul.mubr.msk.bf16.gmra.mrb[132].mxu1 %vm458_vm1, %v8386_v52  ;;  %v8462_v52 = vrot.slane %v8460_v13, 1  ;;  %v8523_v13 = vshll.u32 %v13584_v45, 16 }
 0x415   :  { %12403 = vmatprep.mubr.msk.bf16.mxu1 %vm458_vm1, %v8393_v50  ;;  %v8467_v50 = vshll.u32 %v13576_v11, 16  ;;  %v17508_v11 = vld [vmem:[#allocation28_spill] sm:$0xff] }
 0x416   :  { %12110 = vmatmul.mubr.msk.bf16.gmra.mrb[136].mxu0 %vm458_vm1, %v17486_v21  ;;  %v8463_v21 = vsel %vm1767_vm2, %v8459_v47, %v8462_v52  ;;  %v8466_v23 = vor.u32 %v8464_v22, %v8462_v52  ;;  %v13585_v47 = vld [vmem:[%s17162_s1 + $0x2d4] sm:$0xff]   ;;  %v8522_v22 = vor.u32 %v8520_v34, %v8518_v38 }
 0x417   :  { %12113 = vmatprep.mubr.msk.bf16.mxu0 %vm458_vm1, %v17487_v6  ;;  %v13577_v6 = vld [vmem:[%s17162_s1 + $0x294] sm:$0xff]   ;;  %v8469_v41 = vrot.slane %v8467_v50, 1  ;;  %v8530_v52 = vshll.u32 %v13585_v47, 16  ;;  %v8525_v50 = vrot.slane %v8523_v13, 1 }
 0x418   :  { %v8474_v17 = vshll.u32 %v13577_v6, 16  ;;  %v8478_v51 = vshrl.u32 %v13577_v6, 16  ;;  %v13586_v6 = vld [vmem:[%s17162_s1 + $0x2dc] sm:$0xff]  }
 0x419   :  { %v8470_v42 = vsel %vm1767_vm2, %v8466_v23, %v8469_v41  ;;  %v8541_v23 = vshrl.u32 %v13586_v6, 16 }
 0x41a   :  { %v8476_v27 = vrot.slane %v8474_v17, 1  ;;  %v8537_v17 = vshll.u32 %v13586_v6, 16 }
 0x41c   :  { %12404 = vmatmul.mubr.msk.bf16.gmra.mrb[136].mxu1 %vm458_vm1, %v8400_v57  ;;  %v8473_v57 = vor.u32 %v8471_v59, %v8469_v41  ;;  %v8480_v60 = vor.u32 %v8478_v51, %v8476_v27  ;;  %v8532_v59 = vrot.slane %v8530_v52, 1  ;;  %v8534_v41 = vshrl.u32 %v13585_v47, 16 }
 0x41d   :  { %12407 = vmatprep.mubr.msk.bf16.mxu1 %vm458_vm1, %v8407_v35  ;;  %v13578_v35 = vld [vmem:[%s17162_s1 + $0x29c] sm:$0xff]  }
 0x41e   :  { %12114 = vmatmul.mubr.msk.bf16.gmra.mrb[140].mxu0 %vm458_vm1, %v17490_v30  ;;  %v8481_v14 = vshll.u32 %v13578_v35, 16  ;;  %v8477_v30 = vsel %vm1767_vm2, %v8473_v57, %v8476_v27  ;;  %v8485_v31 = vshrl.u32 %v13578_v35, 16  ;;  %v13587_v57 = vld [vmem:[%s17162_s1 + $0x2e4] sm:$0xff]   ;;  %v8536_v51 = vor.u32 %v8534_v41, %v8532_v59 }
 0x41f   :  { %12117 = vmatprep.mubr.msk.bf16.mxu0 %vm458_vm1, %v17491_v37  ;;  %v13579_v37 = vld [vmem:[%s17162_s1 + $0x2a4] sm:$0xff]   ;;  %v8544_v27 = vshll.u32 %v13587_v57, 16 }
 0x420   :  { %v8488_v62 = vshll.u32 %v13579_v37, 16  ;;  %v8483_v61 = vrot.slane %v8481_v14, 1  ;;  %v8492_v25 = vshrl.u32 %v13579_v37, 16  ;;  %v17510_v35 = vld [vmem:[#allocation30_spill] sm:$0xff]  ;;  %v8539_v14 = vrot.slane %v8537_v17, 1  ;;  %v13588_v37 = vld [vmem:[%s17162_s1 + $0x2ec] sm:$0xff]  }
 0x421   :  { %v16967_v17 = vld [vmem:[%s17164_s3] ss:$0 sm:$0xff] }
 0x422   :  { %v8490_v5 = vrot.slane %v8488_v62, 1  ;;  %v8484_v29 = vsel %vm1767_vm2, %v8480_v60, %v8483_v61  ;;  %v8551_v62 = vshll.u32 %v13588_v37, 16  ;;  %v8555_v60 = vshrl.u32 %v13588_v37, 16 }
 0x424   :  { %12408 = vmatmul.mubr.msk.bf16.gmra.mrb[140].mxu1 %vm458_vm1, %v8414_v1  ;;  %v8487_v1 = vor.u32 %v8485_v31, %v8483_v61  ;;  %v8546_v31 = vrot.slane %v8544_v27, 1  ;;  %v8548_v61 = vshrl.u32 %v13587_v57, 16 }
 0x425   :  { %12411 = vmatprep.mubr.msk.bf16.mxu1 %vm458_vm1, %v8421_v53  ;;  %v13580_v53 = vld [vmem:[%s17162_s1 + $0x2ac] sm:$0xff]  }
 0x426   :  { %12118 = vmatmul.mubr.msk.bf16.gmra.mrb[144].mxu0 %vm458_vm1, %v17494_v26  ;;  %v8495_v18 = vshll.u32 %v13580_v53, 16  ;;  %v8491_v26 = vsel %vm1767_vm2, %v8487_v1, %v8490_v5  ;;  %v8499_v10 = vshrl.u32 %v13580_v53, 16  ;;  %v13589_v1 = vld [vmem:[%s17162_s1 + $0x2f4] sm:$0xff]  }
 0x427   :  { %12121 = vmatprep.mubr.msk.bf16.mxu0 %vm458_vm1, %v17495_v40  ;;  %v13581_v40 = vld [vmem:[%s17162_s1 + $0x2b4] sm:$0xff]  }
 0x428   :  { %v8502_v56 = vshll.u32 %v13581_v40, 16  ;;  %v8497_v3 = vrot.slane %v8495_v18, 1  ;;  %v8506_v24 = vshrl.u32 %v13581_v40, 16  ;;  %v17512_v53 = vld [vmem:[#allocation32_spill] sm:$0xff]  ;;  %v8553_v18 = vrot.slane %v8551_v62, 1  ;;  %v13590_v40 = vld [vmem:[%s17162_s1 + $0x2fc] sm:$0xff]  }
 0x42a   :  { %v8501_v28 = vor.u32 %v8499_v10, %v8497_v3 }
 0x42c   :  { %12412 = vmatmul.mubr.msk.bf16.gmra.mrb[144].mxu1 %vm458_vm1, %v8428_v19  ;;  %v8494_v19 = vor.u32 %v8492_v25, %v8490_v5  ;;  %v8558_v5 = vshll.u32 %v13589_v1, 16  ;;  %v8550_v25 = vor.u32 %v8548_v61, %v8546_v31 }
 0x42d   :  { %12415 = vmatprep.mubr.msk.bf16.mxu1 %vm458_vm1, %v8435_v55  ;;  %v8504_v55 = vrot.slane %v8502_v56, 1  ;;  %v8565_v56 = vshll.u32 %v13590_v40, 16 }
 0x42e   :  { %12122 = vmatmul.mubr.msk.bf16.gmra.mrb[148].mxu0 %vm458_vm1, %v17496_v46  ;;  %v8498_v46 = vsel %vm1767_vm2, %v8494_v19, %v8497_v3  ;;  %v8560_v10 = vrot.slane %v8558_v5, 1  ;;  %v8562_v3 = vshrl.u32 %v13589_v1, 16  ;;  %v8569_v19 = vshrl.u32 %v13590_v40, 16 }
 0x42f   :  { %12125 = vmatprep.mubr.msk.bf16.mxu0 %vm458_vm1, %v17497_v16  ;;  %v8505_v16 = vsel %vm1767_vm2, %v8501_v28, %v8504_v55  ;;  %v8508_v15 = vor.u32 %v8506_v24, %v8504_v55  ;;  %v13591_v28 = vld [vmem:[%s17162_s1 + $0x304] sm:$0xff]   ;;  %v8567_v7 = vrot.slane %v8565_v56, 1 }
 0x430   :  { %v8572_v55 = vshll.u32 %v13591_v28, 16  ;;  %v8564_v24 = vor.u32 %v8562_v3, %v8560_v10 }
 0x432   :  { %v8574_v44 = vrot.slane %v8572_v55, 1  ;;  %v8568_v20 = vsel %vm1767_vm2, %v8564_v24, %v8567_v7 }
 0x434   :  { %12416 = vmatmul.mubr.msk.bf16.gmra.mrb[148].mxu1 %vm458_vm1, %v8442_v39  ;;  %v17507_v39 = vld [vmem:[#allocation27_spill] sm:$0xff] }
 0x435   :  { %12419 = vmatprep.mubr.msk.bf16.mxu1 %vm458_vm1, %v8449_v48  ;;  %v8515_v48 = vor.u32 %v8513_v8, %v8511_v33  ;;  %v8571_v8 = vor.u32 %v8569_v19, %v8567_v7 }
 0x436   :  { %12126 = vmatmul.mubr.msk.bf16.gmra.mrb[152].mxu0 %vm458_vm1, %v17498_v49  ;;  %v8512_v49 = vsel %vm1767_vm2, %v8508_v15, %v8511_v33  ;;  %v17516_v15 = vld [vmem:[#allocation36_spill] sm:$0xff] }
 0x437   :  { %12129 = vmatprep.mubr.msk.bf16.mxu0 %vm458_vm1, %v17499_v58  ;;  %v8519_v58 = vsel %vm1767_vm2, %v8515_v48, %v8518_v38 }
 0x43c   :  { %12420 = vmatmul.mubr.msk.bf16.gmra.mrb[152].mxu1 %vm458_vm1, %v8456_v32  ;;  %v17509_v32 = vld [vmem:[#allocation29_spill] sm:$0xff] }
 0x43d   :  { %12423 = vmatprep.mubr.msk.bf16.mxu1 %vm458_vm1, %v8463_v21  ;;  %v8529_v21 = vor.u32 %v8527_v0, %v8525_v50 }
 0x43e   :  { %12130 = vmatmul.mubr.msk.bf16.gmra.mrb[156].mxu0 %vm458_vm1, %v17500_v2  ;;  %v8526_v2 = vsel %vm1767_vm2, %v8522_v22, %v8525_v50 }
 0x43f   :  { %12133 = vmatprep.mubr.msk.bf16.mxu0 %vm458_vm1, %v17501_v43  ;;  %v8533_v43 = vsel %vm1767_vm2, %v8529_v21, %v8532_v59 }
 0x444   :  { %12424 = vmatmul.mubr.msk.bf16.gmra.mrb[156].mxu1 %vm458_vm1, %v8470_v42  ;;  %v17511_v42 = vld [vmem:[#allocation31_spill] sm:$0xff] }
 0x445   :  { %12427 = vmatprep.mubr.msk.bf16.mxu1 %vm458_vm1, %v8477_v30  ;;  %v8543_v30 = vor.u32 %v8541_v23, %v8539_v14 }
 0x446   :  { %12134 = vmatmul.mubr.msk.bf16.gmra.mrb[160].mxu0 %vm458_vm1, %v17502_v12  ;;  %v8540_v12 = vsel %vm1767_vm2, %v8536_v51, %v8539_v14 }
 0x447   :  { %12137 = vmatprep.mubr.msk.bf16.mxu0 %vm458_vm1, %v17503_v9  ;;  %v8547_v9 = vsel %vm1767_vm2, %v8543_v30, %v8546_v31 }
 0x44c   :  { %12428 = vmatmul.mubr.msk.bf16.gmra.mrb[160].mxu1 %vm458_vm1, %v8484_v29  ;;  %v17513_v29 = vld [vmem:[#allocation33_spill] sm:$0xff] }
 0x44d   :  { %12431 = vmatprep.mubr.msk.bf16.mxu1 %vm458_vm1, %v8491_v26  ;;  %v8557_v26 = vor.u32 %v8555_v60, %v8553_v18 }
 0x44e   :  { %12138 = vmatmul.mubr.msk.bf16.gmra.mrb[164].mxu0 %vm458_vm1, %v17504_v36  ;;  %v8554_v36 = vsel %vm1767_vm2, %v8550_v25, %v8553_v18 }
 0x44f   :  { %12141 = vmatprep.mubr.msk.bf16.mxu0 %vm458_vm1, %v17505_v54  ;;  %v8561_v54 = vsel %vm1767_vm2, %v8557_v26, %v8560_v10 }
 0x454   :  { %12432 = vmatmul.mubr.msk.bf16.gmra.mrb[164].mxu1 %vm458_vm1, %v8498_v46  ;;  %v17515_v46 = vld [vmem:[#allocation35_spill] sm:$0xff] }
 0x455   :  { %12435 = vmatprep.mubr.msk.bf16.mxu1 %vm458_vm1, %v8505_v16  ;;  %v13434_v16 = vld [vmem:[%s17162_s1 + $0x30c] ss:$0 sps:$4 sm:$0x11]  }
 0x456   :  { %12142 = vmatmul.mubr.msk.bf16.gmra.mrb[168].mxu0 %vm458_vm1, %v17506_v63  ;;  %v8576_v63 = vshrl.u32 %v13591_v28, 16  ;;  %v8580_v33 = vshll.u32 %v13434_v16, 16 }
 0x457   :  { %12145 = vmatprep.mubr.msk.bf16.mxu0 %vm458_vm1, %v17507_v39  ;;  %v8575_v39 = vsel %vm1767_vm2, %v8571_v8, %v8574_v44 }
 0x458   :  { %v8578_v48 = vor.u32 %v8576_v63, %v8574_v44  ;;  %v8582_v38 = vrot.slane %v8580_v33, 1 }
 0x45a   :  { %v8583_v45 = vsel %vm1767_vm2, %v8578_v48, %v8582_v38 }
 0x45c   :  { %12436 = vmatmul.mubr.msk.bf16.gmra.mrb[168].mxu1 %vm458_vm1, %v8512_v49 }
 0x45d   :  { %12439 = vmatprep.mubr.msk.bf16.mxu1 %vm458_vm1, %v8519_v58 }
 0x45e   :  { %12146 = vmatmul.mubr.msk.bf16.gmra.mrb[172].mxu0 %vm458_vm1, %v17508_v11 }
 0x45f   :  { %12149 = vmatprep.mubr.msk.bf16.mxu0 %vm458_vm1, %v17509_v32 }
 0x464   :  { %12440 = vmatmul.mubr.msk.bf16.gmra.mrb[172].mxu1 %vm458_vm1, %v8526_v2 }
 0x465   :  { %12443 = vmatprep.mubr.msk.bf16.mxu1 %vm458_vm1, %v8533_v43 }
 0x466   :  { %12150 = vmatmul.mubr.msk.bf16.gmra.mrb[176].mxu0 %vm458_vm1, %v17510_v35 }
 0x467   :  { %12153 = vmatprep.mubr.msk.bf16.mxu0 %vm458_vm1, %v17511_v42 }
 0x46c   :  { %12444 = vmatmul.mubr.msk.bf16.gmra.mrb[176].mxu1 %vm458_vm1, %v8540_v12 }
 0x46d   :  { %12447 = vmatprep.mubr.msk.bf16.mxu1 %vm458_vm1, %v8547_v9 }
 0x46e   :  { %12154 = vmatmul.mubr.msk.bf16.gmra.mrb[180].mxu0 %vm458_vm1, %v17512_v53 }
 0x46f   :  { %12157 = vmatprep.mubr.msk.bf16.mxu0 %vm458_vm1, %v17513_v29 }
 0x474   :  { %12448 = vmatmul.mubr.msk.bf16.gmra.mrb[180].mxu1 %vm458_vm1, %v8554_v36 }
 0x475   :  { %12451 = vmatprep.mubr.msk.bf16.mxu1 %vm458_vm1, %v8561_v54 }
 0x476   :  { %12158 = vmatmul.mubr.msk.bf16.gmra.mrb[184].mxu0 %vm458_vm1, %v17514_v4 }
 0x477   :  { %12161 = vmatprep.mubr.msk.bf16.mxu0 %vm458_vm1, %v17515_v46 }
 0x47c   :  { %12452 = vmatmul.mubr.msk.bf16.gmra.mrb[184].mxu1 %vm458_vm1, %v8568_v20 }
 0x47d   :  { %12455 = vmatprep.mubr.msk.bf16.mxu1 %vm458_vm1, %v8575_v39 }
 0x47e   :  { %12162 = vmatmul.mubr.msk.bf16.gmra.mrb[188].mxu0 %vm458_vm1, %v17516_v15 }
 0x484   :  { %12456 = vmatmul.mubr.msk.bf16.gmra.mrb[188].mxu1 %vm458_vm1, %v8583_v45 }
 0x499   :  { %v12071_v13 = vpop.f32.mrb[96].mxu0 }
 0x49a   :  { %v7056_v49 = vpop.f32.mrb[97].mxu0 }
 0x49b   :  { %v12072_v34 = vpop.f32.mrb[98].mxu0 }
 0x49c   :  { %v7059_v58 = vpop.f32.mrb[99].mxu0 }
 0x49f   :  { %v12365_v47 = vpop.f32.mrb[96].mxu1 }
 0x4a0   :  { %v8762_v11 = vpop.f32.mrb[97].mxu1 }
 0x4a1   :  { %v12075_v0 = vpop.f32.mrb[100].mxu0  ;;  %v9177_v32 = vmax.f32 %v7056_v49, %v8762_v11  ;;  %v12366_v22 = vpop.f32.mrb[98].mxu1 }
 0x4a2   :  { %v7071_v52 = vpop.f32.mrb[101].mxu0  ;;  %v9179_v59 = vmax.f32 %v12072_v34, %v12366_v22  ;;  %v8765_v6 = vpop.f32.mrb[99].mxu1 }
 0x4a3   :  { %v12076_v50 = vpop.f32.mrb[102].mxu0  ;;  %v9241_v2 = vadd.f32 %v16967_v17, %v9177_v32  ;;  %v9178_v41 = vmax.f32 %v7059_v58, %v8765_v6 }
 0x4a4   :  { %v7074_v21 = vpop.f32.mrb[103].mxu0  ;;  %v9243_v43 = vadd.f32 %v16967_v17, %v9179_v59 }
 0x4a5   :  { %v9305_v23 = vmax.f32 %v9241_v2, 0.0  ;;  %v9242_v37 = vadd.f32 %v16967_v17, %v9178_v41 }
 0x4a6   :  { %v9307_v57 = vmax.f32 %v9243_v43, 0.0 }
 0x4a7   :  { %v12369_v35 = vpop.f32.mrb[100].mxu1  ;;  %v9306_v53 = vmax.f32 %v9242_v37, 0.0 }
 0x4a8   :  { %v9369_v42 = vmax.f32 %v9305_v23, %v9307_v57  ;;  %v9181_v51 = vmax.f32 %v12075_v0, %v12369_v35  ;;  %v8777_v30 = vpop.f32.mrb[101].mxu1 }
 0x4a9   :  { %v12079_v27 = vpop.f32.mrb[104].mxu0  ;;  %v9180_v62 = vmax.f32 %v7071_v52, %v8777_v30  ;;  %v12370_v12 = vpop.f32.mrb[102].mxu1 }
 0x4aa   :  { %v7086_v14 = vpop.f32.mrb[105].mxu0  ;;  %v10663_v9 = vpack.c.bf16 %v9369_v42, %v9369_v42  ;;  %v9182_v60 = vmax.f32 %v12076_v50, %v12370_v12  ;;  %v8780_v1 = vpop.f32.mrb[103].mxu1  ;;  %v9245_v7 = vadd.f32 %v16967_v17, %v9181_v51 }
 0x4ab   :  { %v12080_v31 = vpop.f32.mrb[106].mxu0  ;;  %v9244_v5 = vadd.f32 %v16967_v17, %v9180_v62 }
 0x4ac   :  { %v7088_v61 = vpop.f32.mrb[107].mxu0  ;;  %10599 = vst.msk [vmem:[%s17165_s4 + $0x80] sm:$0xf] %vm4768_vm3, %v10663_v9  ;;  %v9246_v40 = vadd.f32 %v16967_v17, %v9182_v60  ;;  %v9309_v63 = vmax.f32 %v9245_v7, 0.0 }
 0x4ad   :  { %v9308_v18 = vmax.f32 %v9244_v5, 0.0 }
 0x4ae   :  { %v9310_v24 = vmax.f32 %v9246_v40, 0.0 }
 0x4af   :  { %v9370_v25 = vmax.f32 %v9306_v53, %v9308_v18  ;;  %v12373_v26 = vpop.f32.mrb[104].mxu1 }
 0x4b0   :  { %v9184_v56 = vmax.f32 %v12079_v27, %v12373_v26  ;;  %v8792_v36 = vpop.f32.mrb[105].mxu1 }
 0x4b1   :  { %v12083_v29 = vpop.f32.mrb[108].mxu0  ;;  %v10664_v54 = vpack.c.bf16 %v9370_v25, %v9370_v25  ;;  %v12374_v19 = vpop.f32.mrb[106].mxu1 }
 0x4b2   :  { %v7100_v10 = vpop.f32.mrb[109].mxu0  ;;  %v9248_v55 = vadd.f32 %v16967_v17, %v9184_v56  ;;  %v8794_v4 = vpop.f32.mrb[107].mxu1 }
 0x4b3   :  { %v12084_v3 = vpop.f32.mrb[110].mxu0  ;;  %10600 = vst.msk [vmem:[%s17165_s4 + $0x84] sm:$0xf] %vm4768_vm3, %v10664_v54  ;;  %v9183_v46 = vmax.f32 %v7088_v61, %v8794_v4 }
 0x4b4   :  { %v7103_v28 = vpop.f32.mrb[111].mxu0  ;;  %v9312_v16 = vmax.f32 %v9248_v55, 0.0 }
 0x4b5   :  { %v9247_v8 = vadd.f32 %v16967_v17, %v9183_v46 }
 0x4b6   :  { %v9372_v44 = vmax.f32 %v9310_v24, %v9312_v16 }
 0x4b7   :  { %v9311_v33 = vmax.f32 %v9247_v8, 0.0  ;;  %v12377_v39 = vpop.f32.mrb[108].mxu1 }
 0x4b8   :  { %v10666_v48 = vpack.c.bf16 %v9372_v44, %v9372_v44  ;;  %v8806_v38 = vpop.f32.mrb[109].mxu1 }
 0x4b9   :  { %v12087_v20 = vpop.f32.mrb[112].mxu0  ;;  %v9371_v13 = vmax.f32 %v9309_v63, %v9311_v33  ;;  %v9185_v49 = vmax.f32 %v7100_v10, %v8806_v38  ;;  %v12378_v34 = vpop.f32.mrb[110].mxu1 }
 0x4ba   :  { %v7115_v15 = vpop.f32.mrb[113].mxu0  ;;  %10602 = vst.msk [vmem:[%s17165_s4 + $0x8c] sm:$0xf] %vm4768_vm3, %v10666_v48  ;;  %v9187_v0 = vmax.f32 %v12084_v3, %v12378_v34  ;;  %v8809_v47 = vpop.f32.mrb[111].mxu1 }
 0x4bb   :  { %v12088_v45 = vpop.f32.mrb[114].mxu0  ;;  %v10665_v52 = vpack.c.bf16 %v9371_v13, %v9371_v13  ;;  %v9249_v11 = vadd.f32 %v16967_v17, %v9185_v49  ;;  %v9186_v50 = vmax.f32 %v7103_v28, %v8809_v47 }
 0x4bc   :  { %v7118_v58 = vpop.f32.mrb[115].mxu0  ;;  %v9251_v32 = vadd.f32 %v16967_v17, %v9187_v0 }
 0x4bd   :  { %10601 = vst.msk [vmem:[%s17165_s4 + $0x88] sm:$0xf] %vm4768_vm3, %v10665_v52  ;;  %v9313_v22 = vmax.f32 %v9249_v11, 0.0  ;;  %v9250_v27 = vadd.f32 %v16967_v17, %v9186_v50 }
 0x4be   :  { %v9315_v21 = vmax.f32 %v9251_v32, 0.0 }
 0x4bf   :  { %v12381_v6 = vpop.f32.mrb[112].mxu1  ;;  %v9314_v62 = vmax.f32 %v9250_v27, 0.0 }
 0x4c0   :  { %v9373_v41 = vmax.f32 %v9313_v22, %v9315_v21  ;;  %v9189_v43 = vmax.f32 %v12087_v20, %v12381_v6  ;;  %v8821_v23 = vpop.f32.mrb[113].mxu1 }
 0x4c1   :  { %v12091_v59 = vpop.f32.mrb[116].mxu0  ;;  %v9188_v35 = vmax.f32 %v7115_v15, %v8821_v23  ;;  %v12382_v14 = vpop.f32.mrb[114].mxu1 }
 0x4c2   :  { %v7130_v2 = vpop.f32.mrb[117].mxu0  ;;  %v10667_v51 = vpack.c.bf16 %v9373_v41, %v9373_v41  ;;  %v9190_v30 = vmax.f32 %v12088_v45, %v12382_v14  ;;  %v8824_v31 = vpop.f32.mrb[115].mxu1  ;;  %v9253_v36 = vadd.f32 %v16967_v17, %v9189_v43 }
 0x4c3   :  { %v12092_v57 = vpop.f32.mrb[118].mxu0  ;;  %v9252_v37 = vadd.f32 %v16967_v17, %v9188_v35 }
 0x4c4   :  { %v7132_v42 = vpop.f32.mrb[119].mxu0  ;;  %10603 = vst.msk [vmem:[%s17165_s4 + $0x90] sm:$0xf] %vm4768_vm3, %v10667_v51  ;;  %v9254_v5 = vadd.f32 %v16967_v17, %v9190_v30  ;;  %v9317_v7 = vmax.f32 %v9253_v36, 0.0 }
 0x4c5   :  { %v9316_v12 = vmax.f32 %v9252_v37, 0.0 }
 0x4c6   :  { %v9318_v54 = vmax.f32 %v9254_v5, 0.0 }
 0x4c7   :  { %v9374_v9 = vmax.f32 %v9314_v62, %v9316_v12  ;;  %v12385_v60 = vpop.f32.mrb[116].mxu1 }
 0x4c8   :  { %v9192_v53 = vmax.f32 %v12091_v59, %v12385_v60  ;;  %v8836_v18 = vpop.f32.mrb[117].mxu1 }
 0x4c9   :  { %v12095_v61 = vpop.f32.mrb[120].mxu0  ;;  %v10668_v25 = vpack.c.bf16 %v9374_v9, %v9374_v9  ;;  %v12386_v26 = vpop.f32.mrb[118].mxu1 }
 0x4ca   :  { %v7144_v1 = vpop.f32.mrb[121].mxu0  ;;  %v9256_v40 = vadd.f32 %v16967_v17, %v9192_v53  ;;  %v8838_v56 = vpop.f32.mrb[119].mxu1 }
 0x4cb   :  { %v12096_v29 = vpop.f32.mrb[122].mxu0  ;;  %10604 = vst.msk [vmem:[%s17165_s4 + $0x94] sm:$0xf] %vm4768_vm3, %v10668_v25  ;;  %v9191_v3 = vmax.f32 %v7132_v42, %v8838_v56 }
 0x4cc   :  { %v7147_v10 = vpop.f32.mrb[123].mxu0  ;;  %v9320_v19 = vmax.f32 %v9256_v40, 0.0 }
 0x4cd   :  { %v9255_v28 = vadd.f32 %v16967_v17, %v9191_v3 }
 0x4ce   :  { %v9376_v55 = vmax.f32 %v9318_v54, %v9320_v19 }
 0x4cf   :  { %v9319_v46 = vmax.f32 %v9255_v28, 0.0  ;;  %v12389_v24 = vpop.f32.mrb[120].mxu1 }
 0x4d0   :  { %v10670_v8 = vpack.c.bf16 %v9376_v55, %v9376_v55  ;;  %v8850_v44 = vpop.f32.mrb[121].mxu1 }
 0x4d1   :  { %v12099_v4 = vpop.f32.mrb[124].mxu0  ;;  %v9375_v63 = vmax.f32 %v9317_v7, %v9319_v46  ;;  %v9193_v33 = vmax.f32 %v7144_v1, %v8850_v44  ;;  %v12390_v39 = vpop.f32.mrb[122].mxu1 }
 0x4d2   :  { %v7159_v16 = vpop.f32.mrb[125].mxu0  ;;  %10606 = vst.msk [vmem:[%s17165_s4 + $0x9c] sm:$0xf] %vm4768_vm3, %v10670_v8  ;;  %v9195_v48 = vmax.f32 %v12096_v29, %v12390_v39  ;;  %v8853_v38 = vpop.f32.mrb[123].mxu1 }
 0x4d3   :  { %v12100_v20 = vpop.f32.mrb[126].mxu0  ;;  %v10669_v45 = vpack.c.bf16 %v9375_v63, %v9375_v63  ;;  %v9257_v13 = vadd.f32 %v16967_v17, %v9193_v33  ;;  %v9194_v49 = vmax.f32 %v7147_v10, %v8853_v38 }
 0x4d4   :  { %v7162_v15 = vpop.f32.mrb[127].mxu0  ;;  %v9259_v34 = vadd.f32 %v16967_v17, %v9195_v48 }
 0x4d5   :  { %10605 = vst.msk [vmem:[%s17165_s4 + $0x98] sm:$0xf] %vm4768_vm3, %v10669_v45  ;;  %v9321_v58 = vmax.f32 %v9257_v13, 0.0  ;;  %v9258_v59 = vadd.f32 %v16967_v17, %v9194_v49 }
 0x4d6   :  { %v9323_v0 = vmax.f32 %v9259_v34, 0.0 }
 0x4d7   :  { %v12393_v52 = vpop.f32.mrb[124].mxu1  ;;  %v9322_v35 = vmax.f32 %v9258_v59, 0.0 }
 0x4d8   :  { %v9377_v50 = vmax.f32 %v9321_v58, %v9323_v0  ;;  %v9197_v32 = vmax.f32 %v12099_v4, %v12393_v52  ;;  %v8865_v22 = vpop.f32.mrb[125].mxu1 }
 0x4d9   :  { %v12103_v47 = vpop.f32.mrb[128].mxu0  ;;  %v9196_v6 = vmax.f32 %v7159_v16, %v8865_v22  ;;  %v12394_v2 = vpop.f32.mrb[126].mxu1 }
 0x4da   :  { %v7174_v11 = vpop.f32.mrb[129].mxu0  ;;  %v10671_v43 = vpack.c.bf16 %v9377_v50, %v9377_v50  ;;  %v9198_v23 = vmax.f32 %v12100_v20, %v12394_v2  ;;  %v8868_v57 = vpop.f32.mrb[127].mxu1  ;;  %v9261_v18 = vadd.f32 %v16967_v17, %v9197_v32 }
 0x4db   :  { %v12104_v21 = vpop.f32.mrb[130].mxu0  ;;  %v9260_v27 = vadd.f32 %v16967_v17, %v9196_v6 }
 0x4dc   :  { %v7176_v41 = vpop.f32.mrb[131].mxu0  ;;  %10607 = vst.msk [vmem:[%s17165_s4 + $0xa0] sm:$0xf] %vm4768_vm3, %v10671_v43  ;;  %v9262_v37 = vadd.f32 %v16967_v17, %v9198_v23  ;;  %v9325_v36 = vmax.f32 %v9261_v18, 0.0 }
 0x4dd   :  { %v9324_v14 = vmax.f32 %v9260_v27, 0.0 }
 0x4de   :  { %v9326_v25 = vmax.f32 %v9262_v37, 0.0 }
 0x4df   :  { %v9378_v51 = vmax.f32 %v9322_v35, %v9324_v14  ;;  %v12397_v30 = vpop.f32.mrb[128].mxu1 }
 0x4e0   :  { %v9200_v62 = vmax.f32 %v12103_v47, %v12397_v30  ;;  %v8880_v12 = vpop.f32.mrb[129].mxu1 }
 0x4e1   :  { %v12107_v42 = vpop.f32.mrb[132].mxu0  ;;  %v10672_v9 = vpack.c.bf16 %v9378_v51, %v9378_v51  ;;  %v12398_v60 = vpop.f32.mrb[130].mxu1 }
 0x4e2   :  { %v7188_v31 = vpop.f32.mrb[133].mxu0  ;;  %v9264_v5 = vadd.f32 %v16967_v17, %v9200_v62  ;;  %v8882_v53 = vpop.f32.mrb[131].mxu1 }
 0x4e3   :  { %v12108_v61 = vpop.f32.mrb[134].mxu0  ;;  %10608 = vst.msk [vmem:[%s17165_s4 + $0xa4] sm:$0xf] %vm4768_vm3, %v10672_v9  ;;  %v9199_v29 = vmax.f32 %v7176_v41, %v8882_v53 }
 0x4e4   :  { %v7191_v1 = vpop.f32.mrb[135].mxu0  ;;  %v9328_v26 = vmax.f32 %v9264_v5, 0.0 }
 0x4e5   :  { %v9263_v10 = vadd.f32 %v16967_v17, %v9199_v29 }
 0x4e6   :  { %v9380_v40 = vmax.f32 %v9326_v25, %v9328_v26 }
 0x4e7   :  { %v9327_v3 = vmax.f32 %v9263_v10, 0.0  ;;  %v12401_v54 = vpop.f32.mrb[132].mxu1 }
 0x4e8   :  { %v10674_v28 = vpack.c.bf16 %v9380_v40, %v9380_v40  ;;  %v8894_v55 = vpop.f32.mrb[133].mxu1 }
 0x4e9   :  { %v12111_v56 = vpop.f32.mrb[136].mxu0  ;;  %v9379_v7 = vmax.f32 %v9325_v36, %v9327_v3  ;;  %v9201_v46 = vmax.f32 %v7188_v31, %v8894_v55  ;;  %v12402_v24 = vpop.f32.mrb[134].mxu1 }
 0x4ea   :  { %v7203_v19 = vpop.f32.mrb[137].mxu0  ;;  %10610 = vst.msk [vmem:[%s17165_s4 + $0xac] sm:$0xf] %vm4768_vm3, %v10674_v28  ;;  %v9203_v8 = vmax.f32 %v12108_v61, %v12402_v24  ;;  %v8897_v44 = vpop.f32.mrb[135].mxu1 }
 0x4eb   :  { %v12112_v4 = vpop.f32.mrb[138].mxu0  ;;  %v10673_v20 = vpack.c.bf16 %v9379_v7, %v9379_v7  ;;  %v9265_v63 = vadd.f32 %v16967_v17, %v9201_v46  ;;  %v9202_v33 = vmax.f32 %v7191_v1, %v8897_v44 }
 0x4ec   :  { %v7206_v16 = vpop.f32.mrb[139].mxu0  ;;  %v9267_v39 = vadd.f32 %v16967_v17, %v9203_v8 }
 0x4ed   :  { %10609 = vst.msk [vmem:[%s17165_s4 + $0xa8] sm:$0xf] %vm4768_vm3, %v10673_v20  ;;  %v9329_v15 = vmax.f32 %v9265_v63, 0.0  ;;  %v9266_v47 = vadd.f32 %v16967_v17, %v9202_v33 }
 0x4ee   :  { %v9331_v48 = vmax.f32 %v9267_v39, 0.0 }
 0x4ef   :  { %v12405_v45 = vpop.f32.mrb[136].mxu1  ;;  %v9330_v6 = vmax.f32 %v9266_v47, 0.0 }
 0x4f0   :  { %v9381_v49 = vmax.f32 %v9329_v15, %v9331_v48  ;;  %v9205_v34 = vmax.f32 %v12111_v56, %v12405_v45  ;;  %v8909_v58 = vpop.f32.mrb[137].mxu1 }
 0x4f1   :  { %v12115_v38 = vpop.f32.mrb[140].mxu0  ;;  %v9204_v52 = vmax.f32 %v7203_v19, %v8909_v58  ;;  %v12406_v11 = vpop.f32.mrb[138].mxu1 }
 0x4f2   :  { %v7218_v13 = vpop.f32.mrb[141].mxu0  ;;  %v10675_v32 = vpack.c.bf16 %v9381_v49, %v9381_v49  ;;  %v9206_v22 = vmax.f32 %v12112_v4, %v12406_v11  ;;  %v8912_v21 = vpop.f32.mrb[139].mxu1  ;;  %v9269_v12 = vadd.f32 %v16967_v17, %v9205_v34 }
 0x4f3   :  { %v12116_v0 = vpop.f32.mrb[142].mxu0  ;;  %v9268_v59 = vadd.f32 %v16967_v17, %v9204_v52 }
 0x4f4   :  { %v7220_v50 = vpop.f32.mrb[143].mxu0  ;;  %10611 = vst.msk [vmem:[%s17165_s4 + $0xb0] sm:$0xf] %vm4768_vm3, %v10675_v32  ;;  %v9270_v27 = vadd.f32 %v16967_v17, %v9206_v22  ;;  %v9333_v18 = vmax.f32 %v9269_v12, 0.0 }
 0x4f5   :  { %v9332_v2 = vmax.f32 %v9268_v59, 0.0 }
 0x4f6   :  { %v9334_v9 = vmax.f32 %v9270_v27, 0.0 }
 0x4f7   :  { %v9382_v43 = vmax.f32 %v9330_v6, %v9332_v2  ;;  %v12409_v23 = vpop.f32.mrb[140].mxu1 }
 0x4f8   :  { %v9208_v35 = vmax.f32 %v12115_v38, %v12409_v23  ;;  %v8924_v14 = vpop.f32.mrb[141].mxu1 }
 0x4f9   :  { %v12119_v41 = vpop.f32.mrb[144].mxu0  ;;  %v10676_v51 = vpack.c.bf16 %v9382_v43, %v9382_v43  ;;  %v12410_v30 = vpop.f32.mrb[142].mxu1 }
 0x4fa   :  { %v7232_v57 = vpop.f32.mrb[145].mxu0  ;;  %v9272_v37 = vadd.f32 %v16967_v17, %v9208_v35  ;;  %v8926_v62 = vpop.f32.mrb[143].mxu1 }
 0x4fb   :  { %v12120_v42 = vpop.f32.mrb[146].mxu0  ;;  %10612 = vst.msk [vmem:[%s17165_s4 + $0xb4] sm:$0xf] %vm4768_vm3, %v10676_v51  ;;  %v9207_v61 = vmax.f32 %v7220_v50, %v8926_v62 }
 0x4fc   :  { %v7235_v31 = vpop.f32.mrb[147].mxu0  ;;  %v9336_v60 = vmax.f32 %v9272_v37, 0.0 }
 0x4fd   :  { %v9271_v1 = vadd.f32 %v16967_v17, %v9207_v61 }
 0x4fe   :  { %v9384_v5 = vmax.f32 %v9334_v9, %v9336_v60 }
 0x4ff   :  { %v9335_v29 = vmax.f32 %v9271_v1, 0.0  ;;  %v12413_v25 = vpop.f32.mrb[144].mxu1 }
 0x500   :  { %v10678_v10 = vpack.c.bf16 %v9384_v5, %v9384_v5  ;;  %v8938_v40 = vpop.f32.mrb[145].mxu1 }
 0x501   :  { %v12123_v53 = vpop.f32.mrb[148].mxu0  ;;  %v9383_v36 = vmax.f32 %v9333_v18, %v9335_v29  ;;  %v9209_v3 = vmax.f32 %v7232_v57, %v8938_v40  ;;  %v12414_v54 = vpop.f32.mrb[146].mxu1 }
 0x502   :  { %v7247_v26 = vpop.f32.mrb[149].mxu0  ;;  %10614 = vst.msk [vmem:[%s17165_s4 + $0xbc] sm:$0xf] %vm4768_vm3, %v10678_v10  ;;  %v9211_v28 = vmax.f32 %v12120_v42, %v12414_v54  ;;  %v8941_v55 = vpop.f32.mrb[147].mxu1 }
 0x503   :  { %v12124_v56 = vpop.f32.mrb[150].mxu0  ;;  %v10677_v4 = vpack.c.bf16 %v9383_v36, %v9383_v36  ;;  %v9273_v7 = vadd.f32 %v16967_v17, %v9209_v3  ;;  %v9210_v46 = vmax.f32 %v7235_v31, %v8941_v55 }
 0x504   :  { %v7250_v19 = vpop.f32.mrb[151].mxu0  ;;  %v9275_v24 = vadd.f32 %v16967_v17, %v9211_v28 }
 0x505   :  { %10613 = vst.msk [vmem:[%s17165_s4 + $0xb8] sm:$0xf] %vm4768_vm3, %v10677_v4  ;;  %v9337_v16 = vmax.f32 %v9273_v7, 0.0  ;;  %v9274_v38 = vadd.f32 %v16967_v17, %v9210_v46 }
 0x506   :  { %v9339_v8 = vmax.f32 %v9275_v24, 0.0 }
 0x507   :  { %v12417_v20 = vpop.f32.mrb[148].mxu1  ;;  %v9338_v52 = vmax.f32 %v9274_v38, 0.0 }
 0x508   :  { %v9385_v33 = vmax.f32 %v9337_v16, %v9339_v8  ;;  %v9213_v39 = vmax.f32 %v12123_v53, %v12417_v20  ;;  %v8953_v15 = vpop.f32.mrb[149].mxu1 }
 0x509   :  { %v12127_v44 = vpop.f32.mrb[152].mxu0  ;;  %v9212_v45 = vmax.f32 %v7247_v26, %v8953_v15  ;;  %v12418_v13 = vpop.f32.mrb[150].mxu1 }
 0x50a   :  { %v7262_v63 = vpop.f32.mrb[153].mxu0  ;;  %v10679_v34 = vpack.c.bf16 %v9385_v33, %v9385_v33  ;;  %v9214_v58 = vmax.f32 %v12124_v56, %v12418_v13  ;;  %v8956_v0 = vpop.f32.mrb[151].mxu1  ;;  %v9277_v14 = vadd.f32 %v16967_v17, %v9213_v39 }
 0x50b   :  { %v12128_v48 = vpop.f32.mrb[154].mxu0  ;;  %v9276_v47 = vadd.f32 %v16967_v17, %v9212_v45 }
 0x50c   :  { %v7264_v49 = vpop.f32.mrb[155].mxu0  ;;  %10615 = vst.msk [vmem:[%s17165_s4 + $0xc0] sm:$0xf] %vm4768_vm3, %v10679_v34  ;;  %v9278_v59 = vadd.f32 %v16967_v17, %v9214_v58  ;;  %v9341_v12 = vmax.f32 %v9277_v14, 0.0 }
 0x50d   :  { %v9340_v11 = vmax.f32 %v9276_v47, 0.0 }
 0x50e   :  { %v9342_v51 = vmax.f32 %v9278_v59, 0.0 }
 0x50f   :  { %v9386_v32 = vmax.f32 %v9338_v52, %v9340_v11  ;;  %v12421_v22 = vpop.f32.mrb[152].mxu1 }
 0x510   :  { %v9216_v6 = vmax.f32 %v12127_v44, %v12421_v22  ;;  %v8968_v2 = vpop.f32.mrb[153].mxu1 }
 0x511   :  { %v12131_v50 = vpop.f32.mrb[156].mxu0  ;;  %v10680_v43 = vpack.c.bf16 %v9386_v32, %v9386_v32  ;;  %v12422_v23 = vpop.f32.mrb[154].mxu1 }
 0x512   :  { %v7276_v21 = vpop.f32.mrb[157].mxu0  ;;  %v9280_v27 = vadd.f32 %v16967_v17, %v9216_v6  ;;  %v8970_v35 = vpop.f32.mrb[155].mxu1 }
 0x513   :  { %v12132_v41 = vpop.f32.mrb[158].mxu0  ;;  %10616 = vst.msk [vmem:[%s17165_s4 + $0xc4] sm:$0xf] %vm4768_vm3, %v10680_v43  ;;  %v9215_v42 = vmax.f32 %v7264_v49, %v8970_v35 }
 0x514   :  { %v7279_v57 = vpop.f32.mrb[159].mxu0  ;;  %v9344_v30 = vmax.f32 %v9280_v27, 0.0 }
 0x515   :  { %v9279_v31 = vadd.f32 %v16967_v17, %v9215_v42 }
 0x516   :  { %v9388_v37 = vmax.f32 %v9342_v51, %v9344_v30 }
 0x517   :  { %v9343_v61 = vmax.f32 %v9279_v31, 0.0  ;;  %v12425_v9 = vpop.f32.mrb[156].mxu1 }
 0x518   :  { %v10682_v1 = vpack.c.bf16 %v9388_v37, %v9388_v37  ;;  %v8982_v5 = vpop.f32.mrb[157].mxu1 }
 0x519   :  { %v12135_v62 = vpop.f32.mrb[160].mxu0  ;;  %v9387_v18 = vmax.f32 %v9341_v12, %v9343_v61  ;;  %v9217_v29 = vmax.f32 %v7276_v21, %v8982_v5  ;;  %v12426_v25 = vpop.f32.mrb[158].mxu1 }
 0x51a   :  { %v7291_v60 = vpop.f32.mrb[161].mxu0  ;;  %10618 = vst.msk [vmem:[%s17165_s4 + $0xcc] sm:$0xf] %vm4768_vm3, %v10682_v1  ;;  %v9219_v10 = vmax.f32 %v12132_v41, %v12426_v25  ;;  %v8985_v40 = vpop.f32.mrb[159].mxu1 }
 0x51b   :  { %v12136_v53 = vpop.f32.mrb[162].mxu0  ;;  %v10681_v56 = vpack.c.bf16 %v9387_v18, %v9387_v18  ;;  %v9281_v36 = vadd.f32 %v16967_v17, %v9217_v29  ;;  %v9218_v3 = vmax.f32 %v7279_v57, %v8985_v40 }
 0x51c   :  { %v7294_v26 = vpop.f32.mrb[163].mxu0  ;;  %v9283_v54 = vadd.f32 %v16967_v17, %v9219_v10 }
 0x51d   :  { %10617 = vst.msk [vmem:[%s17165_s4 + $0xc8] sm:$0xf] %vm4768_vm3, %v10681_v56  ;;  %v9345_v19 = vmax.f32 %v9281_v36, 0.0  ;;  %v9282_v44 = vadd.f32 %v16967_v17, %v9218_v3 }
 0x51e   :  { %v9347_v28 = vmax.f32 %v9283_v54, 0.0 }
 0x51f   :  { %v12429_v4 = vpop.f32.mrb[160].mxu1  ;;  %v9346_v45 = vmax.f32 %v9282_v44, 0.0 }
 0x520   :  { %v9389_v46 = vmax.f32 %v9345_v19, %v9347_v28  ;;  %v9221_v24 = vmax.f32 %v12135_v62, %v12429_v4  ;;  %v8997_v16 = vpop.f32.mrb[161].mxu1 }
 0x521   :  { %v12139_v55 = vpop.f32.mrb[164].mxu0  ;;  %v9220_v20 = vmax.f32 %v7291_v60, %v8997_v16  ;;  %v12430_v63 = vpop.f32.mrb[162].mxu1 }
 0x522   :  { %v7306_v7 = vpop.f32.mrb[165].mxu0  ;;  %v10683_v39 = vpack.c.bf16 %v9389_v46, %v9389_v46  ;;  %v9222_v15 = vmax.f32 %v12136_v53, %v12430_v63  ;;  %v9000_v48 = vpop.f32.mrb[163].mxu1  ;;  %v9285_v2 = vadd.f32 %v16967_v17, %v9221_v24 }
 0x523   :  { %v12140_v8 = vpop.f32.mrb[166].mxu0  ;;  %v9284_v38 = vadd.f32 %v16967_v17, %v9220_v20 }
 0x524   :  { %v7308_v33 = vpop.f32.mrb[167].mxu0  ;;  %10619 = vst.msk [vmem:[%s17165_s4 + $0xd0] sm:$0xf] %vm4768_vm3, %v10683_v39  ;;  %v9286_v47 = vadd.f32 %v16967_v17, %v9222_v15  ;;  %v9349_v14 = vmax.f32 %v9285_v2, 0.0 }
 0x525   :  { %v9348_v13 = vmax.f32 %v9284_v38, 0.0 }
 0x526   :  { %v9350_v43 = vmax.f32 %v9286_v47, 0.0 }
 0x527   :  { %v9390_v34 = vmax.f32 %v9346_v45, %v9348_v13  ;;  %v12433_v58 = vpop.f32.mrb[164].mxu1 }
 0x528   :  { %v9224_v52 = vmax.f32 %v12139_v55, %v12433_v58  ;;  %v9012_v11 = vpop.f32.mrb[165].mxu1 }
 0x529   :  { %v12143_v49 = vpop.f32.mrb[168].mxu0  ;;  %v10684_v32 = vpack.c.bf16 %v9390_v34, %v9390_v34  ;;  %v12434_v22 = vpop.f32.mrb[166].mxu1 }
 0x52a   :  { %v7320_v0 = vpop.f32.mrb[169].mxu0  ;;  %v9288_v59 = vadd.f32 %v16967_v17, %v9224_v52  ;;  %v9014_v6 = vpop.f32.mrb[167].mxu1 }
 0x52b   :  { %v12144_v50 = vpop.f32.mrb[170].mxu0  ;;  %10620 = vst.msk [vmem:[%s17165_s4 + $0xd4] sm:$0xf] %vm4768_vm3, %v10684_v32  ;;  %v9223_v41 = vmax.f32 %v7308_v33, %v9014_v6 }
 0x52c   :  { %v7323_v21 = vpop.f32.mrb[171].mxu0  ;;  %v9352_v23 = vmax.f32 %v9288_v59, 0.0 }
 0x52d   :  { %v9287_v57 = vadd.f32 %v16967_v17, %v9223_v41 }
 0x52e   :  { %v9392_v27 = vmax.f32 %v9350_v43, %v9352_v23 }
 0x52f   :  { %v9351_v42 = vmax.f32 %v9287_v57, 0.0  ;;  %v12437_v51 = vpop.f32.mrb[168].mxu1 }
 0x530   :  { %v10686_v31 = vpack.c.bf16 %v9392_v27, %v9392_v27  ;;  %v9026_v37 = vpop.f32.mrb[169].mxu1 }
 0x531   :  { %v12147_v35 = vpop.f32.mrb[172].mxu0  ;;  %v9391_v12 = vmax.f32 %v9349_v14, %v9351_v42  ;;  %v9225_v61 = vmax.f32 %v7320_v0, %v9026_v37  ;;  %v12438_v9 = vpop.f32.mrb[170].mxu1 }
 0x532   :  { %v7335_v30 = vpop.f32.mrb[173].mxu0  ;;  %10622 = vst.msk [vmem:[%s17165_s4 + $0xdc] sm:$0xf] %vm4768_vm3, %v10686_v31  ;;  %v9227_v1 = vmax.f32 %v12144_v50, %v12438_v9  ;;  %v9029_v5 = vpop.f32.mrb[171].mxu1 }
 0x533   :  { %v12148_v62 = vpop.f32.mrb[174].mxu0  ;;  %v10685_v53 = vpack.c.bf16 %v9391_v12, %v9391_v12  ;;  %v9289_v18 = vadd.f32 %v16967_v17, %v9225_v61  ;;  %v9226_v29 = vmax.f32 %v7323_v21, %v9029_v5 }
 0x534   :  { %v7338_v60 = vpop.f32.mrb[175].mxu0  ;;  %v9291_v25 = vadd.f32 %v16967_v17, %v9227_v1 }
 0x535   :  { %10621 = vst.msk [vmem:[%s17165_s4 + $0xd8] sm:$0xf] %vm4768_vm3, %v10685_v53  ;;  %v9353_v26 = vmax.f32 %v9289_v18, 0.0  ;;  %v9290_v55 = vadd.f32 %v16967_v17, %v9226_v29 }
 0x536   :  { %v9355_v10 = vmax.f32 %v9291_v25, 0.0 }
 0x537   :  { %v12441_v56 = vpop.f32.mrb[172].mxu1  ;;  %v9354_v20 = vmax.f32 %v9290_v55, 0.0 }
 0x538   :  { %v9393_v3 = vmax.f32 %v9353_v26, %v9355_v10  ;;  %v9229_v54 = vmax.f32 %v12147_v35, %v12441_v56  ;;  %v9041_v19 = vpop.f32.mrb[173].mxu1 }
 0x539   :  { %v12151_v40 = vpop.f32.mrb[176].mxu0  ;;  %v9228_v4 = vmax.f32 %v7335_v30, %v9041_v19  ;;  %v12442_v7 = vpop.f32.mrb[174].mxu1 }
 0x53a   :  { %v7350_v36 = vpop.f32.mrb[177].mxu0  ;;  %v10687_v24 = vpack.c.bf16 %v9393_v3, %v9393_v3  ;;  %v9230_v16 = vmax.f32 %v12148_v62, %v12442_v7  ;;  %v9044_v8 = vpop.f32.mrb[175].mxu1  ;;  %v9293_v11 = vadd.f32 %v16967_v17, %v9229_v54 }
 0x53b   :  { %v12152_v28 = vpop.f32.mrb[178].mxu0  ;;  %v9292_v44 = vadd.f32 %v16967_v17, %v9228_v4 }
 0x53c   :  { %v7352_v46 = vpop.f32.mrb[179].mxu0  ;;  %10623 = vst.msk [vmem:[%s17165_s4 + $0xe0] sm:$0xf] %vm4768_vm3, %v10687_v24  ;;  %v9294_v38 = vadd.f32 %v16967_v17, %v9230_v16  ;;  %v9357_v2 = vmax.f32 %v9293_v11, 0.0 }
 0x53d   :  { %v9356_v63 = vmax.f32 %v9292_v44, 0.0 }
 0x53e   :  { %v9358_v32 = vmax.f32 %v9294_v38, 0.0 }
 0x53f   :  { %v9394_v39 = vmax.f32 %v9354_v20, %v9356_v63  ;;  %v12445_v15 = vpop.f32.mrb[176].mxu1 }
 0x540   :  { %v9232_v45 = vmax.f32 %v12151_v40, %v12445_v15  ;;  %v9056_v13 = vpop.f32.mrb[177].mxu1 }
 0x541   :  { %v12155_v33 = vpop.f32.mrb[180].mxu0  ;;  %v10688_v34 = vpack.c.bf16 %v9394_v39, %v9394_v39  ;;  %v12446_v58 = vpop.f32.mrb[178].mxu1 }
 0x542   :  { %v7364_v48 = vpop.f32.mrb[181].mxu0  ;;  %v9296_v47 = vadd.f32 %v16967_v17, %v9232_v45  ;;  %v9058_v52 = vpop.f32.mrb[179].mxu1 }
 0x543   :  { %v12156_v49 = vpop.f32.mrb[182].mxu0  ;;  %10624 = vst.msk [vmem:[%s17165_s4 + $0xe4] sm:$0xf] %vm4768_vm3, %v10688_v34  ;;  %v9231_v50 = vmax.f32 %v7352_v46, %v9058_v52 }
 0x544   :  { %v7367_v0 = vpop.f32.mrb[183].mxu0  ;;  %v9360_v22 = vmax.f32 %v9296_v47, 0.0 }
 0x545   :  { %v9295_v21 = vadd.f32 %v16967_v17, %v9231_v50 }
 0x546   :  { %v9396_v59 = vmax.f32 %v9358_v32, %v9360_v22 }
 0x547   :  { %v9359_v41 = vmax.f32 %v9295_v21, 0.0  ;;  %v12449_v43 = vpop.f32.mrb[180].mxu1 }
 0x548   :  { %v10690_v57 = vpack.c.bf16 %v9396_v59, %v9396_v59  ;;  %v9070_v27 = vpop.f32.mrb[181].mxu1 }
 0x549   :  { %v12159_v6 = vpop.f32.mrb[184].mxu0  ;;  %v9395_v14 = vmax.f32 %v9357_v2, %v9359_v41  ;;  %v9233_v42 = vmax.f32 %v7364_v48, %v9070_v27  ;;  %v12450_v51 = vpop.f32.mrb[182].mxu1 }
 0x54a   :  { %v7379_v23 = vpop.f32.mrb[185].mxu0  ;;  %10626 = vst.msk [vmem:[%s17165_s4 + $0xec] sm:$0xf] %vm4768_vm3, %v10690_v57  ;;  %v9235_v31 = vmax.f32 %v12156_v49, %v12450_v51  ;;  %v9073_v37 = vpop.f32.mrb[183].mxu1 }
 0x54b   :  { %v12160_v35 = vpop.f32.mrb[186].mxu0  ;;  %v10689_v62 = vpack.c.bf16 %v9395_v14, %v9395_v14  ;;  %v9297_v12 = vadd.f32 %v16967_v17, %v9233_v42  ;;  %v9234_v61 = vmax.f32 %v7367_v0, %v9073_v37 }
 0x54c   :  { %v7382_v30 = vpop.f32.mrb[187].mxu0  ;;  %v9299_v9 = vadd.f32 %v16967_v17, %v9235_v31 }
 0x54d   :  { %10625 = vst.msk [vmem:[%s17165_s4 + $0xe8] sm:$0xf] %vm4768_vm3, %v10689_v62  ;;  %v9361_v60 = vmax.f32 %v9297_v12, 0.0  ;;  %v9298_v40 = vadd.f32 %v16967_v17, %v9234_v61 }
 0x54e   :  { %v9363_v1 = vmax.f32 %v9299_v9, 0.0 }
 0x54f   :  { %v12453_v53 = vpop.f32.mrb[184].mxu1  ;;  %v9362_v4 = vmax.f32 %v9298_v40, 0.0 }
 0x550   :  { %v9397_v29 = vmax.f32 %v9361_v60, %v9363_v1  ;;  %v9237_v25 = vmax.f32 %v12159_v6, %v12453_v53  ;;  %v9085_v26 = vpop.f32.mrb[185].mxu1 }
 0x551   :  { %v12163_v5 = vpop.f32.mrb[188].mxu0  ;;  %v9236_v56 = vmax.f32 %v7379_v23, %v9085_v26  ;;  %v12454_v36 = vpop.f32.mrb[186].mxu1 }
 0x552   :  { %v7394_v18 = vpop.f32.mrb[189].mxu0  ;;  %v10691_v54 = vpack.c.bf16 %v9397_v29, %v9397_v29  ;;  %v9238_v19 = vmax.f32 %v12160_v35, %v12454_v36  ;;  %v9088_v28 = vpop.f32.mrb[187].mxu1  ;;  %v9301_v15 = vadd.f32 %v16967_v17, %v9237_v25 }
 0x553   :  { %v12164_v10 = vpop.f32.mrb[190].mxu0  ;;  %v9300_v55 = vadd.f32 %v16967_v17, %v9236_v56 }
 0x554   :  { %v7396_v3 = vpop.f32.mrb[191].mxu0  ;;  %10627 = vst.msk [vmem:[%s17165_s4 + $0xf0] sm:$0xf] %vm4768_vm3, %v10691_v54  ;;  %v9302_v16 = vadd.f32 %v16967_v17, %v9238_v19  ;;  %v9365_v34 = vmax.f32 %v9301_v15, 0.0 }
 0x555   :  { %v9364_v7 = vmax.f32 %v9300_v55, 0.0 }
 0x556   :  { %v9366_v38 = vmax.f32 %v9302_v16, 0.0 }
 0x557   :  { %v9398_v46 = vmax.f32 %v9362_v4, %v9364_v7  ;;  %v12457_v24 = vpop.f32.mrb[188].mxu1 }
 0x558   :  { %v9240_v8 = vmax.f32 %v12163_v5, %v12457_v24  ;;  %v9100_v44 = vpop.f32.mrb[189].mxu1 }
 0x559   :  { %v10692_v20 = vpack.c.bf16 %v9398_v46, %v9398_v46  ;;  %v12458_v63 = vpop.f32.mrb[190].mxu1 }
 0x55a   :  { %v9304_v33 = vadd.f32 %v16967_v17, %v9240_v8  ;;  %v9102_v39 = vpop.f32.mrb[191].mxu1 }
 0x55b   :  { %10628 = vst.msk [vmem:[%s17165_s4 + $0xf4] sm:$0xf] %vm4768_vm3, %v10692_v20  ;;  %v9239_v48 = vmax.f32 %v7396_v3, %v9102_v39 }
 0x55c   :  { %v9368_v45 = vmax.f32 %v9304_v33, 0.0 }
 0x55d   :  { %v9303_v13 = vadd.f32 %v16967_v17, %v9239_v48 }
 0x55e   :  { %v9400_v49 = vmax.f32 %v9366_v38, %v9368_v45 }
 0x55f   :  { %v9367_v58 = vmax.f32 %v9303_v13, 0.0 }
 0x560   :  { %v10694_v0 = vpack.c.bf16 %v9400_v49, %v9400_v49 }
 0x561   :  { %v9399_v47 = vmax.f32 %v9365_v34, %v9367_v58 }
 0x562   :  { %10630 = vst.msk [vmem:[%s17165_s4 + $0xfc] sm:$0xf] %vm4768_vm3, %v10694_v0 }
 0x563   :  { %v10693_v52 = vpack.c.bf16 %v9399_v47, %v9399_v47 }
 0x565   :  { %10629 = vst.msk [vmem:[%s17165_s4 + $0xf8] sm:$0xf] %vm4768_vm3, %v10693_v52 }

</bundles_post_ra>
